<compile_context>
chip_gen: v7x
topology: tpu7x:2x2x1
jax: 0.10.0
libtpu: 0.0.40
codegen_flags: <defaults>
</compile_context>

<pallas_src>
import functools
import math

import jax
import jax.numpy as jnp
from jax.experimental import pallas as pl
from jax.experimental.pallas import tpu as pltpu


# ---------------------------------------------------------------------------
# tuning helpers
# ---------------------------------------------------------------------------
def _round_up(x, m):
    return ((x + m - 1) // m) * m


def _tpu_tuning():
    """Per-generation knobs: scoped-VMEM limit and softmax intermediate dtype."""
    kind = ""
    try:
        kind = jax.devices()[0].device_kind.lower()
    except Exception:
        pass
    old_gen = any(s in kind for s in ("v2", "v3", "v4", "v5"))
    if old_gen or "v6" in kind:
        vmem_limit = 96 * 1024 * 1024        # 128 MiB physical VMEM on v5e/v6e
    else:
        vmem_limit = 48 * 1024 * 1024        # v7x: 64 MiB physical per TensorCore
    # v5e and older have no bf16 VPU/EUP -> keep softmax intermediates in f32.
    softmax_dtype = jnp.float32 if (old_gen or not kind) else jnp.bfloat16
    return vmem_limit, softmax_dtype


def _pick_head_block(num_heads, t, s, budget_bytes=8 * 1024 * 1024):
    """Largest divisor of H whose per-group logits+probs stay under budget."""
    hb = num_heads
    while hb > 1 and t * hb * s * s * 8 > budget_bytes:
        hb -= 1
        while num_heads % hb:
            hb -= 1
    return max(hb, 1)


def _pick_t_block(n_res, n_seq, c_m, hdp, vmem_limit, requested=None):
    """MSA columns per grid step (multiple of 8 for the sublane constraint)."""
    if requested is not None:
        t = _round_up(max(int(requested), 1), 8)
    else:
        # rough bytes per column: in/out blocks (double buffered, f32) + LN /
        # residual copies + fused projection + gate/attention outputs + one
        # head-row of logits/probs.
        per_col = n_seq * (16 * c_m + 12 * c_m + 16 * hdp + 12 * hdp) \
            + n_seq * n_seq * 8
        t = 8
        while t * 2 <= 128:
            if (t * 2) * per_col > vmem_limit // 2:
                break
            t *= 2
    return min(t, _round_up(n_res, 8))


# ---------------------------------------------------------------------------
# kernel
# ---------------------------------------------------------------------------
def _msa_col_attn_kernel(m_ref, mask_ref,
                         ln_w_ref, ln_b_ref,
                         wqkvg_ref, bg_ref, wo_ref, bo_ref,
                         out_ref,
                         *, num_heads, d_pad, head_block, inf, eps,
                         softmax_dtype):
    _, S, T, c_m = m_ref.shape
    H, Dp, hb = num_heads, d_pad, head_block
    HDp = H * Dp
    n_grp = H // hb

    # ---- (N_seq, column) exchange: gather T columns into (t, s)-major rows.
    # The HBM->VMEM DMA stays a contiguous natural-layout slab; this exchange
    # is T strided in-VMEM copies instead of a full extra HBM pass on host.
    xf = jnp.concatenate([m_ref[0, :, t, :] for t in range(T)], axis=0)  # [T*S, c_m]

    # ---- LayerNorm over c_m (f32) ----
    mu = jnp.mean(xf, axis=-1, keepdims=True)
    var = jnp.mean((xf - mu) ** 2, axis=-1, keepdims=True)
    xn = (xf - mu) * jax.lax.rsqrt(var + eps)
    xn = xn * ln_w_ref[0] + ln_b_ref[0]

    # ---- fused Q/K/V/gate projection: one bf16 MXU matmul, f32 accumulate.
    # Each HDp slot is zero-padded so the four splits start on 128-lane
    # boundaries; 1/sqrt(D) is already folded into the Q columns.
    proj = jnp.dot(xn.astype(jnp.bfloat16), wqkvg_ref[...],
                   preferred_element_type=jnp.float32)                   # [T*S, 4*HDp]
    gate = jax.nn.sigmoid(proj[:, 3 * HDp:4 * HDp] + bg_ref[0])          # [T*S, HDp]

    # ---- key-mask bias, shared by every head group (batch order = (h, t)) --
    bias = ((mask_ref[0] - 1.0) * inf)[:, None, :]                       # [T, 1, S]
    if hb > 1:
        bias = jnp.concatenate([bias] * hb, axis=0)                      # [hb*T, 1, S]

    def to_batch(cols):                     # [T*S, hb*Dp] -> [hb*T, S, Dp]
        parts = [cols[:, h * Dp:(h + 1) * Dp].reshape(1, T * S, Dp)
                 for h in range(hb)]
        stacked = parts[0] if hb == 1 else jnp.concatenate(parts, axis=0)
        return stacked.reshape(hb * T, S, Dp)

    # ---- head-group loop: one pair of batched MXU contractions per group;
    # only one group's [hb*T, S, S] logits/probs are live at a time.
    o_parts = []
    for grp in range(n_grp):
        lo = grp * hb * Dp
        q = to_batch(proj[:, 0 * HDp + lo:0 * HDp + lo + hb * Dp].astype(jnp.bfloat16))
        k = to_batch(proj[:, 1 * HDp + lo:1 * HDp + lo + hb * Dp].astype(jnp.bfloat16))
        v = to_batch(proj[:, 2 * HDp + lo:2 * HDp + lo + hb * Dp].astype(jnp.bfloat16))

        logits = jnp.einsum("bqd,bkd->bqk", q, k,
                            preferred_element_type=jnp.float32)          # [hb*T, S, S]
        logits = logits + bias
        logits = logits - jnp.max(logits, axis=-1, keepdims=True)
        p = jnp.exp(logits.astype(softmax_dtype))
        denom = jnp.sum(p.astype(jnp.float32), axis=-1, keepdims=True)
        r = pl.reciprocal(denom, approx=True)                            # [hb*T, S, 1]

        pv = jnp.einsum("bqk,bkd->bqd", p.astype(jnp.bfloat16), v,
                        preferred_element_type=jnp.float32)              # [hb*T, S, Dp]
        pv = pv * r                    # softmax normalization AFTER the PV matmul
        pv = pv.reshape(hb, T * S, Dp)
        heads = [pv[h] for h in range(hb)]
        o_parts.append(heads[0] if hb == 1
                       else jnp.concatenate(heads, axis=-1))             # [T*S, hb*Dp]

    o = o_parts[0] if n_grp == 1 else jnp.concatenate(o_parts, axis=-1)  # [T*S, HDp]
    o = o * gate

    out = jnp.dot(o.astype(jnp.bfloat16), wo_ref[...],
                  preferred_element_type=jnp.float32) + bo_ref[0]        # [T*S, c_m]
    res = xf + out                                                       # residual

    # ---- exchange back: scatter the T columns into the natural-layout block.
    for t in range(T):
        out_ref[0, :, t, :] = res[t * S:(t + 1) * S, :]


# ---------------------------------------------------------------------------
# wrapper
# ---------------------------------------------------------------------------
def msa_column_attention(m, mask, params, *, num_heads, c_hidden,
                         inf=1e9, eps=1e-5, t_block=None):
    """m: [B, N_seq, N_res, c_m], mask: [B, N_seq, N_res] -> same shape as m."""
    B, N_seq, N_res, c_m = m.shape
    H, D = num_heads, c_hidden

    # pad the per-head width so H*Dp is a multiple of 128 (lane-aligned splits)
    gcd = math.gcd(H, 128)
    Dp = _round_up(D, 128 // gcd)
    HDp = H * Dp

    vmem_limit, softmax_dtype = _tpu_tuning()
    T = _pick_t_block(N_res, N_seq, c_m, HDp, vmem_limit, t_block)
    N_res_pad = _round_up(N_res, T)
    pad = N_res_pad - N_res
    hb = _pick_head_block(H, T, N_seq)

    m_in = m.astype(jnp.float32)
    mask_t = jnp.swapaxes(mask, -1, -2).astype(jnp.float32)   # [B, N_res, N_seq] (tiny)
    if pad:
        m_in = jnp.pad(m_in, ((0, 0), (0, 0), (0, pad), (0, 0)))
        mask_t = jnp.pad(mask_t, ((0, 0), (0, pad), (0, 0)))  # padded cols fully masked

    # fused, lane-aligned Q/K/V/gate weights (1/sqrt(D) folded into Wq)
    scale = 1.0 / (D ** 0.5)
    def pad_w(w, s=1.0):
        w3 = (w.astype(jnp.float32) * s).reshape(c_m, H, D)
        return jnp.pad(w3, ((0, 0), (0, 0), (0, Dp - D))).reshape(c_m, HDp)
    wqkvg = jnp.concatenate(
        [pad_w(params["wq"], scale), pad_w(params["wk"]),
         pad_w(params["wv"]), pad_w(params["wg"])], axis=1).astype(jnp.bfloat16)
    bg = jnp.pad(params["bg"].astype(jnp.float32).reshape(1, H, D),
                 ((0, 0), (0, 0), (0, Dp - D))).reshape(1, HDp)
    wo = jnp.pad(params["wo"].astype(jnp.float32).reshape(H, D, c_m),
                 ((0, 0), (0, Dp - D), (0, 0))).reshape(HDp, c_m).astype(jnp.bfloat16)

    kernel = functools.partial(_msa_col_attn_kernel, num_heads=H, d_pad=Dp,
                               head_block=hb, inf=inf, eps=eps,
                               softmax_dtype=softmax_dtype)

    m_spec = pl.BlockSpec((1, N_seq, T, c_m), lambda b, j: (b, 0, j, 0))
    mask_spec = pl.BlockSpec((1, T, N_seq), lambda b, j: (b, j, 0))
    full = lambda shape: pl.BlockSpec(shape, lambda b, j: (0,) * len(shape))
    # TODO(synk): weight specs could use pipeline_mode=pl.Buffered(1) to drop the
    # dead second weight buffer on v7x; left at the default to stay conservative.

    out = pl.pallas_call(
        kernel,
        out_shape=jax.ShapeDtypeStruct((B, N_seq, N_res_pad, c_m), jnp.float32),
        grid=(B, N_res_pad // T),
        in_specs=[m_spec, mask_spec,
                  full((1, c_m)), full((1, c_m)),
                  full((c_m, 4 * HDp)), full((1, HDp)),
                  full((HDp, c_m)), full((1, c_m))],
        out_specs=m_spec,
        compiler_params=pltpu.CompilerParams(
            dimension_semantics=("parallel", "parallel"),
            vmem_limit_bytes=vmem_limit),
    )(m_in, mask_t,
      params["ln_w"], params["ln_b"],
      wqkvg, bg, wo, params["bo"])

    if pad:
        out = out[:, :, :N_res, :]
    return out


# ---------------------------------------------------------------------------
# pure-JAX reference (mirrors the PyTorch module forward)
# ---------------------------------------------------------------------------
def _reference(m, mask, params, *, num_heads, c_hidden, inf=1e9, eps=1e-5):
    H, D = num_heads, c_hidden
    x = jnp.swapaxes(m, -2, -3)                      # [B, Nr, S, c_m]
    mk = jnp.swapaxes(mask, -1, -2)                  # [B, Nr, S]

    mu = jnp.mean(x, axis=-1, keepdims=True)
    var = jnp.mean((x - mu) ** 2, axis=-1, keepdims=True)
    xn = (x - mu) * jax.lax.rsqrt(var + eps) * params["ln_w"][0] + params["ln_b"][0]

    q = (xn @ params["wq"]) * (1.0 / D ** 0.5)
    k = xn @ params["wk"]
    v = xn @ params["wv"]
    g = jax.nn.sigmoid(xn @ params["wg"] + params["bg"][0])

    B, Nr, S, _ = xn.shape
    qh = q.reshape(B, Nr, S, H, D)
    kh = k.reshape(B, Nr, S, H, D)
    vh = v.reshape(B, Nr, S, H, D)
    logits = jnp.einsum("brqhd,brkhd->brhqk", qh, kh)
    logits = logits + ((mk - 1.0) * inf)[:, :, None, None, :]
    logits = logits - jnp.max(logits, axis=-1, keepdims=True)
    p = jnp.exp(logits)
    p = p / jnp.sum(p, axis=-1, keepdims=True)
    o = jnp.einsum("brhqk,brkhd->brqhd", p, vh).reshape(B, Nr, S, H * D)
    o = o * g
    out = o @ params["wo"] + params["bo"][0]
    return m + jnp.swapaxes(out, -2, -3)


if __name__ == "__main__":
    B, N_seq, N_res = 2, 8, 16
    c_m, c_hidden, num_heads = 32, 16, 4
    inf = 1e9

    key = jax.random.PRNGKey(0)
    ks = jax.random.split(key, 12)

    m = jax.random.normal(ks[0], (B, N_seq, N_res, c_m), dtype=jnp.float32)
    mask = (jax.random.uniform(ks[1], (B, N_seq, N_res)) > 0.3).astype(jnp.float32)
    mask = mask.at[:, 0, :].set(1.0)  # every column has at least one valid key

    HD = num_heads * c_hidden
    params = {
        "ln_w": jax.random.normal(ks[2], (1, c_m)) * 0.1 + 1.0,
        "ln_b": jax.random.normal(ks[3], (1, c_m)) * 0.1,
        "wq": jax.random.normal(ks[4], (c_m, HD)) * 0.1,
        "wk": jax.random.normal(ks[5], (c_m, HD)) * 0.1,
        "wv": jax.random.normal(ks[6], (c_m, HD)) * 0.1,
        "wg": jax.random.normal(ks[7], (c_m, HD)) * 0.1,
        "bg": jnp.ones((1, HD), jnp.float32),       # gate bias init = 1 (as in module)
        "wo": jax.random.normal(ks[8], (HD, c_m)) * 0.1,
        "bo": jax.random.normal(ks[9], (1, c_m)) * 0.1,
    }
    params = {k_: v.astype(jnp.float32) for k_, v in params.items()}

    out = msa_column_attention(m, mask, params, num_heads=num_heads,
                               c_hidden=c_hidden, inf=inf)
    out = jax.block_until_ready(out)

    ref = _reference(m, mask, params, num_heads=num_heads,
                     c_hidden=c_hidden, inf=inf)
    assert out.shape == (B, N_seq, N_res, c_m)
    # bf16 matmuls / softmax intermediates (f32 accumulation) + approx reciprocal
    assert jnp.allclose(out, ref, atol=3e-2, rtol=3e-2), "mismatch vs reference"

    print("KERNEL_OK")
</pallas_src>

<mosaic_0001>
module attributes {stable_mosaic.version = 11 : i64} {
  func.func @_msa_col_attn_kernel(%arg0: i32, %arg1: i32, %arg2: memref<1x8x16x32xf32, #tpu.memory_space<vmem>>, %arg3: memref<1x16x8xf32, #tpu.memory_space<vmem>>, %arg4: memref<1x32xf32, #tpu.memory_space<vmem>>, %arg5: memref<1x32xf32, #tpu.memory_space<vmem>>, %arg6: memref<32x512xbf16, #tpu.memory_space<vmem>>, %arg7: memref<1x128xf32, #tpu.memory_space<vmem>>, %arg8: memref<128x32xbf16, #tpu.memory_space<vmem>>, %arg9: memref<1x32xf32, #tpu.memory_space<vmem>>, %arg10: memref<1x8x16x32xf32, #tpu.memory_space<vmem>>) attributes {dimension_semantics = [#tpu.dimension_semantics<parallel>, #tpu.dimension_semantics<parallel>], iteration_bounds = array<i64: 2, 1>, scalar_prefetch = 0 : i64, scratch_operands = 0 : i64, tpu.core_type = #tpu.core_type<tc>, window_params = [{transform_indices = @transform_0, window_bounds = array<i64: 1, 8, 16, 32>}, {transform_indices = @transform_1, window_bounds = array<i64: 1, 16, 8>}, {pipeline_mode = #tpu.pipeline_mode<synchronous>, transform_indices = @transform_2, window_bounds = array<i64: 1, 32>}, {pipeline_mode = #tpu.pipeline_mode<synchronous>, transform_indices = @transform_3, window_bounds = array<i64: 1, 32>}, {pipeline_mode = #tpu.pipeline_mode<synchronous>, transform_indices = @transform_4, window_bounds = array<i64: 32, 512>}, {pipeline_mode = #tpu.pipeline_mode<synchronous>, transform_indices = @transform_5, window_bounds = array<i64: 1, 128>}, {pipeline_mode = #tpu.pipeline_mode<synchronous>, transform_indices = @transform_6, window_bounds = array<i64: 128, 32>}, {pipeline_mode = #tpu.pipeline_mode<synchronous>, transform_indices = @transform_7, window_bounds = array<i64: 1, 32>}, {transform_indices = @transform_8, window_bounds = array<i64: 1, 8, 16, 32>}]} {
    %c0 = arith.constant 0 : index
    %c0_0 = arith.constant 0 : index
    %c0_1 = arith.constant 0 : index
    %c0_2 = arith.constant 0 : index
    %0 = vector.load %arg2[%c0, %c0_0, %c0_1, %c0_2] : memref<1x8x16x32xf32, #tpu.memory_space<vmem>>, vector<1x8x1x32xf32>
    %1 = vector.shape_cast %0 : vector<1x8x1x32xf32> to vector<8x32xf32>
    %c0_3 = arith.constant 0 : index
    %c0_4 = arith.constant 0 : index
    %c1 = arith.constant 1 : index
    %c0_5 = arith.constant 0 : index
    %2 = vector.load %arg2[%c0_3, %c0_4, %c1, %c0_5] : memref<1x8x16x32xf32, #tpu.memory_space<vmem>>, vector<1x8x1x32xf32>
    %3 = vector.shape_cast %2 : vector<1x8x1x32xf32> to vector<8x32xf32>
    %c0_6 = arith.constant 0 : index
    %c0_7 = arith.constant 0 : index
    %c2 = arith.constant 2 : index
    %c0_8 = arith.constant 0 : index
    %4 = vector.load %arg2[%c0_6, %c0_7, %c2, %c0_8] : memref<1x8x16x32xf32, #tpu.memory_space<vmem>>, vector<1x8x1x32xf32>
    %5 = vector.shape_cast %4 : vector<1x8x1x32xf32> to vector<8x32xf32>
    %c0_9 = arith.constant 0 : index
    %c0_10 = arith.constant 0 : index
    %c3 = arith.constant 3 : index
    %c0_11 = arith.constant 0 : index
    %6 = vector.load %arg2[%c0_9, %c0_10, %c3, %c0_11] : memref<1x8x16x32xf32, #tpu.memory_space<vmem>>, vector<1x8x1x32xf32>
    %7 = vector.shape_cast %6 : vector<1x8x1x32xf32> to vector<8x32xf32>
    %c0_12 = arith.constant 0 : index
    %c0_13 = arith.constant 0 : index
    %c4 = arith.constant 4 : index
    %c0_14 = arith.constant 0 : index
    %8 = vector.load %arg2[%c0_12, %c0_13, %c4, %c0_14] : memref<1x8x16x32xf32, #tpu.memory_space<vmem>>, vector<1x8x1x32xf32>
    %9 = vector.shape_cast %8 : vector<1x8x1x32xf32> to vector<8x32xf32>
    %c0_15 = arith.constant 0 : index
    %c0_16 = arith.constant 0 : index
    %c5 = arith.constant 5 : index
    %c0_17 = arith.constant 0 : index
    %10 = vector.load %arg2[%c0_15, %c0_16, %c5, %c0_17] : memref<1x8x16x32xf32, #tpu.memory_space<vmem>>, vector<1x8x1x32xf32>
    %11 = vector.shape_cast %10 : vector<1x8x1x32xf32> to vector<8x32xf32>
    %c0_18 = arith.constant 0 : index
    %c0_19 = arith.constant 0 : index
    %c6 = arith.constant 6 : index
    %c0_20 = arith.constant 0 : index
    %12 = vector.load %arg2[%c0_18, %c0_19, %c6, %c0_20] : memref<1x8x16x32xf32, #tpu.memory_space<vmem>>, vector<1x8x1x32xf32>
    %13 = vector.shape_cast %12 : vector<1x8x1x32xf32> to vector<8x32xf32>
    %c0_21 = arith.constant 0 : index
    %c0_22 = arith.constant 0 : index
    %c7 = arith.constant 7 : index
    %c0_23 = arith.constant 0 : index
    %14 = vector.load %arg2[%c0_21, %c0_22, %c7, %c0_23] : memref<1x8x16x32xf32, #tpu.memory_space<vmem>>, vector<1x8x1x32xf32>
    %15 = vector.shape_cast %14 : vector<1x8x1x32xf32> to vector<8x32xf32>
    %c0_24 = arith.constant 0 : index
    %c0_25 = arith.constant 0 : index
    %c8 = arith.constant 8 : index
    %c0_26 = arith.constant 0 : index
    %16 = vector.load %arg2[%c0_24, %c0_25, %c8, %c0_26] : memref<1x8x16x32xf32, #tpu.memory_space<vmem>>, vector<1x8x1x32xf32>
    %17 = vector.shape_cast %16 : vector<1x8x1x32xf32> to vector<8x32xf32>
    %c0_27 = arith.constant 0 : index
    %c0_28 = arith.constant 0 : index
    %c9 = arith.constant 9 : index
    %c0_29 = arith.constant 0 : index
    %18 = vector.load %arg2[%c0_27, %c0_28, %c9, %c0_29] : memref<1x8x16x32xf32, #tpu.memory_space<vmem>>, vector<1x8x1x32xf32>
    %19 = vector.shape_cast %18 : vector<1x8x1x32xf32> to vector<8x32xf32>
    %c0_30 = arith.constant 0 : index
    %c0_31 = arith.constant 0 : index
    %c10 = arith.constant 10 : index
    %c0_32 = arith.constant 0 : index
    %20 = vector.load %arg2[%c0_30, %c0_31, %c10, %c0_32] : memref<1x8x16x32xf32, #tpu.memory_space<vmem>>, vector<1x8x1x32xf32>
    %21 = vector.shape_cast %20 : vector<1x8x1x32xf32> to vector<8x32xf32>
    %c0_33 = arith.constant 0 : index
    %c0_34 = arith.constant 0 : index
    %c11 = arith.constant 11 : index
    %c0_35 = arith.constant 0 : index
    %22 = vector.load %arg2[%c0_33, %c0_34, %c11, %c0_35] : memref<1x8x16x32xf32, #tpu.memory_space<vmem>>, vector<1x8x1x32xf32>
    %23 = vector.shape_cast %22 : vector<1x8x1x32xf32> to vector<8x32xf32>
    %c0_36 = arith.constant 0 : index
    %c0_37 = arith.constant 0 : index
    %c12 = arith.constant 12 : index
    %c0_38 = arith.constant 0 : index
    %24 = vector.load %arg2[%c0_36, %c0_37, %c12, %c0_38] : memref<1x8x16x32xf32, #tpu.memory_space<vmem>>, vector<1x8x1x32xf32>
    %25 = vector.shape_cast %24 : vector<1x8x1x32xf32> to vector<8x32xf32>
    %c0_39 = arith.constant 0 : index
    %c0_40 = arith.constant 0 : index
    %c13 = arith.constant 13 : index
    %c0_41 = arith.constant 0 : index
    %26 = vector.load %arg2[%c0_39, %c0_40, %c13, %c0_41] : memref<1x8x16x32xf32, #tpu.memory_space<vmem>>, vector<1x8x1x32xf32>
    %27 = vector.shape_cast %26 : vector<1x8x1x32xf32> to vector<8x32xf32>
    %c0_42 = arith.constant 0 : index
    %c0_43 = arith.constant 0 : index
    %c14 = arith.constant 14 : index
    %c0_44 = arith.constant 0 : index
    %28 = vector.load %arg2[%c0_42, %c0_43, %c14, %c0_44] : memref<1x8x16x32xf32, #tpu.memory_space<vmem>>, vector<1x8x1x32xf32>
    %29 = vector.shape_cast %28 : vector<1x8x1x32xf32> to vector<8x32xf32>
    %c0_45 = arith.constant 0 : index
    %c0_46 = arith.constant 0 : index
    %c15 = arith.constant 15 : index
    %c0_47 = arith.constant 0 : index
    %30 = vector.load %arg2[%c0_45, %c0_46, %c15, %c0_47] : memref<1x8x16x32xf32, #tpu.memory_space<vmem>>, vector<1x8x1x32xf32>
    %31 = vector.shape_cast %30 : vector<1x8x1x32xf32> to vector<8x32xf32>
    %32 = tpu.concatenate %1, %3, %5, %7, %9, %11, %13, %15, %17, %19, %21, %23, %25, %27, %29, %31 in 0 : vector<8x32xf32>, vector<8x32xf32>, vector<8x32xf32>, vector<8x32xf32>, vector<8x32xf32>, vector<8x32xf32>, vector<8x32xf32>, vector<8x32xf32>, vector<8x32xf32>, vector<8x32xf32>, vector<8x32xf32>, vector<8x32xf32>, vector<8x32xf32>, vector<8x32xf32>, vector<8x32xf32>, vector<8x32xf32> -> vector<128x32xf32>
    %cst = arith.constant dense<0.000000e+00> : vector<128xf32>
    %33 = vector.multi_reduction <add>, %32, %cst [1] : vector<128x32xf32> to vector<128xf32>
    %34 = vector.shape_cast %33 : vector<128xf32> to vector<128x1xf32>
    %cst_48 = arith.constant 3.200000e+01 : f32
    %35 = vector.broadcast %cst_48 : f32 to vector<128x1xf32>
    %36 = arith.divf %34, %35 : vector<128x1xf32>
    %37 = vector.broadcast %36 : vector<128x1xf32> to vector<128x32xf32>
    %38 = arith.subf %32, %37 : vector<128x32xf32>
    %39 = arith.mulf %38, %38 : vector<128x32xf32>
    %cst_49 = arith.constant dense<0.000000e+00> : vector<128xf32>
    %40 = vector.multi_reduction <add>, %39, %cst_49 [1] : vector<128x32xf32> to vector<128xf32>
    %41 = vector.shape_cast %40 : vector<128xf32> to vector<128x1xf32>
    %cst_50 = arith.constant 3.200000e+01 : f32
    %42 = vector.broadcast %cst_50 : f32 to vector<128x1xf32>
    %43 = arith.divf %41, %42 : vector<128x1xf32>
    %44 = vector.broadcast %36 : vector<128x1xf32> to vector<128x32xf32>
    %45 = arith.subf %32, %44 : vector<128x32xf32>
    %cst_51 = arith.constant 9.99999974E-6 : f32
    %46 = vector.broadcast %cst_51 : f32 to vector<128x1xf32>
    %47 = arith.addf %43, %46 : vector<128x1xf32>
    %48 = math.rsqrt %47 : vector<128x1xf32>
    %49 = vector.broadcast %48 : vector<128x1xf32> to vector<128x32xf32>
    %50 = arith.mulf %45, %49 : vector<128x32xf32>
    %c0_52 = arith.constant 0 : index
    %c0_53 = arith.constant 0 : index
    %51 = vector.load %arg4[%c0_52, %c0_53] : memref<1x32xf32, #tpu.memory_space<vmem>>, vector<1x32xf32>
    %52 = vector.shape_cast %51 : vector<1x32xf32> to vector<32xf32>
    %53 = vector.shape_cast %52 : vector<32xf32> to vector<1x32xf32>
    %54 = vector.broadcast %53 : vector<1x32xf32> to vector<128x32xf32>
    %55 = arith.mulf %50, %54 : vector<128x32xf32>
    %c0_54 = arith.constant 0 : index
    %c0_55 = arith.constant 0 : index
    %56 = vector.load %arg5[%c0_54, %c0_55] : memref<1x32xf32, #tpu.memory_space<vmem>>, vector<1x32xf32>
    %57 = vector.shape_cast %56 : vector<1x32xf32> to vector<32xf32>
    %58 = vector.shape_cast %57 : vector<32xf32> to vector<1x32xf32>
    %59 = vector.broadcast %58 : vector<1x32xf32> to vector<128x32xf32>
    %60 = arith.addf %55, %59 : vector<128x32xf32>
    %61 = arith.truncf %60 : vector<128x32xf32> to vector<128x32xbf16>
    %c0_56 = arith.constant 0 : index
    %c0_57 = arith.constant 0 : index
    %62 = vector.load %arg6[%c0_56, %c0_57] : memref<32x512xbf16, #tpu.memory_space<vmem>>, vector<32x512xbf16>
    %cst_58 = arith.constant dense<0.000000e+00> : vector<128x512xf32>
    %63 = tpu.matmul %61, %62, %cst_58 {dimension_numbers = #tpu.dot_dimension_numbers<[1], [0], [0], [1], [0, 0, 1, 1], [], []>} : vector<128x32xbf16>, vector<32x512xbf16>, vector<128x512xf32> -> vector<128x512xf32>
    %64 = vector.extract_strided_slice %63 {offsets = [0, 384], sizes = [128, 128], strides = [1, 1]} : vector<128x512xf32> to vector<128x128xf32>
    %c0_59 = arith.constant 0 : index
    %c0_60 = arith.constant 0 : index
    %65 = vector.load %arg7[%c0_59, %c0_60] : memref<1x128xf32, #tpu.memory_space<vmem>>, vector<1x128xf32>
    %66 = vector.shape_cast %65 : vector<1x128xf32> to vector<128xf32>
    %67 = vector.shape_cast %66 : vector<128xf32> to vector<1x128xf32>
    %68 = vector.broadcast %67 : vector<1x128xf32> to vector<128x128xf32>
    %69 = arith.addf %64, %68 : vector<128x128xf32>
    %70 = arith.negf %69 : vector<128x128xf32>
    %71 = math.exp %70 : vector<128x128xf32>
    %cst_61 = arith.constant 1.000000e+00 : f32
    %72 = vector.broadcast %cst_61 : f32 to vector<128x128xf32>
    %73 = arith.addf %72, %71 : vector<128x128xf32>
    %74 = arith.divf %72, %73 : vector<128x128xf32>
    %c0_62 = arith.constant 0 : index
    %c0_63 = arith.constant 0 : index
    %c0_64 = arith.constant 0 : index
    %75 = vector.load %arg3[%c0_62, %c0_63, %c0_64] : memref<1x16x8xf32, #tpu.memory_space<vmem>>, vector<1x16x8xf32>
    %76 = vector.shape_cast %75 : vector<1x16x8xf32> to vector<16x8xf32>
    %cst_65 = arith.constant 1.000000e+00 : f32
    %77 = vector.broadcast %cst_65 : f32 to vector<16x8xf32>
    %78 = arith.subf %76, %77 : vector<16x8xf32>
    %cst_66 = arith.constant 1.000000e+09 : f32
    %79 = vector.broadcast %cst_66 : f32 to vector<16x8xf32>
    %80 = arith.mulf %78, %79 : vector<16x8xf32>
    %81 = vector.shape_cast %80 : vector<16x8xf32> to vector<16x1x8xf32>
    %82 = tpu.concatenate %81, %81, %81, %81 in 0 : vector<16x1x8xf32>, vector<16x1x8xf32>, vector<16x1x8xf32>, vector<16x1x8xf32> -> vector<64x1x8xf32>
    %83 = vector.extract_strided_slice %63 {offsets = [0, 0], sizes = [128, 128], strides = [1, 1]} : vector<128x512xf32> to vector<128x128xf32>
    %84 = arith.truncf %83 : vector<128x128xf32> to vector<128x128xbf16>
    %85 = vector.extract_strided_slice %84 {offsets = [0, 0], sizes = [128, 32], strides = [1, 1]} : vector<128x128xbf16> to vector<128x32xbf16>
    %86 = vector.shape_cast %85 : vector<128x32xbf16> to vector<1x128x32xbf16>
    %87 = vector.extract_strided_slice %84 {offsets = [0, 32], sizes = [128, 32], strides = [1, 1]} : vector<128x128xbf16> to vector<128x32xbf16>
    %88 = vector.shape_cast %87 : vector<128x32xbf16> to vector<1x128x32xbf16>
    %89 = vector.extract_strided_slice %84 {offsets = [0, 64], sizes = [128, 32], strides = [1, 1]} : vector<128x128xbf16> to vector<128x32xbf16>
    %90 = vector.shape_cast %89 : vector<128x32xbf16> to vector<1x128x32xbf16>
    %91 = vector.extract_strided_slice %84 {offsets = [0, 96], sizes = [128, 32], strides = [1, 1]} : vector<128x128xbf16> to vector<128x32xbf16>
    %92 = vector.shape_cast %91 : vector<128x32xbf16> to vector<1x128x32xbf16>
    %93 = tpu.concatenate %86, %88, %90, %92 in 0 : vector<1x128x32xbf16>, vector<1x128x32xbf16>, vector<1x128x32xbf16>, vector<1x128x32xbf16> -> vector<4x128x32xbf16>
    %94 = vector.shape_cast %93 : vector<4x128x32xbf16> to vector<64x8x32xbf16>
    %95 = vector.extract_strided_slice %63 {offsets = [0, 128], sizes = [128, 128], strides = [1, 1]} : vector<128x512xf32> to vector<128x128xf32>
    %96 = arith.truncf %95 : vector<128x128xf32> to vector<128x128xbf16>
    %97 = vector.extract_strided_slice %96 {offsets = [0, 0], sizes = [128, 32], strides = [1, 1]} : vector<128x128xbf16> to vector<128x32xbf16>
    %98 = vector.shape_cast %97 : vector<128x32xbf16> to vector<1x128x32xbf16>
    %99 = vector.extract_strided_slice %96 {offsets = [0, 32], sizes = [128, 32], strides = [1, 1]} : vector<128x128xbf16> to vector<128x32xbf16>
    %100 = vector.shape_cast %99 : vector<128x32xbf16> to vector<1x128x32xbf16>
    %101 = vector.extract_strided_slice %96 {offsets = [0, 64], sizes = [128, 32], strides = [1, 1]} : vector<128x128xbf16> to vector<128x32xbf16>
    %102 = vector.shape_cast %101 : vector<128x32xbf16> to vector<1x128x32xbf16>
    %103 = vector.extract_strided_slice %96 {offsets = [0, 96], sizes = [128, 32], strides = [1, 1]} : vector<128x128xbf16> to vector<128x32xbf16>
    %104 = vector.shape_cast %103 : vector<128x32xbf16> to vector<1x128x32xbf16>
    %105 = tpu.concatenate %98, %100, %102, %104 in 0 : vector<1x128x32xbf16>, vector<1x128x32xbf16>, vector<1x128x32xbf16>, vector<1x128x32xbf16> -> vector<4x128x32xbf16>
    %106 = vector.shape_cast %105 : vector<4x128x32xbf16> to vector<64x8x32xbf16>
    %107 = vector.extract_strided_slice %63 {offsets = [0, 256], sizes = [128, 128], strides = [1, 1]} : vector<128x512xf32> to vector<128x128xf32>
    %108 = arith.truncf %107 : vector<128x128xf32> to vector<128x128xbf16>
    %109 = vector.extract_strided_slice %108 {offsets = [0, 0], sizes = [128, 32], strides = [1, 1]} : vector<128x128xbf16> to vector<128x32xbf16>
    %110 = vector.shape_cast %109 : vector<128x32xbf16> to vector<1x128x32xbf16>
    %111 = vector.extract_strided_slice %108 {offsets = [0, 32], sizes = [128, 32], strides = [1, 1]} : vector<128x128xbf16> to vector<128x32xbf16>
    %112 = vector.shape_cast %111 : vector<128x32xbf16> to vector<1x128x32xbf16>
    %113 = vector.extract_strided_slice %108 {offsets = [0, 64], sizes = [128, 32], strides = [1, 1]} : vector<128x128xbf16> to vector<128x32xbf16>
    %114 = vector.shape_cast %113 : vector<128x32xbf16> to vector<1x128x32xbf16>
    %115 = vector.extract_strided_slice %108 {offsets = [0, 96], sizes = [128, 32], strides = [1, 1]} : vector<128x128xbf16> to vector<128x32xbf16>
    %116 = vector.shape_cast %115 : vector<128x32xbf16> to vector<1x128x32xbf16>
    %117 = tpu.concatenate %110, %112, %114, %116 in 0 : vector<1x128x32xbf16>, vector<1x128x32xbf16>, vector<1x128x32xbf16>, vector<1x128x32xbf16> -> vector<4x128x32xbf16>
    %118 = vector.shape_cast %117 : vector<4x128x32xbf16> to vector<64x8x32xbf16>
    "tpu.trace_start"() <{level = 10 : i32, message = "bqd,bkd->bqk"}> : () -> ()
    %cst_67 = arith.constant dense<0.000000e+00> : vector<64x8x8xf32>
    %119 = tpu.matmul %94, %106, %cst_67 {dimension_numbers = #tpu.dot_dimension_numbers<[2], [2], [1], [1], [0, 0, 0, 1, 1, 1], [0], [0]>} : vector<64x8x32xbf16>, vector<64x8x32xbf16>, vector<64x8x8xf32> -> vector<64x8x8xf32>
    "tpu.trace_stop"() : () -> ()
    %120 = vector.broadcast %82 : vector<64x1x8xf32> to vector<64x8x8xf32>
    %121 = arith.addf %119, %120 : vector<64x8x8xf32>
    %cst_68 = arith.constant dense<0xFF800000> : vector<64x8xf32>
    %122 = vector.multi_reduction <maximumf>, %121, %cst_68 [2] : vector<64x8x8xf32> to vector<64x8xf32>
    %123 = vector.shape_cast %122 : vector<64x8xf32> to vector<64x8x1xf32>
    %124 = vector.broadcast %123 : vector<64x8x1xf32> to vector<64x8x8xf32>
    %125 = arith.subf %121, %124 : vector<64x8x8xf32>
    %126 = arith.truncf %125 : vector<64x8x8xf32> to vector<64x8x8xbf16>
    %127 = math.exp %126 : vector<64x8x8xbf16>
    %128 = arith.extf %127 : vector<64x8x8xbf16> to vector<64x8x8xf32>
    %cst_69 = arith.constant dense<0.000000e+00> : vector<64x8xf32>
    %129 = vector.multi_reduction <add>, %128, %cst_69 [2] : vector<64x8x8xf32> to vector<64x8xf32>
    %130 = vector.shape_cast %129 : vector<64x8xf32> to vector<64x8x1xf32>
    %131 = tpu.reciprocal %130 {approx = true} : vector<64x8x1xf32> -> vector<64x8x1xf32>
    "tpu.trace_start"() <{level = 10 : i32, message = "bqk,bkd->bqd"}> : () -> ()
    %cst_70 = arith.constant dense<0.000000e+00> : vector<64x8x32xf32>
    %132 = tpu.matmul %127, %118, %cst_70 {dimension_numbers = #tpu.dot_dimension_numbers<[2], [1], [1], [2], [0, 0, 0, 1, 1, 2], [0], [0]>} : vector<64x8x8xbf16>, vector<64x8x32xbf16>, vector<64x8x32xf32> -> vector<64x8x32xf32>
    "tpu.trace_stop"() : () -> ()
    %133 = vector.broadcast %131 : vector<64x8x1xf32> to vector<64x8x32xf32>
    %134 = arith.mulf %132, %133 : vector<64x8x32xf32>
    %135 = vector.shape_cast %134 : vector<64x8x32xf32> to vector<4x128x32xf32>
    %136 = vector.extract_strided_slice %135 {offsets = [0, 0, 0], sizes = [1, 128, 32], strides = [1, 1, 1]} : vector<4x128x32xf32> to vector<1x128x32xf32>
    %137 = vector.shape_cast %136 : vector<1x128x32xf32> to vector<128x32xf32>
    %138 = vector.extract_strided_slice %135 {offsets = [1, 0, 0], sizes = [1, 128, 32], strides = [1, 1, 1]} : vector<4x128x32xf32> to vector<1x128x32xf32>
    %139 = vector.shape_cast %138 : vector<1x128x32xf32> to vector<128x32xf32>
    %140 = vector.extract_strided_slice %135 {offsets = [2, 0, 0], sizes = [1, 128, 32], strides = [1, 1, 1]} : vector<4x128x32xf32> to vector<1x128x32xf32>
    %141 = vector.shape_cast %140 : vector<1x128x32xf32> to vector<128x32xf32>
    %142 = vector.extract_strided_slice %135 {offsets = [3, 0, 0], sizes = [1, 128, 32], strides = [1, 1, 1]} : vector<4x128x32xf32> to vector<1x128x32xf32>
    %143 = vector.shape_cast %142 : vector<1x128x32xf32> to vector<128x32xf32>
    %144 = tpu.concatenate %137, %139, %141, %143 in 1 : vector<128x32xf32>, vector<128x32xf32>, vector<128x32xf32>, vector<128x32xf32> -> vector<128x128xf32>
    %145 = arith.mulf %144, %74 : vector<128x128xf32>
    %146 = arith.truncf %145 : vector<128x128xf32> to vector<128x128xbf16>
    %c0_71 = arith.constant 0 : index
    %c0_72 = arith.constant 0 : index
    %147 = vector.load %arg8[%c0_71, %c0_72] : memref<128x32xbf16, #tpu.memory_space<vmem>>, vector<128x32xbf16>
    %cst_73 = arith.constant dense<0.000000e+00> : vector<128x32xf32>
    %148 = tpu.matmul %146, %147, %cst_73 {dimension_numbers = #tpu.dot_dimension_numbers<[1], [0], [0], [1], [0, 0, 1, 1], [], []>} : vector<128x128xbf16>, vector<128x32xbf16>, vector<128x32xf32> -> vector<128x32xf32>
    %c0_74 = arith.constant 0 : index
    %c0_75 = arith.constant 0 : index
    %149 = vector.load %arg9[%c0_74, %c0_75] : memref<1x32xf32, #tpu.memory_space<vmem>>, vector<1x32xf32>
    %150 = vector.shape_cast %149 : vector<1x32xf32> to vector<32xf32>
    %151 = vector.shape_cast %150 : vector<32xf32> to vector<1x32xf32>
    %152 = vector.broadcast %151 : vector<1x32xf32> to vector<128x32xf32>
    %153 = arith.addf %148, %152 : vector<128x32xf32>
    %154 = arith.addf %32, %153 : vector<128x32xf32>
    %155 = vector.extract_strided_slice %154 {offsets = [0, 0], sizes = [8, 32], strides = [1, 1]} : vector<128x32xf32> to vector<8x32xf32>
    %c0_76 = arith.constant 0 : index
    %c0_77 = arith.constant 0 : index
    %c0_78 = arith.constant 0 : index
    %c0_79 = arith.constant 0 : index
    %156 = vector.load %arg10[%c0_76, %c0_77, %c0_78, %c0_79] : memref<1x8x16x32xf32, #tpu.memory_space<vmem>>, vector<1x8x1x32xf32>
    %157 = vector.shape_cast %156 : vector<1x8x1x32xf32> to vector<8x32xf32>
    %158 = vector.shape_cast %155 : vector<8x32xf32> to vector<1x8x1x32xf32>
    tpu.vector_store %arg10[%c0_76, %c0_77, %c0_78, %c0_79], %158 {strides = array<i32>} : memref<1x8x16x32xf32, #tpu.memory_space<vmem>>, vector<1x8x1x32xf32>,
    %159 = vector.extract_strided_slice %154 {offsets = [8, 0], sizes = [8, 32], strides = [1, 1]} : vector<128x32xf32> to vector<8x32xf32>
    %c0_80 = arith.constant 0 : index
    %c0_81 = arith.constant 0 : index
    %c1_82 = arith.constant 1 : index
    %c0_83 = arith.constant 0 : index
    %160 = vector.load %arg10[%c0_80, %c0_81, %c1_82, %c0_83] : memref<1x8x16x32xf32, #tpu.memory_space<vmem>>, vector<1x8x1x32xf32>
    %161 = vector.shape_cast %160 : vector<1x8x1x32xf32> to vector<8x32xf32>
    %162 = vector.shape_cast %159 : vector<8x32xf32> to vector<1x8x1x32xf32>
    tpu.vector_store %arg10[%c0_80, %c0_81, %c1_82, %c0_83], %162 {strides = array<i32>} : memref<1x8x16x32xf32, #tpu.memory_space<vmem>>, vector<1x8x1x32xf32>,
    %163 = vector.extract_strided_slice %154 {offsets = [16, 0], sizes = [8, 32], strides = [1, 1]} : vector<128x32xf32> to vector<8x32xf32>
    %c0_84 = arith.constant 0 : index
    %c0_85 = arith.constant 0 : index
    %c2_86 = arith.constant 2 : index
    %c0_87 = arith.constant 0 : index
    %164 = vector.load %arg10[%c0_84, %c0_85, %c2_86, %c0_87] : memref<1x8x16x32xf32, #tpu.memory_space<vmem>>, vector<1x8x1x32xf32>
    %165 = vector.shape_cast %164 : vector<1x8x1x32xf32> to vector<8x32xf32>
    %166 = vector.shape_cast %163 : vector<8x32xf32> to vector<1x8x1x32xf32>
    tpu.vector_store %arg10[%c0_84, %c0_85, %c2_86, %c0_87], %166 {strides = array<i32>} : memref<1x8x16x32xf32, #tpu.memory_space<vmem>>, vector<1x8x1x32xf32>,
    %167 = vector.extract_strided_slice %154 {offsets = [24, 0], sizes = [8, 32], strides = [1, 1]} : vector<128x32xf32> to vector<8x32xf32>
    %c0_88 = arith.constant 0 : index
    %c0_89 = arith.constant 0 : index
    %c3_90 = arith.constant 3 : index
    %c0_91 = arith.constant 0 : index
    %168 = vector.load %arg10[%c0_88, %c0_89, %c3_90, %c0_91] : memref<1x8x16x32xf32, #tpu.memory_space<vmem>>, vector<1x8x1x32xf32>
    %169 = vector.shape_cast %168 : vector<1x8x1x32xf32> to vector<8x32xf32>
    %170 = vector.shape_cast %167 : vector<8x32xf32> to vector<1x8x1x32xf32>
    tpu.vector_store %arg10[%c0_88, %c0_89, %c3_90, %c0_91], %170 {strides = array<i32>} : memref<1x8x16x32xf32, #tpu.memory_space<vmem>>, vector<1x8x1x32xf32>,
    %171 = vector.extract_strided_slice %154 {offsets = [32, 0], sizes = [8, 32], strides = [1, 1]} : vector<128x32xf32> to vector<8x32xf32>
    %c0_92 = arith.constant 0 : index
    %c0_93 = arith.constant 0 : index
    %c4_94 = arith.constant 4 : index
    %c0_95 = arith.constant 0 : index
    %172 = vector.load %arg10[%c0_92, %c0_93, %c4_94, %c0_95] : memref<1x8x16x32xf32, #tpu.memory_space<vmem>>, vector<1x8x1x32xf32>
    %173 = vector.shape_cast %172 : vector<1x8x1x32xf32> to vector<8x32xf32>
    %174 = vector.shape_cast %171 : vector<8x32xf32> to vector<1x8x1x32xf32>
    tpu.vector_store %arg10[%c0_92, %c0_93, %c4_94, %c0_95], %174 {strides = array<i32>} : memref<1x8x16x32xf32, #tpu.memory_space<vmem>>, vector<1x8x1x32xf32>,
    %175 = vector.extract_strided_slice %154 {offsets = [40, 0], sizes = [8, 32], strides = [1, 1]} : vector<128x32xf32> to vector<8x32xf32>
    %c0_96 = arith.constant 0 : index
    %c0_97 = arith.constant 0 : index
    %c5_98 = arith.constant 5 : index
    %c0_99 = arith.constant 0 : index
    %176 = vector.load %arg10[%c0_96, %c0_97, %c5_98, %c0_99] : memref<1x8x16x32xf32, #tpu.memory_space<vmem>>, vector<1x8x1x32xf32>
    %177 = vector.shape_cast %176 : vector<1x8x1x32xf32> to vector<8x32xf32>
    %178 = vector.shape_cast %175 : vector<8x32xf32> to vector<1x8x1x32xf32>
    tpu.vector_store %arg10[%c0_96, %c0_97, %c5_98, %c0_99], %178 {strides = array<i32>} : memref<1x8x16x32xf32, #tpu.memory_space<vmem>>, vector<1x8x1x32xf32>,
    %179 = vector.extract_strided_slice %154 {offsets = [48, 0], sizes = [8, 32], strides = [1, 1]} : vector<128x32xf32> to vector<8x32xf32>
    %c0_100 = arith.constant 0 : index
    %c0_101 = arith.constant 0 : index
    %c6_102 = arith.constant 6 : index
    %c0_103 = arith.constant 0 : index
    %180 = vector.load %arg10[%c0_100, %c0_101, %c6_102, %c0_103] : memref<1x8x16x32xf32, #tpu.memory_space<vmem>>, vector<1x8x1x32xf32>
    %181 = vector.shape_cast %180 : vector<1x8x1x32xf32> to vector<8x32xf32>
    %182 = vector.shape_cast %179 : vector<8x32xf32> to vector<1x8x1x32xf32>
    tpu.vector_store %arg10[%c0_100, %c0_101, %c6_102, %c0_103], %182 {strides = array<i32>} : memref<1x8x16x32xf32, #tpu.memory_space<vmem>>, vector<1x8x1x32xf32>,
    %183 = vector.extract_strided_slice %154 {offsets = [56, 0], sizes = [8, 32], strides = [1, 1]} : vector<128x32xf32> to vector<8x32xf32>
    %c0_104 = arith.constant 0 : index
    %c0_105 = arith.constant 0 : index
    %c7_106 = arith.constant 7 : index
    %c0_107 = arith.constant 0 : index
    %184 = vector.load %arg10[%c0_104, %c0_105, %c7_106, %c0_107] : memref<1x8x16x32xf32, #tpu.memory_space<vmem>>, vector<1x8x1x32xf32>
    %185 = vector.shape_cast %184 : vector<1x8x1x32xf32> to vector<8x32xf32>
    %186 = vector.shape_cast %183 : vector<8x32xf32> to vector<1x8x1x32xf32>
    tpu.vector_store %arg10[%c0_104, %c0_105, %c7_106, %c0_107], %186 {strides = array<i32>} : memref<1x8x16x32xf32, #tpu.memory_space<vmem>>, vector<1x8x1x32xf32>,
    %187 = vector.extract_strided_slice %154 {offsets = [64, 0], sizes = [8, 32], strides = [1, 1]} : vector<128x32xf32> to vector<8x32xf32>
    %c0_108 = arith.constant 0 : index
    %c0_109 = arith.constant 0 : index
    %c8_110 = arith.constant 8 : index
    %c0_111 = arith.constant 0 : index
    %188 = vector.load %arg10[%c0_108, %c0_109, %c8_110, %c0_111] : memref<1x8x16x32xf32, #tpu.memory_space<vmem>>, vector<1x8x1x32xf32>
    %189 = vector.shape_cast %188 : vector<1x8x1x32xf32> to vector<8x32xf32>
    %190 = vector.shape_cast %187 : vector<8x32xf32> to vector<1x8x1x32xf32>
    tpu.vector_store %arg10[%c0_108, %c0_109, %c8_110, %c0_111], %190 {strides = array<i32>} : memref<1x8x16x32xf32, #tpu.memory_space<vmem>>, vector<1x8x1x32xf32>,
    %191 = vector.extract_strided_slice %154 {offsets = [72, 0], sizes = [8, 32], strides = [1, 1]} : vector<128x32xf32> to vector<8x32xf32>
    %c0_112 = arith.constant 0 : index
    %c0_113 = arith.constant 0 : index
    %c9_114 = arith.constant 9 : index
    %c0_115 = arith.constant 0 : index
    %192 = vector.load %arg10[%c0_112, %c0_113, %c9_114, %c0_115] : memref<1x8x16x32xf32, #tpu.memory_space<vmem>>, vector<1x8x1x32xf32>
    %193 = vector.shape_cast %192 : vector<1x8x1x32xf32> to vector<8x32xf32>
    %194 = vector.shape_cast %191 : vector<8x32xf32> to vector<1x8x1x32xf32>
    tpu.vector_store %arg10[%c0_112, %c0_113, %c9_114, %c0_115], %194 {strides = array<i32>} : memref<1x8x16x32xf32, #tpu.memory_space<vmem>>, vector<1x8x1x32xf32>,
    %195 = vector.extract_strided_slice %154 {offsets = [80, 0], sizes = [8, 32], strides = [1, 1]} : vector<128x32xf32> to vector<8x32xf32>
    %c0_116 = arith.constant 0 : index
    %c0_117 = arith.constant 0 : index
    %c10_118 = arith.constant 10 : index
    %c0_119 = arith.constant 0 : index
    %196 = vector.load %arg10[%c0_116, %c0_117, %c10_118, %c0_119] : memref<1x8x16x32xf32, #tpu.memory_space<vmem>>, vector<1x8x1x32xf32>
    %197 = vector.shape_cast %196 : vector<1x8x1x32xf32> to vector<8x32xf32>
    %198 = vector.shape_cast %195 : vector<8x32xf32> to vector<1x8x1x32xf32>
    tpu.vector_store %arg10[%c0_116, %c0_117, %c10_118, %c0_119], %198 {strides = array<i32>} : memref<1x8x16x32xf32, #tpu.memory_space<vmem>>, vector<1x8x1x32xf32>,
    %199 = vector.extract_strided_slice %154 {offsets = [88, 0], sizes = [8, 32], strides = [1, 1]} : vector<128x32xf32> to vector<8x32xf32>
    %c0_120 = arith.constant 0 : index
    %c0_121 = arith.constant 0 : index
    %c11_122 = arith.constant 11 : index
    %c0_123 = arith.constant 0 : index
    %200 = vector.load %arg10[%c0_120, %c0_121, %c11_122, %c0_123] : memref<1x8x16x32xf32, #tpu.memory_space<vmem>>, vector<1x8x1x32xf32>
    %201 = vector.shape_cast %200 : vector<1x8x1x32xf32> to vector<8x32xf32>
    %202 = vector.shape_cast %199 : vector<8x32xf32> to vector<1x8x1x32xf32>
    tpu.vector_store %arg10[%c0_120, %c0_121, %c11_122, %c0_123], %202 {strides = array<i32>} : memref<1x8x16x32xf32, #tpu.memory_space<vmem>>, vector<1x8x1x32xf32>,
    %203 = vector.extract_strided_slice %154 {offsets = [96, 0], sizes = [8, 32], strides = [1, 1]} : vector<128x32xf32> to vector<8x32xf32>
    %c0_124 = arith.constant 0 : index
    %c0_125 = arith.constant 0 : index
    %c12_126 = arith.constant 12 : index
    %c0_127 = arith.constant 0 : index
    %204 = vector.load %arg10[%c0_124, %c0_125, %c12_126, %c0_127] : memref<1x8x16x32xf32, #tpu.memory_space<vmem>>, vector<1x8x1x32xf32>
    %205 = vector.shape_cast %204 : vector<1x8x1x32xf32> to vector<8x32xf32>
    %206 = vector.shape_cast %203 : vector<8x32xf32> to vector<1x8x1x32xf32>
    tpu.vector_store %arg10[%c0_124, %c0_125, %c12_126, %c0_127], %206 {strides = array<i32>} : memref<1x8x16x32xf32, #tpu.memory_space<vmem>>, vector<1x8x1x32xf32>,
    %207 = vector.extract_strided_slice %154 {offsets = [104, 0], sizes = [8, 32], strides = [1, 1]} : vector<128x32xf32> to vector<8x32xf32>
    %c0_128 = arith.constant 0 : index
    %c0_129 = arith.constant 0 : index
    %c13_130 = arith.constant 13 : index
    %c0_131 = arith.constant 0 : index
    %208 = vector.load %arg10[%c0_128, %c0_129, %c13_130, %c0_131] : memref<1x8x16x32xf32, #tpu.memory_space<vmem>>, vector<1x8x1x32xf32>
    %209 = vector.shape_cast %208 : vector<1x8x1x32xf32> to vector<8x32xf32>
    %210 = vector.shape_cast %207 : vector<8x32xf32> to vector<1x8x1x32xf32>
    tpu.vector_store %arg10[%c0_128, %c0_129, %c13_130, %c0_131], %210 {strides = array<i32>} : memref<1x8x16x32xf32, #tpu.memory_space<vmem>>, vector<1x8x1x32xf32>,
    %211 = vector.extract_strided_slice %154 {offsets = [112, 0], sizes = [8, 32], strides = [1, 1]} : vector<128x32xf32> to vector<8x32xf32>
    %c0_132 = arith.constant 0 : index
    %c0_133 = arith.constant 0 : index
    %c14_134 = arith.constant 14 : index
    %c0_135 = arith.constant 0 : index
    %212 = vector.load %arg10[%c0_132, %c0_133, %c14_134, %c0_135] : memref<1x8x16x32xf32, #tpu.memory_space<vmem>>, vector<1x8x1x32xf32>
    %213 = vector.shape_cast %212 : vector<1x8x1x32xf32> to vector<8x32xf32>
    %214 = vector.shape_cast %211 : vector<8x32xf32> to vector<1x8x1x32xf32>
    tpu.vector_store %arg10[%c0_132, %c0_133, %c14_134, %c0_135], %214 {strides = array<i32>} : memref<1x8x16x32xf32, #tpu.memory_space<vmem>>, vector<1x8x1x32xf32>,
    %215 = vector.extract_strided_slice %154 {offsets = [120, 0], sizes = [8, 32], strides = [1, 1]} : vector<128x32xf32> to vector<8x32xf32>
    %c0_136 = arith.constant 0 : index
    %c0_137 = arith.constant 0 : index
    %c15_138 = arith.constant 15 : index
    %c0_139 = arith.constant 0 : index
    %216 = vector.load %arg10[%c0_136, %c0_137, %c15_138, %c0_139] : memref<1x8x16x32xf32, #tpu.memory_space<vmem>>, vector<1x8x1x32xf32>
    %217 = vector.shape_cast %216 : vector<1x8x1x32xf32> to vector<8x32xf32>
    %218 = vector.shape_cast %215 : vector<8x32xf32> to vector<1x8x1x32xf32>
    tpu.vector_store %arg10[%c0_136, %c0_137, %c15_138, %c0_139], %218 {strides = array<i32>} : memref<1x8x16x32xf32, #tpu.memory_space<vmem>>, vector<1x8x1x32xf32>,
    return
  }
  func.func @transform_0(%arg0: i32, %arg1: i32) -> (i32, i32, i32, i32) {
    %c0_i32 = arith.constant 0 : i32
    %c0_i32_0 = arith.constant 0 : i32
    %c0_i32_1 = arith.constant 0 : i32
    return %arg0, %c0_i32, %arg1, %c0_i32_0 : i32, i32, i32, i32
  }
  func.func @transform_1(%arg0: i32, %arg1: i32) -> (i32, i32, i32) {
    %c0_i32 = arith.constant 0 : i32
    %c0_i32_0 = arith.constant 0 : i32
    return %arg0, %arg1, %c0_i32 : i32, i32, i32
  }
  func.func @transform_2(%arg0: i32, %arg1: i32) -> (i32, i32) {
    %c0_i32 = arith.constant 0 : i32
    %c0_i32_0 = arith.constant 0 : i32
    %c0_i32_1 = arith.constant 0 : i32
    return %c0_i32, %c0_i32_0 : i32, i32
  }
  func.func @transform_3(%arg0: i32, %arg1: i32) -> (i32, i32) {
    %c0_i32 = arith.constant 0 : i32
    %c0_i32_0 = arith.constant 0 : i32
    %c0_i32_1 = arith.constant 0 : i32
    return %c0_i32, %c0_i32_0 : i32, i32
  }
  func.func @transform_4(%arg0: i32, %arg1: i32) -> (i32, i32) {
    %c0_i32 = arith.constant 0 : i32
    %c0_i32_0 = arith.constant 0 : i32
    %c0_i32_1 = arith.constant 0 : i32
    return %c0_i32, %c0_i32_0 : i32, i32
  }
  func.func @transform_5(%arg0: i32, %arg1: i32) -> (i32, i32) {
    %c0_i32 = arith.constant 0 : i32
    %c0_i32_0 = arith.constant 0 : i32
    %c0_i32_1 = arith.constant 0 : i32
    return %c0_i32, %c0_i32_0 : i32, i32
  }
  func.func @transform_6(%arg0: i32, %arg1: i32) -> (i32, i32) {
    %c0_i32 = arith.constant 0 : i32
    %c0_i32_0 = arith.constant 0 : i32
    %c0_i32_1 = arith.constant 0 : i32
    return %c0_i32, %c0_i32_0 : i32, i32
  }
  func.func @transform_7(%arg0: i32, %arg1: i32) -> (i32, i32) {
    %c0_i32 = arith.constant 0 : i32
    %c0_i32_0 = arith.constant 0 : i32
    %c0_i32_1 = arith.constant 0 : i32
    return %c0_i32, %c0_i32_0 : i32, i32
  }
  func.func @transform_8(%arg0: i32, %arg1: i32) -> (i32, i32, i32, i32) {
    %c0_i32 = arith.constant 0 : i32
    %c0_i32_0 = arith.constant 0 : i32
    %c0_i32_1 = arith.constant 0 : i32
    return %arg0, %c0_i32, %arg1, %c0_i32_0 : i32, i32, i32, i32
  }
}

</mosaic_0001>

<bundles_post_ra>
// kernel: tpu_custom_call.1
= control target key start
LH: loop header
LB: loop body
LE: loop exit
PB: predicated region body
PF: predicated region fallthrough
CT: control target
= control target key end

     0   :  { %13 = vsyncpa [#allocation3], 0  ;;  %s16351_s0 = inlined_call_operand.hbm [shape: f32[2,8,16,32], index: 0, kind: input, shape index: {}]   ;;  %s16352_s1 = inlined_call_operand.vmem [shape: f32[2,16,8], index: 1, kind: input, shape index: {}]   ;;  %s16353_s2 = inlined_call_operand.vmem [shape: f32[1,32], index: 2, kind: input, shape index: {}]   ;;  %s16354_s3 = inlined_call_operand.vmem [shape: f32[1,32], index: 3, kind: input, shape index: {}]   ;;  %s16355_s4 = inlined_call_operand.vmem [shape: bf16[32,512], index: 4, kind: input, shape index: {}]   ;;  %s16356_s5 = inlined_call_operand.vmem [shape: f32[1,128], index: 5, kind: input, shape index: {}]   ;;  %s16357_s6 = inlined_call_operand.vmem [shape: bf16[128,32], index: 6, kind: input, shape index: {}]   ;;  %s16358_s7 = inlined_call_operand.vmem [shape: f32[1,32], index: 7, kind: input, shape index: {}]   ;;  %s16359_s8 = inlined_call_operand.hbm [shape: f32[2,8,16,32], index: 8, kind: output, shape index: {}]  }
   0x1   :  { %15 = vsyncpa [#allocation3 + $0x1], 0 }
   0x2   :  { %16 = vsyncpa [#allocation4], 0 }
   0x3   :  { %18 = vsyncpa [#allocation4 + $0x1], 0  ;;  %s12876_s27 = smov 0   ;;  %s12878_s28 = smov 0  }
   0x4   :  { %s12880_s29 = smov 0   ;;  %s12882_s30 = smov 0  }
   0x5   :  { %s12884_s9 = smov 0   ;;  %s12886_s10 = smov 0  }
   0x6 LB: > { %s10741_s11 = sadd.s32 4294967295, %s12816_s10   ;;  %s10742_s12 = sadd.s32 4294967294, %s12816_s10   ;;  %s12816_s10 = sphi %s12886_s10, %s24_s10   ;;  %s12812_s9 = sphi %s12884_s9, %s16625_s9   ;;  %s12808_s30 = sphi %s12882_s30, %s16624_s30   ;;  %s12804_s29 = sphi %s12880_s29, %s16623_s29   ;;  %s12800_s28 = sphi %s12878_s28, %s16622_s28   ;;  %s12796_s27 = sphi %s12876_s27, %s16621_s27  }
   0x7   : > { %s36_s13 = sadd.s32 1, %s12812_s9  ;;  %s45_s14 = sadd.s32 1, %s12804_s29 }
   0x8   : > { %p38_p0 = scmp.ge.s32.totalorder %s36_s13, 2  ;;  %p52_p1 = scmp.ne.s32.totalorder %s12804_s29, %s12800_s28 }
   0x9   : > { %p53_p2 = scmp.eq.s32.totalorder %s12816_s10, 0  ;;  %p58_p3 = scmp.ne.s32.totalorder %s12800_s28, %s12796_s27 }
   0xa   : > { %s16627_s13 = smov (%p38_p0, %s36_s13), 0  ;;  %p59_p5 = scmp.eq.s32.totalorder %s10741_s11, 0 }
   0xb   : > { %p12917_p4 = por %p53_p2, %p52_p1  ;;  %s40_s16 = ssub.s32 %s12812_s9, %s16627_s13 }
   0xc   : > { %p238_p6 = scmp.eq.s32.totalorder %s10741_s11, 1  ;;  %p43_p7 = scmp.eq.s32.totalorder %s40_s16, 0 }
   0xd   : > { %p12923_p8 = por %p59_p5, %p58_p3  ;;  %p244_p10 = scmp.eq.s32.totalorder %s10742_s12, 1 }
   0xe   : > { %p12927_p9 = por %p238_p6, %p52_p1  ;;  %p12271_p13 = scmp.lt.s32.totalorder %s12816_s10, 2 }
   0xf   : > { %s12932_s19 = scalar_select %p43_p7, %s12804_s29, %s45_s14  }
  0x10   : > { %s16437_s18 = scalar_select %p12927_p9, 1, 0 }
  0x11   : > { %p12934_p11 = por %p244_p10, %p58_p3  ;;  %s282_s21 = sand.u32 1, %s12804_s29  }
  0x12   : > { %s10745_s22 = sshll.u32 %s282_s21, 7  ;;  %s11132_s23 = sshll.u32 %s12812_s9, 11 }
  0x13   : > { %s16438_s20 = scalar_select %p12934_p11, 1, 0 }
  0x14   : > { %s12945_s26 = scalar_lea.hbm %s16351_s0, %s11132_s23  ;;  %s286_s11 = scalar_lea.vmem [#allocation2], %s10745_s22 }
  0x15   : > { %s295_s12 = sshll.u32 %s286_s11, 4  ;;  %p12951_p0 = pnand %p12271_p13, %p12917_p4  ;;  %s12947_s12 = int_to_ptr.vmem [resolvable:$true] %s295_s12 }
  0x16   : > { %s12956_s16 = scalar_lea.sflag [#allocation3], %s282_s21  ;;  %s12704_s23 = scalar_lea.hbm %s12945_s26, 2048 }
  0x17   : > { %p12705_p2 = scmp.ne.s32.totalorder %s12945_s26, %s12704_s23  ;;  %p12706_p3 = pneg %p12951_p0 }
  0x18   : > { %s12709_s15 = scalar_lea.hbm %s16351_s0, 4096  ;;  %p12710_p4 = scmp.lt.u32.totalorder %s12945_s26, %s16351_s0 }
  0x19   : > { %p12707_p5 = pnand %p12706_p3, %p12705_p2  ;;  %p12711_p7 = scmp.lt.u32.totalorder %s12709_s15, %s12704_s23 }
  0x1a   : > { %p12713_p13 = scmp.lt.u32.totalorder %s12704_s23, %s12945_s26 }
  0x1b   : > { %p12708_p6 = pneg %p12707_p5  ;;  %p12712_p10 = por %p12711_p7, %p12710_p4 }
  0x1d   : > { %p12714_p12 = por %p12713_p13, %p12712_p10 }
  0x1f   : > { %p12715_p1 = pnand %p12714_p12, %p12708_p6 }
  0x21   : > { %12718 = shalt.err (!%p12715_p1)
}
  0x22   : > { %s12719_s21 = scalar_lea.vmem %s12947_s12, 2048  ;;  %s12818_s22 = smov [#allocation2]  }
  0x23   : > { %p12720_p2 = scmp.ne.s32.totalorder %s12947_s12, %s12719_s21  ;;  %s12724_s24 = sshll.u32 %s12818_s22, 4  ;;  %s12725_s24 = int_to_ptr.vmem [resolvable:$false] %s12724_s24 }
  0x24   : > { %s12726_s25 = scalar_lea.vmem %s12725_s24, 4096  ;;  %p12727_p9 = scmp.lt.s32.totalorder %s12947_s12, %s12725_s24 }
  0x25   : > { %p12722_p5 = pnand %p12720_p2, %p12706_p3  ;;  %p12728_p4 = scmp.lt.s32.totalorder %s12726_s25, %s12719_s21 }
  0x27   : > { %p12723_p11 = pneg %p12722_p5  ;;  %p12729_p7 = por %p12728_p4, %p12727_p9 }
  0x29   : > { %p12730_p10 = pnand %p12729_p7, %p12723_p11 }
  0x2b   : > { %12733 = shalt.err (!%p12730_p10)
}
  0x2c   : > { %s12819_s23 = smov 128   ;;  %s12820_s15 = smov 8  }
  0x2d   : > { %12266 = dma.hbm_to_vmem [thread:$0]  (!%p12951_p0), %s12945_s26, 2048, %s12947_s12, %s12956_s16, %s12819_s23, %s12819_s23, %s12820_s15  }
  0x2e   : > { %p316_p12 = scmp.lt.s32.totalorder %s12816_s10, 3  ;;  %p16440_p1 = scmp.ge.s32.totalorder %s12816_s10, 1 }
  0x30   : > { %p317_p3 = pnand %p16440_p1, %p316_p12 }
  0x32   : > { %320 = sbr.rel (%p317_p3) target bundleno = 1941 (0x795), region = 52 }
  0x39   : > { %s12988_s11 = sand.u32 1, %s12800_s28  }
  0x3a   : > { %s10749_s21 = sshll.u32 %s12988_s11, 7  ;;  %s323_s22 = scalar_lea.sflag [#allocation3], %s12988_s11 }
  0x3b   : > { %s12994_s24 = scalar_lea.vmem [#allocation2], %s10749_s21 }
  0x3c   : > { %12787 = dma.done.wait (%p12923_p8), %s323_s22, 2048  }
  0x3d   : > { %12789 = vsyncadd (%p12923_p8), %s323_s22, 4294965248  ;;  %vm518_vm0 = vcmask 1041409   ;;  %vm521_vm1 = vcmask 1042434   ;;  %vm524_vm2 = vcmask 1043459   ;;  %vm527_vm3 = vcmask 1044484   ;;  %s12824_s17 = smov 96  }
  0x3e   : > { %vm530_vm4 = vcmask 1045509   ;;  %vm533_vm5 = vcmask 1046534   ;;  %vm536_vm6 = vcmask 1047559   ;;  %v381_v0 = vld [vmem:[%s12994_s24] sm:$0x1]  ;;  %vm884_vm7 = vcmask 261120  }
  0x3f   : > { %v382_v1 = vld [vmem:[%s12994_s24 + $0x10] sm:$0x1]  ;;  %v383_v2 = vld [vmem:[%s12994_s24 + $0x20] sm:$0x1]  ;;  %v397_v14 = vld [vmem:[%s12994_s24 + $0x2] sm:$0x1] }
  0x40   : > { %v384_v3 = vld [vmem:[%s12994_s24 + $0x30] sm:$0x1]  ;;  %v385_v4 = vld [vmem:[%s12994_s24 + $0x40] sm:$0x1]  ;;  %v517_v8 = vrot.slane %v382_v1, 7  ;;  %v520_v9 = vrot.slane %v383_v2, 6 }
  0x41   : > { %v386_v5 = vld [vmem:[%s12994_s24 + $0x50] sm:$0x1]  ;;  %v387_v6 = vld [vmem:[%s12994_s24 + $0x60] sm:$0x1]  ;;  %v523_v10 = vrot.slane %v384_v3, 5  ;;  %v526_v11 = vrot.slane %v385_v4, 4 }
  0x42   : > { %v388_v7 = vld [vmem:[%s12994_s24 + $0x70] sm:$0x1]  ;;  %v529_v12 = vrot.slane %v386_v5, 3  ;;  %v532_v13 = vrot.slane %v387_v6, 2  ;;  %v519_v15 = vsel %vm518_vm0, %v517_v8, %v381_v0  ;;  %v398_v17 = vld [vmem:[%s12994_s24 + $0x12] sm:$0x1] }
  0x43   : > { %v535_v16 = vrot.slane %v388_v7, 1  ;;  %v399_v18 = vld [vmem:[%s12994_s24 + $0x22] sm:$0x1]  ;;  %v522_v19 = vsel %vm521_vm1, %v520_v9, %v519_v15  ;;  %v400_v20 = vld [vmem:[%s12994_s24 + $0x32] sm:$0x1]  ;;  %v570_v26 = vrot.slane %v398_v17, 7 }
  0x44   : > { %v401_v21 = vld [vmem:[%s12994_s24 + $0x42] sm:$0x1]  ;;  %v402_v22 = vld [vmem:[%s12994_s24 + $0x52] sm:$0x1]  ;;  %v525_v23 = vsel %vm524_vm2, %v523_v10, %v522_v19  ;;  %v572_v27 = vrot.slane %v399_v18, 6  ;;  %v574_v29 = vrot.slane %v400_v20, 5 }
  0x45   : > { %v403_v24 = vld [vmem:[%s12994_s24 + $0x62] sm:$0x1]  ;;  %v404_v25 = vld [vmem:[%s12994_s24 + $0x72] sm:$0x1]  ;;  %v528_v28 = vsel %vm527_vm3, %v526_v11, %v525_v23  ;;  %v576_v30 = vrot.slane %v401_v21, 4  ;;  %v578_v31 = vrot.slane %v402_v22, 3  ;;  %v571_v34 = vsel %vm518_vm0, %v570_v26, %v397_v14 }
  0x46   : > { %v389_v32 = vld [vmem:[%s12994_s24 + $0x1] sm:$0x1]  ;;  %v531_v33 = vsel %vm530_vm4, %v529_v12, %v528_v28  ;;  %v580_v35 = vrot.slane %v403_v24, 2  ;;  %v582_v36 = vrot.slane %v404_v25, 1  ;;  %v390_v37 = vld [vmem:[%s12994_s24 + $0x11] sm:$0x1]  ;;  %v573_v40 = vsel %vm521_vm1, %v572_v27, %v571_v34 }
  0x47   : > { %v391_v38 = vld [vmem:[%s12994_s24 + $0x21] sm:$0x1]  ;;  %v534_v39 = vsel %vm533_vm5, %v532_v13, %v531_v33  ;;  %v392_v41 = vld [vmem:[%s12994_s24 + $0x31] sm:$0x1]  ;;  %v575_v45 = vsel %vm524_vm2, %v574_v29, %v573_v40  ;;  %v547_v48 = vrot.slane %v390_v37, 7  ;;  %vm12823_vm8 = vmmov 0  }
  0x48   : > { %v393_v42 = vld [vmem:[%s12994_s24 + $0x41] sm:$0x1]  ;;  %v394_v43 = vld [vmem:[%s12994_s24 + $0x51] sm:$0x1]  ;;  %v13031_v44 = vsel %vm536_vm6, %v535_v16, %v534_v39  ;;  %v549_v49 = vrot.slane %v391_v38, 6  ;;  %v577_v51 = vsel %vm527_vm3, %v576_v30, %v575_v45  ;;  %v551_v52 = vrot.slane %v392_v41, 5 }
  0x49   : > { %16441 = vst [vmem:[#allocation8_spill] sm:$0xff] %v13031_v44  ;;  %v395_v46 = vld [vmem:[%s12994_s24 + $0x61] sm:$0x1]  ;;  %v396_v47 = vld [vmem:[%s12994_s24 + $0x71] sm:$0x1]  ;;  %v885_v50 = vsel %vm884_vm7, %v13031_v44, 0.0  ;;  %v579_v55 = vsel %vm530_vm4, %v578_v31, %v577_v51  ;;  %v548_v56 = vsel %vm518_vm0, %v547_v48, %v389_v32 }
  0x4a   : > { %v553_v53 = vrot.slane %v393_v42, 4  ;;  %v405_v54 = vld [vmem:[%s12994_s24 + $0x3] sm:$0x1]  ;;  %886 = vadd.xlane.f32.xlu0 %v885_v50  ;;  %v555_v57 = vrot.slane %v394_v43, 3  ;;  %v557_v58 = vrot.slane %v395_v46, 2  ;;  %v581_v61 = vsel %vm533_vm5, %v580_v35, %v579_v55  ;;  %s12825_s26 = smov 64  }
  0x4b   : > { %v406_v59 = vld [vmem:[%s12994_s24 + $0x13] sm:$0x1]  ;;  %v407_v60 = vld [vmem:[%s12994_s24 + $0x23] sm:$0x1]  ;;  %v550_v62 = vsel %vm521_vm1, %v549_v49, %v548_v56  ;;  %v559_v63 = vrot.slane %v396_v47, 1  ;;  %v13049_v3 = vsel %vm536_vm6, %v582_v36, %v581_v61  ;;  %s12826_s12 = smov 32  }
  0x4c   : > { %v408_v0 = vld [vmem:[%s12994_s24 + $0x33] sm:$0x1]  ;;  %v409_v1 = vld [vmem:[%s12994_s24 + $0x43] sm:$0x1]  ;;  %v593_v2 = vrot.slane %v406_v59, 7  ;;  %16442 = vst [vmem:[#allocation9_spill] sm:$0xff] %v13049_v3  ;;  %v552_v4 = vsel %vm524_vm2, %v551_v52, %v550_v62 }
  0x4d   : > { %v410_v5 = vld [vmem:[%s12994_s24 + $0x53] sm:$0x1]  ;;  %v411_v6 = vld [vmem:[%s12994_s24 + $0x63] sm:$0x1]  ;;  %v891_v8 = vsel %vm884_vm7, %v13049_v3, 0.0  ;;  %v554_v9 = vsel %vm527_vm3, %v553_v53, %v552_v4  ;;  %v595_v11 = vrot.slane %v407_v60, 6 }
  0x4e   : > { %v412_v7 = vld [vmem:[%s12994_s24 + $0x73] sm:$0x1]  ;;  %v594_v10 = vsel %vm518_vm0, %v593_v2, %v405_v54  ;;  %v414_v12 = vld [vmem:[%s12994_s24 + $0x14] sm:$0x1]  ;;  %892 = vadd.xlane.f32.xlu1 %v891_v8  ;;  %v556_v13 = vsel %vm530_vm4, %v555_v57, %v554_v9  ;;  %v597_v14 = vrot.slane %v408_v0, 5  ;;  %v599_v15 = vrot.slane %v409_v1, 4 }
  0x4f   : > { %v601_v16 = vrot.slane %v410_v5, 3  ;;  %v413_v17 = vld [vmem:[%s12994_s24 + $0x4] sm:$0x1]  ;;  %v558_v19 = vsel %vm533_vm5, %v557_v58, %v556_v13  ;;  %v596_v20 = vsel %vm521_vm1, %v595_v11, %v594_v10  ;;  %v603_v21 = vrot.slane %v411_v6, 2  ;;  %v416_v23 = vld [vmem:[%s12994_s24 + $0x34] sm:$0x1] }
  0x50   : > { %v415_v18 = vld [vmem:[%s12994_s24 + $0x24] sm:$0x1]  ;;  %v605_v22 = vrot.slane %v412_v7, 1  ;;  %v13068_v25 = vsel %vm536_vm6, %v559_v63, %v558_v19  ;;  %v598_v26 = vsel %vm524_vm2, %v597_v14, %v596_v20  ;;  %v418_v27 = vld [vmem:[%s12994_s24 + $0x54] sm:$0x1]  ;;  %v616_v32 = vrot.slane %v414_v12, 7 }
  0x51   : > { %v417_v24 = vld [vmem:[%s12994_s24 + $0x44] sm:$0x1]  ;;  %16443 = vst [vmem:[#allocation10_spill] sm:$0xff] %v13068_v25  ;;  %v420_v29 = vld [vmem:[%s12994_s24 + $0x74] sm:$0x1]  ;;  %v888_v30 = vsel %vm884_vm7, %v13068_v25, 0.0  ;;  %v600_v31 = vsel %vm527_vm3, %v599_v15, %v598_v26 }
  0x52   : > { %v419_v28 = vld [vmem:[%s12994_s24 + $0x64] sm:$0x1]  ;;  %v618_v33 = vrot.slane %v415_v18, 6  ;;  %889 = vadd.xlane.f32.xlu0 %v888_v30  ;;  %v602_v34 = vsel %vm530_vm4, %v601_v16, %v600_v31  ;;  %v620_v35 = vrot.slane %v416_v23, 5  ;;  %v622_v36 = vrot.slane %v417_v24, 4  ;;  %p370_p8 = scmp.lt.s32.totalorder %s12808_s30, 1 }
  0x53   : > { %v624_v37 = vrot.slane %v418_v27, 3  ;;  %v421_v38 = vld [vmem:[%s12994_s24 + $0x5] sm:$0x1]  ;;  %v422_v39 = vld [vmem:[%s12994_s24 + $0x15] sm:$0x1]  ;;  %v604_v40 = vsel %vm533_vm5, %v603_v21, %v602_v34  ;;  %v617_v41 = vsel %vm518_vm0, %v616_v32, %v413_v17  ;;  %v626_v42 = vrot.slane %v419_v28, 2 }
  0x54   : > { %v628_v43 = vrot.slane %v420_v29, 1  ;;  %v423_v45 = vld [vmem:[%s12994_s24 + $0x25] sm:$0x1]  ;;  %v424_v46 = vld [vmem:[%s12994_s24 + $0x35] sm:$0x1]  ;;  %v13085_v47 = vsel %vm536_vm6, %v605_v22, %v604_v40  ;;  %v619_v48 = vsel %vm521_vm1, %v618_v33, %v617_v41  ;;  %v639_v55 = vrot.slane %v422_v39, 7 }
  0x55   : > { %16444 = vst [vmem:[#allocation11_spill] sm:$0xff] %v13085_v47  ;;  %v425_v49 = vld [vmem:[%s12994_s24 + $0x45] sm:$0x1]  ;;  %v426_v50 = vld [vmem:[%s12994_s24 + $0x55] sm:$0x1]  ;;  %v894_v52 = vsel %vm884_vm7, %v13085_v47, 0.0  ;;  %v621_v53 = vsel %vm524_vm2, %v620_v35, %v619_v48 }
  0x56   : > { %v427_v51 = vld [vmem:[%s12994_s24 + $0x65] sm:$0x1]  ;;  %v428_v54 = vld [vmem:[%s12994_s24 + $0x75] sm:$0x1]  ;;  %v641_v56 = vrot.slane %v423_v45, 6  ;;  %895 = vadd.xlane.f32.xlu1 %v894_v52  ;;  %v623_v57 = vsel %vm527_vm3, %v622_v36, %v621_v53  ;;  %v643_v58 = vrot.slane %v424_v46, 5  ;;  %v640_v63 = vsel %vm518_vm0, %v639_v55, %v421_v38 }
  0x57   : > { %v645_v59 = vrot.slane %v425_v49, 4  ;;  %v647_v60 = vrot.slane %v426_v50, 3  ;;  %v429_v61 = vld [vmem:[%s12994_s24 + $0x6] sm:$0x1]  ;;  %v625_v62 = vsel %vm530_vm4, %v624_v37, %v623_v57  ;;  %v649_v0 = vrot.slane %v427_v51, 2  ;;  %s371_s14 = scalar_select %p370_p8, %s12808_s30, 1 }
  0x58   : > { %v651_v1 = vrot.slane %v428_v54, 1  ;;  %v430_v2 = vld [vmem:[%s12994_s24 + $0x16] sm:$0x1]  ;;  %v431_v4 = vld [vmem:[%s12994_s24 + $0x26] sm:$0x1]  ;;  %v627_v5 = vsel %vm533_vm5, %v626_v42, %v625_v62  ;;  %v642_v6 = vsel %vm521_vm1, %v641_v56, %v640_v63  ;;  %vm5271_vm9 = vcmask 64512  }
  0x59   : > { %v432_v7 = vld [vmem:[%s12994_s24 + $0x36] sm:$0x1]  ;;  %v433_v8 = vld [vmem:[%s12994_s24 + $0x46] sm:$0x1]  ;;  %v13107_v10 = vsel %vm536_vm6, %v628_v43, %v627_v5  ;;  %v644_v11 = vsel %vm524_vm2, %v643_v58, %v642_v6  ;;  %v662_v14 = vrot.slane %v430_v2, 7  ;;  %v664_v15 = vrot.slane %v431_v4, 6 }
  0x5a   : > { %v434_v9 = vld [vmem:[%s12994_s24 + $0x56] sm:$0x1]  ;;  %16445 = vst [vmem:[#allocation12_spill] sm:$0xff] %v13107_v10  ;;  %v435_v12 = vld [vmem:[%s12994_s24 + $0x66] sm:$0x1]  ;;  %v897_v16 = vsel %vm884_vm7, %v13107_v10, 0.0  ;;  %v646_v17 = vsel %vm527_vm3, %v645_v59, %v644_v11 }
  0x5b   : > { %v436_v13 = vld [vmem:[%s12994_s24 + $0x76] sm:$0x1]  ;;  %v666_v18 = vrot.slane %v432_v7, 5  ;;  %v668_v19 = vrot.slane %v433_v8, 4  ;;  %v437_v20 = vld [vmem:[%s12994_s24 + $0x7] sm:$0x1]  ;;  %898 = vadd.xlane.f32.xlu0 %v897_v16  ;;  %v648_v21 = vsel %vm530_vm4, %v647_v60, %v646_v17  ;;  %v663_v22 = vsel %vm518_vm0, %v662_v14, %v429_v61 }
  0x5c   : > { %v670_v23 = vrot.slane %v434_v9, 3  ;;  %v672_v24 = vrot.slane %v435_v12, 2  ;;  %v438_v26 = vld [vmem:[%s12994_s24 + $0x17] sm:$0x1]  ;;  %v439_v27 = vld [vmem:[%s12994_s24 + $0x27] sm:$0x1]  ;;  %v650_v28 = vsel %vm533_vm5, %v649_v0, %v648_v21  ;;  %v665_v29 = vsel %vm521_vm1, %v664_v15, %v663_v22 }
  0x5d   : > { %v674_v30 = vrot.slane %v436_v13, 1  ;;  %v440_v31 = vld [vmem:[%s12994_s24 + $0x37] sm:$0x1]  ;;  %v441_v32 = vld [vmem:[%s12994_s24 + $0x47] sm:$0x1]  ;;  %v685_v33 = vrot.slane %v438_v26, 7  ;;  %v13125_v34 = vsel %vm536_vm6, %v651_v1, %v650_v28  ;;  %v667_v35 = vsel %vm524_vm2, %v666_v18, %v665_v29 }
  0x5e   : > { %16446 = vst [vmem:[#allocation13_spill] sm:$0xff] %v13125_v34  ;;  %v442_v36 = vld [vmem:[%s12994_s24 + $0x57] sm:$0x1]  ;;  %v443_v37 = vld [vmem:[%s12994_s24 + $0x67] sm:$0x1]  ;;  %v900_v39 = vsel %vm884_vm7, %v13125_v34, 0.0  ;;  %v669_v40 = vsel %vm527_vm3, %v668_v19, %v667_v35 }
  0x5f   : > { %v444_v38 = vld [vmem:[%s12994_s24 + $0x77] sm:$0x1]  ;;  %v686_v41 = vsel %vm518_vm0, %v685_v33, %v437_v20  ;;  %v687_v42 = vrot.slane %v439_v27, 6  ;;  %v446_v43 = vld [vmem:[%s12994_s24 + $0x18] sm:$0x1]  ;;  %901 = vadd.xlane.f32.xlu1 %v900_v39  ;;  %v671_v45 = vsel %vm530_vm4, %v670_v23, %v669_v40  ;;  %v689_v46 = vrot.slane %v440_v31, 5 }
  0x60   : > { %v691_v48 = vrot.slane %v441_v32, 4  ;;  %v693_v49 = vrot.slane %v442_v36, 3  ;;  %v445_v50 = vld [vmem:[%s12994_s24 + $0x8] sm:$0x1]  ;;  %v673_v52 = vsel %vm533_vm5, %v672_v24, %v671_v45  ;;  %v695_v54 = vrot.slane %v443_v37, 2  ;;  %s11133_s16 = sshll.u32 %s371_s14, 4 }
  0x61   : > { %v447_v51 = vld [vmem:[%s12994_s24 + $0x28] sm:$0x1]  ;;  %v688_v53 = vsel %vm521_vm1, %v687_v42, %v686_v41  ;;  %v697_v55 = vrot.slane %v444_v38, 1  ;;  %v448_v56 = vld [vmem:[%s12994_s24 + $0x38] sm:$0x1]  ;;  %v13144_v58 = vsel %vm536_vm6, %v674_v30, %v673_v52  ;;  %v708_v1 = vrot.slane %v446_v43, 7  ;;  %s13959_s15 = scalar_lea.vmem %s16352_s1, %s11133_s16 }
  0x62   : > { %v449_v57 = vld [vmem:[%s12994_s24 + $0x48] sm:$0x1]  ;;  %16447 = vst [vmem:[#allocation14_spill] sm:$0xff] %v13144_v58  ;;  %v690_v59 = vsel %vm524_vm2, %v689_v46, %v688_v53  ;;  %v450_v60 = vld [vmem:[%s12994_s24 + $0x58] sm:$0x1]  ;;  %v903_v63 = vsel %vm884_vm7, %v13144_v58, 0.0 }
  0x63   : > { %v451_v61 = vld [vmem:[%s12994_s24 + $0x68] sm:$0x1]  ;;  %v452_v62 = vld [vmem:[%s12994_s24 + $0x78] sm:$0x1]  ;;  %v692_v0 = vsel %vm527_vm3, %v691_v48, %v690_v59  ;;  %v710_v2 = vrot.slane %v447_v51, 6  ;;  %904 = vadd.xlane.f32.xlu0 %v903_v63  ;;  %v712_v5 = vrot.slane %v448_v56, 5  ;;  %v709_v12 = vsel %vm518_vm0, %v708_v1, %v445_v50 }
  0x64   : > { %v694_v4 = vsel %vm530_vm4, %v693_v49, %v692_v0  ;;  %v714_v6 = vrot.slane %v449_v57, 4  ;;  %v716_v7 = vrot.slane %v450_v60, 3  ;;  %v453_v8 = vld [vmem:[%s12994_s24 + $0x9] sm:$0x1]  ;;  %v454_v9 = vld [vmem:[%s12994_s24 + $0x19] sm:$0x1] }
  0x65   : > { %v696_v11 = vsel %vm533_vm5, %v695_v54, %v694_v4  ;;  %v718_v13 = vrot.slane %v451_v61, 2  ;;  %v720_v14 = vrot.slane %v452_v62, 1  ;;  %v455_v15 = vld [vmem:[%s12994_s24 + $0x29] sm:$0x1]  ;;  %v456_v16 = vld [vmem:[%s12994_s24 + $0x39] sm:$0x1]  ;;  %v711_v18 = vsel %vm521_vm1, %v710_v2, %v709_v12 }
  0x66   : > { %v13161_v17 = vsel %vm536_vm6, %v697_v55, %v696_v11  ;;  %v457_v19 = vld [vmem:[%s12994_s24 + $0x49] sm:$0x1]  ;;  %v458_v20 = vld [vmem:[%s12994_s24 + $0x59] sm:$0x1]  ;;  %v713_v23 = vsel %vm524_vm2, %v712_v5, %v711_v18  ;;  %v731_v26 = vrot.slane %v454_v9, 7  ;;  %v733_v27 = vrot.slane %v455_v15, 6 }
  0x67   : > { %16448 = vst [vmem:[#allocation15_spill] sm:$0xff] %v13161_v17  ;;  %v459_v21 = vld [vmem:[%s12994_s24 + $0x69] sm:$0x1]  ;;  %v906_v22 = vsel %vm884_vm7, %v13161_v17, 0.0  ;;  %v460_v24 = vld [vmem:[%s12994_s24 + $0x79] sm:$0x1]  ;;  %v715_v28 = vsel %vm527_vm3, %v714_v6, %v713_v23 }
  0x68   : > { %907 = vadd.xlane.f32.xlu1 %v906_v22  ;;  %v735_v29 = vrot.slane %v456_v16, 5  ;;  %v737_v30 = vrot.slane %v457_v19, 4  ;;  %v739_v31 = vrot.slane %v458_v20, 3  ;;  %v461_v32 = vld [vmem:[%s12994_s24 + $0xa] sm:$0x1]  ;;  %v717_v33 = vsel %vm530_vm4, %v716_v7, %v715_v28  ;;  %p16618_p11 = scmp.ne.s32.totalorder %s16437_s18, 0 }
  0x69   : > { %v732_v35 = vsel %vm518_vm0, %v731_v26, %v453_v8  ;;  %v741_v36 = vrot.slane %v459_v21, 2  ;;  %v743_v37 = vrot.slane %v460_v24, 1  ;;  %v462_v38 = vld [vmem:[%s12994_s24 + $0x1a] sm:$0x1]  ;;  %v463_v39 = vld [vmem:[%s12994_s24 + $0x2a] sm:$0x1]  ;;  %v719_v40 = vsel %vm533_vm5, %v718_v13, %v717_v33 }
  0x6a   : > { %v734_v41 = vsel %vm521_vm1, %v733_v27, %v732_v35  ;;  %v464_v42 = vld [vmem:[%s12994_s24 + $0x3a] sm:$0x1]  ;;  %v465_v43 = vld [vmem:[%s12994_s24 + $0x4a] sm:$0x1]  ;;  %v13183_v46 = vsel %vm536_vm6, %v720_v14, %v719_v40  ;;  %v754_v51 = vrot.slane %v462_v38, 7  ;;  %v756_v52 = vrot.slane %v463_v39, 6 }
  0x6b   : > { %v466_v45 = vld [vmem:[%s12994_s24 + $0x5a] sm:$0x1]  ;;  %16449 = vst [vmem:[#allocation16_spill] sm:$0xff] %v13183_v46  ;;  %v736_v48 = vsel %vm524_vm2, %v735_v29, %v734_v41  ;;  %v467_v49 = vld [vmem:[%s12994_s24 + $0x6a] sm:$0x1]  ;;  %v909_v53 = vsel %vm884_vm7, %v13183_v46, 0.0 }
  0x6c   : > { %v468_v50 = vld [vmem:[%s12994_s24 + $0x7a] sm:$0x1]  ;;  %v738_v54 = vsel %vm527_vm3, %v737_v30, %v736_v48  ;;  %v758_v55 = vrot.slane %v464_v42, 5  ;;  %v760_v56 = vrot.slane %v465_v43, 4  ;;  %v469_v57 = vld [vmem:[%s12994_s24 + $0xb] sm:$0x1]  ;;  %910 = vadd.xlane.f32.xlu0 %v909_v53  ;;  %v755_v60 = vsel %vm518_vm0, %v754_v51, %v461_v32 }
  0x6d   : > { %v740_v59 = vsel %vm530_vm4, %v739_v31, %v738_v54  ;;  %v762_v61 = vrot.slane %v466_v45, 3  ;;  %v764_v62 = vrot.slane %v467_v49, 2  ;;  %v470_v63 = vld [vmem:[%s12994_s24 + $0x1b] sm:$0x1]  ;;  %v471_v0 = vld [vmem:[%s12994_s24 + $0x2b] sm:$0x1]  ;;  %v757_v2 = vsel %vm521_vm1, %v756_v52, %v755_v60 }
  0x6e   : > { %v742_v1 = vsel %vm533_vm5, %v741_v36, %v740_v59  ;;  %v766_v4 = vrot.slane %v468_v50, 1  ;;  %v472_v5 = vld [vmem:[%s12994_s24 + $0x3b] sm:$0x1]  ;;  %v473_v6 = vld [vmem:[%s12994_s24 + $0x4b] sm:$0x1]  ;;  %v777_v7 = vrot.slane %v470_v63, 7  ;;  %v759_v9 = vsel %vm524_vm2, %v758_v55, %v757_v2 }
  0x6f   : > { %v13201_v8 = vsel %vm536_vm6, %v743_v37, %v742_v1  ;;  %v474_v11 = vld [vmem:[%s12994_s24 + $0x5b] sm:$0x1]  ;;  %v475_v12 = vld [vmem:[%s12994_s24 + $0x6b] sm:$0x1]  ;;  %v761_v15 = vsel %vm527_vm3, %v760_v56, %v759_v9  ;;  %v779_v18 = vrot.slane %v471_v0, 6  ;;  %v781_v21 = vrot.slane %v472_v5, 5 }
  0x70   : > { %16450 = vst [vmem:[#allocation17_spill] sm:$0xff] %v13201_v8  ;;  %v476_v13 = vld [vmem:[%s12994_s24 + $0x7b] sm:$0x1]  ;;  %v912_v14 = vsel %vm884_vm7, %v13201_v8, 0.0  ;;  %v778_v16 = vsel %vm518_vm0, %v777_v7, %v469_v57  ;;  %v478_v19 = vld [vmem:[%s12994_s24 + $0x1c] sm:$0x1]  ;;  %v763_v20 = vsel %vm530_vm4, %v762_v61, %v761_v15 }
  0x71   : > { %913 = vadd.xlane.f32.xlu1 %v912_v14  ;;  %v783_v22 = vrot.slane %v473_v6, 4  ;;  %v785_v23 = vrot.slane %v474_v11, 3  ;;  %v477_v24 = vld [vmem:[%s12994_s24 + $0xc] sm:$0x1]  ;;  %v765_v27 = vsel %vm533_vm5, %v764_v62, %v763_v20  ;;  %v780_v28 = vsel %vm521_vm1, %v779_v18, %v778_v16  ;;  %v480_v31 = vld [vmem:[%s12994_s24 + $0x3c] sm:$0x1] }
  0x72   : > { %v479_v26 = vld [vmem:[%s12994_s24 + $0x2c] sm:$0x1]  ;;  %v787_v29 = vrot.slane %v475_v12, 2  ;;  %v789_v30 = vrot.slane %v476_v13, 1  ;;  %v13220_v33 = vsel %vm536_vm6, %v766_v4, %v765_v27  ;;  %v782_v35 = vsel %vm524_vm2, %v781_v21, %v780_v28  ;;  %v482_v36 = vld [vmem:[%s12994_s24 + $0x5c] sm:$0x1] }
  0x73   : > { %v481_v32 = vld [vmem:[%s12994_s24 + $0x4c] sm:$0x1]  ;;  %16451 = vst [vmem:[#allocation18_spill] sm:$0xff] %v13220_v33  ;;  %v484_v38 = vld [vmem:[%s12994_s24 + $0x7c] sm:$0x1]  ;;  %v915_v39 = vsel %vm884_vm7, %v13220_v33, 0.0  ;;  %v784_v40 = vsel %vm527_vm3, %v783_v22, %v782_v35 }
  0x74   : > { %v483_v37 = vld [vmem:[%s12994_s24 + $0x6c] sm:$0x1]  ;;  %v800_v41 = vrot.slane %v478_v19, 7  ;;  %v802_v42 = vrot.slane %v479_v26, 6  ;;  %916 = vadd.xlane.f32.xlu0 %v915_v39  ;;  %v786_v43 = vsel %vm530_vm4, %v785_v23, %v784_v40  ;;  %v804_v45 = vrot.slane %v480_v31, 5 }
  0x75   : > { %v806_v48 = vrot.slane %v481_v32, 4  ;;  %v808_v49 = vrot.slane %v482_v36, 3  ;;  %v485_v50 = vld [vmem:[%s12994_s24 + $0xd] sm:$0x1]  ;;  %v486_v51 = vld [vmem:[%s12994_s24 + $0x1d] sm:$0x1]  ;;  %v788_v52 = vsel %vm533_vm5, %v787_v29, %v786_v43 }
  0x76   : > { %v801_v53 = vsel %vm518_vm0, %v800_v41, %v477_v24  ;;  %v810_v54 = vrot.slane %v483_v37, 2  ;;  %v812_v55 = vrot.slane %v484_v38, 1  ;;  %v487_v56 = vld [vmem:[%s12994_s24 + $0x2d] sm:$0x1]  ;;  %v488_v57 = vld [vmem:[%s12994_s24 + $0x3d] sm:$0x1]  ;;  %v13237_v59 = vsel %vm536_vm6, %v789_v30, %v788_v52 }
  0x77   : > { %16452 = vst [vmem:[#allocation19_spill] sm:$0xff] %v13237_v59  ;;  %v803_v60 = vsel %vm521_vm1, %v802_v42, %v801_v53  ;;  %v489_v61 = vld [vmem:[%s12994_s24 + $0x4d] sm:$0x1]  ;;  %v490_v62 = vld [vmem:[%s12994_s24 + $0x5d] sm:$0x1]  ;;  %v918_v0 = vsel %vm884_vm7, %v13237_v59, 0.0 }
  0x78   : > { %v491_v63 = vld [vmem:[%s12994_s24 + $0x6d] sm:$0x1]  ;;  %v805_v1 = vsel %vm524_vm2, %v804_v45, %v803_v60  ;;  %v492_v2 = vld [vmem:[%s12994_s24 + $0x7d] sm:$0x1]  ;;  %v823_v4 = vrot.slane %v486_v51, 7  ;;  %v825_v5 = vrot.slane %v487_v56, 6  ;;  %919 = vadd.xlane.f32.xlu1 %v918_v0 }
  0x79   : > { %v807_v6 = vsel %vm527_vm3, %v806_v48, %v805_v1  ;;  %v827_v7 = vrot.slane %v488_v57, 5  ;;  %v829_v9 = vrot.slane %v489_v61, 4  ;;  %v831_v11 = vrot.slane %v490_v62, 3  ;;  %v493_v12 = vld [vmem:[%s12994_s24 + $0xe] sm:$0x1] }
  0x7a   : > { %v809_v13 = vsel %vm530_vm4, %v808_v49, %v807_v6  ;;  %v824_v14 = vsel %vm518_vm0, %v823_v4, %v485_v50  ;;  %v833_v15 = vrot.slane %v491_v63, 2  ;;  %v835_v16 = vrot.slane %v492_v2, 1  ;;  %v494_v18 = vld [vmem:[%s12994_s24 + $0x1e] sm:$0x1]  ;;  %v495_v19 = vld [vmem:[%s12994_s24 + $0x2e] sm:$0x1] }
  0x7b   : > { %v811_v20 = vsel %vm533_vm5, %v810_v54, %v809_v13  ;;  %v826_v21 = vsel %vm521_vm1, %v825_v5, %v824_v14  ;;  %v496_v22 = vld [vmem:[%s12994_s24 + $0x3e] sm:$0x1]  ;;  %v497_v23 = vld [vmem:[%s12994_s24 + $0x4e] sm:$0x1]  ;;  %v846_v30 = vrot.slane %v494_v18, 7  ;;  %v848_v31 = vrot.slane %v495_v19, 6 }
  0x7c   : > { %v498_v24 = vld [vmem:[%s12994_s24 + $0x5e] sm:$0x1]  ;;  %v13259_v26 = vsel %vm536_vm6, %v812_v55, %v811_v20  ;;  %v828_v27 = vsel %vm524_vm2, %v827_v7, %v826_v21  ;;  %v499_v28 = vld [vmem:[%s12994_s24 + $0x6e] sm:$0x1]  ;;  %v850_v36 = vrot.slane %v496_v22, 5  ;;  %v852_v37 = vrot.slane %v497_v23, 4 }
  0x7d   : > { %16453 = vst [vmem:[#allocation20_spill] sm:$0xff] %v13259_v26  ;;  %v500_v29 = vld [vmem:[%s12994_s24 + $0x7e] sm:$0x1]  ;;  %v921_v32 = vsel %vm884_vm7, %v13259_v26, 0.0  ;;  %v830_v35 = vsel %vm527_vm3, %v829_v9, %v828_v27  ;;  %v501_v38 = vld [vmem:[%s12994_s24 + $0xf] sm:$0x1]  ;;  %v847_v40 = vsel %vm518_vm0, %v846_v30, %v493_v12 }
  0x7e   : > { %922 = vadd.xlane.f32.xlu0 %v921_v32  ;;  %v832_v39 = vsel %vm530_vm4, %v831_v11, %v830_v35  ;;  %v854_v41 = vrot.slane %v498_v24, 3  ;;  %v856_v42 = vrot.slane %v499_v28, 2  ;;  %v502_v43 = vld [vmem:[%s12994_s24 + $0x1f] sm:$0x1]  ;;  %v503_v45 = vld [vmem:[%s12994_s24 + $0x2f] sm:$0x1]  ;;  %v849_v49 = vsel %vm521_vm1, %v848_v31, %v847_v40 }
  0x7f   : > { %v834_v48 = vsel %vm533_vm5, %v833_v15, %v832_v39  ;;  %v858_v50 = vrot.slane %v500_v29, 1  ;;  %v504_v51 = vld [vmem:[%s12994_s24 + $0x3f] sm:$0x1]  ;;  %v505_v52 = vld [vmem:[%s12994_s24 + $0x4f] sm:$0x1]  ;;  %v869_v53 = vrot.slane %v502_v43, 7  ;;  %v851_v55 = vsel %vm524_vm2, %v850_v36, %v849_v49 }
  0x80   : > { %v13277_v54 = vsel %vm536_vm6, %v835_v16, %v834_v48  ;;  %v506_v56 = vld [vmem:[%s12994_s24 + $0x5f] sm:$0x1]  ;;  %v507_v57 = vld [vmem:[%s12994_s24 + $0x6f] sm:$0x1]  ;;  %v853_v62 = vsel %vm527_vm3, %v852_v37, %v851_v55  ;;  %v871_v0 = vrot.slane %v503_v45, 6  ;;  %v873_v2 = vrot.slane %v504_v51, 5 }
  0x81   : > { %16454 = vst [vmem:[#allocation21_spill] sm:$0xff] %v13277_v54  ;;  %v508_v60 = vld [vmem:[%s12994_s24 + $0x7f] sm:$0x1]  ;;  %v924_v61 = vsel %vm884_vm7, %v13277_v54, 0.0  ;;  %v870_v63 = vsel %vm518_vm0, %v869_v53, %v501_v38  ;;  %v855_v1 = vsel %vm530_vm4, %v854_v41, %v853_v62  ;;  %v875_v4 = vrot.slane %v505_v52, 4 }
  0x82   : > { %925 = vadd.xlane.f32.xlu1 %v924_v61  ;;  %v877_v5 = vrot.slane %v506_v56, 3  ;;  %v857_v6 = vsel %vm533_vm5, %v856_v42, %v855_v1  ;;  %v872_v7 = vsel %vm521_vm1, %v871_v0, %v870_v63  ;;  %v879_v9 = vrot.slane %v507_v57, 2 }
  0x83   : > { %v881_v11 = vrot.slane %v508_v60, 1  ;;  %v13291_v12 = vsel %vm536_vm6, %v858_v50, %v857_v6  ;;  %v874_v13 = vsel %vm524_vm2, %v873_v2, %v872_v7  ;;  %vm6107_vm10 = vcmask 1043456  }
  0x84   : > { %16455 = vst [vmem:[#allocation22_spill] sm:$0xff] %v13291_v12  ;;  %v927_v14 = vsel %vm884_vm7, %v13291_v12, 0.0  ;;  %v876_v15 = vsel %vm527_vm3, %v875_v4, %v874_v13  ;;  %vm9321_vm11 = vcmask 523264   ;;  %vm9338_vm12 = vcmask 785408  }
  0x85   : > { %928 = vadd.xlane.f32.xlu0 %v927_v14  ;;  %v878_v16 = vsel %vm530_vm4, %v877_v5, %v876_v15  ;;  %vm9621_vm13 = vcmask 253952  }
  0x86   : > { %v880_v18 = vsel %vm533_vm5, %v879_v9, %v878_v16 }
  0x87   : > { %v13300_v19 = vsel %vm536_vm6, %v881_v11, %v880_v18 }
  0x88   : > { %16456 = vst [vmem:[#allocation23_spill] sm:$0xff] %v13300_v19  ;;  %v930_v20 = vsel %vm884_vm7, %v13300_v19, 0.0 }
  0x89   : > { %931 = vadd.xlane.f32.xlu1 %v930_v20 }
  0xd7   : > { %v887_v21 = vpop.xlane.xlu0 %886 }
  0xd8   : > { %v934_v22 = vmul.f32 0.03125, %v887_v21 }
  0xda   : > { %v13305_v23 = vsub.f32 %v13031_v44, %v934_v22 }
  0xdb   : > { %v893_v24 = vpop.xlane.xlu1 %892 }
  0xdc   : > { %v936_v27 = vmul.f32 0.03125, %v893_v24  ;;  %v966_v28 = vmul.f32 %v13305_v23, %v13305_v23 }
  0xde   : > { %v13310_v29 = vsub.f32 %v13049_v3, %v936_v27  ;;  %v982_v30 = vsel %vm884_vm7, %v966_v28, 0.0 }
  0xdf   : > { %v890_v31 = vpop.xlane.xlu0 %889  ;;  %983 = vadd.xlane.f32.xlu0 %v982_v30 }
  0xe0   : > { %v935_v32 = vmul.f32 0.03125, %v890_v31  ;;  %v968_v35 = vmul.f32 %v13310_v29, %v13310_v29 }
  0xe2   : > { %v13316_v36 = vsub.f32 %v13068_v25, %v935_v32  ;;  %v988_v37 = vsel %vm884_vm7, %v968_v35, 0.0 }
  0xe3   : > { %v896_v38 = vpop.xlane.xlu1 %895  ;;  %989 = vadd.xlane.f32.xlu0 %v988_v37 }
  0xe4   : > { %v937_v39 = vmul.f32 0.03125, %v896_v38  ;;  %v967_v40 = vmul.f32 %v13316_v36, %v13316_v36 }
  0xe6   : > { %v13322_v41 = vsub.f32 %v13085_v47, %v937_v39  ;;  %v985_v42 = vsel %vm884_vm7, %v967_v40, 0.0 }
  0xe7   : > { %986 = vadd.xlane.f32.xlu1 %v985_v42 }
  0xe8   : > { %v899_v43 = vpop.xlane.xlu0 %898  ;;  %v969_v45 = vmul.f32 %v13322_v41, %v13322_v41 }
  0xe9   : > { %v938_v48 = vmul.f32 0.03125, %v899_v43 }
  0xea   : > { %v991_v49 = vsel %vm884_vm7, %v969_v45, 0.0 }
  0xeb   : > { %v13329_v50 = vsub.f32 %v13107_v10, %v938_v48  ;;  %992 = vadd.xlane.f32.xlu1 %v991_v49 }
  0xec   : > { %v902_v51 = vpop.xlane.xlu1 %901 }
  0xed   : > { %v939_v52 = vmul.f32 0.03125, %v902_v51  ;;  %v970_v53 = vmul.f32 %v13329_v50, %v13329_v50 }
  0xef   : > { %v13334_v55 = vsub.f32 %v13125_v34, %v939_v52  ;;  %v994_v56 = vsel %vm884_vm7, %v970_v53, 0.0 }
  0xf0   : > { %v905_v57 = vpop.xlane.xlu0 %904  ;;  %995 = vadd.xlane.f32.xlu0 %v994_v56 }
  0xf1   : > { %v940_v60 = vmul.f32 0.03125, %v905_v57  ;;  %v971_v61 = vmul.f32 %v13334_v55, %v13334_v55 }
  0xf3   : > { %v13340_v62 = vsub.f32 %v13144_v58, %v940_v60  ;;  %v997_v63 = vsel %vm884_vm7, %v971_v61, 0.0  ;;  %v12332_v60 = vld [vmem:[%s16355_s4 + $0x4] ss:$16 sps:$4 sm:$0xff]  }
  0xf4   : > { %998 = vadd.xlane.f32.xlu1 %v997_v63  ;;  %1220 = vmatprep.subr.bf16.mxu0 %v12332_v60 }
  0xf5   : > { %v908_v0 = vpop.xlane.xlu1 %907  ;;  %v972_v2 = vmul.f32 %v13340_v62, %v13340_v62  ;;  %12255 = vmatprep.subr.bf16.mxu1 %v12332_v60 }
  0xf6   : > { %v941_v1 = vmul.f32 0.03125, %v908_v0 }
  0xf7   : > { %v1000_v5 = vsel %vm884_vm7, %v972_v2, 0.0 }
  0xf8   : > { %v13346_v4 = vsub.f32 %v13161_v17, %v941_v1  ;;  %1001 = vadd.xlane.f32.xlu0 %v1000_v5 }
  0xf9   : > { %v911_v6 = vpop.xlane.xlu0 %910 }
  0xfa   : > { %v973_v7 = vmul.f32 %v13346_v4, %v13346_v4  ;;  %v942_v9 = vmul.f32 0.03125, %v911_v6 }
  0xfc   : > { %v1003_v11 = vsel %vm884_vm7, %v973_v7, 0.0  ;;  %v13353_v13 = vsub.f32 %v13183_v46, %v942_v9  ;;  %v12334_v9 = vld [vmem:[%s16355_s4] ss:$16 sps:$4 sm:$0xff]  }
  0xfd   : > { %1004 = vadd.xlane.f32.xlu1 %v1003_v11  ;;  %v12335_v11 = vld [vmem:[%s16355_s4 + $0x24] ss:$16 sps:$4 sm:$0xff]   ;;  %1221 = vmatpush1.bf16.msra.mxu0 %v12334_v9 }
  0xfe   : > { %v914_v14 = vpop.xlane.xlu1 %913  ;;  %v974_v16 = vmul.f32 %v13353_v13, %v13353_v13  ;;  %12257 = vmatpush1.bf16.msra.mxu1 %v12334_v9  ;;  %1222 = vmatprep.subr.bf16.mxu0 %v12335_v11 }
  0xff   : > { %v943_v15 = vmul.f32 0.03125, %v914_v14  ;;  %12256 = vmatprep.subr.bf16.mxu1 %v12335_v11 }
 0x100   : > { %v1006_v20 = vsel %vm884_vm7, %v974_v16, 0.0  ;;  %v12821_v16 = vmov 0  }
 0x101   : > { %v13358_v18 = vsub.f32 %v13201_v8, %v943_v15  ;;  %v917_v21 = vpop.xlane.xlu0 %916  ;;  %1007 = vadd.xlane.f32.xlu0 %v1006_v20  ;;  %v12337_v15 = vld [vmem:[%s16355_s4 + $0x20] ss:$16 sps:$4 sm:$0xff]   ;;  %1252 = vmatprep.mubr.bf16.mxu0 %v12821_v16  ;;  %v12340_v20 = vld [vmem:[%s16355_s4 + $0xc] ss:$16 sps:$4 sm:$0xff]   ;;  %v1577_v8 = vlaneseq }
 0x102   : > { %v944_v22 = vmul.f32 0.03125, %v917_v21  ;;  %1223 = vmatpush1.bf16.msra.mxu0 %v12337_v15  ;;  %12258 = vmatpush1.bf16.msra.mxu1 %v12337_v15 }
 0x103   : > { %v975_v24 = vmul.f32 %v13358_v18, %v13358_v18  ;;  %1302 = vmatprep.mubr.bf16.mxu1 %v12821_v16  ;;  %1333 = vmatprep.subr.bf16.mxu1 %v12340_v20 }
 0x104   : > { %v13364_v27 = vsub.f32 %v13220_v33, %v944_v22 }
 0x105   : > { %v1009_v28 = vsel %vm884_vm7, %v975_v24, 0.0  ;;  %v920_v30 = vpop.xlane.xlu1 %919 }
 0x106   : > { %1010 = vadd.xlane.f32.xlu1 %v1009_v28  ;;  %v945_v31 = vmul.f32 0.03125, %v920_v30  ;;  %v976_v32 = vmul.f32 %v13364_v27, %v13364_v27 }
 0x108   : > { %v13370_v35 = vsub.f32 %v13237_v59, %v945_v31  ;;  %v1012_v37 = vsel %vm884_vm7, %v976_v32, 0.0 }
 0x109   : > { %1013 = vadd.xlane.f32.xlu0 %v1012_v37 }
 0x10a   : > { %v977_v39 = vmul.f32 %v13370_v35, %v13370_v35 }
 0x10b   : > { %v923_v38 = vpop.xlane.xlu0 %922 }
 0x10c   : > { %v946_v40 = vmul.f32 0.03125, %v923_v38  ;;  %v1015_v42 = vsel %vm884_vm7, %v977_v39, 0.0 }
 0x10d   : > { %1016 = vadd.xlane.f32.xlu1 %v1015_v42 }
 0x10e   : > { %v13377_v43 = vsub.f32 %v13259_v26, %v946_v40 }
 0x10f   : > { %v926_v45 = vpop.xlane.xlu1 %925 }
 0x110   : > { %v947_v48 = vmul.f32 0.03125, %v926_v45  ;;  %v978_v49 = vmul.f32 %v13377_v43, %v13377_v43 }
 0x112   : > { %v13382_v51 = vsub.f32 %v13277_v54, %v947_v48  ;;  %v1018_v52 = vsel %vm884_vm7, %v978_v49, 0.0  ;;  %v929_v53 = vpop.xlane.xlu0 %928 }
 0x113   : > { %1019 = vadd.xlane.f32.xlu0 %v1018_v52  ;;  %v948_v56 = vmul.f32 0.03125, %v929_v53 }
 0x114   : > { %v979_v57 = vmul.f32 %v13382_v51, %v13382_v51 }
 0x115   : > { %v13391_v61 = vsub.f32 %v13291_v12, %v948_v56  ;;  %v13421_v56 = vld [vmem:[%s16353_s2] ss:$0 sm:$0xff] }
 0x116   : > { %v1021_v63 = vsel %vm884_vm7, %v979_v57, 0.0  ;;  %v932_v0 = vpop.xlane.xlu1 %931 }
 0x117   : > { %1022 = vadd.xlane.f32.xlu1 %v1021_v63  ;;  %v949_v1 = vmul.f32 0.03125, %v932_v0  ;;  %v980_v2 = vmul.f32 %v13391_v61, %v13391_v61 }
 0x119   : > { %v13397_v5 = vsub.f32 %v13300_v19, %v949_v1  ;;  %v1024_v6 = vsel %vm884_vm7, %v980_v2, 0.0 }
 0x11a   : > { %1025 = vadd.xlane.f32.xlu0 %v1024_v6  ;;  %v13428_v6 = vld [vmem:[%s16354_s3] ss:$0 sm:$0xff] }
 0x11b   : > { %v981_v7 = vmul.f32 %v13397_v5, %v13397_v5 }
 0x11d   : > { %v1027_v14 = vsel %vm884_vm7, %v981_v7, 0.0 }
 0x11e   : > { %1028 = vadd.xlane.f32.xlu1 %v1027_v14 }
 0x16c   : > { %v984_v21 = vpop.xlane.xlu0 %983 }
 0x16d   : > { %v1030_v22 = vmul.f32 0.03125, %v984_v21 }
 0x16f   : > { %v1046_v24 = vadd.f32 1e-05, %v1030_v22 }
 0x170   : > { %v990_v28 = vpop.xlane.xlu0 %989 }
 0x171   : > { %12352 = vrsqrt.f32 %v1046_v24  ;;  %v1032_v30 = vmul.f32 0.03125, %v990_v28 }
 0x173   : > { %v1048_v38 = vadd.f32 1e-05, %v1032_v30 }
 0x174   : > { %v987_v31 = vpop.xlane.xlu1 %986 }
 0x175   : > { %v1031_v32 = vmul.f32 0.03125, %v987_v31 }
 0x177   : > { %v1047_v37 = vadd.f32 1e-05, %v1031_v32 }
 0x178   : > { %v993_v39 = vpop.xlane.xlu1 %992 }
 0x179   : > { %12354 = vrsqrt.f32 %v1047_v37  ;;  %v1033_v40 = vmul.f32 0.03125, %v993_v39 }
 0x17a   : > { %12356 = vrsqrt.f32 %v1048_v38 }
 0x17b   : > { %v1049_v42 = vadd.f32 1e-05, %v1033_v40  ;;  %v12353_v45 = vpop.eup %12352 }
 0x17c   : > { %v1078_v52 = vmul.f32 %v12353_v45, %v13305_v23 }
 0x17d   : > { %12358 = vrsqrt.f32 %v1049_v42  ;;  %v996_v48 = vpop.xlane.xlu0 %995 }
 0x17e   : > { %v1034_v49 = vmul.f32 0.03125, %v996_v48  ;;  %v1101_v0 = vmul.f32 %v13421_v56, %v1078_v52 }
 0x180   : > { %v1050_v53 = vadd.f32 1e-05, %v1034_v49  ;;  %v1124_v15 = vadd.f32 %v13428_v6, %v1101_v0 }
 0x181   : > { %v999_v57 = vpop.xlane.xlu1 %998 }
 0x182   : > { %v1035_v60 = vmul.f32 0.03125, %v999_v57  ;;  %12360 = vrsqrt.f32 %v1050_v53 }
 0x183   : > { %v12355_v63 = vpop.eup %12354 }
 0x184   : > { %v1051_v1 = vadd.f32 1e-05, %v1035_v60  ;;  %v1079_v2 = vmul.f32 %v12355_v63, %v13316_v36  ;;  %v12357_v23 = vpop.eup %12356 }
 0x185   : > { %v1002_v7 = vpop.xlane.xlu0 %1001  ;;  %v1080_v22 = vmul.f32 %v12357_v23, %v13310_v29 }
 0x186   : > { %12362 = vrsqrt.f32 %v1051_v1  ;;  %v1036_v9 = vmul.f32 0.03125, %v1002_v7  ;;  %v1102_v11 = vmul.f32 %v13421_v56, %v1079_v2 }
 0x187   : > { %v12359_v14 = vpop.eup %12358  ;;  %v1103_v37 = vmul.f32 %v13421_v56, %v1080_v22 }
 0x188   : > { %v1052_v20 = vadd.f32 1e-05, %v1036_v9  ;;  %v1125_v21 = vadd.f32 %v13428_v6, %v1102_v11  ;;  %v1081_v36 = vmul.f32 %v12359_v14, %v13322_v41 }
 0x189   : > { %v1126_v42 = vadd.f32 %v13428_v6, %v1103_v37 }
 0x18a   : > { %v1005_v24 = vpop.xlane.xlu1 %1004  ;;  %v13435_v30 = vpack.c.bf16 %v1125_v21, %v1124_v15  ;;  %v1104_v31 = vmul.f32 %v13421_v56, %v1081_v36  ;;  %12364 = vrsqrt.f32 %v1052_v20 }
 0x18b   : > { %v1037_v28 = vmul.f32 0.03125, %v1005_v24 }
 0x18c   : > { %10763 = vmatmul.mubr.msk.bf16.vlgmr.msra.gmra.mrb[0].mxu0 %vm884_vm7, %v13435_v30  ;;  %v12361_v38 = vpop.eup %12360  ;;  %v1127_v41 = vadd.f32 %v13428_v6, %v1104_v31 }
 0x18d   : > { %v1053_v32 = vadd.f32 1e-05, %v1037_v28  ;;  %1262 = vmatprep.mubr.bf16.mxu0 %v12821_v16  ;;  %v1082_v45 = vmul.f32 %v12361_v38, %v13329_v50 }
 0x18e   : > { %v1008_v29 = vpop.xlane.xlu0 %1007  ;;  %v13446_v53 = vpack.c.bf16 %v1127_v41, %v1126_v42 }
 0x18f   : > { %12366 = vrsqrt.f32 %v1053_v32  ;;  %v1038_v39 = vmul.f32 0.03125, %v1008_v29  ;;  %v1105_v63 = vmul.f32 %v13421_v56, %v1082_v45 }
 0x190   : > { %v12363_v40 = vpop.eup %12362 }
 0x191   : > { %v1054_v48 = vadd.f32 1e-05, %v1038_v39  ;;  %v1083_v49 = vmul.f32 %v12363_v40, %v13334_v55  ;;  %v1128_v7 = vadd.f32 %v13428_v6, %v1105_v63 }
 0x193   : > { %v1011_v52 = vpop.xlane.xlu1 %1010  ;;  %12368 = vrsqrt.f32 %v1054_v48  ;;  %v1106_v60 = vmul.f32 %v13421_v56, %v1083_v49 }
 0x194   : > { %v1039_v57 = vmul.f32 0.03125, %v1011_v52  ;;  %10764 = vmatmul.mubr.msk.bf16.gmra.mrb[4].mxu0 %vm884_vm7, %v13446_v53  ;;  %v12365_v0 = vpop.eup %12364 }
 0x195   : > { %1272 = vmatprep.mubr.bf16.mxu0 %v12821_v16  ;;  %v1129_v2 = vadd.f32 %v13428_v6, %v1106_v60  ;;  %v1084_v9 = vmul.f32 %v12365_v0, %v13340_v62 }
 0x196   : > { %v1055_v1 = vadd.f32 1e-05, %v1039_v57  ;;  %v1014_v50 = vpop.xlane.xlu0 %1013 }
 0x197   : > { %v1040_v55 = vmul.f32 0.03125, %v1014_v50  ;;  %v13457_v20 = vpack.c.bf16 %v1129_v2, %v1128_v7  ;;  %v1107_v36 = vmul.f32 %v13421_v56, %v1084_v9 }
 0x198   : > { %12370 = vrsqrt.f32 %v1055_v1 }
 0x199   : > { %v12367_v23 = vpop.eup %12366  ;;  %v1056_v11 = vadd.f32 1e-05, %v1040_v55  ;;  %v1130_v32 = vadd.f32 %v13428_v6, %v1107_v36  ;;  %v12343_v36 = vld [vmem:[%s16355_s4 + $0x2c] ss:$16 sps:$4 sm:$0xff]  }
 0x19a   : > { %v1085_v14 = vmul.f32 %v12367_v23, %v13346_v4  ;;  %v1017_v15 = vpop.xlane.xlu1 %1016 }
 0x19b   : > { %12372 = vrsqrt.f32 %v1056_v11  ;;  %v1041_v21 = vmul.f32 0.03125, %v1017_v15 }
 0x19c   : > { %v1108_v22 = vmul.f32 %v13421_v56, %v1085_v14  ;;  %10765 = vmatmul.mubr.msk.bf16.gmra.mrb[8].mxu0 %vm884_vm7, %v13457_v20 }
 0x19d   : > { %v12369_v24 = vpop.eup %12368  ;;  %v1057_v28 = vadd.f32 1e-05, %v1041_v21  ;;  %1282 = vmatprep.mubr.bf16.mxu0 %v12821_v16 }
 0x19e   : > { %v1131_v62 = vadd.f32 %v13428_v6, %v1108_v22  ;;  %v1086_v37 = vmul.f32 %v12369_v24, %v13353_v13 }
 0x19f   : > { %12374 = vrsqrt.f32 %v1057_v28 }
 0x1a0   : > { %v1020_v4 = vpop.xlane.xlu0 %1019  ;;  %v13467_v41 = vpack.c.bf16 %v1131_v62, %v1130_v32  ;;  %v1109_v45 = vmul.f32 %v13421_v56, %v1086_v37 }
 0x1a1   : > { %v1042_v31 = vmul.f32 0.03125, %v1020_v4 }
 0x1a2   : > { %v12371_v38 = vpop.eup %12370  ;;  %v1132_v63 = vadd.f32 %v13428_v6, %v1109_v45 }
 0x1a3   : > { %v1058_v29 = vadd.f32 1e-05, %v1042_v31  ;;  %v1087_v39 = vmul.f32 %v12371_v38, %v13358_v18 }
 0x1a4   : > { %v1023_v40 = vpop.xlane.xlu1 %1022  ;;  %10766 = vmatmul.mubr.msk.bf16.gmra.mrb[12].mxu0 %vm884_vm7, %v13467_v41 }
 0x1a5   : > { %12376 = vrsqrt.f32 %v1058_v29  ;;  %v1043_v42 = vmul.f32 0.03125, %v1023_v40  ;;  %v1110_v48 = vmul.f32 %v13421_v56, %v1087_v39  ;;  %v12373_v49 = vpop.eup %12372  ;;  %1292 = vmatprep.mubr.bf16.mxu0 %v12821_v16 }
 0x1a6   : > { %v1088_v52 = vmul.f32 %v12373_v49, %v13364_v27 }
 0x1a7   : > { %v1059_v13 = vadd.f32 1e-05, %v1043_v42  ;;  %v1133_v57 = vadd.f32 %v13428_v6, %v1110_v48  ;;  %v1026_v60 = vpop.xlane.xlu0 %1025 }
 0x1a8   : > { %v1044_v18 = vmul.f32 0.03125, %v1026_v60  ;;  %v1111_v2 = vmul.f32 %v13421_v56, %v1088_v52 }
 0x1a9   : > { %12378 = vrsqrt.f32 %v1059_v13  ;;  %v12375_v0 = vpop.eup %12374  ;;  %v1144_v55 = vpack.c.bf16 %v1133_v57, %v1132_v63 }
 0x1aa   : > { %v1060_v1 = vadd.f32 1e-05, %v1044_v18  ;;  %v1089_v50 = vmul.f32 %v12375_v0, %v13370_v35  ;;  %v1134_v14 = vadd.f32 %v13428_v6, %v1111_v2  ;;  %v12338_v35 = vld [vmem:[%s16355_s4 + $0x8] ss:$16 sps:$4 sm:$0xff]  }
 0x1ab   : > { %v1029_v23 = vpop.xlane.xlu1 %1028 }
 0x1ac   : > { %12380 = vrsqrt.f32 %v1060_v1  ;;  %v1045_v7 = vmul.f32 0.03125, %v1029_v23  ;;  %v1112_v9 = vmul.f32 %v13421_v56, %v1089_v50  ;;  %10767 = vmatmul.mubr.msk.bf16.gmra.mrb[16].mxu0 %vm884_vm7, %v1144_v55 }
 0x1ae   : > { %v1061_v11 = vadd.f32 1e-05, %v1045_v7  ;;  %v1135_v15 = vadd.f32 %v13428_v6, %v1112_v9 }
 0x1af   : > { %v12377_v27 = vpop.eup %12376 }
 0x1b0   : > { %v1090_v21 = vmul.f32 %v12377_v27, %v13377_v43  ;;  %12382 = vrsqrt.f32 %v1061_v11  ;;  %v1145_v22 = vpack.c.bf16 %v1135_v15, %v1134_v14  ;;  %v12341_v43 = vld [vmem:[%s16355_s4 + $0x28] ss:$16 sps:$4 sm:$0xff]  }
 0x1b2   : > { %10768 = vmatmul.mubr.msk.bf16.vlgmr.msra.gmra.mrb[0].mxu1 %vm884_vm7, %v1145_v22  ;;  %v1113_v62 = vmul.f32 %v13421_v56, %v1090_v21 }
 0x1b3   : > { %v12379_v24 = vpop.eup %12378  ;;  %1312 = vmatprep.mubr.bf16.mxu1 %v12821_v16  ;;  %1334 = vmatpush1.bf16.msra.mxu1 %v12338_v35 }
 0x1b4   : > { %v1091_v28 = vmul.f32 %v12379_v24, %v13382_v51  ;;  %1335 = vmatprep.subr.bf16.mxu1 %v12343_v36  ;;  %v1136_v32 = vadd.f32 %v13428_v6, %v1113_v62 }
 0x1b6   : > { %v1114_v4 = vmul.f32 %v13421_v56, %v1091_v28  ;;  %v12381_v31 = vpop.eup %12380 }
 0x1b7   : > { %v1092_v38 = vmul.f32 %v12381_v31, %v13391_v61  ;;  %1336 = vmatpush1.bf16.msra.mxu1 %v12341_v43  ;;  %v16361_v61 = vmov 0.0  }
 0x1b8   : > { %v1137_v37 = vadd.f32 %v13428_v6, %v1114_v4  ;;  %11455 = vmatprep.subr.bf16.mxu0 %v16361_v61  ;;  %11461 = vmatprep.subr.bf16.mxu1 %v16361_v61 }
 0x1b9   : > { %v1115_v40 = vmul.f32 %v13421_v56, %v1092_v38  ;;  %11457 = vmatprep.mubr.msk.bf16.mxu0 %vm12823_vm8, %v16361_v61 }
 0x1ba   : > { %v1146_v29 = vpack.c.bf16 %v1137_v37, %v1136_v32  ;;  %v12383_v51 = vpop.eup %12382 }
 0x1bb   : > { %v1093_v39 = vmul.f32 %v12383_v51, %v13397_v5  ;;  %v1138_v45 = vadd.f32 %v13428_v6, %v1115_v40 }
 0x1bc   : > { %10769 = vmatmul.mubr.msk.bf16.gmra.mrb[4].mxu1 %vm884_vm7, %v1146_v29 }
 0x1bd   : > { %1322 = vmatprep.mubr.bf16.mxu1 %v12821_v16  ;;  %v1116_v42 = vmul.f32 %v13421_v56, %v1093_v39 }
 0x1bf   : > { %v1139_v48 = vadd.f32 %v13428_v6, %v1116_v42 }
 0x1c1   : > { %v1147_v49 = vpack.c.bf16 %v1139_v48, %v1138_v45 }
 0x1c4   : > { %10770 = vmatmul.mubr.msk.bf16.gmra.mrb[8].mxu1 %vm884_vm7, %v1147_v49 }
 0x1c5   : > { %1365 = vmatprep.mubr.bf16.mxu1 %v12821_v16 }
 0x1cc   : > { %10771 = vmatmul.mubr.msk.bf16.vlgmr.msra.gmra.mrb[12].mxu1 %vm884_vm7, %v13435_v30 }
 0x1cd   : > { %1375 = vmatprep.mubr.bf16.mxu1 %v12821_v16 }
 0x1d4   : > { %10772 = vmatmul.mubr.msk.bf16.gmra.mrb[16].mxu1 %vm884_vm7, %v13446_v53 }
 0x1d5   : > { %1385 = vmatprep.mubr.bf16.mxu1 %v12821_v16 }
 0x1dc   : > { %10773 = vmatmul.mubr.msk.bf16.gmra.mrb[20].mxu1 %vm884_vm7, %v13457_v20 }
 0x1dd   : > { %1395 = vmatprep.mubr.bf16.mxu1 %v12821_v16 }
 0x1e4   : > { %10774 = vmatmul.mubr.msk.bf16.gmra.mrb[24].mxu1 %vm884_vm7, %v13467_v41 }
 0x1e5   : > { %1405 = vmatprep.mubr.bf16.mxu1 %v12821_v16 }
 0x1ec   : > { %10775 = vmatmul.mubr.msk.bf16.gmra.mrb[28].mxu1 %vm884_vm7, %v1144_v55 }
 0x1ed   : > { %1415 = vmatprep.mubr.bf16.mxu1 %v12821_v16 }
 0x1f4   : > { %10776 = vmatmul.mubr.msk.bf16.gmra.mrb[32].mxu1 %vm884_vm7, %v1145_v22 }
 0x1f5   : > { %1425 = vmatprep.mubr.bf16.mxu1 %v12821_v16 }
 0x1fc   : > { %10777 = vmatmul.mubr.msk.bf16.gmra.mrb[36].mxu1 %vm884_vm7, %v1146_v29 }
 0x1fd   : > { %1435 = vmatprep.mubr.bf16.mxu1 %v12821_v16 }
 0x204   : > { %10778 = vmatmul.mubr.msk.bf16.gmra.mrb[40].mxu1 %vm884_vm7, %v1147_v49 }
 0x205   : > { %11463 = vmatprep.mubr.msk.bf16.mxu1 %vm12823_vm8, %v16361_v61 }
 0x25f   : > { %v1254_v5 = vpop.f32.mrb[0].mxu0 }
 0x260   : > { %v1256_v56 = vpop.f32.mrb[1].mxu0  ;;  %v11134_v18 = vpack.c.bf16 %v1254_v5, %v1254_v5 }
 0x261   : > { %v1258_v6 = vpop.f32.mrb[2].mxu0  ;;  %v11150_v30 = vpack.c.bf16 %v1256_v56, %v1256_v56 }
 0x262   : > { %v1260_v53 = vpop.f32.mrb[3].mxu0  ;;  %v13536_v20 = vpack.c.bf16 %v1258_v6, %v1254_v5  ;;  %v11135_v2 = vpack.c.bf16 %v1258_v6, %v1258_v6 }
 0x263   : > { %v2331_v41 = vsel %vm884_vm7, %v11150_v30, 0  ;;  %v13539_v13 = vpack.c.bf16 %v1260_v53, %v1256_v56  ;;  %v11151_v52 = vpack.c.bf16 %v1260_v53, %v1260_v53 }
 0x264   : > { %11456 = vmatpush3.bf16.xpose.msra.mxu0 %v2331_v41  ;;  %1687 = vrot.lane.b32.xlu1 %v13536_v20, %s12824_s17 }
 0x265   : > { %1879 = vrot.lane.b32.xlu0 %v13539_v13, %s12824_s17  ;;  %v2377_v16 = vsel %vm884_vm7, %v11151_v52, 0  ;;  %11467 = vmatprep.subr.bf16.mxu0 %v16361_v61 }
 0x266   : > { %11462 = vmatpush3.bf16.xpose.msra.mxu1 %v2377_v16 }
 0x267   : > { %v1264_v57 = vpop.f32.mrb[4].mxu0  ;;  %11473 = vmatprep.subr.bf16.mxu1 %v16361_v61 }
 0x268   : > { %v1266_v60 = vpop.f32.mrb[5].mxu0  ;;  %v11136_v14 = vpack.c.bf16 %v1264_v57, %v1264_v57 }
 0x269   : > { %v1268_v63 = vpop.f32.mrb[6].mxu0  ;;  %v11152_v0 = vpack.c.bf16 %v1266_v60, %v1266_v60 }
 0x26a   : > { %v1270_v1 = vpop.f32.mrb[7].mxu0  ;;  %v13548_v50 = vpack.c.bf16 %v1268_v63, %v1264_v57  ;;  %v11137_v62 = vpack.c.bf16 %v1268_v63, %v1268_v63 }
 0x26b   : > { %11458 = vmatmul.mubr.msk.bf16.vlgmr.msra.gmra.mrb[20].mxu0 %vm884_vm7, %v11134_v18  ;;  %v2423_v55 = vsel %vm884_vm7, %v11152_v0, 0  ;;  %v13552_v23 = vpack.c.bf16 %v1270_v1, %v1266_v60  ;;  %v11153_v7 = vpack.c.bf16 %v1270_v1, %v1270_v1 }
 0x26c   : > { %11468 = vmatpush3.bf16.xpose.msra.mxu0 %v2423_v55  ;;  %11469 = vmatprep.mubr.msk.bf16.mxu0 %vm12823_vm8, %v16361_v61 }
 0x26d   : > { %1881 = vrot.lane.b32.xlu1 %v13552_v23, %s12824_s17  ;;  %11464 = vmatmul.mubr.msk.bf16.vlgmr.msra.gmra.mrb[44].mxu1 %vm884_vm7, %v11135_v2  ;;  %v2469_v9 = vsel %vm884_vm7, %v11153_v7, 0 }
 0x26e   : > { %11474 = vmatpush3.bf16.xpose.msra.mxu1 %v2469_v9  ;;  %11479 = vmatprep.subr.bf16.mxu0 %v16361_v61 }
 0x26f   : > { %v1274_v27 = vpop.f32.mrb[8].mxu0  ;;  %11475 = vmatprep.mubr.msk.bf16.mxu1 %vm12823_vm8, %v16361_v61  ;;  %11485 = vmatprep.subr.bf16.mxu1 %v16361_v61 }
 0x270   : > { %v1276_v11 = vpop.f32.mrb[9].mxu0  ;;  %v11138_v32 = vpack.c.bf16 %v1274_v27, %v1274_v27 }
 0x271   : > { %1689 = vrot.lane.b32.xlu1 %v13548_v50, %s12824_s17  ;;  %v1278_v15 = vpop.f32.mrb[10].mxu0  ;;  %v11154_v21 = vpack.c.bf16 %v1276_v11, %v1276_v11 }
 0x272   : > { %v1280_v35 = vpop.f32.mrb[11].mxu0  ;;  %v13566_v22 = vpack.c.bf16 %v1278_v15, %v1274_v27  ;;  %v11139_v45 = vpack.c.bf16 %v1278_v15, %v1278_v15 }
 0x273   : > { %11470 = vmatmul.mubr.msk.bf16.vlgmr.msra.gmra.mrb[24].mxu0 %vm884_vm7, %v11136_v14  ;;  %v2515_v36 = vsel %vm884_vm7, %v11154_v21, 0  ;;  %v13570_v24 = vpack.c.bf16 %v1280_v35, %v1276_v11  ;;  %v11155_v28 = vpack.c.bf16 %v1280_v35, %v1280_v35 }
 0x274   : > { %11480 = vmatpush3.bf16.xpose.msra.mxu0 %v2515_v36  ;;  %11481 = vmatprep.mubr.msk.bf16.mxu0 %vm12823_vm8, %v16361_v61 }
 0x275   : > { %1691 = vrot.lane.b32.xlu1 %v13566_v22, %s12824_s17  ;;  %1883 = vrot.lane.b32.xlu0 %v13570_v24, %s12824_s17  ;;  %v2561_v43 = vsel %vm884_vm7, %v11155_v28, 0 }
 0x276   : > { %11476 = vmatmul.mubr.msk.bf16.vlgmr.msra.gmra.mrb[48].mxu1 %vm884_vm7, %v11137_v62  ;;  %11491 = vmatprep.subr.bf16.mxu0 %v16361_v61 }
 0x277   : > { %11486 = vmatpush3.bf16.xpose.msra.mxu1 %v2561_v43  ;;  %v1284_v4 = vpop.f32.mrb[12].mxu0  ;;  %11487 = vmatprep.mubr.msk.bf16.mxu1 %vm12823_vm8, %v16361_v61 }
 0x278   : > { %v1286_v31 = vpop.f32.mrb[13].mxu0  ;;  %11497 = vmatprep.subr.bf16.mxu1 %v16361_v61  ;;  %v11140_v56 = vpack.c.bf16 %v1284_v4, %v1284_v4 }
 0x279   : > { %v1288_v37 = vpop.f32.mrb[14].mxu0  ;;  %v11156_v38 = vpack.c.bf16 %v1286_v31, %v1286_v31 }
 0x27a   : > { %v1290_v29 = vpop.f32.mrb[15].mxu0  ;;  %v13584_v51 = vpack.c.bf16 %v1288_v37, %v1284_v4  ;;  %v11141_v60 = vpack.c.bf16 %v1288_v37, %v1288_v37 }
 0x27b   : > { %11482 = vmatmul.mubr.msk.bf16.vlgmr.msra.gmra.mrb[28].mxu0 %vm884_vm7, %v11138_v32  ;;  %v2607_v39 = vsel %vm884_vm7, %v11156_v38, 0  ;;  %v13588_v40 = vpack.c.bf16 %v1290_v29, %v1286_v31  ;;  %v11157_v42 = vpack.c.bf16 %v1290_v29, %v1290_v29 }
 0x27c   : > { %1693 = vrot.lane.b32.xlu1 %v13584_v51, %s12824_s17  ;;  %11492 = vmatpush3.bf16.xpose.msra.mxu0 %v2607_v39 }
 0x27d   : > { %1885 = vrot.lane.b32.xlu0 %v13588_v40, %s12824_s17  ;;  %v2653_v48 = vsel %vm884_vm7, %v11157_v42, 0  ;;  %11493 = vmatprep.mubr.msk.bf16.mxu0 %vm12823_vm8, %v16361_v61 }
 0x27e   : > { %11488 = vmatmul.mubr.msk.bf16.vlgmr.msra.gmra.mrb[52].mxu1 %vm884_vm7, %v11139_v45  ;;  %11503 = vmatprep.subr.bf16.mxu0 %v16361_v61 }
 0x27f   : > { %11498 = vmatpush3.bf16.xpose.msra.mxu1 %v2653_v48  ;;  %v1294_v49 = vpop.f32.mrb[16].mxu0  ;;  %11499 = vmatprep.mubr.msk.bf16.mxu1 %vm12823_vm8, %v16361_v61 }
 0x280   : > { %v1296_v5 = vpop.f32.mrb[17].mxu0  ;;  %11509 = vmatprep.subr.bf16.mxu1 %v16361_v61  ;;  %v11142_v9 = vpack.c.bf16 %v1294_v49, %v1294_v49 }
 0x281   : > { %v1298_v6 = vpop.f32.mrb[18].mxu0  ;;  %v11158_v30 = vpack.c.bf16 %v1296_v5, %v1296_v5 }
 0x282   : > { %v1300_v53 = vpop.f32.mrb[19].mxu0  ;;  %v13602_v41 = vpack.c.bf16 %v1298_v6, %v1294_v49  ;;  %v11143_v15 = vpack.c.bf16 %v1298_v6, %v1298_v6 }
 0x283   : > { %11494 = vmatmul.mubr.msk.bf16.vlgmr.msra.gmra.mrb[32].mxu0 %vm884_vm7, %v11140_v56  ;;  %v2699_v52 = vsel %vm884_vm7, %v11158_v30, 0  ;;  %v13606_v16 = vpack.c.bf16 %v1300_v53, %v1296_v5  ;;  %v11159_v57 = vpack.c.bf16 %v1300_v53, %v1300_v53 }
 0x284   : > { %11504 = vmatpush3.bf16.xpose.msra.mxu0 %v2699_v52  ;;  %1695 = vrot.lane.b32.xlu1 %v13602_v41, %s12824_s17 }
 0x285   : > { %v1304_v18 = vpop.f32.mrb[0].mxu1  ;;  %1887 = vrot.lane.b32.xlu0 %v13606_v16, %s12824_s17  ;;  %v2745_v63 = vsel %vm884_vm7, %v11159_v57, 0  ;;  %11505 = vmatprep.mubr.msk.bf16.mxu0 %vm12823_vm8, %v16361_v61 }
 0x286   : > { %v1306_v0 = vpop.f32.mrb[1].mxu1  ;;  %11500 = vmatmul.mubr.msk.bf16.vlgmr.msra.gmra.mrb[56].mxu1 %vm884_vm7, %v11141_v60  ;;  %11515 = vmatprep.subr.bf16.mxu0 %v16361_v61  ;;  %v11144_v43 = vpack.c.bf16 %v1304_v18, %v1304_v18 }
 0x287   : > { %v1308_v1 = vpop.f32.mrb[2].mxu1  ;;  %11510 = vmatpush3.bf16.xpose.msra.mxu1 %v2745_v63  ;;  %v11160_v2 = vpack.c.bf16 %v1306_v0, %v1306_v0  ;;  %11511 = vmatprep.mubr.msk.bf16.mxu1 %vm12823_vm8, %v16361_v61 }
 0x288   : > { %v1310_v55 = vpop.f32.mrb[3].mxu1  ;;  %v13619_v7 = vpack.c.bf16 %v1308_v1, %v1304_v18  ;;  %11521 = vmatprep.subr.bf16.mxu1 %v16361_v61  ;;  %v11145_v29 = vpack.c.bf16 %v1308_v1, %v1308_v1 }
 0x289   : > { %v13622_v27 = vpack.c.bf16 %v1310_v55, %v1306_v0  ;;  %v11161_v11 = vpack.c.bf16 %v1310_v55, %v1310_v55  ;;  %v2791_v14 = vsel %vm884_vm7, %v11160_v2, 0 }
 0x28a   : > { %1697 = vrot.lane.b32.xlu1 %v13619_v7, %s12824_s17 }
 0x28b   : > { %1889 = vrot.lane.b32.xlu0 %v13622_v27, %s12824_s17  ;;  %11506 = vmatmul.mubr.msk.bf16.vlgmr.msra.gmra.mrb[36].mxu0 %vm884_vm7, %v11142_v9  ;;  %v2837_v35 = vsel %vm884_vm7, %v11161_v11, 0 }
 0x28c   : > { %11516 = vmatpush3.bf16.xpose.msra.mxu0 %v2791_v14  ;;  %11517 = vmatprep.mubr.msk.bf16.mxu0 %vm12823_vm8, %v16361_v61 }
 0x28d   : > { %11527 = vmatprep.subr.bf16.mxu0 %v16361_v61 }
 0x28e   : > { %11512 = vmatmul.mubr.msk.bf16.vlgmr.msra.gmra.mrb[60].mxu1 %vm884_vm7, %v11143_v15 }
 0x28f   : > { %v1314_v21 = vpop.f32.mrb[4].mxu1  ;;  %11522 = vmatpush3.bf16.xpose.msra.mxu1 %v2837_v35  ;;  %11523 = vmatprep.mubr.msk.bf16.mxu1 %vm12823_vm8, %v16361_v61 }
 0x290   : > { %v1316_v36 = vpop.f32.mrb[5].mxu1  ;;  %11533 = vmatprep.subr.bf16.mxu1 %v16361_v61  ;;  %v11146_v5 = vpack.c.bf16 %v1314_v21, %v1314_v21 }
 0x291   : > { %v1318_v28 = vpop.f32.mrb[6].mxu1  ;;  %v11162_v62 = vpack.c.bf16 %v1316_v36, %v1316_v36 }
 0x292   : > { %v1320_v4 = vpop.f32.mrb[7].mxu1  ;;  %v13638_v31 = vpack.c.bf16 %v1318_v28, %v1314_v21  ;;  %v11147_v57 = vpack.c.bf16 %v1318_v28, %v1318_v28 }
 0x293   : > { %v13640_v32 = vpack.c.bf16 %v1320_v4, %v1316_v36  ;;  %v11163_v37 = vpack.c.bf16 %v1320_v4, %v1320_v4  ;;  %11518 = vmatmul.mubr.msk.bf16.vlgmr.msra.gmra.mrb[40].mxu0 %vm884_vm7, %v11144_v43  ;;  %v2883_v38 = vsel %vm884_vm7, %v11162_v62, 0 }
 0x294   : > { %1699 = vrot.lane.b32.xlu1 %v13638_v31, %s12824_s17  ;;  %11528 = vmatpush3.bf16.xpose.msra.mxu0 %v2883_v38 }
 0x295   : > { %1891 = vrot.lane.b32.xlu0 %v13640_v32, %s12824_s17  ;;  %11529 = vmatprep.mubr.msk.bf16.mxu0 %vm12823_vm8, %v16361_v61  ;;  %v2929_v42 = vsel %vm884_vm7, %v11163_v37, 0 }
 0x296   : > { %11539 = vmatprep.subr.bf16.mxu0 %v16361_v61  ;;  %11524 = vmatmul.mubr.msk.bf16.vlgmr.msra.gmra.mrb[64].mxu1 %vm884_vm7, %v11145_v29 }
 0x297   : > { %v1324_v39 = vpop.f32.mrb[8].mxu1  ;;  %11534 = vmatpush3.bf16.xpose.msra.mxu1 %v2929_v42  ;;  %11535 = vmatprep.mubr.msk.bf16.mxu1 %vm12823_vm8, %v16361_v61 }
 0x298   : > { %v1326_v45 = vpop.f32.mrb[9].mxu1  ;;  %11545 = vmatprep.subr.bf16.mxu1 %v16361_v61  ;;  %v11148_v1 = vpack.c.bf16 %v1324_v39, %v1324_v39 }
 0x299   : > { %v1328_v48 = vpop.f32.mrb[10].mxu1  ;;  %v11164_v49 = vpack.c.bf16 %v1326_v45, %v1326_v45 }
 0x29a   : > { %v1330_v56 = vpop.f32.mrb[11].mxu1  ;;  %v13656_v6 = vpack.c.bf16 %v1328_v48, %v1324_v39  ;;  %v11149_v9 = vpack.c.bf16 %v1328_v48, %v1328_v48 }
 0x29b   : > { %v13658_v30 = vpack.c.bf16 %v1330_v56, %v1326_v45  ;;  %v11165_v53 = vpack.c.bf16 %v1330_v56, %v1330_v56  ;;  %11530 = vmatmul.mubr.msk.bf16.vlgmr.msra.gmra.mrb[44].mxu0 %vm884_vm7, %v11146_v5  ;;  %v2975_v52 = vsel %vm884_vm7, %v11164_v49, 0 }
 0x29c   : > { %1701 = vrot.lane.b32.xlu1 %v13656_v6, %s12824_s17  ;;  %11540 = vmatpush3.bf16.xpose.msra.mxu0 %v2975_v52 }
 0x29d   : > { %1893 = vrot.lane.b32.xlu0 %v13658_v30, %s12824_s17  ;;  %11541 = vmatprep.mubr.msk.bf16.mxu0 %vm12823_vm8, %v16361_v61  ;;  %v3021_v18 = vsel %vm884_vm7, %v11165_v53, 0 }
 0x29e   : > { %11551 = vmatprep.subr.bf16.mxu0 %v16361_v61  ;;  %11536 = vmatmul.mubr.msk.bf16.vlgmr.msra.gmra.mrb[68].mxu1 %vm884_vm7, %v11147_v57 }
 0x29f   : > { %v13669_v60 = vpop.f32.mrb[12].mxu1  ;;  %11546 = vmatpush3.bf16.xpose.msra.mxu1 %v3021_v18  ;;  %11547 = vmatprep.mubr.msk.bf16.mxu1 %vm12823_vm8, %v16361_v61 }
 0x2a0   : > { %v13673_v63 = vpop.f32.mrb[13].mxu1  ;;  %1703 = vrot.lane.b32.xlu1 %v13536_v20, %s12825_s26  ;;  %11557 = vmatprep.subr.bf16.mxu1 %v16361_v61 }
 0x2a1   : > { %16457 = vst [vmem:[#allocation24_spill] sm:$0xff] %v13673_v63  ;;  %v13677_v0 = vpop.f32.mrb[14].mxu1  ;;  %1895 = vrot.lane.b32.xlu0 %v13539_v13, %s12825_s26 }
 0x2a2   : > { %v13683_v2 = vpop.f32.mrb[15].mxu1  ;;  %v13687_v55 = vpack.c.bf16 %v13677_v0, %v13669_v60 }
 0x2a3   : > { %16458 = vst [vmem:[#allocation25_spill] sm:$0xff] %v13683_v2  ;;  %11542 = vmatmul.mubr.msk.bf16.vlgmr.msra.gmra.mrb[48].mxu0 %vm884_vm7, %v11148_v1 }
 0x2a4   : > { %1705 = vrot.lane.b32.xlu1 %v13548_v50, %s12825_s26  ;;  %11553 = vmatprep.mubr.msk.bf16.mxu0 %vm12823_vm8, %v16361_v61 }
 0x2a5   : > { %1897 = vrot.lane.b32.xlu0 %v13552_v23, %s12825_s26 }
 0x2a6   : > { %11548 = vmatmul.mubr.msk.bf16.vlgmr.msra.gmra.mrb[72].mxu1 %vm884_vm7, %v11149_v9 }
 0x2a7   : > { %v13697_v11 = vpop.f32.mrb[16].mxu1  ;;  %11559 = vmatprep.mubr.msk.bf16.mxu1 %vm12823_vm8, %v16361_v61 }
 0x2a8   : > { %v13700_v14 = vpop.f32.mrb[17].mxu1  ;;  %1707 = vrot.lane.b32.xlu1 %v13566_v22, %s12825_s26 }
 0x2a9   : > { %16459 = vst [vmem:[#allocation26_spill] sm:$0xff] %v13700_v14  ;;  %v13706_v15 = vpop.f32.mrb[18].mxu1  ;;  %1899 = vrot.lane.b32.xlu0 %v13570_v24, %s12825_s26 }
 0x2aa   : > { %v13710_v21 = vpop.f32.mrb[19].mxu1  ;;  %v13714_v35 = vpack.c.bf16 %v13706_v15, %v13697_v11 }
 0x2ab   : > { %16460 = vst [vmem:[#allocation27_spill] sm:$0xff] %v13710_v21 }
 0x2ac   : > { %16461 = vst [vmem:[#allocation28_spill] sm:$0xff] %v13714_v35  ;;  %1709 = vrot.lane.b32.xlu1 %v13584_v51, %s12825_s26 }
 0x2ad   : > { %1901 = vrot.lane.b32.xlu0 %v13588_v40, %s12825_s26 }
 0x2af   : > { %v13720_v36 = vpop.f32.mrb[20].mxu1 }
 0x2b0   : > { %v13722_v28 = vpop.f32.mrb[21].mxu1  ;;  %1711 = vrot.lane.b32.xlu1 %v13602_v41, %s12825_s26 }
 0x2b1   : > { %16462 = vst [vmem:[#allocation29_spill] sm:$0xff] %v13722_v28  ;;  %v13726_v62 = vpop.f32.mrb[22].mxu1  ;;  %1903 = vrot.lane.b32.xlu0 %v13606_v16, %s12825_s26 }
 0x2b2   : > { %v13730_v43 = vpop.f32.mrb[23].mxu1  ;;  %v13734_v4 = vpack.c.bf16 %v13726_v62, %v13720_v36 }
 0x2b3   : > { %16463 = vst [vmem:[#allocation30_spill] sm:$0xff] %v13730_v43 }
 0x2b4   : > { %16464 = vst [vmem:[#allocation31_spill] sm:$0xff] %v13734_v4  ;;  %1713 = vrot.lane.b32.xlu1 %v13619_v7, %s12825_s26 }
 0x2b5   : > { %1905 = vrot.lane.b32.xlu0 %v13622_v27, %s12825_s26 }
 0x2b7   : > { %v13740_v37 = vpop.f32.mrb[24].mxu1 }
 0x2b8   : > { %v13742_v38 = vpop.f32.mrb[25].mxu1  ;;  %1715 = vrot.lane.b32.xlu1 %v13638_v31, %s12825_s26 }
 0x2b9   : > { %16465 = vst [vmem:[#allocation32_spill] sm:$0xff] %v13742_v38  ;;  %v13746_v29 = vpop.f32.mrb[26].mxu1  ;;  %1907 = vrot.lane.b32.xlu0 %v13640_v32, %s12825_s26 }
 0x2ba   : > { %v13750_v39 = vpop.f32.mrb[27].mxu1  ;;  %v13754_v42 = vpack.c.bf16 %v13746_v29, %v13740_v37 }
 0x2bb   : > { %16466 = vst [vmem:[#allocation33_spill] sm:$0xff] %v13750_v39 }
 0x2bc   : > { %16467 = vst [vmem:[#allocation34_spill] sm:$0xff] %v13754_v42  ;;  %1717 = vrot.lane.b32.xlu1 %v13656_v6, %s12825_s26 }
 0x2bd   : > { %1909 = vrot.lane.b32.xlu0 %v13658_v30, %s12825_s26 }
 0x2bf   : > { %v13760_v45 = vpop.f32.mrb[28].mxu1 }
 0x2c0   : > { %v13762_v48 = vpop.f32.mrb[29].mxu1  ;;  %1719 = vrot.lane.b32.xlu1 %v13536_v20, %s12826_s12 }
 0x2c1   : > { %16468 = vst [vmem:[#allocation35_spill] sm:$0xff] %v13762_v48  ;;  %v13766_v49 = vpop.f32.mrb[30].mxu1  ;;  %1911 = vrot.lane.b32.xlu0 %v13539_v13, %s12826_s12 }
 0x2c2   : > { %v13770_v5 = vpop.f32.mrb[31].mxu1  ;;  %v13774_v56 = vpack.c.bf16 %v13766_v49, %v13760_v45 }
 0x2c3   : > { %16469 = vst [vmem:[#allocation36_spill] sm:$0xff] %v13770_v5 }
 0x2c4   : > { %16470 = vst [vmem:[#allocation37_spill] sm:$0xff] %v13774_v56  ;;  %1721 = vrot.lane.b32.xlu1 %v13548_v50, %s12826_s12 }
 0x2c5   : > { %1913 = vrot.lane.b32.xlu0 %v13552_v23, %s12826_s12 }
 0x2c7   : > { %v13780_v53 = vpop.f32.mrb[32].mxu1 }
 0x2c8   : > { %v13782_v20 = vpop.f32.mrb[33].mxu1  ;;  %1723 = vrot.lane.b32.xlu1 %v13566_v22, %s12826_s12 }
 0x2c9   : > { %16471 = vst [vmem:[#allocation38_spill] sm:$0xff] %v13782_v20  ;;  %v13786_v13 = vpop.f32.mrb[34].mxu1  ;;  %1915 = vrot.lane.b32.xlu0 %v13570_v24, %s12826_s12 }
 0x2ca   : > { %v13790_v52 = vpop.f32.mrb[35].mxu1  ;;  %v13794_v50 = vpack.c.bf16 %v13786_v13, %v13780_v53 }
 0x2cb   : > { %16472 = vst [vmem:[#allocation39_spill] sm:$0xff] %v13790_v52 }
 0x2cc   : > { %16473 = vst [vmem:[#allocation40_spill] sm:$0xff] %v13794_v50  ;;  %1725 = vrot.lane.b32.xlu1 %v13584_v51, %s12826_s12 }
 0x2cd   : > { %1917 = vrot.lane.b32.xlu0 %v13588_v40, %s12826_s12 }
 0x2cf   : > { %v13800_v23 = vpop.f32.mrb[36].mxu1 }
 0x2d0   : > { %16474 = vst [vmem:[#allocation41_spill] sm:$0xff] %v13800_v23  ;;  %v13802_v22 = vpop.f32.mrb[37].mxu1  ;;  %1727 = vrot.lane.b32.xlu1 %v13602_v41, %s12826_s12 }
 0x2d1   : > { %16475 = vst [vmem:[#allocation42_spill] sm:$0xff] %v13802_v22  ;;  %v13806_v24 = vpop.f32.mrb[38].mxu1  ;;  %1921 = vrot.lane.b32.xlu0 %v13622_v27, %s12826_s12 }
 0x2d2   : > { %16476 = vst [vmem:[#allocation43_spill] sm:$0xff] %v13806_v24  ;;  %v13810_v57 = vpop.f32.mrb[39].mxu1  ;;  %v13814_v51 = vpack.c.bf16 %v13806_v24, %v13800_v23 }
 0x2d3   : > { %16477 = vst [vmem:[#allocation44_spill] sm:$0xff] %v13810_v57 }
 0x2d4   : > { %16478 = vst [vmem:[#allocation45_spill] sm:$0xff] %v13814_v51  ;;  %1729 = vrot.lane.b32.xlu1 %v13619_v7, %s12826_s12 }
 0x2d5   : > { %1923 = vrot.lane.b32.xlu0 %v13640_v32, %s12826_s12 }
 0x2d7   : > { %v13820_v40 = vpop.f32.mrb[40].mxu1  ;;  %v1880_v27 = vpop.permute.xlu0 %1879 }
 0x2d8   : > { %16479 = vst [vmem:[#allocation46_spill] sm:$0xff] %v13820_v40  ;;  %v13822_v41 = vpop.f32.mrb[41].mxu1  ;;  %1731 = vrot.lane.b32.xlu1 %v13638_v31, %s12826_s12  ;;  %v10878_v1 = vcombine.low %v1880_v27, %v1880_v27  ;;  %v10879_v9 = vcombine.high %v1880_v27, %v1880_v27  ;;  %v1688_v31 = vpop.permute.xlu1 %1687 }
 0x2d9   : > { %16480 = vst [vmem:[#allocation47_spill] sm:$0xff] %v13822_v41  ;;  %v13826_v18 = vpop.f32.mrb[42].mxu1  ;;  %1925 = vrot.lane.b32.xlu0 %v13658_v30, %s12826_s12  ;;  %v16483_v30 = vmov 0.0   ;;  %v10815_v19 = vcombine.high %v1688_v31, %v1688_v31 }
 0x2da   : > { %16481 = vst [vmem:[#allocation48_spill] sm:$0xff] %v13826_v18  ;;  %v13830_v61 = vpop.f32.mrb[43].mxu1  ;;  %v13834_v7 = vpack.c.bf16 %v13826_v18, %v13820_v40  ;;  %v3067_v32 = vsel %vm884_vm7, %v10878_v1, 0  ;;  %v3113_v54 = vsel %vm884_vm7, %v10879_v9, 0  ;;  %v10814_v1 = vcombine.low %v1688_v31, %v1688_v31 }
 0x2db   : > { %16482 = vst [vmem:[#allocation49_spill] sm:$0xff] %v13830_v61  ;;  %11552 = vmatpush3.bf16.xpose.msra.mxu0 %v3067_v32  ;;  %11558 = vmatpush3.bf16.xpose.msra.mxu1 %v3113_v54 }
 0x2dc   : > { %1733 = vrot.lane.b32.xlu1 %v13656_v6, %s12826_s12  ;;  %11563 = vmatprep.subr.bf16.mxu0 %v16483_v30 }
 0x2dd   : > { %2071 = vrot.lane.b32.xlu0 %v13687_v55, %s12824_s17  ;;  %11569 = vmatprep.subr.bf16.mxu1 %v16483_v30 }
 0x2df   : > { %v1882_v27 = vpop.permute.xlu1 %1881 }
 0x2e0   : > { %2073 = vrot.lane.b32.xlu1 %v13714_v35, %s12824_s17  ;;  %v10880_v9 = vcombine.low %v1882_v27, %v1882_v27  ;;  %v10881_v6 = vcombine.high %v1882_v27, %v1882_v27 }
 0x2e1   : > { %2089 = vrot.lane.b32.xlu0 %v13714_v35, %s12825_s26 }
 0x2e2   : > { %11554 = vmatmul.mubr.msk.bf16.vlgmr.msra.gmra.mrb[52].mxu0 %vm884_vm7, %v10814_v1  ;;  %v3159_v32 = vsel %vm884_vm7, %v10880_v9, 0  ;;  %v3205_v54 = vsel %vm884_vm7, %v10881_v6, 0  ;;  %11560 = vmatmul.mubr.msk.bf16.vlgmr.msra.gmra.mrb[76].mxu1 %vm884_vm7, %v10815_v19 }
 0x2e3   : > { %11564 = vmatpush3.bf16.xpose.msra.mxu0 %v3159_v32  ;;  %11570 = vmatpush3.bf16.xpose.msra.mxu1 %v3205_v54  ;;  %v1690_v31 = vpop.permute.xlu1 %1689 }
 0x2e4   : > { %2087 = vrot.lane.b32.xlu1 %v13687_v55, %s12825_s26  ;;  %11565 = vmatprep.mubr.msk.bf16.mxu0 %vm12823_vm8, %v16483_v30  ;;  %v10816_v1 = vcombine.low %v1690_v31, %v1690_v31  ;;  %v10817_v9 = vcombine.high %v1690_v31, %v1690_v31 }
 0x2e5   : > { %1919 = vrot.lane.b32.xlu0 %v13606_v16, %s12826_s12  ;;  %11571 = vmatprep.mubr.msk.bf16.mxu1 %vm12823_vm8, %v16483_v30 }
 0x2e6   : > { %11575 = vmatprep.subr.bf16.mxu0 %v16483_v30  ;;  %11581 = vmatprep.subr.bf16.mxu1 %v16483_v30 }
 0x2e7   : > { %v1884_v27 = vpop.permute.xlu0 %1883  ;;  %v1692_v54 = vpop.permute.xlu1 %1691 }
 0x2e8   : > { %2091 = vrot.lane.b32.xlu1 %v13734_v4, %s12825_s26  ;;  %v10882_v19 = vcombine.low %v1884_v27, %v1884_v27  ;;  %v10883_v16 = vcombine.high %v1884_v27, %v1884_v27 }
 0x2e9   : > { %2075 = vrot.lane.b32.xlu0 %v13734_v4, %s12824_s17 }
 0x2ea   : > { %v3251_v6 = vsel %vm884_vm7, %v10882_v19, 0  ;;  %v3297_v32 = vsel %vm884_vm7, %v10883_v16, 0  ;;  %11566 = vmatmul.mubr.msk.bf16.vlgmr.msra.gmra.mrb[56].mxu0 %vm884_vm7, %v10816_v1  ;;  %11572 = vmatmul.mubr.msk.bf16.vlgmr.msra.gmra.mrb[80].mxu1 %vm884_vm7, %v10817_v9  ;;  %v10818_v16 = vcombine.low %v1692_v54, %v1692_v54  ;;  %v10819_v9 = vcombine.high %v1692_v54, %v1692_v54 }
 0x2eb   : > { %11576 = vmatpush3.bf16.xpose.msra.mxu0 %v3251_v6  ;;  %11582 = vmatpush3.bf16.xpose.msra.mxu1 %v3297_v32 }
 0x2ec   : > { %2077 = vrot.lane.b32.xlu1 %v13754_v42, %s12824_s17  ;;  %11577 = vmatprep.mubr.msk.bf16.mxu0 %vm12823_vm8, %v16483_v30 }
 0x2ed   : > { %2093 = vrot.lane.b32.xlu0 %v13754_v42, %s12825_s26  ;;  %11583 = vmatprep.mubr.msk.bf16.mxu1 %vm12823_vm8, %v16483_v30 }
 0x2ee   : > { %11587 = vmatprep.subr.bf16.mxu0 %v16483_v30  ;;  %11593 = vmatprep.subr.bf16.mxu1 %v16483_v30  ;;  %v1694_v32 = vpop.permute.xlu1 %1693 }
 0x2ef   : > { %v1886_v31 = vpop.permute.xlu0 %1885 }
 0x2f0   : > { %2095 = vrot.lane.b32.xlu1 %v13774_v56, %s12825_s26  ;;  %v10884_v27 = vcombine.low %v1886_v31, %v1886_v31  ;;  %v10885_v19 = vcombine.high %v1886_v31, %v1886_v31 }
 0x2f1   : > { %2079 = vrot.lane.b32.xlu0 %v13774_v56, %s12824_s17 }
 0x2f2   : > { %v3343_v1 = vsel %vm884_vm7, %v10884_v27, 0  ;;  %v3389_v6 = vsel %vm884_vm7, %v10885_v19, 0  ;;  %11578 = vmatmul.mubr.msk.bf16.vlgmr.msra.gmra.mrb[60].mxu0 %vm884_vm7, %v10818_v16  ;;  %11584 = vmatmul.mubr.msk.bf16.vlgmr.msra.gmra.mrb[84].mxu1 %vm884_vm7, %v10819_v9  ;;  %v10820_v19 = vcombine.low %v1694_v32, %v1694_v32 }
 0x2f3   : > { %11588 = vmatpush3.bf16.xpose.msra.mxu0 %v3343_v1  ;;  %11594 = vmatpush3.bf16.xpose.msra.mxu1 %v3389_v6  ;;  %v10821_v1 = vcombine.high %v1694_v32, %v1694_v32 }
 0x2f4   : > { %2083 = vrot.lane.b32.xlu1 %v13814_v51, %s12824_s17  ;;  %11589 = vmatprep.mubr.msk.bf16.mxu0 %vm12823_vm8, %v16483_v30 }
 0x2f5   : > { %2081 = vrot.lane.b32.xlu0 %v13794_v50, %s12824_s17  ;;  %11595 = vmatprep.mubr.msk.bf16.mxu1 %vm12823_vm8, %v16483_v30 }
 0x2f6   : > { %11599 = vmatprep.subr.bf16.mxu0 %v16483_v30  ;;  %11605 = vmatprep.subr.bf16.mxu1 %v16483_v30 }
 0x2f7   : > { %v1888_v54 = vpop.permute.xlu0 %1887 }
 0x2f8   : > { %2099 = vrot.lane.b32.xlu1 %v13814_v51, %s12825_s26  ;;  %v10886_v31 = vcombine.low %v1888_v54, %v1888_v54  ;;  %v10887_v27 = vcombine.high %v1888_v54, %v1888_v54  ;;  %v1696_v54 = vpop.permute.xlu1 %1695 }
 0x2f9   : > { %2097 = vrot.lane.b32.xlu0 %v13794_v50, %s12825_s26 }
 0x2fa   : > { %v3435_v16 = vsel %vm884_vm7, %v10886_v31, 0  ;;  %v3481_v9 = vsel %vm884_vm7, %v10887_v27, 0  ;;  %11590 = vmatmul.mubr.msk.bf16.vlgmr.msra.gmra.mrb[64].mxu0 %vm884_vm7, %v10820_v19  ;;  %11596 = vmatmul.mubr.msk.bf16.vlgmr.msra.gmra.mrb[88].mxu1 %vm884_vm7, %v10821_v1  ;;  %v10822_v27 = vcombine.low %v1696_v54, %v1696_v54  ;;  %v10823_v19 = vcombine.high %v1696_v54, %v1696_v54 }
 0x2fb   : > { %11600 = vmatpush3.bf16.xpose.msra.mxu0 %v3435_v16  ;;  %11606 = vmatpush3.bf16.xpose.msra.mxu1 %v3481_v9 }
 0x2fc   : > { %11601 = vmatprep.mubr.msk.bf16.mxu0 %vm12823_vm8, %v16483_v30  ;;  %11607 = vmatprep.mubr.msk.bf16.mxu1 %vm12823_vm8, %v16483_v30  ;;  %v1698_v26 = vpop.permute.xlu1 %1697 }
 0x2fd   : > { %2085 = vrot.lane.b32.xlu0 %v13834_v7, %s12824_s17  ;;  %v1890_v6 = vpop.permute.xlu0 %1889  ;;  %11611 = vmatprep.subr.bf16.mxu0 %v16483_v30 }
 0x2fe   : > { %v10888_v32 = vcombine.low %v1890_v6, %v1890_v6  ;;  %11617 = vmatprep.subr.bf16.mxu1 %v16483_v30  ;;  %v10889_v31 = vcombine.high %v1890_v6, %v1890_v6 }
 0x300   : > { %v3527_v16 = vsel %vm884_vm7, %v10888_v32, 0  ;;  %v3573_v1 = vsel %vm884_vm7, %v10889_v31, 0  ;;  %v10824_v32 = vcombine.low %v1698_v26, %v1698_v26 }
 0x302   : > { %11602 = vmatmul.mubr.msk.bf16.vlgmr.msra.gmra.mrb[68].mxu0 %vm884_vm7, %v10822_v27  ;;  %11608 = vmatmul.mubr.msk.bf16.vlgmr.msra.gmra.mrb[92].mxu1 %vm884_vm7, %v10823_v19  ;;  %v10825_v27 = vcombine.high %v1698_v26, %v1698_v26 }
 0x303   : > { %11612 = vmatpush3.bf16.xpose.msra.mxu0 %v3527_v16  ;;  %11618 = vmatpush3.bf16.xpose.msra.mxu1 %v3573_v1 }
 0x304   : > { %11613 = vmatprep.mubr.msk.bf16.mxu0 %vm12823_vm8, %v16483_v30  ;;  %11619 = vmatprep.mubr.msk.bf16.mxu1 %vm12823_vm8, %v16483_v30 }
 0x305   : > { %11623 = vmatprep.subr.bf16.mxu0 %v16483_v30  ;;  %11629 = vmatprep.subr.bf16.mxu1 %v16483_v30 }
 0x306   : > { %v1700_v1 = vpop.permute.xlu1 %1699 }
 0x307   : > { %v1892_v9 = vpop.permute.xlu0 %1891 }
 0x308   : > { %v10890_v6 = vcombine.low %v1892_v9, %v1892_v9  ;;  %v10891_v54 = vcombine.high %v1892_v9, %v1892_v9 }
 0x30a   : > { %11614 = vmatmul.mubr.msk.bf16.vlgmr.msra.gmra.mrb[72].mxu0 %vm884_vm7, %v10824_v32  ;;  %v3619_v31 = vsel %vm884_vm7, %v10890_v6, 0  ;;  %11620 = vmatmul.mubr.msk.bf16.vlgmr.msra.gmra.mrb[96].mxu1 %vm884_vm7, %v10825_v27  ;;  %v3665_v19 = vsel %vm884_vm7, %v10891_v54, 0  ;;  %v10826_v6 = vcombine.low %v1700_v1, %v1700_v1  ;;  %v10827_v27 = vcombine.high %v1700_v1, %v1700_v1 }
 0x30b   : > { %11624 = vmatpush3.bf16.xpose.msra.mxu0 %v3619_v31  ;;  %11630 = vmatpush3.bf16.xpose.msra.mxu1 %v3665_v19 }
 0x30c   : > { %11625 = vmatprep.mubr.msk.bf16.mxu0 %vm12823_vm8, %v16483_v30  ;;  %11631 = vmatprep.mubr.msk.bf16.mxu1 %vm12823_vm8, %v16483_v30 }
 0x30d   : > { %11635 = vmatprep.subr.bf16.mxu0 %v16483_v30  ;;  %11641 = vmatprep.subr.bf16.mxu1 %v16483_v30 }
 0x30f   : > { %v1894_v16 = vpop.permute.xlu0 %1893 }
 0x310   : > { %v10892_v26 = vcombine.low %v1894_v16, %v1894_v16  ;;  %v10893_v9 = vcombine.high %v1894_v16, %v1894_v16  ;;  %v1702_v16 = vpop.permute.xlu1 %1701 }
 0x312   : > { %11626 = vmatmul.mubr.msk.bf16.vlgmr.msra.gmra.mrb[76].mxu0 %vm884_vm7, %v10826_v6  ;;  %v3711_v54 = vsel %vm884_vm7, %v10892_v26, 0  ;;  %11632 = vmatmul.mubr.msk.bf16.vlgmr.msra.gmra.mrb[100].mxu1 %vm884_vm7, %v10827_v27  ;;  %v3757_v31 = vsel %vm884_vm7, %v10893_v9, 0  ;;  %v10828_v6 = vcombine.low %v1702_v16, %v1702_v16  ;;  %v10829_v27 = vcombine.high %v1702_v16, %v1702_v16 }
 0x313   : > { %v1896_v32 = vpop.permute.xlu0 %1895  ;;  %11636 = vmatpush3.bf16.xpose.msra.mxu0 %v3711_v54  ;;  %11642 = vmatpush3.bf16.xpose.msra.mxu1 %v3757_v31 }
 0x314   : > { %11637 = vmatprep.mubr.msk.bf16.mxu0 %vm12823_vm8, %v16483_v30  ;;  %11643 = vmatprep.mubr.msk.bf16.mxu1 %vm12823_vm8, %v16483_v30  ;;  %v10894_v1 = vcombine.low %v1896_v32, %v1896_v32  ;;  %v10895_v26 = vcombine.high %v1896_v32, %v1896_v32  ;;  %v1704_v12 = vpop.permute.xlu1 %1703 }
 0x315   : > { %11647 = vmatprep.subr.bf16.mxu0 %v16483_v30  ;;  %11653 = vmatprep.subr.bf16.mxu1 %v16483_v30 }
 0x316   : > { %v3803_v54 = vsel %vm884_vm7, %v10894_v1, 0  ;;  %v3849_v31 = vsel %vm884_vm7, %v10895_v26, 0 }
 0x317   : > { %v1898_v19 = vpop.permute.xlu0 %1897 }
 0x318   : > { %v10896_v32 = vcombine.low %v1898_v19, %v1898_v19  ;;  %v10897_v16 = vcombine.high %v1898_v19, %v1898_v19  ;;  %v1706_v59 = vpop.permute.xlu1 %1705 }
 0x31a   : > { %11638 = vmatmul.mubr.msk.bf16.vlgmr.msra.gmra.mrb[80].mxu0 %vm884_vm7, %v10828_v6  ;;  %11644 = vmatmul.mubr.msk.bf16.vlgmr.msra.gmra.mrb[104].mxu1 %vm884_vm7, %v10829_v27  ;;  %v10830_v6 = vcombine.low %v1704_v12, %v1704_v12  ;;  %v10831_v27 = vcombine.high %v1704_v12, %v1704_v12  ;;  %v3895_v26 = vsel %vm884_vm7, %v10896_v32, 0  ;;  %v1565_v12 = vld [vmem:[%s13959_s15] sm:$0xff] }
 0x31b   : > { %v1900_v9 = vpop.permute.xlu0 %1899  ;;  %11648 = vmatpush3.bf16.xpose.msra.mxu0 %v3803_v54  ;;  %11654 = vmatpush3.bf16.xpose.msra.mxu1 %v3849_v31  ;;  %v3941_v54 = vsel %vm884_vm7, %v10897_v16, 0  ;;  %v12827_v31 = vmov 1966171168   ;;  %v10796_v16 = vadd.f32 -1.0, %v1565_v12 }
 0x31c   : > { %11649 = vmatprep.mubr.msk.bf16.mxu0 %vm12823_vm8, %v16483_v30  ;;  %11655 = vmatprep.mubr.msk.bf16.mxu1 %vm12823_vm8, %v16483_v30  ;;  %v1575_v19 = vunpack.c.l.s4 %v12827_v31  ;;  %v10898_v32 = vcombine.low %v1900_v9, %v1900_v9  ;;  %v10832_v31 = vcombine.low %v1706_v59, %v1706_v59 }
 0x31d   : > { %11659 = vmatprep.subr.bf16.mxu0 %v16483_v30  ;;  %11665 = vmatprep.subr.bf16.mxu1 %v16483_v30  ;;  %v13978_v10 = vmul.f32 1e+09, %v10796_v16 }
 0x31e   : > { %v3987_v33 = vsel %vm884_vm7, %v10898_v32, 0 }
 0x31f   : > { %v1902_v1 = vpop.permute.xlu0 %1901 }
 0x322   : > { %11650 = vmatmul.mubr.msk.bf16.vlgmr.msra.gmra.mrb[84].mxu0 %vm884_vm7, %v10830_v6  ;;  %11656 = vmatmul.mubr.msk.bf16.vlgmr.msra.gmra.mrb[108].mxu1 %vm884_vm7, %v10831_v27  ;;  %v10899_v6 = vcombine.high %v1900_v9, %v1900_v9  ;;  %v1576_v27 = vunpack.c.0.s8 %v1575_v19 }
 0x323   : > { %11660 = vmatpush3.bf16.xpose.msra.mxu0 %v3895_v26  ;;  %11666 = vmatpush3.bf16.xpose.msra.mxu1 %v3941_v54  ;;  %v1904_v46 = vpop.permute.xlu0 %1903  ;;  %v1578_v26 = vshrl.u32 %v1577_v8, 7  ;;  %v10833_v54 = vcombine.high %v1706_v59, %v1706_v59  ;;  %v1708_v8 = vpop.permute.xlu1 %1707  ;;  %v10900_v59 = vcombine.low %v1902_v1, %v1902_v1 }
 0x324   : > { %11661 = vmatprep.mubr.msk.bf16.mxu0 %vm12823_vm8, %v16483_v30  ;;  %11667 = vmatprep.mubr.msk.bf16.mxu1 %vm12823_vm8, %v16483_v30  ;;  %v4033_v17 = vsel %vm884_vm7, %v10899_v6, 0  ;;  %v10834_v19 = vcombine.low %v1708_v8, %v1708_v8  ;;  %v10835_v12 = vcombine.high %v1708_v8, %v1708_v8  ;;  %v10903_v8 = vcombine.high %v1904_v46, %v1904_v46 }
 0x325   : > { %11671 = vmatprep.subr.bf16.mxu0 %v16483_v30  ;;  %11677 = vmatprep.subr.bf16.mxu1 %v16483_v30  ;;  %v13980_v58 = vsub.s32 %v1576_v27, %v1578_v26  ;;  %v14001_v27 = vsub.s32 0, %v1578_v26 }
 0x327   : > { %v13974_v34 = vpop.permute.xlu0 %1905  ;;  %16484 = vst [vmem:[#allocation50_spill] sm:$0xff] %v13980_v58  ;;  %v1580_v9 = vrot.slane %v13978_v10, %v13980_v58 }
 0x329   : > { %v1588_v16 = vcombine.high %v1580_v9, %v1580_v9 }
 0x32a   : > { %11662 = vmatmul.mubr.msk.bf16.vlgmr.msra.gmra.mrb[88].mxu0 %vm884_vm7, %v10832_v31  ;;  %11668 = vmatmul.mubr.msk.bf16.vlgmr.msra.gmra.mrb[112].mxu1 %vm884_vm7, %v10833_v54  ;;  %v1596_v31 = vrot.slane %v1580_v9, %v13980_v58  ;;  %v10902_v54 = vcombine.low %v1904_v46, %v1904_v46  ;;  %v4217_v9 = vsel %vm884_vm7, %v10903_v8, 0 }
 0x32b   : > { %11672 = vmatpush3.bf16.xpose.msra.mxu0 %v3987_v33  ;;  %11678 = vmatpush3.bf16.xpose.msra.mxu1 %v4033_v17  ;;  %v10901_v33 = vcombine.high %v1902_v1, %v1902_v1  ;;  %v13990_v32 = vpop.permute.xlu0 %1907  ;;  %v4079_v17 = vsel %vm884_vm7, %v10900_v59, 0  ;;  %v1710_v1 = vpop.permute.xlu1 %1709 }
 0x32c   : > { %11673 = vmatprep.mubr.msk.bf16.mxu0 %vm12823_vm8, %v16483_v30  ;;  %11679 = vmatprep.mubr.msk.bf16.mxu1 %vm12823_vm8, %v16483_v30  ;;  %v4171_v26 = vsel %vm884_vm7, %v10902_v54, 0 }
 0x32d   : > { %11683 = vmatprep.subr.bf16.mxu0 %v16483_v30  ;;  %11689 = vmatprep.subr.bf16.mxu1 %v16483_v30  ;;  %v4125_v6 = vsel %vm884_vm7, %v10901_v33, 0  ;;  %v1610_v33 = vrot.slane %v1588_v16, %v13980_v58 }
 0x32f   : > { %v14005_v59 = vpop.permute.xlu0 %1909  ;;  %v14016_v46 = vrot.slane %v1610_v33, %v14001_v27 }
 0x331   : > { %16485 = vst [vmem:[#allocation51_spill] sm:$0xff] %v14016_v46 }
 0x332   : > { %11674 = vmatmul.mubr.msk.bf16.vlgmr.msra.gmra.mrb[92].mxu0 %vm884_vm7, %v10834_v19  ;;  %11680 = vmatmul.mubr.msk.bf16.vlgmr.msra.gmra.mrb[116].mxu1 %vm884_vm7, %v10835_v12  ;;  %v10836_v19 = vcombine.low %v1710_v1, %v1710_v1  ;;  %v10837_v12 = vcombine.high %v1710_v1, %v1710_v1  ;;  %v1573_v1 = vcombine.high %v13978_v10, %v13978_v10 }
 0x333   : > { %11684 = vmatpush3.bf16.xpose.msra.mxu0 %v4079_v17  ;;  %11690 = vmatpush3.bf16.xpose.msra.mxu1 %v4125_v6  ;;  %v14009_v17 = vrot.slane %v1596_v31, %v14001_v27  ;;  %v1712_v6 = vpop.permute.xlu1 %1711  ;;  %v10905_v10 = vcombine.high %v13974_v34, %v13974_v34 }
 0x334   : > { %11685 = vmatprep.mubr.msk.bf16.mxu0 %vm12823_vm8, %v16483_v30  ;;  %11691 = vmatprep.mubr.msk.bf16.mxu1 %vm12823_vm8, %v16483_v30  ;;  %v10838_v44 = vcombine.low %v1712_v6, %v1712_v6  ;;  %v1587_v41 = vrot.slane %v1573_v1, %v13980_v58 }
 0x335   : > { %11695 = vmatprep.subr.bf16.mxu0 %v16483_v30  ;;  %11701 = vmatprep.subr.bf16.mxu1 %v16483_v30 }
 0x337   : > { %v1714_v1 = vpop.permute.xlu1 %1713 }
 0x338   : > { %v10841_v20 = vcombine.high %v1714_v1, %v1714_v1 }
 0x33a   : > { %11686 = vmatmul.mubr.msk.bf16.vlgmr.msra.gmra.mrb[96].mxu0 %vm884_vm7, %v10836_v19  ;;  %11692 = vmatmul.mubr.msk.bf16.vlgmr.msra.gmra.mrb[120].mxu1 %vm884_vm7, %v10837_v12  ;;  %v14022_v19 = vpop.permute.xlu0 %1911  ;;  %v1618_v12 = vcombine.high %v1596_v31, %v1596_v31  ;;  %v1620_v31 = vcombine.high %v1610_v33, %v1610_v33 }
 0x33b   : > { %11696 = vmatpush3.bf16.xpose.msra.mxu0 %v4171_v26  ;;  %11702 = vmatpush3.bf16.xpose.msra.mxu1 %v4217_v9  ;;  %v10904_v26 = vcombine.low %v13974_v34, %v13974_v34 }
 0x33c   : > { %11697 = vmatprep.mubr.msk.bf16.mxu0 %vm12823_vm8, %v16483_v30  ;;  %11703 = vmatprep.mubr.msk.bf16.mxu1 %vm12823_vm8, %v16483_v30  ;;  %v14044_v34 = vrot.slane %v1618_v12, %v14001_v27 }
 0x33d   : > { %11707 = vmatprep.subr.bf16.mxu0 %v16483_v30  ;;  %11713 = vmatprep.subr.bf16.mxu1 %v16483_v30 }
 0x33e   : > { %v2367_v16 = vpop.f32.mrb[20].mxu0  ;;  %16486 = vst [vmem:[#allocation52_spill] sm:$0xff] %v14044_v34 }
 0x33f   : > { %v11459_v54 = vpop.f32.mrb[21].mxu0  ;;  %v14027_v8 = vadd.f32 %v2367_v16, %v14009_v17 }
 0x340   : > { %v2370_v9 = vpop.f32.mrb[22].mxu0  ;;  %v2413_v25 = vpop.f32.mrb[44].mxu1 }
 0x341   : > { %v14036_v54 = vadd.f32 %v2413_v25, %v14016_v46  ;;  %v11460_v47 = vpop.f32.mrb[23].mxu0  ;;  %v5272_v16 = vsel %vm5271_vm9, %v14027_v8, -inf  ;;  %v11465_v3 = vpop.f32.mrb[45].mxu1  ;;  %v10839_v9 = vcombine.high %v1712_v6, %v1712_v6  ;;  %v14053_v6 = vrot.slane %v1620_v31, %v14001_v27 }
 0x342   : > { %5273 = vmax.xlane.f32.xlu0 %v5272_v16  ;;  %v2416_v61 = vpop.f32.mrb[46].mxu1  ;;  %11698 = vmatmul.mubr.msk.bf16.vlgmr.msra.gmra.mrb[100].mxu0 %vm884_vm7, %v10838_v44  ;;  %v4263_v47 = vsel %vm884_vm7, %v10904_v26, 0  ;;  %v14048_v3 = vpop.permute.xlu0 %1913  ;;  %v1589_v44 = vcombine.high %v1587_v41, %v1587_v41  ;;  %v1603_v26 = vrot.slane %v1587_v41, %v13980_v58  ;;  %v10906_v16 = vcombine.low %v13990_v32, %v13990_v32 }
 0x343   : > { %v5275_v22 = vsel %vm5271_vm9, %v14036_v54, -inf  ;;  %v11466_v25 = vpop.f32.mrb[47].mxu1  ;;  %11704 = vmatmul.mubr.msk.bf16.vlgmr.msra.gmra.mrb[124].mxu1 %vm884_vm7, %v10839_v9  ;;  %11708 = vmatpush3.bf16.xpose.msra.mxu0 %v4263_v47  ;;  %v4309_v61 = vsel %vm884_vm7, %v10905_v10, 0  ;;  %v1566_v10 = vld [vmem:[%s13959_s15 + $0x8] sm:$0xff]  ;;  %v10907_v9 = vcombine.high %v13990_v32, %v13990_v32  ;;  %s12828_s15 = smov [#allocation5]  }
 0x344   : > { %5276 = vmax.xlane.f32.xlu1 %v5275_v22  ;;  %11714 = vmatpush3.bf16.xpose.msra.mxu1 %v4309_v61  ;;  %v10840_v61 = vcombine.low %v1714_v1, %v1714_v1  ;;  %v1617_v41 = vrot.slane %v1589_v44, %v13980_v58  ;;  %v10797_v57 = vadd.f32 -1.0, %v1566_v10  ;;  %v14079_v48 = vrot.slane %v1603_v26, %v14001_v27  ;;  %s12738_s22 = sshll.u32 %s12828_s15, 4  ;;  %s12739_s22 = int_to_ptr.vmem [resolvable:$false] %s12738_s22 }
 0x345   : > { %11709 = vmatprep.mubr.msk.bf16.mxu0 %vm12823_vm8, %v16483_v30  ;;  %11715 = vmatprep.mubr.msk.bf16.mxu1 %vm12823_vm8, %v16483_v30  ;;  %v4355_v5 = vsel %vm884_vm7, %v10906_v16, 0 }
 0x346   : > { %v2459_v33 = vpop.f32.mrb[24].mxu0  ;;  %11719 = vmatprep.subr.bf16.mxu0 %v16483_v30  ;;  %11725 = vmatprep.subr.bf16.mxu1 %v16483_v30  ;;  %v14090_v10 = vmul.f32 1e+09, %v10797_v57  ;;  %v10909_v57 = vcombine.high %v14005_v59, %v14005_v59 }
 0x347   : > { %v11471_v12 = vpop.f32.mrb[25].mxu0  ;;  %v14060_v22 = vadd.f32 %v2459_v33, %v14044_v34 }
 0x348   : > { %v2462_v31 = vpop.f32.mrb[26].mxu0 }
 0x349   : > { %v2505_v25 = vpop.f32.mrb[48].mxu1  ;;  %v5278_v47 = vsel %vm5271_vm9, %v14060_v22, -inf  ;;  %v11472_v12 = vpop.f32.mrb[27].mxu0 }
 0x34a   : > { %v14073_v33 = vadd.f32 %v2505_v25, %v14053_v6  ;;  %5279 = vmax.xlane.f32.xlu0 %v5278_v47  ;;  %v14076_v31 = vpop.permute.xlu0 %1915  ;;  %v11477_v52 = vpop.f32.mrb[49].mxu1  ;;  %11710 = vmatmul.mubr.msk.bf16.vlgmr.msra.gmra.mrb[104].mxu0 %vm884_vm7, %v10840_v61  ;;  %v4401_v47 = vsel %vm884_vm7, %v10907_v9, 0  ;;  %v10908_v9 = vcombine.low %v14005_v59, %v14005_v59 }
 0x34b   : > { %v2508_v32 = vpop.f32.mrb[50].mxu1  ;;  %11716 = vmatmul.mubr.msk.bf16.vlgmr.msra.gmra.mrb[128].mxu1 %vm884_vm7, %v10841_v20  ;;  %11720 = vmatpush3.bf16.xpose.msra.mxu0 %v4355_v5  ;;  %v14088_v52 = vrot.slane %v1617_v41, %v14001_v27  ;;  %v1716_v61 = vpop.permute.xlu1 %1715  ;;  %v1619_v5 = vcombine.high %v1603_v26, %v1603_v26 }
 0x34c   : > { %v11478_v25 = vpop.f32.mrb[51].mxu1  ;;  %v5281_v44 = vsel %vm5271_vm9, %v14073_v33, -inf  ;;  %11726 = vmatpush3.bf16.xpose.msra.mxu1 %v4401_v47  ;;  %11721 = vmatprep.mubr.msk.bf16.mxu0 %vm12823_vm8, %v16483_v30  ;;  %v10843_v38 = vcombine.high %v1716_v61, %v1716_v61  ;;  %v4447_v43 = vsel %vm884_vm7, %v10908_v9, 0 }
 0x34d   : > { %11727 = vmatprep.mubr.msk.bf16.mxu1 %vm12823_vm8, %v16483_v30  ;;  %11731 = vmatprep.subr.bf16.mxu0 %v16483_v30  ;;  %v14115_v59 = vrot.slane %v1619_v5, %v14001_v27 }
 0x34e   : > { %v2551_v1 = vpop.f32.mrb[28].mxu0  ;;  %5282 = vmax.xlane.f32.xlu0 %v5281_v44  ;;  %11737 = vmatprep.subr.bf16.mxu1 %v16483_v30  ;;  %v14105_v32 = vpop.permute.xlu0 %1917  ;;  %v10842_v44 = vcombine.low %v1716_v61, %v1716_v61 }
 0x34f   : > { %v14093_v16 = vadd.f32 %v2551_v1, %v14079_v48  ;;  %v11483_v20 = vpop.f32.mrb[29].mxu0 }
 0x350   : > { %v2554_v12 = vpop.f32.mrb[30].mxu0  ;;  %v1621_v20 = vcombine.high %v1617_v41, %v1617_v41  ;;  %v4493_v41 = vsel %vm884_vm7, %v10909_v57, 0 }
 0x351   : > { %v2597_v25 = vpop.f32.mrb[52].mxu1  ;;  %v5284_v47 = vsel %vm5271_vm9, %v14093_v16, -inf  ;;  %v11484_v1 = vpop.f32.mrb[31].mxu0  ;;  %v1629_v12 = vrot.slane %v14090_v10, %v13980_v58 }
 0x352   : > { %v14110_v26 = vadd.f32 %v2597_v25, %v14088_v52  ;;  %5285 = vmax.xlane.f32.xlu0 %v5284_v47  ;;  %v11489_v39 = vpop.f32.mrb[53].mxu1  ;;  %11722 = vmatmul.mubr.msk.bf16.vlgmr.msra.gmra.mrb[108].mxu0 %vm884_vm7, %v10842_v44  ;;  %v1718_v1 = vpop.permute.xlu1 %1717  ;;  %v14124_v61 = vrot.slane %v1621_v20, %v14001_v27  ;;  %v10911_v20 = vcombine.high %v14022_v19, %v14022_v19 }
 0x353   : > { %v2600_v28 = vpop.f32.mrb[54].mxu1  ;;  %11728 = vmatmul.mubr.msk.bf16.vlgmr.msra.gmra.mrb[132].mxu1 %vm884_vm7, %v10843_v38  ;;  %11732 = vmatpush3.bf16.xpose.msra.mxu0 %v4447_v43  ;;  %v14126_v5 = vpop.permute.xlu0 %1921  ;;  %v1645_v43 = vrot.slane %v1629_v12, %v13980_v58  ;;  %v10910_v38 = vcombine.low %v14022_v19, %v14022_v19 }
 0x354   : > { %v5287_v25 = vsel %vm5271_vm9, %v14110_v26, -inf  ;;  %v11490_v47 = vpop.f32.mrb[55].mxu1  ;;  %11738 = vmatpush3.bf16.xpose.msra.mxu1 %v4493_v41  ;;  %v1637_v28 = vcombine.high %v1629_v12, %v1629_v12  ;;  %11733 = vmatprep.mubr.msk.bf16.mxu0 %vm12823_vm8, %v16483_v30  ;;  %v10844_v41 = vcombine.low %v1718_v1, %v1718_v1 }
 0x355   : > { %5288 = vmax.xlane.f32.xlu1 %v5287_v25  ;;  %11739 = vmatprep.mubr.msk.bf16.mxu1 %vm12823_vm8, %v16483_v30  ;;  %v14149_v21 = vrot.slane %v1645_v43, %v14001_v27  ;;  %v4539_v19 = vsel %vm884_vm7, %v10910_v38, 0 }
 0x356   : > { %v2643_v39 = vpop.f32.mrb[32].mxu0  ;;  %11743 = vmatprep.subr.bf16.mxu0 %v16483_v30  ;;  %11749 = vmatprep.subr.bf16.mxu1 %v16483_v30  ;;  %v1720_v38 = vpop.permute.xlu1 %1719 }
 0x357   : > { %v14129_v9 = vadd.f32 %v2643_v39, %v14115_v59  ;;  %v11495_v44 = vpop.f32.mrb[33].mxu0  ;;  %v14155_v51 = vpop.permute.xlu0 %1923 }
 0x358   : > { %v2646_v57 = vpop.f32.mrb[34].mxu0  ;;  %v1659_v44 = vrot.slane %v1637_v28, %v13980_v58  ;;  %v1622_v28 = vcombine.high %v14090_v10, %v14090_v10  ;;  %v10913_v10 = vcombine.high %v14048_v3, %v14048_v3 }
 0x359   : > { %v2689_v25 = vpop.f32.mrb[56].mxu1  ;;  %v5290_v47 = vsel %vm5271_vm9, %v14129_v9, -inf  ;;  %v11496_v12 = vpop.f32.mrb[35].mxu0  ;;  %v10845_v57 = vcombine.high %v1718_v1, %v1718_v1  ;;  %v4585_v1 = vsel %vm884_vm7, %v10911_v20, 0  ;;  %v1667_v20 = vcombine.high %v1645_v43, %v1645_v43 }
 0x35a   : > { %v14145_v39 = vadd.f32 %v2689_v25, %v14124_v61  ;;  %5291 = vmax.xlane.f32.xlu0 %v5290_v47  ;;  %v11501_v14 = vpop.f32.mrb[57].mxu1  ;;  %11734 = vmatmul.mubr.msk.bf16.vlgmr.msra.gmra.mrb[112].mxu0 %vm884_vm7, %v10844_v41 }
 0x35b   : > { %v2692_v63 = vpop.f32.mrb[58].mxu1  ;;  %11740 = vmatmul.mubr.msk.bf16.vlgmr.msra.gmra.mrb[136].mxu1 %vm884_vm7, %v10845_v57  ;;  %11744 = vmatpush3.bf16.xpose.msra.mxu0 %v4539_v19  ;;  %v14183_v50 = vpop.permute.xlu0 %1925  ;;  %v14186_v42 = vrot.slane %v1667_v20, %v14001_v27 }
 0x35c   : > { %v5293_v2 = vsel %vm5271_vm9, %v14145_v39, -inf  ;;  %v11502_v25 = vpop.f32.mrb[59].mxu1  ;;  %11750 = vmatpush3.bf16.xpose.msra.mxu1 %v4585_v1  ;;  %v14160_v63 = vrot.slane %v1659_v44, %v14001_v27  ;;  %11745 = vmatprep.mubr.msk.bf16.mxu0 %vm12823_vm8, %v16483_v30 }
 0x35d   : > { %5294 = vmax.xlane.f32.xlu1 %v5293_v2  ;;  %11751 = vmatprep.mubr.msk.bf16.mxu1 %vm12823_vm8, %v16483_v30  ;;  %v10912_v2 = vcombine.low %v14048_v3, %v14048_v3  ;;  %v10846_v25 = vcombine.low %v1720_v38, %v1720_v38 }
 0x35e   : > { %v2735_v14 = vpop.f32.mrb[36].mxu0  ;;  %11755 = vmatprep.subr.bf16.mxu0 %v16483_v30  ;;  %11761 = vmatprep.subr.bf16.mxu1 %v16483_v30 }
 0x35f   : > { %v14165_v47 = vadd.f32 %v2735_v14, %v14149_v21  ;;  %v11507_v41 = vpop.f32.mrb[37].mxu0  ;;  %v1669_v14 = vcombine.high %v1659_v44, %v1659_v44  ;;  %v4631_v4 = vsel %vm884_vm7, %v10912_v2, 0 }
 0x360   : > { %v2738_v12 = vpop.f32.mrb[38].mxu0  ;;  %v1636_v41 = vrot.slane %v1622_v28, %v13980_v58  ;;  %v4677_v28 = vsel %vm884_vm7, %v10913_v10, 0  ;;  %v10914_v10 = vcombine.low %v14076_v31, %v14076_v31 }
 0x361   : > { %v2781_v57 = vpop.f32.mrb[60].mxu1  ;;  %v5296_v19 = vsel %vm5271_vm9, %v14165_v47, -inf  ;;  %v11508_v43 = vpop.f32.mrb[39].mxu0  ;;  %v10847_v12 = vcombine.high %v1720_v38, %v1720_v38  ;;  %v14195_v38 = vrot.slane %v1669_v14, %v14001_v27  ;;  %v10915_v14 = vcombine.high %v14076_v31, %v14076_v31 }
 0x362   : > { %v14180_v1 = vadd.f32 %v2781_v57, %v14160_v63  ;;  %5297 = vmax.xlane.f32.xlu0 %v5296_v19  ;;  %v11513_v56 = vpop.f32.mrb[61].mxu1  ;;  %11746 = vmatmul.mubr.msk.bf16.vlgmr.msra.gmra.mrb[116].mxu0 %vm884_vm7, %v10846_v25  ;;  %v1638_v20 = vcombine.high %v1636_v41, %v1636_v41  ;;  %v1722_v19 = vpop.permute.xlu1 %1721 }
 0x363   : > { %v2784_v3 = vpop.f32.mrb[62].mxu1  ;;  %11752 = vmatmul.mubr.msk.bf16.vlgmr.msra.gmra.mrb[140].mxu1 %vm884_vm7, %v10847_v12  ;;  %11756 = vmatpush3.bf16.xpose.msra.mxu0 %v4631_v4  ;;  %v1652_v4 = vrot.slane %v1636_v41, %v13980_v58  ;;  %v14211_v12 = vpop.permute.xlu0 %2071 }
 0x364   : > { %v5299_v57 = vsel %vm5271_vm9, %v14180_v1, -inf  ;;  %v11514_v44 = vpop.f32.mrb[63].mxu1  ;;  %11762 = vmatpush3.bf16.xpose.msra.mxu1 %v4677_v28  ;;  %11757 = vmatprep.mubr.msk.bf16.mxu0 %vm12823_vm8, %v16483_v30  ;;  %16487 = vst [vmem:[#allocation53_spill] sm:$0xff] %v14211_v12  ;;  %v4723_v12 = vsel %vm884_vm7, %v10914_v10, 0 }
 0x365   : > { %5300 = vmax.xlane.f32.xlu1 %v5299_v57  ;;  %11763 = vmatprep.mubr.msk.bf16.mxu1 %vm12823_vm8, %v16483_v30  ;;  %v10848_v44 = vcombine.low %v1722_v19, %v1722_v19  ;;  %v14220_v35 = vrot.slane %v1652_v4, %v14001_v27 }
 0x366   : > { %v2827_v56 = vpop.f32.mrb[40].mxu0  ;;  %11767 = vmatprep.subr.bf16.mxu0 %v16483_v30  ;;  %11773 = vmatprep.subr.bf16.mxu1 %v16483_v30 }
 0x367   : > { %v14198_v25 = vadd.f32 %v2827_v56, %v14186_v42  ;;  %v11519_v2 = vpop.f32.mrb[41].mxu0  ;;  %v1666_v56 = vrot.slane %v1638_v20, %v13980_v58  ;;  %v1724_v20 = vpop.permute.xlu1 %1723 }
 0x368   : > { %v2830_v43 = vpop.f32.mrb[42].mxu0  ;;  %v10849_v2 = vcombine.high %v1722_v19, %v1722_v19 }
 0x369   : > { %v2873_v3 = vpop.f32.mrb[64].mxu1  ;;  %v5302_v57 = vsel %vm5271_vm9, %v14198_v25, -inf  ;;  %v11520_v28 = vpop.f32.mrb[43].mxu0  ;;  %v1670_v58 = vcombine.high %v1666_v56, %v1666_v56 }
 0x36a   : > { %v14216_v41 = vadd.f32 %v2873_v3, %v14195_v38  ;;  %5303 = vmax.xlane.f32.xlu0 %v5302_v57  ;;  %v11525_v43 = vpop.f32.mrb[65].mxu1  ;;  %11758 = vmatmul.mubr.msk.bf16.vlgmr.msra.gmra.mrb[120].mxu0 %vm884_vm7, %v10848_v44  ;;  %v4769_v57 = vsel %vm884_vm7, %v10915_v14, 0  ;;  %v14229_v28 = vrot.slane %v1666_v56, %v14001_v27  ;;  %v1668_v14 = vcombine.high %v1652_v4, %v1652_v4 }
 0x36b   : > { %v2876_v31 = vpop.f32.mrb[66].mxu1  ;;  %11764 = vmatmul.mubr.msk.bf16.vlgmr.msra.gmra.mrb[144].mxu1 %vm884_vm7, %v10849_v2  ;;  %11768 = vmatpush3.bf16.xpose.msra.mxu0 %v4723_v12  ;;  %v14231_v43 = vpop.permute.xlu0 %2089  ;;  %v10917_v2 = vcombine.high %v14105_v32, %v14105_v32 }
 0x36c   : > { %v5305_v18 = vsel %vm5271_vm9, %v14216_v41, -inf  ;;  %v11526_v3 = vpop.f32.mrb[67].mxu1  ;;  %11774 = vmatpush3.bf16.xpose.msra.mxu1 %v4769_v57  ;;  %16488 = vst [vmem:[#allocation54_spill] sm:$0xff] %v14231_v43  ;;  %11769 = vmatprep.mubr.msk.bf16.mxu0 %vm12823_vm8, %v16483_v30  ;;  %v14252_v40 = vrot.slane %v1668_v14, %v14001_v27 }
 0x36d   : > { %5306 = vmax.xlane.f32.xlu1 %v5305_v18  ;;  %11775 = vmatprep.mubr.msk.bf16.mxu1 %vm12823_vm8, %v16483_v30  ;;  %v10916_v18 = vcombine.low %v14105_v32, %v14105_v32 }
 0x36e   : > { %v2919_v19 = vpop.f32.mrb[44].mxu0  ;;  %11779 = vmatprep.subr.bf16.mxu0 %v16483_v30  ;;  %11785 = vmatprep.subr.bf16.mxu1 %v16483_v30 }
 0x36f   : > { %v14234_v10 = vadd.f32 %v2919_v19, %v14220_v35  ;;  %v11531_v44 = vpop.f32.mrb[45].mxu0  ;;  %v10850_v19 = vcombine.low %v1724_v20, %v1724_v20  ;;  %v1920_v23 = vpop.permute.xlu0 %1919 }
 0x370   : > { %v2922_v12 = vpop.f32.mrb[46].mxu0 }
 0x371   : > { %v2965_v31 = vpop.f32.mrb[68].mxu1  ;;  %v11532_v3 = vpop.f32.mrb[47].mxu0  ;;  %v5308_v57 = vsel %vm5271_vm9, %v14234_v10, -inf  ;;  %v10851_v12 = vcombine.high %v1724_v20, %v1724_v20  ;;  %v14261_v20 = vrot.slane %v1670_v58, %v14001_v27 }
 0x372   : > { %v14249_v44 = vadd.f32 %v2965_v31, %v14229_v28  ;;  %v11537_v4 = vpop.f32.mrb[69].mxu1  ;;  %5309 = vmax.xlane.f32.xlu0 %v5308_v57  ;;  %11770 = vmatmul.mubr.msk.bf16.vlgmr.msra.gmra.mrb[124].mxu0 %vm884_vm7, %v10850_v19  ;;  %v4815_v3 = vsel %vm884_vm7, %v10916_v18, 0  ;;  %v4861_v31 = vsel %vm884_vm7, %v10917_v2, 0  ;;  %v10918_v57 = vcombine.low %v1920_v23, %v1920_v23 }
 0x373   : > { %v2968_v43 = vpop.f32.mrb[70].mxu1  ;;  %11776 = vmatmul.mubr.msk.bf16.vlgmr.msra.gmra.mrb[148].mxu1 %vm884_vm7, %v10851_v12  ;;  %11780 = vmatpush3.bf16.xpose.msra.mxu0 %v4815_v3 }
 0x374   : > { %v11538_v32 = vpop.f32.mrb[71].mxu1  ;;  %v5311_v24 = vsel %vm5271_vm9, %v14249_v44, -inf  ;;  %11786 = vmatpush3.bf16.xpose.msra.mxu1 %v4861_v31  ;;  %v1726_v43 = vpop.permute.xlu1 %1725  ;;  %11781 = vmatprep.mubr.msk.bf16.mxu0 %vm12823_vm8, %v16483_v30 }
 0x375   : > { %5312 = vmax.xlane.f32.xlu1 %v5311_v24  ;;  %11787 = vmatprep.mubr.msk.bf16.mxu1 %vm12823_vm8, %v16483_v30  ;;  %v10919_v24 = vcombine.high %v1920_v23, %v1920_v23  ;;  %v10852_v4 = vcombine.low %v1726_v43, %v1726_v43  ;;  %v10853_v3 = vcombine.high %v1726_v43, %v1726_v43 }
 0x376   : > { %v3011_v56 = vpop.f32.mrb[48].mxu0  ;;  %11791 = vmatprep.subr.bf16.mxu0 %v16483_v30  ;;  %11797 = vmatprep.subr.bf16.mxu1 %v16483_v30  ;;  %v10920_v43 = vcombine.low %v14126_v5, %v14126_v5 }
 0x377   : > { %v14264_v14 = vadd.f32 %v3011_v56, %v14252_v40  ;;  %v11543_v18 = vpop.f32.mrb[49].mxu0 }
 0x378   : > { %v3014_v19 = vpop.f32.mrb[50].mxu0  ;;  %v4907_v18 = vsel %vm884_vm7, %v10918_v57, 0  ;;  %v10921_v57 = vcombine.high %v14126_v5, %v14126_v5  ;;  %v10922_v5 = vcombine.low %v14155_v51, %v14155_v51 }
 0x379   : > { %v3057_v58 = vpop.f32.mrb[72].mxu1  ;;  %v11544_v27 = vpop.f32.mrb[51].mxu0  ;;  %v5314_v2 = vsel %vm5271_vm9, %v14264_v14, -inf  ;;  %v4953_v19 = vsel %vm884_vm7, %v10919_v24, 0 }
 0x37a   : > { %v14275_v12 = vadd.f32 %v3057_v58, %v14261_v20  ;;  %v11549_v32 = vpop.f32.mrb[73].mxu1  ;;  %5315 = vmax.xlane.f32.xlu0 %v5314_v2  ;;  %11782 = vmatmul.mubr.msk.bf16.vlgmr.msra.gmra.mrb[128].mxu0 %vm884_vm7, %v10852_v4  ;;  %v1728_v58 = vpop.permute.xlu1 %1727  ;;  %v4999_v2 = vsel %vm884_vm7, %v10920_v43, 0  ;;  %v5045_v4 = vsel %vm884_vm7, %v10921_v57, 0 }
 0x37b   : > { %v3060_v31 = vpop.f32.mrb[74].mxu1  ;;  %11788 = vmatmul.mubr.msk.bf16.vlgmr.msra.gmra.mrb[152].mxu1 %vm884_vm7, %v10853_v3  ;;  %11792 = vmatpush3.bf16.xpose.msra.mxu0 %v4907_v18  ;;  %v10854_v24 = vcombine.low %v1728_v58, %v1728_v58  ;;  %v10855_v27 = vcombine.high %v1728_v58, %v1728_v58  ;;  %v10923_v3 = vcombine.high %v14155_v51, %v14155_v51  ;;  %v5091_v18 = vsel %vm884_vm7, %v10922_v5, 0 }
 0x37c   : > { %v11550_v56 = vpop.f32.mrb[75].mxu1  ;;  %v5317_v23 = vsel %vm5271_vm9, %v14275_v12, -inf  ;;  %11798 = vmatpush3.bf16.xpose.msra.mxu1 %v4953_v19  ;;  %11793 = vmatprep.mubr.msk.bf16.mxu0 %vm12823_vm8, %v16483_v30  ;;  %v10924_v51 = vcombine.low %v14183_v50, %v14183_v50  ;;  %v10925_v58 = vcombine.high %v14183_v50, %v14183_v50  ;;  %v11166_v50 = vpack.c.bf16 %v13669_v60, %v13669_v60 }
 0x37d   : > { %5318 = vmax.xlane.f32.xlu1 %v5317_v23  ;;  %11799 = vmatprep.mubr.msk.bf16.mxu1 %vm12823_vm8, %v16483_v30  ;;  %v5137_v23 = vsel %vm884_vm7, %v10923_v3, 0 }
 0x37e   : > { %11803 = vmatprep.subr.bf16.mxu0 %v16483_v30  ;;  %11809 = vmatprep.subr.bf16.mxu1 %v16483_v30  ;;  %v1730_v32 = vpop.permute.xlu1 %1729  ;;  %v6109_v3 = vsel %vm6107_vm10, %v11166_v50, 0 }
 0x37f   : > { %v10856_v31 = vcombine.low %v1730_v32, %v1730_v32  ;;  %v10857_v56 = vcombine.high %v1730_v32, %v1730_v32 }
 0x382   : > { %11794 = vmatmul.mubr.msk.bf16.vlgmr.msra.gmra.mrb[132].mxu0 %vm884_vm7, %v10854_v24  ;;  %v1732_v19 = vpop.permute.xlu1 %1731  ;;  %v5183_v24 = vsel %vm884_vm7, %v10924_v51, 0 }
 0x383   : > { %11800 = vmatmul.mubr.msk.bf16.vlgmr.msra.gmra.mrb[156].mxu1 %vm884_vm7, %v10855_v27  ;;  %11804 = vmatpush3.bf16.xpose.msra.mxu0 %v4999_v2  ;;  %v10858_v43 = vcombine.low %v1732_v19, %v1732_v19  ;;  %v10859_v57 = vcombine.high %v1732_v19, %v1732_v19  ;;  %v5229_v27 = vsel %vm884_vm7, %v10925_v58, 0 }
 0x384   : > { %11810 = vmatpush3.bf16.xpose.msra.mxu1 %v5045_v4  ;;  %11805 = vmatprep.mubr.msk.bf16.mxu0 %vm12823_vm8, %v16483_v30  ;;  %v11167_v4 = vpack.c.bf16 %v13677_v0, %v13677_v0 }
 0x385   : > { %11811 = vmatprep.mubr.msk.bf16.mxu1 %vm12823_vm8, %v16483_v30  ;;  %11815 = vmatprep.subr.bf16.mxu0 %v16483_v30 }
 0x386   : > { %11821 = vmatprep.subr.bf16.mxu1 %v16483_v30  ;;  %v1734_v2 = vpop.permute.xlu1 %1733 }
 0x387   : > { %v10860_v32 = vcombine.low %v1734_v2, %v1734_v2  ;;  %v10861_v5 = vcombine.high %v1734_v2, %v1734_v2 }
 0x38a   : > { %11806 = vmatmul.mubr.msk.bf16.vlgmr.msra.gmra.mrb[136].mxu0 %vm884_vm7, %v10856_v31  ;;  %v6155_v31 = vsel %vm6107_vm10, %v11167_v4, 0  ;;  %v14345_v60 = vpop.permute.xlu1 %2073 }
 0x38b   : > { %11812 = vmatmul.mubr.msk.bf16.vlgmr.msra.gmra.mrb[160].mxu1 %vm884_vm7, %v10857_v56  ;;  %11816 = vmatpush3.bf16.xpose.msra.mxu0 %v5091_v18  ;;  %16489 = vst [vmem:[#allocation55_spill] sm:$0xff] %v14345_v60  ;;  %v14349_v56 = vpop.permute.xlu0 %2075 }
 0x38c   : > { %11822 = vmatpush3.bf16.xpose.msra.mxu1 %v5137_v23  ;;  %11817 = vmatprep.mubr.msk.bf16.mxu0 %vm12823_vm8, %v16483_v30  ;;  %16491 = vst [vmem:[#allocation57_spill] sm:$0xff] %v14349_v56 }
 0x38d   : > { %11823 = vmatprep.mubr.msk.bf16.mxu1 %vm12823_vm8, %v16483_v30  ;;  %11827 = vmatprep.subr.bf16.mxu0 %v16483_v30 }
 0x38e   : > { %11833 = vmatprep.subr.bf16.mxu1 %v16483_v30  ;;  %v14347_v0 = vpop.permute.xlu1 %2087 }
 0x38f   : > { %16490 = vst [vmem:[#allocation56_spill] sm:$0xff] %v14347_v0  ;;  %v14353_v23 = vpop.permute.xlu0 %2093 }
 0x390   : > { %16493 = vst [vmem:[#allocation59_spill] sm:$0xff] %v14353_v23 }
 0x392   : > { %11818 = vmatmul.mubr.msk.bf16.vlgmr.msra.gmra.mrb[140].mxu0 %vm884_vm7, %v10858_v43  ;;  %v14351_v18 = vpop.permute.xlu1 %2091 }
 0x393   : > { %11824 = vmatmul.mubr.msk.bf16.vlgmr.msra.gmra.mrb[164].mxu1 %vm884_vm7, %v10859_v57  ;;  %11828 = vmatpush3.bf16.xpose.msra.mxu0 %v5183_v24  ;;  %16492 = vst [vmem:[#allocation58_spill] sm:$0xff] %v14351_v18  ;;  %v14357_v51 = vpop.permute.xlu0 %2079 }
 0x394   : > { %11834 = vmatpush3.bf16.xpose.msra.mxu1 %v5229_v27  ;;  %11829 = vmatprep.mubr.msk.bf16.mxu0 %vm12823_vm8, %v16483_v30  ;;  %16495 = vst [vmem:[#allocation61_spill] sm:$0xff] %v14357_v51 }
 0x395   : > { %11835 = vmatprep.mubr.msk.bf16.mxu1 %vm12823_vm8, %v16483_v30  ;;  %11839 = vmatprep.subr.bf16.mxu0 %v16483_v30 }
 0x396   : > { %11845 = vmatprep.subr.bf16.mxu1 %v16483_v30  ;;  %v14355_v19 = vpop.permute.xlu1 %2077 }
 0x397   : > { %16494 = vst [vmem:[#allocation60_spill] sm:$0xff] %v14355_v19  ;;  %v14371_v23 = vpop.permute.xlu0 %2081 }
 0x398   : > { %16499 = vst [vmem:[#allocation65_spill] sm:$0xff] %v14371_v23 }
 0x39a   : > { %11830 = vmatmul.mubr.msk.bf16.vlgmr.msra.gmra.mrb[144].mxu0 %vm884_vm7, %v10860_v32 }
 0x39b   : > { %11836 = vmatmul.mubr.msk.bf16.vlgmr.msra.gmra.mrb[168].mxu1 %vm884_vm7, %v10861_v5  ;;  %11840 = vmatpush3.bf16.msra.mxu0 %v6109_v3 }
 0x39c   : > { %11846 = vmatpush3.bf16.msra.mxu1 %v6155_v31  ;;  %11841 = vmatprep.mubr.msk.bf16.mxu0 %vm12823_vm8, %v16483_v30 }
 0x39d   : > { %11851 = vmatprep.subr.bf16.mxu0 %v16483_v30  ;;  %11847 = vmatprep.mubr.msk.bf16.mxu1 %vm12823_vm8, %v16483_v30 }
 0x39e   : > { %11857 = vmatprep.subr.bf16.mxu1 %v16483_v30 }
 0x3b5   : > { %v3103_v58 = vpop.f32.mrb[52].mxu0  ;;  %v3149_v57 = vpop.f32.mrb[76].mxu1 }
 0x3b6   : > { %v14360_v43 = vadd.f32 %v3103_v58, %v14009_v17  ;;  %v11555_v24 = vpop.f32.mrb[53].mxu0  ;;  %v14363_v27 = vadd.f32 %v3149_v57, %v14016_v46  ;;  %v11561_v2 = vpop.f32.mrb[77].mxu1 }
 0x3b7   : > { %v3106_v50 = vpop.f32.mrb[54].mxu0  ;;  %v3152_v4 = vpop.f32.mrb[78].mxu1 }
 0x3b8   : > { %16496 = vst [vmem:[#allocation62_spill] sm:$0xff] %v14360_v43  ;;  %16497 = vst [vmem:[#allocation63_spill] sm:$0xff] %v14363_v27  ;;  %v11556_v32 = vpop.f32.mrb[55].mxu0  ;;  %v5320_v5 = vsel %vm5271_vm9, %v14360_v43, -inf  ;;  %v11562_v3 = vpop.f32.mrb[79].mxu1  ;;  %v5323_v31 = vsel %vm5271_vm9, %v14363_v27, -inf }
 0x3b9   : > { %5321 = vmax.xlane.f32.xlu0 %v5320_v5  ;;  %5324 = vmax.xlane.f32.xlu1 %v5323_v31  ;;  %v14369_v58 = vpop.permute.xlu1 %2095  ;;  %v14380_v31 = vpop.permute.xlu0 %2097 }
 0x3ba   : > { %16498 = vst [vmem:[#allocation64_spill] sm:$0xff] %v14369_v58  ;;  %16501 = vst [vmem:[#allocation67_spill] sm:$0xff] %v14380_v31 }
 0x3bd   : > { %v3195_v24 = vpop.f32.mrb[56].mxu0  ;;  %v14376_v2 = vpop.f32.mrb[80].mxu1 }
 0x3be   : > { %v14374_v57 = vadd.f32 %v3195_v24, %v14044_v34  ;;  %v11567_v50 = vpop.f32.mrb[57].mxu0  ;;  %v11573_v4 = vpop.f32.mrb[81].mxu1 }
 0x3bf   : > { %v3198_v32 = vpop.f32.mrb[58].mxu0  ;;  %v3244_v18 = vpop.f32.mrb[82].mxu1 }
 0x3c0   : > { %16500 = vst [vmem:[#allocation66_spill] sm:$0xff] %v14374_v57  ;;  %v11568_v3 = vpop.f32.mrb[59].mxu0  ;;  %v5326_v0 = vsel %vm5271_vm9, %v14374_v57, -inf  ;;  %v11574_v5 = vpop.f32.mrb[83].mxu1 }
 0x3c1   : > { %5327 = vmax.xlane.f32.xlu0 %v5326_v0  ;;  %v14382_v58 = vpop.permute.xlu1 %2083  ;;  %v14388_v18 = vpop.permute.xlu0 %2085 }
 0x3c2   : > { %16502 = vst [vmem:[#allocation68_spill] sm:$0xff] %v14382_v58  ;;  %16503 = vst [vmem:[#allocation69_spill] sm:$0xff] %v14388_v18 }
 0x3c5   : > { %v14384_v23 = vpop.f32.mrb[60].mxu0  ;;  %v14386_v24 = vpop.f32.mrb[84].mxu1 }
 0x3c6   : > { %v11579_v51 = vpop.f32.mrb[61].mxu0  ;;  %v11585_v19 = vpop.f32.mrb[85].mxu1 }
 0x3c7   : > { %v3290_v50 = vpop.f32.mrb[62].mxu0  ;;  %v3336_v4 = vpop.f32.mrb[86].mxu1 }
 0x3c8   : > { %v11580_v32 = vpop.f32.mrb[63].mxu0  ;;  %v11586_v3 = vpop.f32.mrb[87].mxu1 }
 0x3c9   : > { %v14392_v0 = vpop.permute.xlu1 %2099 }
 0x3ca   : > { %2103 = vrot.lane.b32.xlu1 %v13687_v55, %s12826_s12  ;;  %16504 = vst [vmem:[#allocation70_spill] sm:$0xff] %v14392_v0 }
 0x3cd   : > { %v14394_v5 = vpop.f32.mrb[64].mxu0  ;;  %v14396_v58 = vpop.f32.mrb[88].mxu1 }
 0x3ce   : > { %v11591_v56 = vpop.f32.mrb[65].mxu0  ;;  %v11597_v19 = vpop.f32.mrb[89].mxu1 }
 0x3cf   : > { %v5274_v31 = vpop.xlane.xlu0 %5273  ;;  %v3382_v50 = vpop.f32.mrb[66].mxu0 }
 0x3d0   : > { %v5464_v51 = vsub.f32 %v14027_v8, %v5274_v31  ;;  %v3428_v4 = vpop.f32.mrb[90].mxu1  ;;  %v11592_v60 = vpop.f32.mrb[67].mxu0 }
 0x3d1   : > { %v11598_v18 = vpop.f32.mrb[91].mxu1  ;;  %v5277_v3 = vpop.xlane.xlu1 %5276 }
 0x3d2   : > { %v5528_v32 = vpack.c.bf16 %v5464_v51, %v5464_v51  ;;  %v5465_v55 = vsub.f32 %v14036_v54, %v5277_v3 }
 0x3d4   : > { %v5593_v57 = vmul.bf16 1069105081, %v5528_v32  ;;  %v5529_v0 = vpack.c.bf16 %v5465_v55, %v5465_v55  ;;  %v11168_v32 = vpack.c.bf16 %v13697_v11, %v13697_v11 }
 0x3d5   : > { %v14400_v27 = vpop.f32.mrb[68].mxu0  ;;  %v14402_v46 = vpop.f32.mrb[92].mxu1 }
 0x3d6   : > { %12384 = vpow.bf16 %v5593_v57  ;;  %v5596_v34 = vmul.bf16 1069105081, %v5529_v0  ;;  %v11603_v56 = vpop.f32.mrb[69].mxu0  ;;  %v11609_v60 = vpop.f32.mrb[93].mxu1  ;;  %v6201_v11 = vsel %vm6107_vm10, %v11168_v32, 0  ;;  %v11170_v32 = vpack.c.bf16 %v13720_v36, %v13720_v36 }
 0x3d7   : > { %v5280_v43 = vpop.xlane.xlu0 %5279  ;;  %2101 = vrot.lane.b32.xlu0 %v13834_v7, %s12825_s26  ;;  %v3474_v31 = vpop.f32.mrb[70].mxu0  ;;  %v11171_v36 = vpack.c.bf16 %v13726_v62, %v13726_v62 }
 0x3d8   : > { %v5466_v8 = vsub.f32 %v14060_v22, %v5280_v43  ;;  %12386 = vpow.bf16 %v5596_v34  ;;  %v3520_v18 = vpop.f32.mrb[94].mxu1  ;;  %v11604_v54 = vpop.f32.mrb[71].mxu0 }
 0x3d9   : > { %v11610_v57 = vpop.f32.mrb[95].mxu1  ;;  %v11169_v54 = vpack.c.bf16 %v13706_v15, %v13706_v15 }
 0x3da   : > { %v5530_v51 = vpack.c.bf16 %v5466_v8, %v5466_v8 }
 0x3db   : > { %v5283_v19 = vpop.xlane.xlu0 %5282  ;;  %v6247_v15 = vsel %vm6107_vm10, %v11169_v54, 0 }
 0x3dc   : > { %v5599_v50 = vmul.bf16 1069105081, %v5530_v51  ;;  %v5467_v4 = vsub.f32 %v14073_v33, %v5283_v19 }
 0x3dd   : > { %v14410_v3 = vpop.f32.mrb[72].mxu0  ;;  %v14412_v43 = vpop.f32.mrb[96].mxu1 }
 0x3de   : > { %12388 = vpow.bf16 %v5599_v50  ;;  %v5531_v0 = vpack.c.bf16 %v5467_v4, %v5467_v4  ;;  %v11615_v34 = vpop.f32.mrb[73].mxu0  ;;  %v11621_v60 = vpop.f32.mrb[97].mxu1 }
 0x3df   : > { %v5286_v55 = vpop.xlane.xlu0 %5285  ;;  %v3566_v31 = vpop.f32.mrb[74].mxu0 }
 0x3e0   : > { %v5602_v22 = vmul.bf16 1069105081, %v5531_v0  ;;  %v5468_v56 = vsub.f32 %v14093_v16, %v5286_v55  ;;  %v3612_v33 = vpop.f32.mrb[98].mxu1  ;;  %v11616_v51 = vpop.f32.mrb[75].mxu0 }
 0x3e1   : > { %v14415_v8 = vpop.eup %12384  ;;  %v11622_v57 = vpop.f32.mrb[99].mxu1  ;;  %v14447_v51 = vadd.f32 %v14376_v2, %v14053_v6 }
 0x3e2   : > { %12390 = vpow.bf16 %v5602_v22  ;;  %v5532_v18 = vpack.c.bf16 %v5468_v56, %v5468_v56  ;;  %11842 = vmatmul.mubr.msk.bf16.vlgmr.msra.gmra.mrb[148].mxu0 %vm5271_vm9, %v14415_v8  ;;  %v5289_v19 = vpop.xlane.xlu1 %5288 }
 0x3e3   : > { %11852 = vmatpush3.bf16.msra.mxu0 %v6201_v11  ;;  %11853 = vmatprep.mubr.msk.bf16.mxu0 %vm12823_vm8, %v16483_v30  ;;  %v5469_v50 = vsub.f32 %v14110_v26, %v5289_v19  ;;  %v14426_v4 = vpop.eup %12386 }
 0x3e4   : > { %v5605_v16 = vmul.bf16 1069105081, %v5532_v18  ;;  %11863 = vmatprep.subr.bf16.mxu0 %v16483_v30  ;;  %16505 = vst [vmem:[#allocation71_spill] sm:$0xff] %v14426_v4  ;;  %11848 = vmatmul.mubr.msk.bf16.vlgmr.msra.gmra.mrb[172].mxu1 %vm5271_vm9, %v14426_v4 }
 0x3e5   : > { %v5533_v0 = vpack.c.bf16 %v5469_v50, %v5469_v50  ;;  %11858 = vmatpush3.bf16.msra.mxu1 %v6247_v15  ;;  %v14433_v55 = vpop.f32.mrb[76].mxu0  ;;  %11859 = vmatprep.mubr.msk.bf16.mxu1 %vm12823_vm8, %v16483_v30  ;;  %v14437_v34 = vpop.f32.mrb[100].mxu1  ;;  %v11172_v15 = vpack.c.bf16 %v13740_v37, %v13740_v37 }
 0x3e6   : > { %12392 = vpow.bf16 %v5605_v16  ;;  %v11627_v56 = vpop.f32.mrb[77].mxu0  ;;  %11869 = vmatprep.subr.bf16.mxu1 %v16483_v30  ;;  %v11633_v33 = vpop.f32.mrb[101].mxu1 }
 0x3e7   : > { %v5292_v22 = vpop.xlane.xlu0 %5291  ;;  %v5608_v26 = vmul.bf16 1069105081, %v5533_v0  ;;  %v3658_v18 = vpop.f32.mrb[78].mxu0  ;;  %v6339_v0 = vsel %vm6107_vm10, %v11171_v36, 0  ;;  %v14481_v36 = vadd.f32 %v14384_v23, %v14079_v48 }
 0x3e8   : > { %v5470_v60 = vsub.f32 %v14129_v9, %v5292_v22  ;;  %v3704_v11 = vpop.f32.mrb[102].mxu1  ;;  %v11628_v57 = vpop.f32.mrb[79].mxu0  ;;  %v6293_v9 = vsel %vm6107_vm10, %v11170_v32, 0  ;;  %v14463_v32 = vadd.f32 %v14386_v24, %v14088_v52 }
 0x3e9   : > { %v14441_v31 = vpop.eup %12388  ;;  %12394 = vpow.bf16 %v5608_v26  ;;  %v11634_v19 = vpop.f32.mrb[103].mxu1  ;;  %v5329_v26 = vsel %vm5271_vm9, %v14447_v51, -inf  ;;  %v6385_v57 = vsel %vm6107_vm10, %v11172_v15, 0 }
 0x3ea   : > { %v5534_v54 = vpack.c.bf16 %v5470_v60, %v5470_v60  ;;  %11854 = vmatmul.mubr.msk.bf16.vlgmr.msra.gmra.mrb[152].mxu0 %vm5271_vm9, %v14441_v31  ;;  %v5295_v16 = vpop.xlane.xlu1 %5294 }
 0x3eb   : > { %11864 = vmatpush3.bf16.msra.mxu0 %v6293_v9  ;;  %11865 = vmatprep.mubr.msk.bf16.mxu0 %vm12823_vm8, %v16483_v30  ;;  %v5471_v50 = vsub.f32 %v14145_v39, %v5295_v16  ;;  %v14486_v9 = vadd.f32 %v14396_v58, %v14124_v61 }
 0x3ec   : > { %v5611_v62 = vmul.bf16 1069105081, %v5534_v54  ;;  %11875 = vmatprep.subr.bf16.mxu0 %v16483_v30 }
 0x3ed   : > { %v14456_v2 = vpop.eup %12390  ;;  %v5535_v22 = vpack.c.bf16 %v5471_v50, %v5471_v50  ;;  %v14469_v39 = vpop.f32.mrb[80].mxu0 }
 0x3ee   : > { %16506 = vst [vmem:[#allocation72_spill] sm:$0xff] %v14456_v2  ;;  %12396 = vpow.bf16 %v5611_v62  ;;  %11860 = vmatmul.mubr.msk.bf16.vlgmr.msra.gmra.mrb[176].mxu1 %vm5271_vm9, %v14456_v2  ;;  %5330 = vmax.xlane.f32.xlu1 %v5329_v26  ;;  %v14471_v33 = vpop.f32.mrb[104].mxu1  ;;  %v11639_v37 = vpop.f32.mrb[81].mxu0  ;;  %v5335_v62 = vsel %vm5271_vm9, %v14463_v32, -inf  ;;  %v14502_v26 = vadd.f32 %v14394_v5, %v14115_v59 }
 0x3ef   : > { %11870 = vmatpush3.bf16.msra.mxu1 %v6339_v0  ;;  %v5298_v56 = vpop.xlane.xlu0 %5297  ;;  %v5614_v60 = vmul.bf16 1069105081, %v5535_v22  ;;  %11871 = vmatprep.mubr.msk.bf16.mxu1 %vm12823_vm8, %v16483_v30  ;;  %v11645_v11 = vpop.f32.mrb[105].mxu1  ;;  %v11173_v0 = vpack.c.bf16 %v13746_v29, %v13746_v29  ;;  %v14508_v29 = vadd.f32 %v14400_v27, %v14149_v21 }
 0x3f0   : > { %v5472_v24 = vsub.f32 %v14165_v47, %v5298_v56  ;;  %11881 = vmatprep.subr.bf16.mxu1 %v16483_v30  ;;  %v3750_v54 = vpop.f32.mrb[82].mxu0  ;;  %v3796_v47 = vpop.f32.mrb[106].mxu1  ;;  %v5332_v56 = vsel %vm5271_vm9, %v14481_v36, -inf  ;;  %v11174_v11 = vpack.c.bf16 %v13760_v45, %v13760_v45  ;;  %v5338_v45 = vsel %vm5271_vm9, %v14502_v26, -inf }
 0x3f1   : > { %v14477_v18 = vpop.eup %12392  ;;  %12398 = vpow.bf16 %v5614_v60  ;;  %v11640_v16 = vpop.f32.mrb[83].mxu0  ;;  %v5341_v60 = vsel %vm5271_vm9, %v14486_v9, -inf  ;;  %v6431_v5 = vsel %vm6107_vm10, %v11173_v0, 0 }
 0x3f2   : > { %16507 = vst [vmem:[#allocation73_spill] sm:$0xff] %v14477_v18  ;;  %v5536_v19 = vpack.c.bf16 %v5472_v24, %v5472_v24  ;;  %11866 = vmatmul.mubr.msk.bf16.vlgmr.msra.gmra.mrb[156].mxu0 %vm5271_vm9, %v14477_v18  ;;  %v11646_v23 = vpop.f32.mrb[107].mxu1  ;;  %v5301_v50 = vpop.xlane.xlu1 %5300  ;;  %5336 = vmax.xlane.f32.xlu1 %v5335_v62  ;;  %v14528_v16 = vadd.f32 %v14402_v46, %v14160_v63 }
 0x3f3   : > { %11876 = vmatpush3.bf16.msra.mxu0 %v6385_v57  ;;  %v5473_v58 = vsub.f32 %v14180_v1, %v5301_v50  ;;  %11877 = vmatprep.mubr.msk.bf16.mxu0 %vm12823_vm8, %v16483_v30  ;;  %v14535_v50 = vadd.f32 %v14410_v3, %v14186_v42  ;;  %v11175_v3 = vpack.c.bf16 %v13766_v49, %v13766_v49 }
 0x3f4   : > { %v5617_v15 = vmul.bf16 1069105081, %v5536_v19  ;;  %11887 = vmatprep.subr.bf16.mxu0 %v16483_v30  ;;  %v14498_v22 = vpop.eup %12394  ;;  %v14558_v49 = vadd.f32 %v14469_v39, %v14252_v40 }
 0x3f5   : > { %16508 = vst [vmem:[#allocation74_spill] sm:$0xff] %v14498_v22  ;;  %v5537_v1 = vpack.c.bf16 %v5473_v58, %v5473_v58  ;;  %v14514_v37 = vpop.f32.mrb[84].mxu0  ;;  %v14519_v54 = vpop.f32.mrb[108].mxu1  ;;  %v5344_v58 = vsel %vm5271_vm9, %v14508_v29, -inf }
 0x3f6   : > { %12400 = vpow.bf16 %v5617_v15  ;;  %11872 = vmatmul.mubr.msk.bf16.vlgmr.msra.gmra.mrb[180].mxu1 %vm5271_vm9, %v14498_v22  ;;  %5333 = vmax.xlane.f32.xlu0 %v5332_v56  ;;  %v11651_v57 = vpop.f32.mrb[85].mxu0  ;;  %v11657_v62 = vpop.f32.mrb[109].mxu1 }
 0x3f7   : > { %5342 = vmax.xlane.f32.xlu1 %v5341_v60  ;;  %v5304_v24 = vpop.xlane.xlu0 %5303  ;;  %v5620_v27 = vmul.bf16 1069105081, %v5537_v1  ;;  %11882 = vmatpush3.bf16.msra.mxu1 %v6431_v5  ;;  %v3842_v23 = vpop.f32.mrb[86].mxu0  ;;  %v6477_v1 = vsel %vm6107_vm10, %v11174_v11, 0  ;;  %v5347_v57 = vsel %vm5271_vm9, %v14528_v16, -inf  ;;  %v5350_v11 = vsel %vm5271_vm9, %v14535_v50, -inf }
 0x3f8   : > { %v5474_v47 = vsub.f32 %v14198_v25, %v5304_v24  ;;  %11883 = vmatprep.mubr.msk.bf16.mxu1 %vm12823_vm8, %v16483_v30  ;;  %11893 = vmatprep.subr.bf16.mxu1 %v16483_v30  ;;  %v3888_v25 = vpop.f32.mrb[110].mxu1  ;;  %v11652_v15 = vpop.f32.mrb[87].mxu0  ;;  %v11176_v23 = vpack.c.bf16 %v13780_v53, %v13780_v53 }
 0x3f9   : > { %v14524_v19 = vpop.eup %12396  ;;  %12402 = vpow.bf16 %v5620_v27  ;;  %v11658_v46 = vpop.f32.mrb[111].mxu1  ;;  %v14551_v27 = vadd.f32 %v14412_v43, %v14195_v38  ;;  %v6523_v43 = vsel %vm6107_vm10, %v11175_v3, 0 }
 0x3fa   : > { %16509 = vst [vmem:[#allocation75_spill] sm:$0xff] %v14524_v19  ;;  %v5538_v0 = vpack.c.bf16 %v5474_v47, %v5474_v47  ;;  %11878 = vmatmul.mubr.msk.bf16.vlgmr.msra.gmra.mrb[160].mxu0 %vm5271_vm9, %v14524_v19  ;;  %v5307_v56 = vpop.xlane.xlu1 %5306  ;;  %5339 = vmax.xlane.f32.xlu0 %v5338_v45 }
 0x3fb   : > { %5345 = vmax.xlane.f32.xlu1 %v5344_v58  ;;  %v5475_v5 = vsub.f32 %v14216_v41, %v5307_v56  ;;  %11888 = vmatpush3.bf16.msra.mxu0 %v6477_v1  ;;  %v14576_v58 = vadd.f32 %v14433_v55, %v14220_v35  ;;  %v5353_v53 = vsel %vm5271_vm9, %v14551_v27, -inf }
 0x3fc   : > { %v5623_v60 = vmul.bf16 1069105081, %v5538_v0  ;;  %11889 = vmatprep.mubr.msk.bf16.mxu0 %vm12823_vm8, %v16483_v30  ;;  %v14547_v24 = vpop.eup %12398  ;;  %11899 = vmatprep.subr.bf16.mxu0 %v16483_v30 }
 0x3fd   : > { %16510 = vst [vmem:[#allocation76_spill] sm:$0xff] %v14547_v24  ;;  %v5539_v41 = vpack.c.bf16 %v5475_v5, %v5475_v5  ;;  %v14564_v47 = vpop.f32.mrb[88].mxu0  ;;  %v3977_v45 = vpop.f32.mrb[112].mxu1  ;;  %v5362_v5 = vsel %vm5271_vm9, %v14558_v49, -inf }
 0x3fe   : > { %12404 = vpow.bf16 %v5623_v60  ;;  %11884 = vmatmul.mubr.msk.bf16.vlgmr.msra.gmra.mrb[184].mxu1 %vm5271_vm9, %v14547_v24  ;;  %5351 = vmax.xlane.f32.xlu0 %v5350_v11  ;;  %v11663_v25 = vpop.f32.mrb[89].mxu0  ;;  %v11669_v46 = vpop.f32.mrb[113].mxu1  ;;  %v14582_v1 = vadd.f32 %v3977_v45, %v14053_v6  ;;  %v11177_v11 = vpack.c.bf16 %v13786_v13, %v13786_v13  ;;  %v14598_v45 = vadd.f32 %v14437_v34, %v14229_v28 }
 0x3ff   : > { %5348 = vmax.xlane.f32.xlu1 %v5347_v57  ;;  %v5310_v62 = vpop.xlane.xlu0 %5309  ;;  %v5626_v39 = vmul.bf16 1069105081, %v5539_v41  ;;  %11894 = vmatpush3.bf16.msra.mxu1 %v6523_v43  ;;  %v3934_v56 = vpop.f32.mrb[90].mxu0  ;;  %v6569_v41 = vsel %vm6107_vm10, %v11176_v23, 0  ;;  %v16513_v25 = vld [vmem:[#allocation41_spill] sm:$0xff] }
 0x400   : > { %v5476_v0 = vsub.f32 %v14234_v10, %v5310_v62  ;;  %11895 = vmatprep.mubr.msk.bf16.mxu1 %vm12823_vm8, %v16483_v30  ;;  %11905 = vmatprep.subr.bf16.mxu1 %v16483_v30  ;;  %v3980_v10 = vpop.f32.mrb[114].mxu1  ;;  %v11664_v60 = vpop.f32.mrb[91].mxu0  ;;  %v11178_v23 = vpack.c.bf16 %v16513_v25, %v16513_v25  ;;  %v6615_v34 = vsel %vm6107_vm10, %v11177_v11, 0  ;;  %v16516_v11 = vld [vmem:[#allocation43_spill] sm:$0xff] }
 0x401   : > { %v14572_v15 = vpop.eup %12400  ;;  %12406 = vpow.bf16 %v5626_v39  ;;  %v11670_v55 = vpop.f32.mrb[115].mxu1 }
 0x402   : > { %16511 = vst [vmem:[#allocation77_spill] sm:$0xff] %v14572_v15  ;;  %v5540_v3 = vpack.c.bf16 %v5476_v0, %v5476_v0  ;;  %11890 = vmatmul.mubr.msk.bf16.vlgmr.msra.gmra.mrb[164].mxu0 %vm5271_vm9, %v14572_v15  ;;  %v5313_v57 = vpop.xlane.xlu1 %5312  ;;  %5363 = vmax.xlane.f32.xlu0 %v5362_v5  ;;  %v5377_v0 = vsel %vm5271_vm9, %v14582_v1, -inf }
 0x403   : > { %5354 = vmax.xlane.f32.xlu1 %v5353_v53  ;;  %v5477_v62 = vsub.f32 %v14249_v44, %v5313_v57  ;;  %11900 = vmatpush3.bf16.msra.mxu0 %v6569_v41  ;;  %v5356_v44 = vsel %vm5271_vm9, %v14576_v58, -inf }
 0x404   : > { %v5629_v43 = vmul.bf16 1069105081, %v5540_v3  ;;  %11901 = vmatprep.mubr.msk.bf16.mxu0 %vm12823_vm8, %v16483_v30  ;;  %v14594_v39 = vpop.eup %12402  ;;  %11911 = vmatprep.subr.bf16.mxu0 %v16483_v30 }
 0x405   : > { %16512 = vst [vmem:[#allocation78_spill] sm:$0xff] %v14594_v39  ;;  %v5541_v13 = vpack.c.bf16 %v5477_v62, %v5477_v62  ;;  %v14609_v46 = vpop.f32.mrb[92].mxu0  ;;  %v4069_v10 = vpop.f32.mrb[116].mxu1  ;;  %v11179_v62 = vpack.c.bf16 %v16516_v11, %v16516_v11 }
 0x406   : > { %12408 = vpow.bf16 %v5629_v43  ;;  %11896 = vmatmul.mubr.msk.bf16.vlgmr.msra.gmra.mrb[188].mxu1 %vm5271_vm9, %v14594_v39  ;;  %5378 = vmax.xlane.f32.xlu0 %v5377_v0  ;;  %v11675_v3 = vpop.f32.mrb[93].mxu0  ;;  %v14618_v55 = vadd.f32 %v4069_v10, %v14088_v52  ;;  %v11681_v57 = vpop.f32.mrb[117].mxu1  ;;  %v6661_v43 = vsel %vm6107_vm10, %v11178_v23, 0  ;;  %v5359_v0 = vsel %vm5271_vm9, %v14598_v45, -inf }
 0x407   : > { %5357 = vmax.xlane.f32.xlu1 %v5356_v44  ;;  %v5316_v56 = vpop.xlane.xlu0 %5315  ;;  %v5632_v53 = vmul.bf16 1069105081, %v5541_v13  ;;  %11906 = vmatpush3.bf16.msra.mxu1 %v6615_v34  ;;  %v4026_v41 = vpop.f32.mrb[94].mxu0  ;;  %v6707_v3 = vsel %vm6107_vm10, %v11179_v62, 0 }
 0x408   : > { %v5478_v60 = vsub.f32 %v14264_v14, %v5316_v56  ;;  %11907 = vmatprep.mubr.msk.bf16.mxu1 %vm12823_vm8, %v16483_v30  ;;  %16515 = vst [vmem:[#allocation79_spill] sm:$0xff] %v14618_v55  ;;  %11917 = vmatprep.subr.bf16.mxu1 %v16483_v30  ;;  %v14626_v14 = vadd.f32 %v14471_v33, %v14261_v20  ;;  %v4072_v25 = vpop.f32.mrb[118].mxu1  ;;  %v11676_v44 = vpop.f32.mrb[95].mxu0  ;;  %v5383_v56 = vsel %vm5271_vm9, %v14618_v55, -inf }
 0x409   : > { %v14615_v5 = vpop.eup %12404  ;;  %12410 = vpow.bf16 %v5632_v53  ;;  %v11682_v23 = vpop.f32.mrb[119].mxu1  ;;  %v14645_v41 = vadd.f32 %v14514_v37, %v14009_v17 }
 0x40a   : > { %16514 = vst [vmem:[#allocation41_spill] sm:$0xff] %v14615_v5  ;;  %v5542_v13 = vpack.c.bf16 %v5478_v60, %v5478_v60  ;;  %11902 = vmatmul.mubr.msk.bf16.vlgmr.msra.gmra.mrb[168].mxu0 %vm5271_vm9, %v14615_v5  ;;  %v5319_v34 = vpop.xlane.xlu1 %5318  ;;  %5384 = vmax.xlane.f32.xlu0 %v5383_v56  ;;  %v16518_v60 = vld [vmem:[#allocation46_spill] sm:$0xff]  ;;  %v16520_v23 = vld [vmem:[#allocation48_spill] sm:$0xff]  ;;  %v16521_v56 = vld [vmem:[#allocation51_spill] sm:$0xff] }
 0x40b   : > { %5360 = vmax.xlane.f32.xlu1 %v5359_v0  ;;  %11912 = vmatpush3.bf16.msra.mxu0 %v6661_v43  ;;  %v5479_v33 = vsub.f32 %v14275_v12, %v5319_v34  ;;  %v11180_v57 = vpack.c.bf16 %v16518_v60, %v16518_v60  ;;  %v5365_v12 = vsel %vm5271_vm9, %v14626_v14, -inf  ;;  %v11181_v34 = vpack.c.bf16 %v16520_v23, %v16520_v23 }
 0x40c   : > { %v5635_v10 = vmul.bf16 1069105081, %v5542_v13  ;;  %11913 = vmatprep.mubr.msk.bf16.mxu0 %vm12823_vm8, %v16483_v30  ;;  %v14637_v53 = vpop.eup %12406  ;;  %11923 = vmatprep.subr.bf16.mxu0 %v16483_v30  ;;  %v5368_v60 = vsel %vm5271_vm9, %v14645_v41, -inf }
 0x40d   : > { %16517 = vst [vmem:[#allocation43_spill] sm:$0xff] %v14637_v53  ;;  %v5543_v43 = vpack.c.bf16 %v5479_v33, %v5479_v33  ;;  %v4115_v11 = vpop.f32.mrb[96].mxu0  ;;  %v14651_v25 = vpop.f32.mrb[120].mxu1  ;;  %v6799_v23 = vsel %vm6107_vm10, %v11181_v34, 0  ;;  %v14696_v34 = vadd.f32 %v14609_v46, %v14079_v48 }
 0x40e   : > { %12412 = vpow.bf16 %v5635_v10  ;;  %11908 = vmatmul.mubr.msk.bf16.vlgmr.msra.gmra.mrb[192].mxu1 %vm5271_vm9, %v14637_v53  ;;  %v11687_v13 = vpop.f32.mrb[97].mxu0  ;;  %v11693_v44 = vpop.f32.mrb[121].mxu1  ;;  %v14662_v10 = vadd.f32 %v14519_v54, %v16521_v56 }
 0x40f   : > { %5366 = vmax.xlane.f32.xlu1 %v5365_v12  ;;  %11918 = vmatpush3.bf16.msra.mxu1 %v6707_v3  ;;  %v5638_v62 = vmul.bf16 1069105081, %v5543_v43  ;;  %v4118_v0 = vpop.f32.mrb[98].mxu0  ;;  %v4164_v33 = vpop.f32.mrb[122].mxu1  ;;  %v6753_v43 = vsel %vm6107_vm10, %v11180_v57, 0  ;;  %v16524_v44 = vld [vmem:[#allocation52_spill] sm:$0xff] }
 0x410   : > { %11919 = vmatprep.mubr.msk.bf16.mxu1 %vm12823_vm8, %v16483_v30  ;;  %11929 = vmatprep.subr.bf16.mxu1 %v16483_v30  ;;  %v11688_v3 = vpop.f32.mrb[99].mxu0  ;;  %v11694_v12 = vpop.f32.mrb[123].mxu1  ;;  %v14678_v0 = vadd.f32 %v14564_v47, %v16524_v44  ;;  %v5371_v57 = vsel %vm5271_vm9, %v14662_v10, -inf }
 0x411   : > { %v14656_v37 = vpop.eup %12408  ;;  %12414 = vpow.bf16 %v5638_v62  ;;  %v16523_v62 = vld [vmem:[#allocation53_spill] sm:$0xff] }
 0x412   : > { %16519 = vst [vmem:[#allocation46_spill] sm:$0xff] %v14656_v37  ;;  %11914 = vmatmul.mubr.msk.bf16.vlgmr.msra.gmra.mrb[172].mxu0 %vm5271_vm9, %v14656_v37  ;;  %v10942_v13 = vcombine.low %v16523_v62, %v16523_v62  ;;  %16526 = vst [vmem:[#allocation53_spill] sm:$0xff] %v14696_v34 }
 0x413   : > { %5369 = vmax.xlane.f32.xlu1 %v5368_v60  ;;  %11924 = vmatpush3.bf16.msra.mxu0 %v6753_v43 }
 0x414   : > { %11925 = vmatprep.mubr.msk.bf16.mxu0 %vm12823_vm8, %v16483_v30  ;;  %11935 = vmatprep.subr.bf16.mxu0 %v16483_v30  ;;  %v14672_v54 = vpop.eup %12410  ;;  %v6845_v53 = vsel %vm6107_vm10, %v10942_v13, 0 }
 0x415   : > { %16522 = vst [vmem:[#allocation48_spill] sm:$0xff] %v14672_v54  ;;  %v4207_v33 = vpop.f32.mrb[100].mxu0 }
 0x416   : > { %11920 = vmatmul.mubr.msk.bf16.vlgmr.msra.gmra.mrb[196].mxu1 %vm5271_vm9, %v14672_v54  ;;  %v14685_v3 = vpop.f32.mrb[124].mxu1  ;;  %v11699_v60 = vpop.f32.mrb[101].mxu0  ;;  %v10943_v54 = vcombine.high %v16523_v62, %v16523_v62  ;;  %v14709_v62 = vadd.f32 %v4115_v11, %v14115_v59 }
 0x417   : > { %5372 = vmax.xlane.f32.xlu1 %v5371_v57  ;;  %11930 = vmatpush3.bf16.msra.mxu1 %v6799_v23  ;;  %v11705_v43 = vpop.f32.mrb[125].mxu1  ;;  %v4210_v12 = vpop.f32.mrb[102].mxu0  ;;  %v5374_v60 = vsel %vm5271_vm9, %v14678_v0, -inf }
 0x418   : > { %11931 = vmatprep.mubr.msk.bf16.mxu1 %vm12823_vm8, %v16483_v30  ;;  %11941 = vmatprep.subr.bf16.mxu1 %v16483_v30  ;;  %v4256_v57 = vpop.f32.mrb[126].mxu1  ;;  %v11700_v23 = vpop.f32.mrb[103].mxu0  ;;  %16528 = vst [vmem:[#allocation80_spill] sm:$0xff] %v14709_v62  ;;  %v5380_v43 = vsel %vm5271_vm9, %v14696_v34, -inf }
 0x419   : > { %v14690_v47 = vpop.eup %12412  ;;  %v11706_v39 = vpop.f32.mrb[127].mxu1  ;;  %v14720_v23 = vadd.f32 %v4207_v33, %v14149_v21 }
 0x41a   : > { %16525 = vst [vmem:[#allocation51_spill] sm:$0xff] %v14690_v47  ;;  %11926 = vmatmul.mubr.msk.bf16.vlgmr.msra.gmra.mrb[176].mxu0 %vm5271_vm9, %v14690_v47  ;;  %v6891_v39 = vsel %vm6107_vm10, %v10943_v54, 0 }
 0x41b   : > { %5375 = vmax.xlane.f32.xlu1 %v5374_v60  ;;  %11936 = vmatpush3.bf16.msra.mxu0 %v6845_v53  ;;  %16529 = vst [vmem:[#allocation81_spill] sm:$0xff] %v14720_v23 }
 0x41c   : > { %11937 = vmatprep.mubr.msk.bf16.mxu0 %vm12823_vm8, %v16483_v30  ;;  %11947 = vmatprep.subr.bf16.mxu0 %v16483_v30  ;;  %v14706_v46 = vpop.eup %12414 }
 0x41d   : > { %16527 = vst [vmem:[#allocation52_spill] sm:$0xff] %v14706_v46  ;;  %v4299_v13 = vpop.f32.mrb[104].mxu0 }
 0x41e   : > { %11932 = vmatmul.mubr.msk.bf16.vlgmr.msra.gmra.mrb[200].mxu1 %vm5271_vm9, %v14706_v46  ;;  %v4345_v53 = vpop.f32.mrb[128].mxu1  ;;  %v11711_v12 = vpop.f32.mrb[105].mxu0  ;;  %v16530_v46 = vld [vmem:[#allocation28_spill] sm:$0xff] }
 0x41f   : > { %5381 = vmax.xlane.f32.xlu1 %v5380_v43  ;;  %11942 = vmatpush3.bf16.msra.mxu1 %v6891_v39  ;;  %v11717_v11 = vpop.f32.mrb[129].mxu1  ;;  %v4302_v57 = vpop.f32.mrb[106].mxu0  ;;  %v5386_v43 = vsel %vm5271_vm9, %v14709_v62, -inf  ;;  %v14727_v12 = vadd.f32 %v4299_v13, %v14186_v42 }
 0x420   : > { %11943 = vmatprep.mubr.msk.bf16.mxu1 %vm12823_vm8, %v16483_v30  ;;  %11953 = vmatprep.subr.bf16.mxu1 %v16483_v30  ;;  %v4348_v60 = vpop.f32.mrb[130].mxu1  ;;  %v11712_v54 = vpop.f32.mrb[107].mxu0  ;;  %v5392_v11 = vsel %vm5271_vm9, %v14720_v23, -inf }
 0x421   : > { %2105 = vrot.lane.b32.xlu0 %v16530_v46, %s12826_s12  ;;  %v11718_v39 = vpop.f32.mrb[131].mxu1  ;;  %16531 = vst [vmem:[#allocation28_spill] sm:$0xff] %v14727_v12 }
 0x423   : > { %5387 = vmax.xlane.f32.xlu1 %v5386_v43  ;;  %v5398_v43 = vsel %vm5271_vm9, %v14727_v12, -inf }
 0x425   : > { %v4391_v57 = vpop.f32.mrb[108].mxu0 }
 0x426   : > { %v4437_v33 = vpop.f32.mrb[132].mxu1  ;;  %v11723_v24 = vpop.f32.mrb[109].mxu0  ;;  %v14732_v46 = vadd.f32 %v4391_v57, %v14220_v35 }
 0x427   : > { %5393 = vmax.xlane.f32.xlu1 %v5392_v11  ;;  %v11729_v60 = vpop.f32.mrb[133].mxu1  ;;  %v4394_v22 = vpop.f32.mrb[110].mxu0 }
 0x428   : > { %16532 = vst [vmem:[#allocation82_spill] sm:$0xff] %v14732_v46  ;;  %v4440_v54 = vpop.f32.mrb[134].mxu1  ;;  %v11724_v47 = vpop.f32.mrb[111].mxu0  ;;  %v5404_v13 = vsel %vm5271_vm9, %v14732_v46, -inf  ;;  %v14744_v46 = vadd.f32 %v14651_v25, %v14124_v61 }
 0x429   : > { %v11730_v39 = vpop.f32.mrb[135].mxu1 }
 0x42a   : > { %16533 = vst [vmem:[#allocation83_spill] sm:$0xff] %v14744_v46 }
 0x42b   : > { %5399 = vmax.xlane.f32.xlu1 %v5398_v43 }
 0x42d   : > { %v14738_v23 = vpop.f32.mrb[112].mxu0 }
 0x42e   : > { %v4529_v11 = vpop.f32.mrb[136].mxu1  ;;  %v11735_v24 = vpop.f32.mrb[113].mxu0 }
 0x42f   : > { %5405 = vmax.xlane.f32.xlu1 %v5404_v13  ;;  %v11741_v60 = vpop.f32.mrb[137].mxu1  ;;  %v4486_v22 = vpop.f32.mrb[114].mxu0 }
 0x430   : > { %v4532_v2 = vpop.f32.mrb[138].mxu1  ;;  %v11736_v57 = vpop.f32.mrb[115].mxu0 }
 0x431   : > { %v11742_v37 = vpop.f32.mrb[139].mxu1  ;;  %v14750_v2 = vadd.f32 %v14685_v3, %v14160_v63  ;;  %v14757_v57 = vadd.f32 %v4345_v53, %v14195_v38 }
 0x433   : > { %16534 = vst [vmem:[#allocation84_spill] sm:$0xff] %v14750_v2  ;;  %v5395_v3 = vsel %vm5271_vm9, %v14750_v2, -inf  ;;  %v5401_v53 = vsel %vm5271_vm9, %v14757_v57, -inf }
 0x435   : > { %v14740_v54 = vpop.f32.mrb[116].mxu0 }
 0x436   : > { %v4621_v47 = vpop.f32.mrb[140].mxu1  ;;  %v11747_v4 = vpop.f32.mrb[117].mxu0 }
 0x437   : > { %v11753_v12 = vpop.f32.mrb[141].mxu1  ;;  %v4578_v39 = vpop.f32.mrb[118].mxu0  ;;  %v5389_v4 = vsel %vm5271_vm9, %v14744_v46, -inf  ;;  %v16536_v46 = vld [vmem:[#allocation62_spill] sm:$0xff] }
 0x438   : > { %v4624_v43 = vpop.f32.mrb[142].mxu1  ;;  %v11748_v62 = vpop.f32.mrb[119].mxu0  ;;  %v16535_v12 = vld [vmem:[#allocation31_spill] sm:$0xff] }
 0x439   : > { %v11754_v5 = vpop.f32.mrb[143].mxu1 }
 0x43d   : > { %v14746_v13 = vpop.f32.mrb[120].mxu0 }
 0x43e   : > { %v4713_v37 = vpop.f32.mrb[144].mxu1  ;;  %v11759_v24 = vpop.f32.mrb[121].mxu0 }
 0x43f   : > { %v11765_v62 = vpop.f32.mrb[145].mxu1  ;;  %v4670_v5 = vpop.f32.mrb[122].mxu0 }
 0x440   : > { %2107 = vrot.lane.b32.xlu1 %v16535_v12, %s12826_s12  ;;  %5390 = vmax.xlane.f32.xlu0 %v5389_v4  ;;  %v4716_v60 = vpop.f32.mrb[146].mxu1  ;;  %v11760_v25 = vpop.f32.mrb[123].mxu0  ;;  %v14765_v12 = vadd.f32 %v4437_v33, %v14229_v28  ;;  %v16537_v62 = vld [vmem:[#allocation63_spill] sm:$0xff] }
 0x441   : > { %v11766_v22 = vpop.f32.mrb[147].mxu1 }
 0x444   : > { %5396 = vmax.xlane.f32.xlu0 %v5395_v3 }
 0x445   : > { %v14761_v43 = vpop.f32.mrb[124].mxu0 }
 0x446   : > { %v5322_v39 = vpop.xlane.xlu0 %5321  ;;  %v5325_v24 = vpop.xlane.xlu1 %5324 }
 0x447   : > { %v5480_v15 = vsub.f32 %v16536_v46, %v5322_v39  ;;  %v4805_v4 = vpop.f32.mrb[148].mxu1  ;;  %v5481_v5 = vsub.f32 %v16537_v62, %v5325_v24  ;;  %v11771_v60 = vpop.f32.mrb[125].mxu0  ;;  %v14771_v46 = vadd.f32 %v4529_v11, %v14261_v20  ;;  %v5407_v39 = vsel %vm5271_vm9, %v14765_v12, -inf }
 0x448   : > { %v11777_v25 = vpop.f32.mrb[149].mxu1  ;;  %5402 = vmax.xlane.f32.xlu0 %v5401_v53  ;;  %v4762_v3 = vpop.f32.mrb[126].mxu0  ;;  %v14778_v62 = vadd.f32 %v4621_v47, %v16521_v56  ;;  %v16539_v47 = vld [vmem:[#allocation55_spill] sm:$0xff] }
 0x449   : > { %v5544_v22 = vpack.c.bf16 %v5480_v15, %v5480_v15  ;;  %v5545_v2 = vpack.c.bf16 %v5481_v5, %v5481_v5  ;;  %v4808_v34 = vpop.f32.mrb[150].mxu1  ;;  %v11772_v55 = vpop.f32.mrb[127].mxu0  ;;  %v16538_v5 = vld [vmem:[#allocation66_spill] sm:$0xff]  ;;  %v5413_v11 = vsel %vm5271_vm9, %v14771_v46, -inf  ;;  %v14784_v3 = vadd.f32 %v4713_v37, %v14053_v6 }
 0x44a   : > { %v11778_v18 = vpop.f32.mrb[151].mxu1  ;;  %v5419_v56 = vsel %vm5271_vm9, %v14778_v62, -inf }
 0x44b   : > { %v5641_v19 = vmul.bf16 1069105081, %v5544_v22  ;;  %v5644_v33 = vmul.bf16 1069105081, %v5545_v2 }
 0x44c   : > { %5408 = vmax.xlane.f32.xlu0 %v5407_v39  ;;  %v10944_v39 = vcombine.low %v16539_v47, %v16539_v47 }
 0x44d   : > { %12416 = vpow.bf16 %v5641_v19  ;;  %v14775_v24 = vpop.f32.mrb[128].mxu0 }
 0x44e   : > { %12418 = vpow.bf16 %v5644_v33  ;;  %v5328_v15 = vpop.xlane.xlu0 %5327  ;;  %v4897_v34 = vpop.f32.mrb[152].mxu1 }
 0x44f   : > { %v11783_v55 = vpop.f32.mrb[129].mxu0  ;;  %v5482_v18 = vsub.f32 %v16538_v5, %v5328_v15  ;;  %v11789_v2 = vpop.f32.mrb[153].mxu1  ;;  %v10945_v15 = vcombine.high %v16539_v47, %v16539_v47  ;;  %v16540_v47 = vld [vmem:[#allocation57_spill] sm:$0xff] }
 0x450   : > { %5414 = vmax.xlane.f32.xlu0 %v5413_v11  ;;  %v4854_v60 = vpop.f32.mrb[130].mxu0  ;;  %v4900_v19 = vpop.f32.mrb[154].mxu1  ;;  %v5425_v11 = vsel %vm5271_vm9, %v14784_v3, -inf }
 0x451   : > { %v5546_v53 = vpack.c.bf16 %v5482_v18, %v5482_v18  ;;  %v11784_v25 = vpop.f32.mrb[131].mxu0  ;;  %v11790_v22 = vpop.f32.mrb[155].mxu1  ;;  %v14797_v18 = vadd.f32 %v4805_v4, %v14088_v52  ;;  %v6937_v19 = vsel %vm6107_vm10, %v10944_v39, 0  ;;  %v6983_v52 = vsel %vm6107_vm10, %v10945_v15, 0 }
 0x452   : > { %v10946_v39 = vcombine.low %v16540_v47, %v16540_v47  ;;  %v14824_v15 = vadd.f32 %v14738_v23, %v14252_v40 }
 0x453   : > { %v5647_v33 = vmul.bf16 1069105081, %v5546_v53 }
 0x454   : > { %5420 = vmax.xlane.f32.xlu0 %v5419_v56  ;;  %v5431_v56 = vsel %vm5271_vm9, %v14797_v18, -inf  ;;  %v7029_v23 = vsel %vm6107_vm10, %v10946_v39, 0 }
 0x455   : > { %12420 = vpow.bf16 %v5647_v33  ;;  %v14792_v55 = vpop.f32.mrb[132].mxu0  ;;  %v14812_v33 = vadd.f32 %v4897_v34, %v14124_v61 }
 0x456   : > { %v4989_v6 = vpop.f32.mrb[156].mxu1  ;;  %v11795_v37 = vpop.f32.mrb[133].mxu0 }
 0x457   : > { %v11801_v60 = vpop.f32.mrb[157].mxu1  ;;  %v4946_v53 = vpop.f32.mrb[134].mxu0  ;;  %v14827_v34 = vadd.f32 %v4989_v6, %v14160_v63  ;;  %v14838_v63 = vadd.f32 %v14740_v54, %v14009_v17  ;;  %v14852_v17 = vadd.f32 %v14746_v13, %v16524_v44  ;;  %v14863_v44 = vadd.f32 %v14761_v43, %v14079_v48 }
 0x458   : > { %v14794_v5 = vpop.eup %12416  ;;  %5426 = vmax.xlane.f32.xlu0 %v5425_v11  ;;  %v4992_v25 = vpop.f32.mrb[158].mxu1  ;;  %v5437_v60 = vsel %vm5271_vm9, %v14812_v33, -inf }
 0x459   : > { %v14801_v2 = vpop.eup %12418  ;;  %11938 = vmatmul.mubr.msk.bf16.vlgmr.msra.gmra.mrb[180].mxu0 %vm5271_vm9, %v14794_v5  ;;  %v11796_v22 = vpop.f32.mrb[135].mxu0  ;;  %v5416_v39 = vsel %vm5271_vm9, %v14838_v63, -inf }
 0x45a   : > { %11944 = vmatmul.mubr.msk.bf16.vlgmr.msra.gmra.mrb[204].mxu1 %vm5271_vm9, %v14801_v2  ;;  %11948 = vmatpush3.bf16.msra.mxu0 %v6937_v19  ;;  %v11802_v4 = vpop.f32.mrb[159].mxu1 }
 0x45b   : > { %11954 = vmatpush3.bf16.msra.mxu1 %v6983_v52  ;;  %11949 = vmatprep.mubr.msk.bf16.mxu0 %vm12823_vm8, %v16483_v30  ;;  %v5410_v4 = vsel %vm5271_vm9, %v14824_v15, -inf }
 0x45c   : > { %11959 = vmatprep.subr.bf16.mxu0 %v16483_v30  ;;  %11955 = vmatprep.mubr.msk.bf16.mxu1 %vm12823_vm8, %v16483_v30 }
 0x45d   : > { %5432 = vmax.xlane.f32.xlu0 %v5431_v56  ;;  %11965 = vmatprep.subr.bf16.mxu1 %v16483_v30  ;;  %v5035_v61 = vpop.f32.mrb[136].mxu0 }
 0x45e   : > { %v5081_v37 = vpop.f32.mrb[160].mxu1  ;;  %v11807_v11 = vpop.f32.mrb[137].mxu0 }
 0x45f   : > { %v11813_v19 = vpop.f32.mrb[161].mxu1  ;;  %v5038_v25 = vpop.f32.mrb[138].mxu0  ;;  %v14845_v56 = vadd.f32 %v5081_v37, %v14195_v38  ;;  %v5443_v11 = vsel %vm5271_vm9, %v14827_v34, -inf }
 0x460   : > { %v14831_v53 = vpop.eup %12420  ;;  %v5084_v22 = vpop.f32.mrb[162].mxu1 }
 0x461   : > { %5438 = vmax.xlane.f32.xlu0 %v5437_v60  ;;  %v11808_v52 = vpop.f32.mrb[139].mxu0  ;;  %11950 = vmatmul.mubr.msk.bf16.vlgmr.msra.gmra.mrb[184].mxu0 %vm5271_vm9, %v14831_v53  ;;  %v11814_v6 = vpop.f32.mrb[163].mxu1  ;;  %v5449_v38 = vsel %vm5271_vm9, %v14845_v56, -inf }
 0x462   : > { %11960 = vmatpush3.bf16.msra.mxu0 %v7029_v23  ;;  %11961 = vmatprep.mubr.msk.bf16.mxu0 %vm12823_vm8, %v16483_v30  ;;  %v5422_v6 = vsel %vm5271_vm9, %v14852_v17, -inf }
 0x463   : > { %11971 = vmatprep.subr.bf16.mxu0 %v16483_v30 }
 0x464   : > { %5411 = vmax.xlane.f32.xlu1 %v5410_v4 }
 0x465   : > { %5444 = vmax.xlane.f32.xlu0 %v5443_v11  ;;  %v5127_v54 = vpop.f32.mrb[140].mxu0 }
 0x466   : > { %v5173_v60 = vpop.f32.mrb[164].mxu1  ;;  %v11819_v19 = vpop.f32.mrb[141].mxu0 }
 0x467   : > { %v14859_v37 = vadd.f32 %v5173_v60, %v14229_v28  ;;  %v11825_v25 = vpop.f32.mrb[165].mxu1  ;;  %v5130_v22 = vpop.f32.mrb[142].mxu0  ;;  %v14871_v28 = vadd.f32 %v14775_v24, %v14115_v59  ;;  %v14884_v24 = vadd.f32 %v5035_v61, %v14186_v42 }
 0x468   : > { %5417 = vmax.xlane.f32.xlu1 %v5416_v39  ;;  %v5176_v52 = vpop.f32.mrb[166].mxu1  ;;  %v11820_v23 = vpop.f32.mrb[143].mxu0  ;;  %v5428_v39 = vsel %vm5271_vm9, %v14863_v44, -inf  ;;  %v14879_v22 = vadd.f32 %v14792_v55, %v14149_v21 }
 0x469   : > { %5450 = vmax.xlane.f32.xlu0 %v5449_v38  ;;  %v11826_v13 = vpop.f32.mrb[167].mxu1  ;;  %v5455_v4 = vsel %vm5271_vm9, %v14859_v37, -inf  ;;  %v5434_v59 = vsel %vm5271_vm9, %v14871_v28, -inf  ;;  %v5446_v21 = vsel %vm5271_vm9, %v14884_v24, -inf }
 0x46a   : > { %v5440_v23 = vsel %vm5271_vm9, %v14879_v22, -inf  ;;  %v14888_v13 = vpop.permute.xlu1 %2103 }
 0x46c   : > { %5423 = vmax.xlane.f32.xlu1 %v5422_v6  ;;  %v14891_v6 = vadd.f32 %v5127_v54, %v14220_v35 }
 0x46d   : > { %5456 = vmax.xlane.f32.xlu0 %v5455_v4  ;;  %v5219_v11 = vpop.f32.mrb[144].mxu0 }
 0x46e   : > { %v14875_v60 = vpop.f32.mrb[168].mxu1  ;;  %v11831_v48 = vpop.f32.mrb[145].mxu0  ;;  %v5452_v61 = vsel %vm5271_vm9, %v14891_v6, -inf }
 0x46f   : > { %v11837_v43 = vpop.f32.mrb[169].mxu1  ;;  %v5222_v19 = vpop.f32.mrb[146].mxu0 }
 0x470   : > { %5429 = vmax.xlane.f32.xlu1 %v5428_v39  ;;  %v5268_v38 = vpop.f32.mrb[170].mxu1  ;;  %v11832_v25 = vpop.f32.mrb[147].mxu0  ;;  %v14897_v39 = vadd.f32 %v5219_v11, %v14252_v40 }
 0x471   : > { %v11838_v52 = vpop.f32.mrb[171].mxu1  ;;  %v14901_v48 = vpop.permute.xlu0 %2101  ;;  %v16541_v38 = vld [vmem:[#allocation34_spill] sm:$0xff] }
 0x472   : > { %v5458_v40 = vsel %vm5271_vm9, %v14897_v39, -inf }
 0x474   : > { %5435 = vmax.xlane.f32.xlu1 %v5434_v59 }
 0x478   : > { %5441 = vmax.xlane.f32.xlu1 %v5440_v23 }
 0x47b   : > { %v5331_v55 = vpop.xlane.xlu1 %5330 }
 0x47c   : > { %5447 = vmax.xlane.f32.xlu1 %v5446_v21  ;;  %v5483_v4 = vsub.f32 %v14447_v51, %v5331_v55 }
 0x47e   : > { %v5547_v42 = vpack.c.bf16 %v5483_v4, %v5483_v4 }
 0x47f   : > { %v5337_v43 = vpop.xlane.xlu1 %5336 }
 0x480   : > { %5453 = vmax.xlane.f32.xlu1 %v5452_v61  ;;  %v5650_v35 = vmul.bf16 1069105081, %v5547_v42  ;;  %v5485_v54 = vsub.f32 %v14463_v32, %v5337_v43  ;;  %v10947_v42 = vcombine.high %v16540_v47, %v16540_v47 }
 0x482   : > { %12422 = vpow.bf16 %v5650_v35  ;;  %v5549_v19 = vpack.c.bf16 %v5485_v54, %v5485_v54 }
 0x483   : > { %2109 = vrot.lane.b32.xlu0 %v16541_v38, %s12826_s12  ;;  %v5334_v11 = vpop.xlane.xlu0 %5333 }
 0x484   : > { %v5343_v51 = vpop.xlane.xlu1 %5342  ;;  %5459 = vmax.xlane.f32.xlu1 %v5458_v40  ;;  %v5484_v25 = vsub.f32 %v14481_v36, %v5334_v11  ;;  %v5656_v52 = vmul.bf16 1069105081, %v5549_v19  ;;  %v16542_v40 = vld [vmem:[#allocation60_spill] sm:$0xff] }
 0x485   : > { %v5487_v59 = vsub.f32 %v14486_v9, %v5343_v51  ;;  %v7075_v9 = vsel %vm6107_vm10, %v10947_v42, 0  ;;  %v10949_v51 = vcombine.high %v16542_v40, %v16542_v40  ;;  %v10948_v11 = vcombine.low %v16542_v40, %v16542_v40 }
 0x486   : > { %v5548_v23 = vpack.c.bf16 %v5484_v25, %v5484_v25  ;;  %12424 = vpow.bf16 %v5656_v52 }
 0x487   : > { %v5340_v55 = vpop.xlane.xlu0 %5339  ;;  %v5551_v61 = vpack.c.bf16 %v5487_v59, %v5487_v59  ;;  %v16543_v59 = vld [vmem:[#allocation37_spill] sm:$0xff] }
 0x488   : > { %v5346_v21 = vpop.xlane.xlu1 %5345  ;;  %v5653_v32 = vmul.bf16 1069105081, %v5548_v23  ;;  %v5486_v4 = vsub.f32 %v14502_v26, %v5340_v55 }
 0x489   : > { %v5662_v36 = vmul.bf16 1069105081, %v5551_v61  ;;  %v5488_v26 = vsub.f32 %v14508_v29, %v5346_v21 }
 0x48a   : > { %12426 = vpow.bf16 %v5653_v32  ;;  %v5550_v43 = vpack.c.bf16 %v5486_v4, %v5486_v4  ;;  %v7167_v4 = vsel %vm6107_vm10, %v10949_v51, 0 }
 0x48b   : > { %12428 = vpow.bf16 %v5662_v36  ;;  %v5552_v25 = vpack.c.bf16 %v5488_v26, %v5488_v26  ;;  %v5352_v29 = vpop.xlane.xlu0 %5351 }
 0x48c   : > { %v5349_v35 = vpop.xlane.xlu1 %5348  ;;  %v5659_v38 = vmul.bf16 1069105081, %v5550_v43  ;;  %v5490_v61 = vsub.f32 %v14535_v50, %v5352_v29  ;;  %v7121_v43 = vsel %vm6107_vm10, %v10948_v11, 0 }
 0x48d   : > { %v14913_v54 = vpop.eup %12422  ;;  %v5489_v19 = vsub.f32 %v14528_v16, %v5349_v35  ;;  %v5665_v42 = vmul.bf16 1069105081, %v5552_v25  ;;  %v16544_v35 = vld [vmem:[#allocation40_spill] sm:$0xff] }
 0x48e   : > { %11956 = vmatmul.mubr.msk.bf16.vlgmr.msra.gmra.mrb[208].mxu1 %vm5271_vm9, %v14913_v54  ;;  %12430 = vpow.bf16 %v5659_v38  ;;  %v5554_v26 = vpack.c.bf16 %v5490_v61, %v5490_v61  ;;  %v14955_v38 = vadd.f32 %v14875_v60, %v14261_v20  ;;  %v5802_v61 = vunpack.c.l.bf16 %v14831_v53 }
 0x48f   : > { %11966 = vmatpush3.bf16.msra.mxu1 %v7075_v9  ;;  %11967 = vmatprep.mubr.msk.bf16.mxu1 %vm12823_vm8, %v16483_v30  ;;  %v5553_v16 = vpack.c.bf16 %v5489_v19, %v5489_v19 }
 0x490   : > { %v5355_v47 = vpop.xlane.xlu1 %5354  ;;  %11977 = vmatprep.subr.bf16.mxu1 %v16483_v30  ;;  %v5671_v29 = vmul.bf16 1069105081, %v5554_v26 }
 0x491   : > { %v14929_v23 = vpop.eup %12424  ;;  %v5668_v55 = vmul.bf16 1069105081, %v5553_v16  ;;  %v5491_v32 = vsub.f32 %v14551_v27, %v5355_v47  ;;  %v16545_v27 = vld [vmem:[#allocation61_spill] sm:$0xff] }
 0x492   : > { %v10951_v50 = vcombine.high %v16545_v27, %v16545_v27  ;;  %v10950_v9 = vcombine.low %v16545_v27, %v16545_v27  ;;  %v16546_v47 = vld [vmem:[#allocation45_spill] sm:$0xff] }
 0x493   : > { %12432 = vpow.bf16 %v5668_v55  ;;  %v5555_v19 = vpack.c.bf16 %v5491_v32, %v5491_v32  ;;  %v5461_v55 = vsel %vm5271_vm9, %v14955_v38, -inf }
 0x494   : > { %v5358_v52 = vpop.xlane.xlu1 %5357  ;;  %12434 = vpow.bf16 %v5665_v42  ;;  %v7259_v25 = vsel %vm6107_vm10, %v10951_v50, 0  ;;  %v7213_v60 = vsel %vm6107_vm10, %v10950_v9, 0 }
 0x495   : > { %2111 = vrot.lane.b32.xlu1 %v16543_v59, %s12826_s12  ;;  %v14931_v21 = vpop.eup %12426  ;;  %v5674_v16 = vmul.bf16 1069105081, %v5555_v19  ;;  %v5492_v59 = vsub.f32 %v14576_v58, %v5358_v52  ;;  %v16547_v58 = vld [vmem:[#allocation65_spill] sm:$0xff] }
 0x496   : > { %11968 = vmatmul.mubr.msk.bf16.vlgmr.msra.gmra.mrb[212].mxu1 %vm5271_vm9, %v14929_v23  ;;  %11962 = vmatmul.mubr.msk.bf16.vlgmr.msra.gmra.mrb[188].mxu0 %vm5271_vm9, %v14931_v21  ;;  %v14959_v40 = vpop.eup %12428  ;;  %v10953_v52 = vcombine.high %v16547_v58, %v16547_v58 }
 0x497   : > { %11978 = vmatpush3.bf16.msra.mxu1 %v7167_v4  ;;  %11972 = vmatpush3.bf16.msra.mxu0 %v7121_v43  ;;  %12436 = vpow.bf16 %v5674_v16  ;;  %v10952_v4 = vcombine.low %v16547_v58, %v16547_v58  ;;  %v5803_v16 = vunpack.c.l.bf16 %v14913_v54 }
 0x498   : > { %v5361_v36 = vpop.xlane.xlu1 %5360  ;;  %11973 = vmatprep.mubr.msk.bf16.mxu0 %vm12823_vm8, %v16483_v30  ;;  %11979 = vmatprep.mubr.msk.bf16.mxu1 %vm12823_vm8, %v16483_v30  ;;  %12438 = vpow.bf16 %v5671_v29  ;;  %v7351_v19 = vsel %vm6107_vm10, %v10953_v52, 0 }
 0x499   : > { %2113 = vrot.lane.b32.xlu1 %v16544_v35, %s12826_s12  ;;  %11983 = vmatprep.subr.bf16.mxu0 %v16483_v30  ;;  %v14961_v51 = vpop.eup %12430  ;;  %v5493_v11 = vsub.f32 %v14598_v45, %v5361_v36  ;;  %v5800_v45 = vunpack.c.l.bf16 %v14794_v5  ;;  %v5364_v5 = vpop.xlane.xlu0 %5363  ;;  %v7305_v53 = vsel %vm6107_vm10, %v10952_v4, 0 }
 0x49a   : > { %11989 = vmatprep.subr.bf16.mxu1 %v16483_v30  ;;  %v5494_v9 = vsub.f32 %v14558_v49, %v5364_v5  ;;  %v16548_v49 = vld [vmem:[#allocation68_spill] sm:$0xff]  ;;  %v5784_v5 = vunpack.c.l.bf16 %v14415_v8 }
 0x49b   : > { %v5557_v32 = vpack.c.bf16 %v5493_v11, %v5493_v11  ;;  %v5896_v42 = vsel %vm5271_vm9, %v5800_v45, 0.0 }
 0x49c   : > { %v5367_v20 = vpop.xlane.xlu1 %5366  ;;  %v5558_v54 = vpack.c.bf16 %v5494_v9, %v5494_v9  ;;  %v5786_v9 = vunpack.c.l.bf16 %v14441_v31 }
 0x49d   : > { %2115 = vrot.lane.b32.xlu1 %v16546_v47, %s12826_s12  ;;  %v5680_v27 = vmul.bf16 1069105081, %v5557_v32  ;;  %v5495_v50 = vsub.f32 %v14626_v14, %v5367_v20  ;;  %v5902_v47 = vsel %vm5271_vm9, %v5802_v61, 0.0  ;;  %v10955_v14 = vcombine.high %v16548_v49, %v16548_v49  ;;  %v5379_v8 = vpop.xlane.xlu0 %5378 }
 0x49e   : > { %11980 = vmatmul.mubr.msk.bf16.vlgmr.msra.gmra.mrb[216].mxu1 %vm5271_vm9, %v14959_v40  ;;  %11974 = vmatmul.mubr.msk.bf16.vlgmr.msra.gmra.mrb[192].mxu0 %vm5271_vm9, %v14961_v51  ;;  %v14988_v43 = vpop.eup %12432  ;;  %v5804_v20 = vunpack.c.l.bf16 %v14931_v21  ;;  %v5683_v32 = vmul.bf16 1069105081, %v5558_v54 }
 0x49f   : > { %11990 = vmatpush3.bf16.msra.mxu1 %v7259_v25  ;;  %11984 = vmatpush3.bf16.msra.mxu0 %v7213_v60  ;;  %v14990_v36 = vpop.eup %12434  ;;  %12440 = vpow.bf16 %v5680_v27  ;;  %v5559_v11 = vpack.c.bf16 %v5495_v50, %v5495_v50  ;;  %v10954_v25 = vcombine.low %v16548_v49, %v16548_v49  ;;  %v7443_v52 = vsel %vm6107_vm10, %v10955_v14, 0 }
 0x4a0   : > { %11985 = vmatprep.mubr.msk.bf16.mxu0 %vm12823_vm8, %v16483_v30  ;;  %11991 = vmatprep.mubr.msk.bf16.mxu1 %vm12823_vm8, %v16483_v30  ;;  %v5370_v35 = vpop.xlane.xlu1 %5369  ;;  %v5848_v50 = vsel %vm5271_vm9, %v5784_v5, 0.0 }
 0x4a1   : > { %2117 = vrot.lane.b32.xlu1 %v13834_v7, %s12826_s12  ;;  %11995 = vmatprep.subr.bf16.mxu0 %v16483_v30  ;;  %v5556_v7 = vpack.c.bf16 %v5492_v59, %v5492_v59  ;;  %v5905_v59 = vsel %vm5271_vm9, %v5803_v16, 0.0  ;;  %v5686_v45 = vmul.bf16 1069105081, %v5559_v11  ;;  %v5496_v4 = vsub.f32 %v14645_v41, %v5370_v35 }
 0x4a2   : > { %5462 = vmax.xlane.f32.xlu0 %v5461_v55  ;;  %12001 = vmatprep.subr.bf16.mxu1 %v16483_v30  ;;  %v15014_v60 = vpop.eup %12436  ;;  %v7397_v21 = vsel %vm6107_vm10, %v10954_v25, 0  ;;  %v5499_v16 = vsub.f32 %v14582_v1, %v5379_v8  ;;  %v5854_v1 = vsel %vm5271_vm9, %v5786_v9, 0.0  ;;  %v16553_v8 = vld [vmem:[#allocation75_spill] sm:$0xff] }
 0x4a3   : > { %v5677_v26 = vmul.bf16 1069105081, %v5556_v7  ;;  %v15016_v55 = vpop.eup %12438  ;;  %v5908_v7 = vsel %vm5271_vm9, %v5804_v20, 0.0  ;;  %v5560_v35 = vpack.c.bf16 %v5496_v4, %v5496_v4  ;;  %v16551_v20 = vld [vmem:[#allocation73_spill] sm:$0xff] }
 0x4a4   : > { %v5373_v29 = vpop.xlane.xlu1 %5372 }
 0x4a5   : > { %12442 = vpow.bf16 %v5677_v26  ;;  %v5497_v58 = vsub.f32 %v14662_v10, %v5373_v29  ;;  %v16549_v10 = vld [vmem:[#allocation69_spill] sm:$0xff]  ;;  %v5689_v25 = vmul.bf16 1069105081, %v5560_v35  ;;  %v5790_v35 = vunpack.c.l.bf16 %v16553_v8 }
 0x4a6   : > { %5897 = vadd.xlane.f32.xlu0 %v5896_v42  ;;  %11992 = vmatmul.mubr.msk.bf16.vlgmr.msra.gmra.mrb[220].mxu1 %vm5271_vm9, %v14988_v43  ;;  %v10957_v41 = vcombine.high %v16549_v10, %v16549_v10  ;;  %12444 = vpow.bf16 %v5686_v45  ;;  %v10956_v61 = vcombine.low %v16549_v10, %v16549_v10  ;;  %v5788_v45 = vunpack.c.l.bf16 %v16551_v20 }
 0x4a7   : > { %11986 = vmatmul.mubr.msk.bf16.vlgmr.msra.gmra.mrb[196].mxu0 %vm5271_vm9, %v14990_v36  ;;  %12002 = vmatpush3.bf16.msra.mxu1 %v7351_v19  ;;  %v5561_v42 = vpack.c.bf16 %v5497_v58, %v5497_v58  ;;  %12446 = vpow.bf16 %v5683_v32  ;;  %v5563_v32 = vpack.c.bf16 %v5499_v16, %v5499_v16  ;;  %v16554_v16 = vld [vmem:[#allocation79_spill] sm:$0xff]  ;;  %v5801_v20 = vunpack.c.l.bf16 %v14801_v2 }
 0x4a8   : > { %11996 = vmatpush3.bf16.msra.mxu0 %v7305_v53  ;;  %11997 = vmatprep.mubr.msk.bf16.mxu0 %vm12823_vm8, %v16483_v30  ;;  %v5376_v27 = vpop.xlane.xlu1 %5375  ;;  %v7535_v14 = vsel %vm6107_vm10, %v10957_v41, 0  ;;  %v7489_v31 = vsel %vm6107_vm10, %v10956_v61, 0  ;;  %v5805_v8 = vunpack.c.l.bf16 %v14929_v23 }
 0x4a9   : > { %12003 = vmatprep.mubr.msk.bf16.mxu1 %vm12823_vm8, %v16483_v30  ;;  %12007 = vmatprep.subr.bf16.mxu0 %v16483_v30  ;;  %v5692_v49 = vmul.bf16 1069105081, %v5561_v42  ;;  %v5498_v54 = vsub.f32 %v14678_v0, %v5376_v27  ;;  %v16552_v0 = vld [vmem:[#allocation56_spill] sm:$0xff]  ;;  %v5860_v42 = vsel %vm5271_vm9, %v5788_v45, 0.0  ;;  %v5866_v45 = vsel %vm5271_vm9, %v5790_v35, 0.0 }
 0x4aa   : > { %5903 = vadd.xlane.f32.xlu0 %v5902_v47  ;;  %12013 = vmatprep.subr.bf16.mxu1 %v16483_v30  ;;  %v15042_v26 = vpop.eup %12440 }
 0x4ab   : > { %12448 = vpow.bf16 %v5692_v49  ;;  %v5562_v5 = vpack.c.bf16 %v5498_v54, %v5498_v54  ;;  %v16555_v54 = vld [vmem:[#allocation53_spill] sm:$0xff] }
 0x4ac   : > { %12450 = vpow.bf16 %v5689_v25  ;;  %v5382_v41 = vpop.xlane.xlu1 %5381 }
 0x4ad   : > { %v5695_v25 = vmul.bf16 1069105081, %v5562_v5 }
 0x4ae   : > { %5906 = vadd.xlane.f32.xlu0 %v5905_v59  ;;  %12004 = vmatmul.mubr.msk.bf16.vlgmr.msra.gmra.mrb[224].mxu1 %vm5271_vm9, %v15014_v60 }
 0x4af   : > { %11998 = vmatmul.mubr.msk.bf16.vlgmr.msra.gmra.mrb[200].mxu0 %vm5271_vm9, %v15016_v55  ;;  %12014 = vmatpush3.bf16.msra.mxu1 %v7443_v52  ;;  %v10959_v52 = vcombine.high %v16552_v0, %v16552_v0 }
 0x4b0   : > { %12008 = vmatpush3.bf16.msra.mxu0 %v7397_v21  ;;  %12009 = vmatprep.mubr.msk.bf16.mxu0 %vm12823_vm8, %v16483_v30  ;;  %v15044_v47 = vpop.eup %12442  ;;  %v10958_v21 = vcombine.low %v16552_v0, %v16552_v0  ;;  %v16556_v0 = vld [vmem:[#allocation77_spill] sm:$0xff]  ;;  %v5388_v35 = vpop.xlane.xlu1 %5387 }
 0x4b1   : > { %12015 = vmatprep.mubr.msk.bf16.mxu1 %vm12823_vm8, %v16483_v30  ;;  %12019 = vmatprep.subr.bf16.mxu0 %v16483_v30  ;;  %v15072_v27 = vpop.eup %12444 }
 0x4b2   : > { %5909 = vadd.xlane.f32.xlu0 %v5908_v7  ;;  %12025 = vmatprep.subr.bf16.mxu1 %v16483_v30  ;;  %v5385_v7 = vpop.xlane.xlu0 %5384  ;;  %v15074_v9 = vpop.eup %12446 }
 0x4b3   : > { %v5501_v49 = vsub.f32 %v16554_v16, %v5385_v7 }
 0x4b5   : > { %v15039_v19 = vpop.f32.mrb[148].mxu0  ;;  %v5565_v7 = vpack.c.bf16 %v5501_v49, %v5501_v49 }
 0x4b6   : > { %16550 = vst [vmem:[#allocation31_spill] sm:$0xff] %v15039_v19  ;;  %5849 = vadd.xlane.f32.xlu0 %v5848_v50  ;;  %v11843_v53 = vpop.f32.mrb[149].mxu0  ;;  %12016 = vmatmul.mubr.msk.bf16.vlgmr.msra.gmra.mrb[228].mxu1 %vm5271_vm9, %v15042_v26 }
 0x4b7   : > { %v6148_v11 = vpop.f32.mrb[150].mxu0  ;;  %12010 = vmatmul.mubr.msk.bf16.vlgmr.msra.gmra.mrb[204].mxu0 %vm5271_vm9, %v15044_v47  ;;  %12026 = vmatpush3.bf16.msra.mxu1 %v7535_v14  ;;  %v15054_v59 = vpop.f32.mrb[172].mxu1  ;;  %v5698_v53 = vmul.bf16 1069105081, %v5563_v32  ;;  %v7627_v14 = vsel %vm6107_vm10, %v10959_v52, 0  ;;  %v5792_v52 = vunpack.c.l.bf16 %v16556_v0  ;;  %v5911_v0 = vsel %vm5271_vm9, %v5805_v8, 0.0 }
 0x4b8   : > { %v11844_v29 = vpop.f32.mrb[151].mxu0  ;;  %12020 = vmatpush3.bf16.msra.mxu0 %v7489_v31  ;;  %12021 = vmatprep.mubr.msk.bf16.mxu0 %vm12823_vm8, %v16483_v30  ;;  %v11849_v58 = vpop.f32.mrb[173].mxu1  ;;  %v5500_v31 = vsub.f32 %v16555_v54, %v5382_v41  ;;  %v5899_v41 = vsel %vm5271_vm9, %v5801_v20, 0.0  ;;  %v16559_v20 = vld [vmem:[#allocation80_spill] sm:$0xff] }
 0x4b9   : > { %12027 = vmatprep.mubr.msk.bf16.mxu1 %vm12823_vm8, %v16483_v30  ;;  %v6194_v4 = vpop.f32.mrb[174].mxu1  ;;  %12031 = vmatprep.subr.bf16.mxu0 %v16483_v30  ;;  %v7581_v29 = vsel %vm6107_vm10, %v10958_v21, 0  ;;  %12452 = vpow.bf16 %v5698_v53  ;;  %v16558_v53 = vld [vmem:[#allocation41_spill] sm:$0xff] }
 0x4ba   : > { %5855 = vadd.xlane.f32.xlu0 %v5854_v1  ;;  %12037 = vmatprep.subr.bf16.mxu1 %v16483_v30  ;;  %v11850_v10 = vpop.f32.mrb[175].mxu1  ;;  %v16557_v4 = vld [vmem:[#allocation54_spill] sm:$0xff]  ;;  %12454 = vpow.bf16 %v5695_v25  ;;  %v5794_v49 = vunpack.c.l.bf16 %v16558_v53  ;;  %v5704_v25 = vmul.bf16 1069105081, %v5565_v7 }
 0x4bb   : > { %v10960_v21 = vcombine.low %v16557_v4, %v16557_v4  ;;  %v10961_v2 = vcombine.high %v16557_v4, %v16557_v4  ;;  %v5564_v10 = vpack.c.bf16 %v5500_v31, %v5500_v31 }
 0x4bc   : > { %v5878_v7 = vsel %vm5271_vm9, %v5794_v49, 0.0  ;;  %12456 = vpow.bf16 %v5704_v25 }
 0x4bd   : > { %v15069_v61 = vpop.f32.mrb[152].mxu0  ;;  %v7673_v23 = vsel %vm6107_vm10, %v10960_v21, 0  ;;  %v7719_v31 = vsel %vm6107_vm10, %v10961_v2, 0  ;;  %v16561_v2 = vld [vmem:[#allocation46_spill] sm:$0xff] }
 0x4be   : > { %5861 = vadd.xlane.f32.xlu0 %v5860_v42  ;;  %v11855_v50 = vpop.f32.mrb[153].mxu0  ;;  %12028 = vmatmul.mubr.msk.bf16.vlgmr.msra.gmra.mrb[232].mxu1 %vm5271_vm9, %v15072_v27 }
 0x4bf   : > { %v6240_v11 = vpop.f32.mrb[154].mxu0  ;;  %12022 = vmatmul.mubr.msk.bf16.vlgmr.msra.gmra.mrb[208].mxu0 %vm5271_vm9, %v15074_v9  ;;  %12038 = vmatpush3.bf16.msra.mxu1 %v7627_v14  ;;  %v5872_v50 = vsel %vm5271_vm9, %v5792_v52, 0.0  ;;  %v15105_v14 = vpop.eup %12448 }
 0x4c0   : > { %v11856_v1 = vpop.f32.mrb[155].mxu0  ;;  %12032 = vmatpush3.bf16.msra.mxu0 %v7581_v29  ;;  %12033 = vmatprep.mubr.msk.bf16.mxu0 %vm12823_vm8, %v16483_v30  ;;  %v15107_v54 = vpop.eup %12450 }
 0x4c1   : > { %v15086_v58 = vpop.f32.mrb[176].mxu1  ;;  %12039 = vmatprep.mubr.msk.bf16.mxu1 %vm12823_vm8, %v16483_v30  ;;  %12043 = vmatprep.subr.bf16.mxu0 %v16483_v30  ;;  %v5701_v1 = vmul.bf16 1069105081, %v5564_v10  ;;  %v15122_v10 = vpop.permute.xlu0 %2105 }
 0x4c2   : > { %5867 = vadd.xlane.f32.xlu0 %v5866_v45  ;;  %v11861_v32 = vpop.f32.mrb[177].mxu1  ;;  %12049 = vmatprep.subr.bf16.mxu1 %v16483_v30  ;;  %v5502_v45 = vsub.f32 %v16559_v20, %v5388_v35 }
 0x4c3   : > { %v6286_v5 = vpop.f32.mrb[178].mxu1  ;;  %v16560_v32 = vld [vmem:[#allocation71_spill] sm:$0xff]  ;;  %12458 = vpow.bf16 %v5701_v1 }
 0x4c4   : > { %v11862_v42 = vpop.f32.mrb[179].mxu1  ;;  %v5785_v4 = vunpack.c.l.bf16 %v16560_v32  ;;  %v5796_v5 = vunpack.c.l.bf16 %v16561_v2  ;;  %v5566_v53 = vpack.c.bf16 %v5502_v45, %v5502_v45  ;;  %v15140_v32 = vpop.eup %12452 }
 0x4c5   : > { %5900 = vadd.xlane.f32.xlu1 %v5899_v41  ;;  %v15102_v16 = vpop.f32.mrb[156].mxu0  ;;  %v16562_v42 = vld [vmem:[#allocation58_spill] sm:$0xff] }
 0x4c6   : > { %5873 = vadd.xlane.f32.xlu0 %v5872_v50  ;;  %v11867_v11 = vpop.f32.mrb[157].mxu0  ;;  %12040 = vmatmul.mubr.msk.bf16.vlgmr.msra.gmra.mrb[236].mxu1 %vm5271_vm9, %v15105_v14  ;;  %v10962_v8 = vcombine.low %v16562_v42, %v16562_v42  ;;  %v10963_v35 = vcombine.high %v16562_v42, %v16562_v42  ;;  %v5851_v49 = vsel %vm5271_vm9, %v5785_v4, 0.0  ;;  %v5884_v20 = vsel %vm5271_vm9, %v5796_v5, 0.0  ;;  %v16566_v4 = vld [vmem:[#allocation83_spill] sm:$0xff] }
 0x4c7   : > { %v6332_v29 = vpop.f32.mrb[158].mxu0  ;;  %12034 = vmatmul.mubr.msk.bf16.vlgmr.msra.gmra.mrb[212].mxu0 %vm5271_vm9, %v15107_v54  ;;  %12050 = vmatpush3.bf16.msra.mxu1 %v7719_v31 }
 0x4c8   : > { %v11868_v52 = vpop.f32.mrb[159].mxu0  ;;  %12044 = vmatpush3.bf16.msra.mxu0 %v7673_v23  ;;  %12045 = vmatprep.mubr.msk.bf16.mxu0 %vm12823_vm8, %v16483_v30  ;;  %v16563_v23 = vld [vmem:[#allocation72_spill] sm:$0xff]  ;;  %v5394_v29 = vpop.xlane.xlu1 %5393  ;;  %v7811_v5 = vsel %vm6107_vm10, %v10963_v35, 0  ;;  %v5806_v35 = vunpack.c.l.bf16 %v14961_v51 }
 0x4c9   : > { %5912 = vadd.xlane.f32.xlu1 %v5911_v0  ;;  %v15119_v21 = vpop.f32.mrb[180].mxu1  ;;  %12051 = vmatprep.mubr.msk.bf16.mxu1 %vm12823_vm8, %v16483_v30  ;;  %v5787_v31 = vunpack.c.l.bf16 %v16563_v23  ;;  %v16565_v0 = vld [vmem:[#allocation51_spill] sm:$0xff] }
 0x4ca   : > { %5879 = vadd.xlane.f32.xlu0 %v5878_v7  ;;  %v11873_v41 = vpop.f32.mrb[181].mxu1  ;;  %12055 = vmatprep.subr.bf16.mxu0 %v16483_v30  ;;  %v5798_v52 = vunpack.c.l.bf16 %v16565_v0  ;;  %v15142_v7 = vpop.eup %12454  ;;  %v16568_v0 = vld [vmem:[#allocation74_spill] sm:$0xff] }
 0x4cb   : > { %v6378_v50 = vpop.f32.mrb[182].mxu1  ;;  %12061 = vmatprep.subr.bf16.mxu1 %v16483_v30  ;;  %v7765_v41 = vsel %vm6107_vm10, %v10962_v8, 0  ;;  %v5857_v23 = vsel %vm5271_vm9, %v5787_v31, 0.0 }
 0x4cc   : > { %v11874_v11 = vpop.f32.mrb[183].mxu1  ;;  %v5707_v50 = vmul.bf16 1069105081, %v5566_v53  ;;  %v5890_v8 = vsel %vm5271_vm9, %v5798_v52, 0.0 }
 0x4cd   : > { %5852 = vadd.xlane.f32.xlu1 %v5851_v49  ;;  %v15137_v25 = vpop.f32.mrb[160].mxu0  ;;  %v5391_v1 = vpop.xlane.xlu0 %5390  ;;  %v16567_v49 = vld [vmem:[#allocation81_spill] sm:$0xff] }
 0x4ce   : > { %16564 = vst [vmem:[#allocation62_spill] sm:$0xff] %v15137_v25  ;;  %5885 = vadd.xlane.f32.xlu0 %v5884_v20  ;;  %v11879_v45 = vpop.f32.mrb[161].mxu0  ;;  %v5503_v2 = vsub.f32 %v16566_v4, %v5391_v1  ;;  %12052 = vmatmul.mubr.msk.bf16.vlgmr.msra.gmra.mrb[240].mxu1 %vm5271_vm9, %v15140_v32  ;;  %v5504_v11 = vsub.f32 %v16567_v49, %v5394_v29  ;;  %v5789_v1 = vunpack.c.l.bf16 %v16568_v0  ;;  %12460 = vpow.bf16 %v5707_v50  ;;  %v16571_v0 = vld [vmem:[#allocation76_spill] sm:$0xff] }
 0x4cf   : > { %v6424_v42 = vpop.f32.mrb[162].mxu0  ;;  %12046 = vmatmul.mubr.msk.bf16.vlgmr.msra.gmra.mrb[216].mxu0 %vm5271_vm9, %v15142_v7  ;;  %12062 = vmatpush3.bf16.msra.mxu1 %v7811_v5  ;;  %v16569_v5 = vld [vmem:[#allocation59_spill] sm:$0xff] }
 0x4d0   : > { %v11880_v20 = vpop.f32.mrb[163].mxu0  ;;  %v5567_v45 = vpack.c.bf16 %v5503_v2, %v5503_v2  ;;  %12056 = vmatpush3.bf16.msra.mxu0 %v7765_v41  ;;  %12057 = vmatprep.mubr.msk.bf16.mxu0 %vm12823_vm8, %v16483_v30  ;;  %v10964_v31 = vcombine.low %v16569_v5, %v16569_v5  ;;  %v10965_v2 = vcombine.high %v16569_v5, %v16569_v5  ;;  %v16570_v42 = vld [vmem:[#allocation84_spill] sm:$0xff] }
 0x4d1   : > { %5858 = vadd.xlane.f32.xlu1 %v5857_v23  ;;  %v15155_v4 = vpop.f32.mrb[184].mxu1  ;;  %v5397_v53 = vpop.xlane.xlu0 %5396  ;;  %12063 = vmatprep.mubr.msk.bf16.mxu1 %vm12823_vm8, %v16483_v30  ;;  %v5568_v51 = vpack.c.bf16 %v5504_v11, %v5504_v11  ;;  %v5863_v20 = vsel %vm5271_vm9, %v5789_v1, 0.0 }
 0x4d2   : > { %5891 = vadd.xlane.f32.xlu0 %v5890_v8  ;;  %v11885_v29 = vpop.f32.mrb[185].mxu1  ;;  %v5710_v41 = vmul.bf16 1069105081, %v5567_v45  ;;  %v5505_v49 = vsub.f32 %v16570_v42, %v5397_v53  ;;  %12067 = vmatprep.subr.bf16.mxu0 %v16483_v30  ;;  %v5791_v8 = vunpack.c.l.bf16 %v16571_v0  ;;  %v5914_v53 = vsel %vm5271_vm9, %v5806_v35, 0.0 }
 0x4d3   : > { %v6470_v52 = vpop.f32.mrb[186].mxu1  ;;  %12073 = vmatprep.subr.bf16.mxu1 %v16483_v30  ;;  %v5400_v29 = vpop.xlane.xlu1 %5399  ;;  %v5808_v42 = vunpack.c.l.bf16 %v14990_v36  ;;  %v5713_v35 = vmul.bf16 1069105081, %v5568_v51  ;;  %v5810_v51 = vunpack.c.l.bf16 %v15016_v55 }
 0x4d4   : > { %v11886_v23 = vpop.f32.mrb[187].mxu1  ;;  %12462 = vpow.bf16 %v5710_v41  ;;  %v5569_v45 = vpack.c.bf16 %v5505_v49, %v5505_v49  ;;  %v15175_v52 = vpop.eup %12456  ;;  %v7857_v41 = vsel %vm6107_vm10, %v10964_v31, 0  ;;  %v7903_v49 = vsel %vm6107_vm10, %v10965_v2, 0 }
 0x4d5   : > { %5864 = vadd.xlane.f32.xlu1 %v5863_v20  ;;  %v15172_v5 = vpop.f32.mrb[164].mxu0  ;;  %v5403_v50 = vpop.xlane.xlu0 %5402  ;;  %v16573_v20 = vld [vmem:[#allocation28_spill] sm:$0xff]  ;;  %v5869_v36 = vsel %vm5271_vm9, %v5791_v8, 0.0  ;;  %v5920_v31 = vsel %vm5271_vm9, %v5808_v42, 0.0  ;;  %12464 = vpow.bf16 %v5713_v35  ;;  %v5812_v35 = vunpack.c.l.bf16 %v15044_v47 }
 0x4d6   : > { %16572 = vst [vmem:[#allocation63_spill] sm:$0xff] %v15172_v5  ;;  %5915 = vadd.xlane.f32.xlu0 %v5914_v53  ;;  %v11891_v11 = vpop.f32.mrb[165].mxu0  ;;  %v15177_v1 = vpop.eup %12458  ;;  %12064 = vmatmul.mubr.msk.bf16.vlgmr.msra.gmra.mrb[244].mxu1 %vm5271_vm9, %v15175_v52  ;;  %v5506_v0 = vsub.f32 %v16573_v20, %v5400_v29  ;;  %v5716_v5 = vmul.bf16 1069105081, %v5569_v45  ;;  %v5507_v25 = vsub.f32 %v14757_v57, %v5403_v50  ;;  %v16575_v8 = vld [vmem:[#allocation64_spill] sm:$0xff] }
 0x4d7   : > { %v6516_v23 = vpop.f32.mrb[166].mxu0  ;;  %12058 = vmatmul.mubr.msk.bf16.vlgmr.msra.gmra.mrb[220].mxu0 %vm5271_vm9, %v15177_v1  ;;  %12074 = vmatpush3.bf16.msra.mxu1 %v7903_v49  ;;  %v16574_v11 = vld [vmem:[#allocation78_spill] sm:$0xff]  ;;  %v10966_v49 = vcombine.low %v16575_v8, %v16575_v8  ;;  %v10967_v57 = vcombine.high %v16575_v8, %v16575_v8 }
 0x4d8   : > { %v11892_v53 = vpop.f32.mrb[167].mxu0  ;;  %v5793_v19 = vunpack.c.l.bf16 %v16574_v11  ;;  %12068 = vmatpush3.bf16.msra.mxu0 %v7857_v41  ;;  %12069 = vmatprep.mubr.msk.bf16.mxu0 %vm12823_vm8, %v16483_v30  ;;  %v5570_v45 = vpack.c.bf16 %v5506_v0, %v5506_v0  ;;  %v5406_v41 = vpop.xlane.xlu1 %5405  ;;  %12466 = vpow.bf16 %v5716_v5  ;;  %v5571_v20 = vpack.c.bf16 %v5507_v25, %v5507_v25  ;;  %v16576_v11 = vld [vmem:[#allocation43_spill] sm:$0xff] }
 0x4d9   : > { %5870 = vadd.xlane.f32.xlu1 %v5869_v36  ;;  %v15190_v2 = vpop.f32.mrb[188].mxu1  ;;  %12079 = vmatprep.subr.bf16.mxu0 %v16483_v30  ;;  %v5409_v55 = vpop.xlane.xlu0 %5408  ;;  %v5926_v36 = vsel %vm5271_vm9, %v5810_v51, 0.0  ;;  %v7949_v25 = vsel %vm6107_vm10, %v10966_v49, 0  ;;  %v7995_v51 = vsel %vm6107_vm10, %v10967_v57, 0  ;;  %v5932_v49 = vsel %vm5271_vm9, %v5812_v35, 0.0 }
 0x4da   : > { %5921 = vadd.xlane.f32.xlu0 %v5920_v31  ;;  %v11897_v29 = vpop.f32.mrb[189].mxu1  ;;  %12075 = vmatprep.mubr.msk.bf16.mxu1 %vm12823_vm8, %v16483_v30  ;;  %v5875_v50 = vsel %vm5271_vm9, %v5793_v19, 0.0  ;;  %v5795_v31 = vunpack.c.l.bf16 %v16576_v11  ;;  %v15209_v0 = vpop.eup %12460  ;;  %v5509_v11 = vsub.f32 %v14765_v12, %v5409_v55  ;;  %v16579_v55 = vld [vmem:[#allocation67_spill] sm:$0xff] }
 0x4db   : > { %v6562_v23 = vpop.f32.mrb[190].mxu1  ;;  %12085 = vmatprep.subr.bf16.mxu1 %v16483_v30 }
 0x4dc   : > { %v11898_v42 = vpop.f32.mrb[191].mxu1  ;;  %v5719_v23 = vmul.bf16 1069105081, %v5570_v45  ;;  %v5881_v47 = vsel %vm5271_vm9, %v5795_v31, 0.0  ;;  %v10968_v31 = vcombine.low %v16579_v55, %v16579_v55 }
 0x4dd   : > { %5876 = vadd.xlane.f32.xlu1 %v5875_v50  ;;  %v15205_v53 = vpop.f32.mrb[168].mxu0  ;;  %v16577_v42 = vld [vmem:[#allocation82_spill] sm:$0xff] }
 0x4de   : > { %5927 = vadd.xlane.f32.xlu0 %v5926_v36  ;;  %v11903_v29 = vpop.f32.mrb[169].mxu0  ;;  %v5508_v5 = vsub.f32 %v16577_v42, %v5406_v41  ;;  %v5722_v36 = vmul.bf16 1069105081, %v5571_v20  ;;  %v16578_v41 = vld [vmem:[#allocation48_spill] sm:$0xff]  ;;  %v5814_v20 = vunpack.c.l.bf16 %v15074_v9  ;;  %v10969_v42 = vcombine.high %v16579_v55, %v16579_v55 }
 0x4df   : > { %v6608_v8 = vpop.f32.mrb[170].mxu0  ;;  %v15211_v19 = vpop.eup %12462  ;;  %12070 = vmatmul.mubr.msk.bf16.vlgmr.msra.gmra.mrb[224].mxu0 %vm5271_vm9, %v15209_v0  ;;  %v5797_v29 = vunpack.c.l.bf16 %v16578_v41  ;;  %12468 = vpow.bf16 %v5719_v23  ;;  %v5573_v9 = vpack.c.bf16 %v5509_v11, %v5509_v11  ;;  %v8041_v55 = vsel %vm6107_vm10, %v10968_v31, 0 }
 0x4e0   : > { %v11904_v50 = vpop.f32.mrb[171].mxu0  ;;  %12080 = vmatpush3.bf16.msra.mxu0 %v7949_v25  ;;  %12076 = vmatmul.mubr.msk.bf16.vlgmr.msra.gmra.mrb[248].mxu1 %vm5271_vm9, %v15211_v19  ;;  %v5415_v8 = vpop.xlane.xlu0 %5414  ;;  %v5572_v25 = vpack.c.bf16 %v5508_v5, %v5508_v5  ;;  %12470 = vpow.bf16 %v5722_v36  ;;  %v5938_v23 = vsel %vm5271_vm9, %v5814_v20, 0.0 }
 0x4e1   : > { %v15222_v45 = vpop.f32.mrb[192].mxu1  ;;  %12086 = vmatpush3.bf16.msra.mxu1 %v7995_v51  ;;  %5882 = vadd.xlane.f32.xlu1 %v5881_v47  ;;  %v5887_v35 = vsel %vm5271_vm9, %v5797_v29, 0.0  ;;  %v16580_v47 = vld [vmem:[#allocation52_spill] sm:$0xff]  ;;  %v5728_v20 = vmul.bf16 1069105081, %v5573_v9 }
 0x4e2   : > { %v11909_v57 = vpop.f32.mrb[193].mxu1  ;;  %5933 = vadd.xlane.f32.xlu0 %v5932_v49  ;;  %12081 = vmatprep.mubr.msk.bf16.mxu0 %vm12823_vm8, %v16483_v30  ;;  %v5799_v41 = vunpack.c.l.bf16 %v16580_v47  ;;  %v5816_v49 = vunpack.c.l.bf16 %v15107_v54  ;;  %v5725_v11 = vmul.bf16 1069105081, %v5572_v25  ;;  %v5511_v47 = vsub.f32 %v14771_v46, %v5415_v8  ;;  %v16581_v46 = vld [vmem:[#allocation70_spill] sm:$0xff] }
 0x4e3   : > { %v6654_v12 = vpop.f32.mrb[194].mxu1  ;;  %12091 = vmatprep.subr.bf16.mxu0 %v16483_v30  ;;  %12087 = vmatprep.mubr.msk.bf16.mxu1 %vm12823_vm8, %v16483_v30  ;;  %v15243_v57 = vpop.eup %12464  ;;  %v5807_v25 = vunpack.c.l.bf16 %v14959_v40  ;;  %v10970_v8 = vcombine.low %v16581_v46, %v16581_v46 }
 0x4e4   : > { %v11910_v51 = vpop.f32.mrb[195].mxu1  ;;  %12097 = vmatprep.subr.bf16.mxu1 %v16483_v30  ;;  %v15245_v36 = vpop.eup %12466  ;;  %v5893_v54 = vsel %vm5271_vm9, %v5799_v41, 0.0  ;;  %v5944_v31 = vsel %vm5271_vm9, %v5816_v49, 0.0  ;;  %v10971_v41 = vcombine.high %v16581_v46, %v16581_v46  ;;  %12472 = vpow.bf16 %v5725_v11 }
 0x4e5   : > { %v15237_v50 = vpop.f32.mrb[172].mxu0  ;;  %5888 = vadd.xlane.f32.xlu1 %v5887_v35  ;;  %v5421_v29 = vpop.xlane.xlu0 %5420  ;;  %v8087_v51 = vsel %vm6107_vm10, %v10969_v42, 0  ;;  %v5817_v42 = vunpack.c.l.bf16 %v15105_v14  ;;  %12474 = vpow.bf16 %v5728_v20  ;;  %v5575_v14 = vpack.c.bf16 %v5511_v47, %v5511_v47 }
 0x4e6   : > { %v11915_v5 = vpop.f32.mrb[173].mxu0  ;;  %5939 = vadd.xlane.f32.xlu0 %v5938_v23  ;;  %v15269_v49 = vpop.permute.xlu1 %2107 }
 0x4e7   : > { %v6700_v12 = vpop.f32.mrb[174].mxu0  ;;  %12082 = vmatmul.mubr.msk.bf16.vlgmr.msra.gmra.mrb[228].mxu0 %vm5271_vm9, %v15243_v57  ;;  %v5947_v11 = vsel %vm5271_vm9, %v5817_v42, 0.0  ;;  %v5734_v46 = vmul.bf16 1069105081, %v5575_v14  ;;  %v5513_v42 = vsub.f32 %v14778_v62, %v5421_v29  ;;  %v5819_v62 = vunpack.c.l.bf16 %v15140_v32 }
 0x4e8   : > { %v11916_v35 = vpop.f32.mrb[175].mxu0  ;;  %12092 = vmatpush3.bf16.msra.mxu0 %v8041_v55  ;;  %12088 = vmatmul.mubr.msk.bf16.vlgmr.msra.gmra.mrb[252].mxu1 %vm5271_vm9, %v15245_v36  ;;  %v5917_v12 = vsel %vm5271_vm9, %v5807_v25, 0.0  ;;  %v8133_v25 = vsel %vm6107_vm10, %v10970_v8, 0 }
 0x4e9   : > { %v15255_v23 = vpop.f32.mrb[196].mxu1  ;;  %12098 = vmatpush3.bf16.msra.mxu1 %v8087_v51  ;;  %5894 = vadd.xlane.f32.xlu1 %v5893_v54  ;;  %v5809_v51 = vunpack.c.l.bf16 %v14988_v43  ;;  %v5427_v35 = vpop.xlane.xlu0 %5426  ;;  %v8179_v43 = vsel %vm6107_vm10, %v10971_v41, 0  ;;  %12476 = vpow.bf16 %v5734_v46  ;;  %v5577_v32 = vpack.c.bf16 %v5513_v42, %v5513_v42 }
 0x4ea   : > { %v11921_v5 = vpop.f32.mrb[197].mxu1  ;;  %5945 = vadd.xlane.f32.xlu0 %v5944_v31  ;;  %12093 = vmatprep.mubr.msk.bf16.mxu0 %vm12823_vm8, %v16483_v30  ;;  %v5818_v31 = vunpack.c.l.bf16 %v15142_v7 }
 0x4eb   : > { %v6746_v9 = vpop.f32.mrb[198].mxu1  ;;  %12103 = vmatprep.subr.bf16.mxu0 %v16483_v30  ;;  %12099 = vmatprep.mubr.msk.bf16.mxu1 %vm12823_vm8, %v16483_v30  ;;  %v15278_v5 = vpop.eup %12468 }
 0x4ec   : > { %v11922_v40 = vpop.f32.mrb[199].mxu1  ;;  %12109 = vmatprep.subr.bf16.mxu1 %v16483_v30  ;;  %v15280_v47 = vpop.eup %12470  ;;  %v5950_v41 = vsel %vm5271_vm9, %v5818_v31, 0.0 }
 0x4ed   : > { %v15272_v55 = vpop.f32.mrb[176].mxu0  ;;  %5918 = vadd.xlane.f32.xlu1 %v5917_v12  ;;  %v5923_v40 = vsel %vm5271_vm9, %v5809_v51, 0.0  ;;  %v10972_v51 = vcombine.low %v14901_v48, %v14901_v48 }
 0x4ee   : > { %v11927_v54 = vpop.f32.mrb[177].mxu0  ;;  %5948 = vadd.xlane.f32.xlu0 %v5947_v11  ;;  %v5811_v11 = vunpack.c.l.bf16 %v15014_v60  ;;  %v10973_v60 = vcombine.high %v14901_v48, %v14901_v48 }
 0x4ef   : > { %v6792_v20 = vpop.f32.mrb[178].mxu0  ;;  %12094 = vmatmul.mubr.msk.bf16.vlgmr.msra.gmra.mrb[232].mxu0 %vm5271_vm9, %v15278_v5  ;;  %v5433_v54 = vpop.xlane.xlu0 %5432 }
 0x4f0   : > { %v11928_v9 = vpop.f32.mrb[179].mxu0  ;;  %12104 = vmatpush3.bf16.msra.mxu0 %v8133_v25  ;;  %12100 = vmatmul.mubr.msk.bf16.vlgmr.msra.gmra.mrb[0].mxu1 %vm5271_vm9, %v15280_v47  ;;  %v5929_v25 = vsel %vm5271_vm9, %v5811_v11, 0.0  ;;  %v8271_v11 = vsel %vm6107_vm10, %v10973_v60, 0 }
 0x4f1   : > { %v5412_v7 = vpop.xlane.xlu1 %5411  ;;  %v15290_v12 = vpop.f32.mrb[200].mxu1  ;;  %12110 = vmatpush3.bf16.msra.mxu1 %v8179_v43  ;;  %5924 = vadd.xlane.f32.xlu1 %v5923_v40  ;;  %v5813_v43 = vunpack.c.l.bf16 %v15042_v26  ;;  %v5820_v40 = vunpack.c.l.bf16 %v15177_v1  ;;  %v8225_v26 = vsel %vm6107_vm10, %v10972_v51, 0  ;;  %v5822_v51 = vunpack.c.l.bf16 %v15209_v0 }
 0x4f2   : > { %v5510_v8 = vsub.f32 %v14824_v15, %v5412_v7  ;;  %v11933_v14 = vpop.f32.mrb[201].mxu1  ;;  %5951 = vadd.xlane.f32.xlu0 %v5950_v41  ;;  %12105 = vmatprep.mubr.msk.bf16.mxu0 %vm12823_vm8, %v16483_v30  ;;  %v5953_v7 = vsel %vm5271_vm9, %v5819_v62, 0.0  ;;  %v5515_v41 = vsub.f32 %v14784_v3, %v5427_v35  ;;  %v5815_v62 = vunpack.c.l.bf16 %v15072_v27 }
 0x4f3   : > { %v6838_v29 = vpop.f32.mrb[202].mxu1  ;;  %12115 = vmatprep.subr.bf16.mxu0 %v16483_v30  ;;  %12111 = vmatprep.mubr.msk.bf16.mxu1 %vm12823_vm8, %v16483_v30  ;;  %v5935_v14 = vsel %vm5271_vm9, %v5813_v43, 0.0  ;;  %v10975_v3 = vcombine.high %v14888_v13, %v14888_v13 }
 0x4f4   : > { %v5574_v20 = vpack.c.bf16 %v5510_v8, %v5510_v8  ;;  %v11934_v15 = vpop.f32.mrb[203].mxu1  ;;  %12121 = vmatprep.subr.bf16.mxu1 %v16483_v30  ;;  %v15311_v8 = vpop.eup %12472  ;;  %v5579_v27 = vpack.c.bf16 %v5515_v41, %v5515_v41  ;;  %v5941_v0 = vsel %vm5271_vm9, %v5815_v62, 0.0 }
 0x4f5   : > { %v5418_v31 = vpop.xlane.xlu1 %5417  ;;  %5930 = vadd.xlane.f32.xlu1 %v5929_v25  ;;  %v15313_v46 = vpop.eup %12474  ;;  %v5824_v25 = vunpack.c.l.bf16 %v15243_v57 }
 0x4f6   : > { %v5731_v9 = vmul.bf16 1069105081, %v5574_v20  ;;  %v5512_v48 = vsub.f32 %v14838_v63, %v5418_v31  ;;  %5954 = vadd.xlane.f32.xlu0 %v5953_v7  ;;  %v5740_v63 = vmul.bf16 1069105081, %v5577_v32  ;;  %v5439_v29 = vpop.xlane.xlu0 %5438  ;;  %v5956_v20 = vsel %vm5271_vm9, %v5820_v40, 0.0  ;;  %v15340_v43 = vpop.eup %12476 }
 0x4f7   : > { %12106 = vmatmul.mubr.msk.bf16.vlgmr.msra.gmra.mrb[236].mxu0 %vm5271_vm9, %v15311_v8  ;;  %v5821_v32 = vunpack.c.l.bf16 %v15175_v52  ;;  %v5962_v31 = vsel %vm5271_vm9, %v5822_v51, 0.0  ;;  %v5746_v40 = vmul.bf16 1069105081, %v5579_v27 }
 0x4f8   : > { %12478 = vpow.bf16 %v5731_v9  ;;  %v5576_v42 = vpack.c.bf16 %v5512_v48, %v5512_v48  ;;  %12116 = vmatpush3.bf16.msra.mxu0 %v8225_v26  ;;  %12112 = vmatmul.mubr.msk.bf16.vlgmr.msra.gmra.mrb[4].mxu1 %vm5271_vm9, %v15313_v46  ;;  %v10974_v9 = vcombine.low %v14888_v13, %v14888_v13  ;;  %v5968_v26 = vsel %vm5271_vm9, %v5824_v25, 0.0 }
 0x4f9   : > { %v5424_v1 = vpop.xlane.xlu1 %5423  ;;  %12122 = vmatpush3.bf16.msra.mxu1 %v8271_v11  ;;  %5936 = vadd.xlane.f32.xlu1 %v5935_v14  ;;  %12480 = vpow.bf16 %v5740_v63  ;;  %v5826_v13 = vunpack.c.l.bf16 %v15278_v5  ;;  %v5519_v63 = vsub.f32 %v14812_v33, %v5439_v29  ;;  %v10977_v5 = vcombine.high %v15122_v10, %v15122_v10 }
 0x4fa   : > { %5957 = vadd.xlane.f32.xlu0 %v5956_v20  ;;  %12123 = vmatprep.mubr.msk.bf16.mxu1 %vm12823_vm8, %v16483_v30  ;;  %v5737_v35 = vmul.bf16 1069105081, %v5576_v42  ;;  %v5514_v60 = vsub.f32 %v14852_v17, %v5424_v1  ;;  %v5517_v17 = vsub.f32 %v14797_v18, %v5433_v54  ;;  %v5445_v48 = vpop.xlane.xlu0 %5444  ;;  %v8363_v42 = vsel %vm6107_vm10, %v10975_v3, 0 }
 0x4fb   : > { %12133 = vmatprep.subr.bf16.mxu1 %v16483_v30  ;;  %12117 = vmatprep.mubr.msk.bf16.mxu0 %vm12823_vm8, %v16483_v30  ;;  %v5959_v18 = vsel %vm5271_vm9, %v5821_v32, 0.0  ;;  %v5823_v54 = vunpack.c.l.bf16 %v15211_v19  ;;  %v8317_v19 = vsel %vm6107_vm10, %v10974_v9, 0  ;;  %v5825_v29 = vunpack.c.l.bf16 %v15245_v36 }
 0x4fc   : > { %12127 = vmatprep.subr.bf16.mxu0 %v16483_v30  ;;  %12482 = vpow.bf16 %v5737_v35  ;;  %v5578_v7 = vpack.c.bf16 %v5514_v60, %v5514_v60  ;;  %v5974_v51 = vsel %vm5271_vm9, %v5826_v13, 0.0  ;;  %v5828_v3 = vunpack.c.l.bf16 %v15311_v8 }
 0x4fd   : > { %v5430_v15 = vpop.xlane.xlu1 %5429  ;;  %5942 = vadd.xlane.f32.xlu1 %v5941_v0  ;;  %12484 = vpow.bf16 %v5746_v40  ;;  %v5965_v62 = vsel %vm5271_vm9, %v5823_v54, 0.0  ;;  %v5583_v60 = vpack.c.bf16 %v5519_v63, %v5519_v63  ;;  %v5521_v27 = vsub.f32 %v14827_v34, %v5445_v48 }
 0x4fe   : > { %5963 = vadd.xlane.f32.xlu0 %v5962_v31  ;;  %v5516_v52 = vsub.f32 %v14863_v44, %v5430_v15  ;;  %v5581_v44 = vpack.c.bf16 %v5517_v17, %v5517_v17  ;;  %v5743_v41 = vmul.bf16 1069105081, %v5578_v7  ;;  %v5451_v20 = vpop.xlane.xlu0 %5450  ;;  %v8455_v32 = vsel %vm6107_vm10, %v10977_v5, 0 }
 0x4ff   : > { %v5971_v31 = vsel %vm5271_vm9, %v5825_v29, 0.0  ;;  %v5827_v25 = vunpack.c.l.bf16 %v15280_v47  ;;  %v5980_v34 = vsel %vm5271_vm9, %v5828_v3, 0.0  ;;  %v5585_v7 = vpack.c.bf16 %v5521_v27, %v5521_v27 }
 0x500   : > { %12124 = vmatmul.mubr.msk.bf16.vlgmr.msra.gmra.mrb[8].mxu1 %vm5271_vm9, %v15340_v43  ;;  %v5580_v1 = vpack.c.bf16 %v5516_v52, %v5516_v52  ;;  %v5752_v35 = vmul.bf16 1069105081, %v5581_v44  ;;  %12486 = vpow.bf16 %v5743_v41  ;;  %v5523_v52 = vsub.f32 %v14845_v56, %v5451_v20 }
 0x501   : > { %v5436_v57 = vpop.xlane.xlu1 %5435  ;;  %12134 = vmatpush3.bf16.msra.mxu1 %v8363_v42  ;;  %5960 = vadd.xlane.f32.xlu1 %v5959_v18  ;;  %v10979_v18 = vcombine.high %v15269_v49, %v15269_v49  ;;  %v5977_v56 = vsel %vm5271_vm9, %v5827_v25, 0.0  ;;  %v10978_v13 = vcombine.low %v15269_v49, %v15269_v49  ;;  %v5764_v44 = vmul.bf16 1069105081, %v5585_v7 }
 0x502   : > { %5969 = vadd.xlane.f32.xlu0 %v5968_v26  ;;  %12135 = vmatprep.mubr.msk.bf16.mxu1 %vm12823_vm8, %v16483_v30  ;;  %v5518_v14 = vsub.f32 %v14871_v28, %v5436_v57  ;;  %v10976_v28 = vcombine.low %v15122_v10, %v15122_v10  ;;  %v5749_v15 = vmul.bf16 1069105081, %v5580_v1  ;;  %12488 = vpow.bf16 %v5752_v35  ;;  %v5457_v40 = vpop.xlane.xlu0 %5456 }
 0x503   : > { %v15352_v11 = vpop.eup %12478  ;;  %12145 = vmatprep.subr.bf16.mxu1 %v16483_v30  ;;  %v5829_v26 = vunpack.c.l.bf16 %v15313_v46  ;;  %v5587_v63 = vpack.c.bf16 %v5523_v52, %v5523_v52  ;;  %v5525_v41 = vsub.f32 %v14859_v37, %v5457_v40  ;;  %v8547_v49 = vsel %vm6107_vm10, %v10979_v18, 0 }
 0x504   : > { %12118 = vmatmul.mubr.msk.bf16.vlgmr.msra.gmra.mrb[240].mxu0 %vm5271_vm9, %v15352_v11  ;;  %v15374_v36 = vpop.eup %12480  ;;  %v5582_v0 = vpack.c.bf16 %v5518_v14, %v5518_v14  ;;  %v8409_v17 = vsel %vm6107_vm10, %v10976_v28, 0  ;;  %v5830_v9 = vunpack.c.l.bf16 %v15352_v11  ;;  %12490 = vpow.bf16 %v5749_v15 }
 0x505   : > { %12128 = vmatpush3.bf16.msra.mxu0 %v8317_v19  ;;  %v5442_v33 = vpop.xlane.xlu1 %5441  ;;  %12129 = vmatprep.mubr.msk.bf16.mxu0 %vm12823_vm8, %v16483_v30  ;;  %v5833_v28 = vunpack.c.l.bf16 %v15374_v36  ;;  %v8501_v3 = vsel %vm6107_vm10, %v10978_v13, 0 }
 0x506   : > { %5966 = vadd.xlane.f32.xlu1 %v5965_v62  ;;  %12139 = vmatprep.subr.bf16.mxu0 %v16483_v30  ;;  %v5520_v10 = vsub.f32 %v14879_v22, %v5442_v33  ;;  %v5758_v22 = vmul.bf16 1069105081, %v5583_v60  ;;  %v5755_v47 = vmul.bf16 1069105081, %v5582_v0  ;;  %v5983_v33 = vsel %vm5271_vm9, %v5829_v26, 0.0  ;;  %v2110_v29 = vpop.permute.xlu0 %2109 }
 0x507   : > { %5975 = vadd.xlane.f32.xlu0 %v5974_v51  ;;  %v12483_v48 = vpop.eup %12482  ;;  %v5831_v62 = vunpack.c.l.bf16 %v15340_v43  ;;  %v5770_v51 = vmul.bf16 1069105081, %v5587_v63  ;;  %v10981_v27 = vcombine.high %v2110_v29, %v2110_v29 }
 0x508   : > { %12136 = vmatmul.mubr.msk.bf16.vlgmr.msra.gmra.mrb[12].mxu1 %vm5271_vm9, %v15374_v36  ;;  %v5584_v42 = vpack.c.bf16 %v5520_v10, %v5520_v10  ;;  %v5832_v11 = vunpack.c.l.bf16 %v12483_v48  ;;  %12492 = vpow.bf16 %v5758_v22  ;;  %v12485_v1 = vpop.eup %12484  ;;  %v5995_v10 = vsel %vm5271_vm9, %v5833_v28, 0.0 }
 0x509   : > { %v5448_v8 = vpop.xlane.xlu1 %5447  ;;  %12146 = vmatpush3.bf16.msra.mxu1 %v8455_v32  ;;  %12147 = vmatprep.mubr.msk.bf16.mxu1 %vm12823_vm8, %v16483_v30  ;;  %12494 = vpow.bf16 %v5755_v47  ;;  %v5989_v36 = vsel %vm5271_vm9, %v5831_v62, 0.0  ;;  %v5835_v15 = vunpack.c.l.bf16 %v12485_v1 }
 0x50a   : > { %5972 = vadd.xlane.f32.xlu1 %v5971_v31  ;;  %v5522_v57 = vsub.f32 %v14884_v24, %v5448_v8  ;;  %12157 = vmatprep.subr.bf16.mxu1 %v16483_v30  ;;  %v5986_v24 = vsel %vm5271_vm9, %v5830_v9, 0.0  ;;  %v5761_v46 = vmul.bf16 1069105081, %v5584_v42  ;;  %v5992_v37 = vsel %vm5271_vm9, %v5832_v11, 0.0 }
 0x50b   : > { %5981 = vadd.xlane.f32.xlu0 %v5980_v34  ;;  %v12487_v20 = vpop.eup %12486  ;;  %12496 = vpow.bf16 %v5764_v44  ;;  %v10980_v31 = vcombine.low %v2110_v29, %v2110_v29  ;;  %v6001_v9 = vsel %vm5271_vm9, %v5835_v15, 0.0 }
 0x50c   : > { %12130 = vmatmul.mubr.msk.bf16.vlgmr.msra.gmra.mrb[244].mxu0 %vm5271_vm9, %v12483_v48  ;;  %v5586_v14 = vpack.c.bf16 %v5522_v57, %v5522_v57  ;;  %12498 = vpow.bf16 %v5761_v46  ;;  %v5834_v32 = vunpack.c.l.bf16 %v12487_v20 }
 0x50d   : > { %12140 = vmatpush3.bf16.msra.mxu0 %v8409_v17  ;;  %v5454_v54 = vpop.xlane.xlu1 %5453  ;;  %12141 = vmatprep.mubr.msk.bf16.mxu0 %vm12823_vm8, %v16483_v30  ;;  %v12489_v0 = vpop.eup %12488  ;;  %12500 = vpow.bf16 %v5770_v51  ;;  %v8639_v17 = vsel %vm6107_vm10, %v10981_v27, 0  ;;  %v8593_v57 = vsel %vm6107_vm10, %v10980_v31, 0 }
 0x50e   : > { %5978 = vadd.xlane.f32.xlu1 %v5977_v56  ;;  %12151 = vmatprep.subr.bf16.mxu0 %v16483_v30  ;;  %v5524_v19 = vsub.f32 %v14891_v6, %v5454_v54  ;;  %v5589_v6 = vpack.c.bf16 %v5525_v41, %v5525_v41  ;;  %v5767_v35 = vmul.bf16 1069105081, %v5586_v14  ;;  %v5837_v48 = vunpack.c.l.bf16 %v12489_v0 }
 0x50f   : > { %5987 = vadd.xlane.f32.xlu0 %v5986_v24  ;;  %v5998_v52 = vsel %vm5271_vm9, %v5834_v32, 0.0 }
 0x510   : > { %12148 = vmatmul.mubr.msk.bf16.vlgmr.msra.gmra.mrb[16].mxu1 %vm5271_vm9, %v12485_v1  ;;  %v5588_v43 = vpack.c.bf16 %v5524_v19, %v5524_v19  ;;  %v5776_v8 = vmul.bf16 1069105081, %v5589_v6  ;;  %12502 = vpow.bf16 %v5767_v35  ;;  %v6007_v54 = vsel %vm5271_vm9, %v5837_v48, 0.0 }
 0x511   : > { %v5460_v5 = vpop.xlane.xlu1 %5459  ;;  %12158 = vmatpush3.bf16.msra.mxu1 %v8547_v49  ;;  %12159 = vmatprep.mubr.msk.bf16.mxu1 %vm12823_vm8, %v16483_v30 }
 0x512   : > { %5984 = vadd.xlane.f32.xlu1 %v5983_v33  ;;  %v5526_v60 = vsub.f32 %v14897_v39, %v5460_v5  ;;  %12169 = vmatprep.subr.bf16.mxu1 %v16483_v30  ;;  %v12491_v39 = vpop.eup %12490  ;;  %v5773_v25 = vmul.bf16 1069105081, %v5588_v43  ;;  %12504 = vpow.bf16 %v5776_v8 }
 0x513   : > { %5993 = vadd.xlane.f32.xlu0 %v5992_v37  ;;  %v12493_v22 = vpop.eup %12492  ;;  %v5836_v40 = vunpack.c.l.bf16 %v12491_v39 }
 0x514   : > { %12142 = vmatmul.mubr.msk.bf16.vlgmr.msra.gmra.mrb[248].mxu0 %vm5271_vm9, %v12487_v20  ;;  %v5590_v34 = vpack.c.bf16 %v5526_v60, %v5526_v60  ;;  %v12495_v47 = vpop.eup %12494  ;;  %12506 = vpow.bf16 %v5773_v25  ;;  %v5839_v56 = vunpack.c.l.bf16 %v12493_v22 }
 0x515   : > { %12152 = vmatpush3.bf16.msra.mxu0 %v8501_v3  ;;  %12153 = vmatprep.mubr.msk.bf16.mxu0 %vm12823_vm8, %v16483_v30  ;;  %v2112_v7 = vpop.permute.xlu1 %2111  ;;  %v6004_v13 = vsel %vm5271_vm9, %v5836_v40, 0.0  ;;  %v5838_v24 = vunpack.c.l.bf16 %v12495_v47 }
 0x516   : > { %5990 = vadd.xlane.f32.xlu1 %v5989_v36  ;;  %12163 = vmatprep.subr.bf16.mxu0 %v16483_v30  ;;  %v5779_v42 = vmul.bf16 1069105081, %v5590_v34  ;;  %v10983_v18 = vcombine.high %v2112_v7, %v2112_v7  ;;  %v12497_v26 = vpop.eup %12496  ;;  %v10982_v44 = vcombine.low %v2112_v7, %v2112_v7  ;;  %v6013_v41 = vsel %vm5271_vm9, %v5839_v56, 0.0 }
 0x517   : > { %5996 = vadd.xlane.f32.xlu0 %v5995_v10  ;;  %v12499_v11 = vpop.eup %12498  ;;  %v5841_v1 = vunpack.c.l.bf16 %v12497_v26  ;;  %v6010_v19 = vsel %vm5271_vm9, %v5838_v24, 0.0 }
 0x518   : > { %12160 = vmatmul.mubr.msk.bf16.vlgmr.msra.gmra.mrb[20].mxu1 %vm5271_vm9, %v12489_v0  ;;  %12508 = vpow.bf16 %v5779_v42  ;;  %v8731_v63 = vsel %vm6107_vm10, %v10983_v18, 0  ;;  %v12501_v46 = vpop.eup %12500  ;;  %v5840_v49 = vunpack.c.l.bf16 %v12499_v11  ;;  %v8685_v33 = vsel %vm6107_vm10, %v10982_v44, 0 }
 0x519   : > { %12170 = vmatpush3.bf16.msra.mxu1 %v8639_v17  ;;  %12171 = vmatprep.mubr.msk.bf16.mxu1 %vm12823_vm8, %v16483_v30  ;;  %v2114_v14 = vpop.permute.xlu1 %2113  ;;  %v6019_v29 = vsel %vm5271_vm9, %v5841_v1, 0.0  ;;  %v5843_v37 = vunpack.c.l.bf16 %v12501_v46 }
 0x51a   : > { %6002 = vadd.xlane.f32.xlu1 %v6001_v9  ;;  %12181 = vmatprep.subr.bf16.mxu1 %v16483_v30  ;;  %v10985_v62 = vcombine.high %v2114_v14, %v2114_v14  ;;  %v6016_v20 = vsel %vm5271_vm9, %v5840_v49, 0.0  ;;  %v10984_v3 = vcombine.low %v2114_v14, %v2114_v14 }
 0x51b   : > { %5999 = vadd.xlane.f32.xlu0 %v5998_v52  ;;  %v15438_v5 = vpop.eup %12502  ;;  %v6025_v43 = vsel %vm5271_vm9, %v5843_v37, 0.0 }
 0x51c   : > { %12154 = vmatmul.mubr.msk.bf16.vlgmr.msra.gmra.mrb[252].mxu0 %vm5271_vm9, %v12491_v39  ;;  %v5842_v51 = vunpack.c.l.bf16 %v15438_v5  ;;  %v8823_v35 = vsel %vm6107_vm10, %v10985_v62, 0  ;;  %v8777_v10 = vsel %vm6107_vm10, %v10984_v3, 0 }
 0x51d   : > { %12164 = vmatpush3.bf16.msra.mxu0 %v8593_v57  ;;  %12165 = vmatprep.mubr.msk.bf16.mxu0 %vm12823_vm8, %v16483_v30  ;;  %v15448_v28 = vpop.eup %12504  ;;  %v2116_v27 = vpop.permute.xlu1 %2115 }
 0x51e   : > { %6008 = vadd.xlane.f32.xlu1 %v6007_v54  ;;  %12175 = vmatprep.subr.bf16.mxu0 %v16483_v30  ;;  %v5845_v60 = vunpack.c.l.bf16 %v15448_v28  ;;  %v6022_v36 = vsel %vm5271_vm9, %v5842_v51, 0.0  ;;  %v10987_v39 = vcombine.high %v2116_v27, %v2116_v27  ;;  %v10986_v52 = vcombine.low %v2116_v27, %v2116_v27 }
 0x51f   : > { %6005 = vadd.xlane.f32.xlu0 %v6004_v13  ;;  %v15453_v6 = vpop.eup %12506 }
 0x520   : > { %12172 = vmatmul.mubr.msk.bf16.vlgmr.msra.gmra.mrb[24].mxu1 %vm5271_vm9, %v12493_v22  ;;  %v5844_v15 = vunpack.c.l.bf16 %v15453_v6  ;;  %v6031_v31 = vsel %vm5271_vm9, %v5845_v60, 0.0  ;;  %v8915_v57 = vsel %vm6107_vm10, %v10987_v39, 0 }
 0x521   : > { %12182 = vmatpush3.bf16.msra.mxu1 %v8731_v63  ;;  %12183 = vmatprep.mubr.msk.bf16.mxu1 %vm12823_vm8, %v16483_v30  ;;  %v2118_v18 = vpop.permute.xlu1 %2117 }
 0x522   : > { %6014 = vadd.xlane.f32.xlu1 %v6013_v41  ;;  %12193 = vmatprep.subr.bf16.mxu1 %v16483_v30  ;;  %v6028_v34 = vsel %vm5271_vm9, %v5844_v15, 0.0  ;;  %v10989_v24 = vcombine.high %v2118_v18, %v2118_v18  ;;  %v10988_v1 = vcombine.low %v2118_v18, %v2118_v18 }
 0x523   : > { %6011 = vadd.xlane.f32.xlu0 %v6010_v19  ;;  %v15461_v0 = vpop.eup %12508 }
 0x524   : > { %12166 = vmatmul.mubr.msk.bf16.vlgmr.msra.gmra.mrb[0].mxu0 %vm5271_vm9, %v12495_v47  ;;  %v5846_v48 = vunpack.c.l.bf16 %v15461_v0  ;;  %v9007_v14 = vsel %vm6107_vm10, %v10989_v24, 0  ;;  %v8961_v49 = vsel %vm6107_vm10, %v10988_v1, 0 }
 0x525   : > { %12176 = vmatpush3.bf16.msra.mxu0 %v8685_v33  ;;  %12177 = vmatprep.mubr.msk.bf16.mxu0 %vm12823_vm8, %v16483_v30 }
 0x526   : > { %6020 = vadd.xlane.f32.xlu1 %v6019_v29  ;;  %12187 = vmatprep.subr.bf16.mxu0 %v16483_v30  ;;  %v6034_v56 = vsel %vm5271_vm9, %v5846_v48, 0.0 }
 0x527   : > { %6017 = vadd.xlane.f32.xlu0 %v6016_v20 }
 0x528   : > { %12184 = vmatmul.mubr.msk.bf16.vlgmr.msra.gmra.mrb[28].mxu1 %vm5271_vm9, %v12497_v26 }
 0x529   : > { %12194 = vmatpush3.bf16.msra.mxu1 %v8823_v35  ;;  %12195 = vmatprep.mubr.msk.bf16.mxu1 %vm12823_vm8, %v16483_v30 }
 0x52a   : > { %6026 = vadd.xlane.f32.xlu1 %v6025_v43  ;;  %12205 = vmatprep.subr.bf16.mxu1 %v16483_v30 }
 0x52b   : > { %6023 = vadd.xlane.f32.xlu0 %v6022_v36 }
 0x52c   : > { %12178 = vmatmul.mubr.msk.bf16.vlgmr.msra.gmra.mrb[4].mxu0 %vm5271_vm9, %v12499_v11  ;;  %v15467_v32 = vpop.f32.mrb[180].mxu0 }
 0x52d   : > { %12188 = vmatpush3.bf16.msra.mxu0 %v8777_v10  ;;  %v15470_v8 = vpop.f32.mrb[204].mxu1  ;;  %v11939_v25 = vpop.f32.mrb[181].mxu0  ;;  %12189 = vmatprep.mubr.msk.bf16.mxu0 %vm12823_vm8, %v16483_v30 }
 0x52e   : > { %6032 = vadd.xlane.f32.xlu1 %v6031_v31  ;;  %v11945_v17 = vpop.f32.mrb[205].mxu1  ;;  %v6884_v9 = vpop.f32.mrb[182].mxu0  ;;  %12199 = vmatprep.subr.bf16.mxu0 %v16483_v30 }
 0x52f   : > { %6029 = vadd.xlane.f32.xlu0 %v6028_v34  ;;  %v5463_v22 = vpop.xlane.xlu0 %5462  ;;  %v6930_v7 = vpop.f32.mrb[206].mxu1 }
 0x530   : > { %v5527_v40 = vsub.f32 %v14955_v38, %v5463_v22  ;;  %v11940_v47 = vpop.f32.mrb[183].mxu0  ;;  %v11946_v42 = vpop.f32.mrb[207].mxu1  ;;  %12196 = vmatmul.mubr.msk.bf16.vlgmr.msra.gmra.mrb[32].mxu1 %vm5271_vm9, %v12501_v46  ;;  %v8869_v38 = vsel %vm6107_vm10, %v10986_v52, 0 }
 0x531   : > { %12206 = vmatpush3.bf16.msra.mxu1 %v8915_v57  ;;  %12207 = vmatprep.mubr.msk.bf16.mxu1 %vm12823_vm8, %v16483_v30 }
 0x532   : > { %v5591_v54 = vpack.c.bf16 %v5527_v40, %v5527_v40  ;;  %12217 = vmatprep.subr.bf16.mxu1 %v16483_v30 }
 0x533   : > { %6035 = vadd.xlane.f32.xlu0 %v6034_v56  ;;  %v5898_v26 = vpop.xlane.xlu0 %5897 }
 0x534   : > { %v5782_v13 = vmul.bf16 1069105081, %v5591_v54  ;;  %12190 = vmatmul.mubr.msk.bf16.vlgmr.msra.gmra.mrb[8].mxu0 %vm5271_vm9, %v15438_v5  ;;  %v6973_v11 = vpop.f32.mrb[184].mxu0 }
 0x535   : > { %12200 = vmatpush3.bf16.msra.mxu0 %v8869_v38  ;;  %12201 = vmatprep.mubr.msk.bf16.mxu0 %vm12823_vm8, %v16483_v30  ;;  %v11951_v44 = vpop.f32.mrb[185].mxu0 }
 0x536   : > { %12510 = vpow.bf16 %v5782_v13  ;;  %12211 = vmatprep.subr.bf16.mxu0 %v16483_v30  ;;  %v6976_v41 = vpop.f32.mrb[186].mxu0 }
 0x537   : > { %v5904_v63 = vpop.xlane.xlu0 %5903  ;;  %v11952_v46 = vpop.f32.mrb[187].mxu0  ;;  %12512 = vrcp.f32 %v5898_v26 }
 0x538   : > { %12208 = vmatmul.mubr.msk.bf16.vlgmr.msra.gmra.mrb[36].mxu1 %vm5271_vm9, %v15448_v28 }
 0x539   : > { %12218 = vmatpush3.bf16.msra.mxu1 %v9007_v14  ;;  %12219 = vmatprep.mubr.msk.bf16.mxu1 %vm12823_vm8, %v16483_v30 }
 0x53b   : > { %v5907_v19 = vpop.xlane.xlu0 %5906 }
 0x53c   : > { %12202 = vmatmul.mubr.msk.bf16.vlgmr.msra.gmra.mrb[12].mxu0 %vm5271_vm9, %v15453_v6 }
 0x53d   : > { %12212 = vmatpush3.bf16.msra.mxu0 %v8961_v49  ;;  %12213 = vmatprep.mubr.msk.bf16.mxu0 %vm12823_vm8, %v16483_v30 }
 0x53f   : > { %v5910_v5 = vpop.xlane.xlu0 %5909 }
 0x541   : > { %v12511_v33 = vpop.eup %12510 }
 0x542   : > { %12220 = vmatmul.mubr.msk.bf16.vlgmr.msra.gmra.mrb[40].mxu1 %vm5271_vm9, %v12511_v33  ;;  %v5847_v62 = vunpack.c.l.bf16 %v12511_v33  ;;  %v12513_v37 = vpop.eup %12512 }
 0x543   : > { %v15502_v29 = vpop.xlane.xlu0 %5849  ;;  %v9065_v51 = vmul.f32 %v12513_v37, %v15467_v32 }
 0x544   : > { %12214 = vmatmul.mubr.msk.bf16.vlgmr.msra.gmra.mrb[16].mxu0 %vm5271_vm9, %v15461_v0  ;;  %v6037_v28 = vsel %vm5271_vm9, %v5847_v62, 0.0 }
 0x545   : > { %6038 = vadd.xlane.f32.xlu1 %v6037_v28 }
 0x547   : > { %v15507_v20 = vpop.xlane.xlu0 %5855 }
 0x549   : > { %9129 = vrot.lane.b32.xlu0 %v9065_v51, %s12826_s12 }
 0x54b   : > { %v15511_v30 = vpop.xlane.xlu0 %5861 }
 0x54f   : > { %v15513_v6 = vpop.xlane.xlu0 %5867 }
 0x552   : > { %v5901_v3 = vpop.xlane.xlu1 %5900 }
 0x553   : > { %12514 = vrcp.f32 %v5901_v3  ;;  %v15515_v35 = vpop.xlane.xlu0 %5873 }
 0x554   : > { %12516 = vrcp.f32 %v5904_v63 }
 0x555   : > { %12518 = vrcp.f32 %v5907_v19 }
 0x556   : > { %v5913_v43 = vpop.xlane.xlu1 %5912 }
 0x557   : > { %v15517_v60 = vpop.xlane.xlu0 %5879 }
 0x55a   : > { %v15519_v27 = vpop.xlane.xlu1 %5852 }
 0x55b   : > { %v5886_v36 = vpop.xlane.xlu0 %5885 }
 0x55c   : > { %12520 = vrcp.f32 %v5886_v36 }
 0x55d   : > { %v12515_v15 = vpop.eup %12514  ;;  %12522 = vrcp.f32 %v5913_v43 }
 0x55e   : > { %v15521_v0 = vpop.xlane.xlu1 %5858  ;;  %v9066_v10 = vmul.f32 %v12515_v15, %v15470_v8  ;;  %v12517_v32 = vpop.eup %12516 }
 0x55f   : > { %v5892_v39 = vpop.xlane.xlu0 %5891  ;;  %v9067_v34 = vmul.f32 %v12517_v32, %v6973_v11  ;;  %v12519_v22 = vpop.eup %12518 }
 0x560   : > { %12524 = vrcp.f32 %v5892_v39  ;;  %9131 = vrot.lane.b32.xlu1 %v9066_v10, %s12826_s12 }
 0x561   : > { %12526 = vrcp.f32 %v5910_v5  ;;  %v7019_v31 = vpop.f32.mrb[208].mxu1 }
 0x562   : > { %v5865_v25 = vpop.xlane.xlu1 %5864  ;;  %v11957_v9 = vpop.f32.mrb[209].mxu1  ;;  %v9068_v8 = vmul.f32 %v12519_v22, %v7019_v31 }
 0x563   : > { %12528 = vrcp.f32 %v5865_v25  ;;  %v5916_v17 = vpop.xlane.xlu0 %5915  ;;  %v7022_v48 = vpop.f32.mrb[210].mxu1 }
 0x564   : > { %9133 = vrot.lane.b32.xlu1 %v9067_v34, %s12826_s12  ;;  %v11958_v7 = vpop.f32.mrb[211].mxu1 }
 0x566   : > { %v12521_v52 = vpop.eup %12520  ;;  %v5871_v40 = vpop.xlane.xlu1 %5870 }
 0x567   : > { %12530 = vrcp.f32 %v5871_v40  ;;  %v5922_v47 = vpop.xlane.xlu0 %5921  ;;  %v15527_v42 = vmul.f32 %v12521_v52, %v15237_v50  ;;  %v12523_v57 = vpop.eup %12522 }
 0x568   : > { %9135 = vrot.lane.b32.xlu1 %v9068_v8, %s12826_s12  ;;  %12532 = vrcp.f32 %v5916_v17 }
 0x569   : > { %v7111_v54 = vpop.f32.mrb[212].mxu1  ;;  %v7065_v38 = vpop.f32.mrb[188].mxu0 }
 0x56a   : > { %v12525_v18 = vpop.eup %12524  ;;  %v5877_v56 = vpop.xlane.xlu1 %5876  ;;  %v9070_v13 = vmul.f32 %v12523_v57, %v7111_v54 }
 0x56b   : > { %v12527_v26 = vpop.eup %12526  ;;  %12534 = vrcp.f32 %v5877_v56  ;;  %v5928_v24 = vpop.xlane.xlu0 %5927  ;;  %v15531_v11 = vmul.f32 %v12525_v18, %v15272_v55 }
 0x56c   : > { %v9069_v44 = vmul.f32 %v12527_v26, %v7065_v38  ;;  %v11963_v63 = vpop.f32.mrb[189].mxu0  ;;  %v11969_v41 = vpop.f32.mrb[213].mxu1  ;;  %9139 = vrot.lane.b32.xlu1 %v9070_v13, %s12826_s12 }
 0x56d   : > { %v12529_v50 = vpop.eup %12528  ;;  %v7068_v1 = vpop.f32.mrb[190].mxu0 }
 0x56e   : > { %v7114_v46 = vpop.f32.mrb[214].mxu1  ;;  %v11964_v14 = vpop.f32.mrb[191].mxu0  ;;  %9137 = vrot.lane.b32.xlu0 %v9069_v44, %s12826_s12  ;;  %v15536_v49 = vmul.f32 %v12529_v50, %v15119_v21 }
 0x56f   : > { %v11970_v19 = vpop.f32.mrb[215].mxu1  ;;  %v5883_v5 = vpop.xlane.xlu1 %5882 }
 0x570   : > { %12536 = vrcp.f32 %v5883_v5  ;;  %v5934_v33 = vpop.xlane.xlu0 %5933 }
 0x571   : > { %v12531_v55 = vpop.eup %12530  ;;  %12538 = vrcp.f32 %v5922_v47  ;;  %v7203_v62 = vpop.f32.mrb[216].mxu1 }
 0x572   : > { %v15539_v37 = vmul.f32 %v12531_v55, %v15155_v4  ;;  %v12533_v28 = vpop.eup %12532  ;;  %v7157_v3 = vpop.f32.mrb[192].mxu0 }
 0x573   : > { %v5889_v51 = vpop.xlane.xlu1 %5888  ;;  %v9071_v43 = vmul.f32 %v12533_v28, %v7157_v3  ;;  %v11975_v15 = vpop.f32.mrb[193].mxu0 }
 0x574   : > { %12540 = vrcp.f32 %v5889_v51  ;;  %v5940_v36 = vpop.xlane.xlu0 %5939  ;;  %v11981_v32 = vpop.f32.mrb[217].mxu1 }
 0x575   : > { %v12535_v10 = vpop.eup %12534  ;;  %v7160_v21 = vpop.f32.mrb[194].mxu0  ;;  %9141 = vrot.lane.b32.xlu0 %v9071_v43, %s12826_s12 }
 0x576   : > { %v7206_v39 = vpop.f32.mrb[218].mxu1  ;;  %v11976_v31 = vpop.f32.mrb[195].mxu0  ;;  %v15543_v25 = vmul.f32 %v12535_v10, %v15190_v2 }
 0x577   : > { %v11982_v34 = vpop.f32.mrb[219].mxu1  ;;  %v5895_v4 = vpop.xlane.xlu1 %5894 }
 0x578   : > { %12542 = vrcp.f32 %v5895_v4  ;;  %v15545_v17 = vpop.xlane.xlu0 %5945 }
 0x579   : > { %12544 = vrcp.f32 %v5928_v24  ;;  %v7295_v48 = vpop.f32.mrb[220].mxu1 }
 0x57a   : > { %v12537_v9 = vpop.eup %12536  ;;  %v7249_v52 = vpop.f32.mrb[196].mxu0 }
 0x57b   : > { %v12539_v22 = vpop.eup %12538  ;;  %v5919_v7 = vpop.xlane.xlu1 %5918  ;;  %v15548_v8 = vmul.f32 %v12537_v9, %v15222_v45 }
 0x57c   : > { %12546 = vrcp.f32 %v5919_v7  ;;  %v9073_v40 = vmul.f32 %v12539_v22, %v7249_v52  ;;  %v5949_v47 = vpop.xlane.xlu0 %5948  ;;  %v11987_v57 = vpop.f32.mrb[197].mxu0 }
 0x57d   : > { %v11993_v2 = vpop.f32.mrb[221].mxu1  ;;  %v7252_v18 = vpop.f32.mrb[198].mxu0 }
 0x57e   : > { %v12541_v54 = vpop.eup %12540  ;;  %v7298_v56 = vpop.f32.mrb[222].mxu1  ;;  %9145 = vrot.lane.b32.xlu0 %v9073_v40, %s12826_s12 }
 0x57f   : > { %v11988_v26 = vpop.f32.mrb[199].mxu0  ;;  %v11994_v13 = vpop.f32.mrb[223].mxu1  ;;  %v15552_v24 = vmul.f32 %v12541_v54, %v15255_v23 }
 0x580   : > { %v5925_v38 = vpop.xlane.xlu1 %5924  ;;  %v15554_v44 = vpop.xlane.xlu0 %5951 }
 0x581   : > { %12548 = vrcp.f32 %v5925_v38  ;;  %v7387_v63 = vpop.f32.mrb[224].mxu1 }
 0x582   : > { %12550 = vrcp.f32 %v5934_v33  ;;  %v12543_v45 = vpop.eup %12542  ;;  %v7341_v1 = vpop.f32.mrb[200].mxu0 }
 0x583   : > { %v12545_v41 = vpop.eup %12544  ;;  %v15557_v46 = vmul.f32 %v12543_v45, %v15290_v12  ;;  %v11999_v5 = vpop.f32.mrb[201].mxu0 }
 0x584   : > { %v5931_v50 = vpop.xlane.xlu1 %5930  ;;  %v9075_v14 = vmul.f32 %v12545_v41, %v7341_v1  ;;  %v5955_v19 = vpop.xlane.xlu0 %5954 }
 0x585   : > { %12552 = vrcp.f32 %v5931_v50  ;;  %v12005_v55 = vpop.f32.mrb[225].mxu1  ;;  %v7344_v28 = vpop.f32.mrb[202].mxu0 }
 0x586   : > { %v12547_v23 = vpop.eup %12546  ;;  %v7390_v51 = vpop.f32.mrb[226].mxu1  ;;  %9149 = vrot.lane.b32.xlu0 %v9075_v14, %s12826_s12 }
 0x587   : > { %v12000_v3 = vpop.f32.mrb[203].mxu0  ;;  %v12006_v33 = vpop.f32.mrb[227].mxu1  ;;  %v9072_v15 = vmul.f32 %v12547_v23, %v7203_v62 }
 0x588   : > { %v5937_v43 = vpop.xlane.xlu1 %5936  ;;  %v15560_v10 = vpop.xlane.xlu0 %5957 }
 0x589   : > { %12554 = vrcp.f32 %v5937_v43  ;;  %9143 = vrot.lane.b32.xlu1 %v9072_v15, %s12826_s12  ;;  %v7479_v32 = vpop.f32.mrb[228].mxu1 }
 0x58a   : > { %12556 = vrcp.f32 %v5940_v36  ;;  %v7433_v31 = vpop.f32.mrb[204].mxu0  ;;  %v12017_v7 = vpop.f32.mrb[229].mxu1 }
 0x58b   : > { %v12549_v12 = vpop.eup %12548  ;;  %v12011_v22 = vpop.f32.mrb[205].mxu0 }
 0x58c   : > { %v12551_v21 = vpop.eup %12550  ;;  %v5943_v39 = vpop.xlane.xlu1 %5942  ;;  %v9074_v34 = vmul.f32 %v12549_v12, %v7295_v48 }
 0x58d   : > { %12558 = vrcp.f32 %v5943_v39  ;;  %v9077_v4 = vmul.f32 %v12551_v21, %v7433_v31  ;;  %v15563_v9 = vpop.xlane.xlu0 %5963  ;;  %v7436_v52 = vpop.f32.mrb[206].mxu0 }
 0x58e   : > { %9147 = vrot.lane.b32.xlu1 %v9074_v34, %s12826_s12  ;;  %v7482_v40 = vpop.f32.mrb[230].mxu1  ;;  %v12012_v36 = vpop.f32.mrb[207].mxu0  ;;  %12560 = vrcp.f32 %v5949_v47 }
 0x58f   : > { %v12553_v62 = vpop.eup %12552  ;;  %9153 = vrot.lane.b32.xlu0 %v9077_v4, %s12826_s12  ;;  %v12018_v57 = vpop.f32.mrb[231].mxu1  ;;  %12562 = vrcp.f32 %v15545_v17 }
 0x590   : > { %v5961_v2 = vpop.xlane.xlu1 %5960  ;;  %v9076_v18 = vmul.f32 %v12553_v62, %v7387_v63  ;;  %12564 = vrcp.f32 %v5955_v19 }
 0x591   : > { %v15567_v54 = vpop.xlane.xlu0 %5969  ;;  %v7571_v56 = vpop.f32.mrb[232].mxu1  ;;  %12566 = vrcp.f32 %v15554_v44 }
 0x592   : > { %9151 = vrot.lane.b32.xlu1 %v9076_v18, %s12826_s12  ;;  %v7525_v38 = vpop.f32.mrb[208].mxu0  ;;  %v12029_v14 = vpop.f32.mrb[233].mxu1  ;;  %12568 = vrcp.f32 %v5961_v2 }
 0x593   : > { %v12555_v48 = vpop.eup %12554  ;;  %v12023_v1 = vpop.f32.mrb[209].mxu0  ;;  %12570 = vrcp.f32 %v15560_v10 }
 0x594   : > { %v12557_v26 = vpop.eup %12556  ;;  %v9078_v13 = vmul.f32 %v12555_v48, %v7479_v32  ;;  %v5967_v45 = vpop.xlane.xlu1 %5966  ;;  %12572 = vrcp.f32 %v15563_v9 }
 0x595   : > { %v9079_v41 = vmul.f32 %v12557_v26, %v7525_v38  ;;  %v15571_v50 = vpop.xlane.xlu0 %5975  ;;  %v7528_v5 = vpop.f32.mrb[210].mxu0  ;;  %12574 = vrcp.f32 %v5967_v45 }
 0x596   : > { %9155 = vrot.lane.b32.xlu1 %v9078_v13, %s12826_s12  ;;  %v7574_v63 = vpop.f32.mrb[234].mxu1  ;;  %v12024_v55 = vpop.f32.mrb[211].mxu0  ;;  %12576 = vrcp.f32 %v15567_v54 }
 0x597   : > { %v12559_v47 = vpop.eup %12558  ;;  %9157 = vrot.lane.b32.xlu0 %v9079_v41, %s12826_s12  ;;  %v12030_v28 = vpop.f32.mrb[235].mxu1 }
 0x598   : > { %v9080_v17 = vmul.f32 %v12559_v47, %v7571_v56  ;;  %v5973_v23 = vpop.xlane.xlu1 %5972  ;;  %v12561_v3 = vpop.eup %12560 }
 0x599   : > { %v15575_v51 = vpop.xlane.xlu0 %5981  ;;  %v7663_v33 = vpop.f32.mrb[236].mxu1  ;;  %12578 = vrcp.f32 %v5973_v23 }
 0x59a   : > { %9159 = vrot.lane.b32.xlu1 %v9080_v17, %s12826_s12  ;;  %v12563_v43 = vpop.eup %12562  ;;  %v7617_v15 = vpop.f32.mrb[212].mxu0  ;;  %v9082_v12 = vmul.f32 %v12561_v3, %v7663_v33  ;;  %12580 = vrcp.f32 %v15571_v50  ;;  %s15926_s12 = scalar_lea.vmem [#allocation5], %s10749_s21  ;;  %s11182_s21 = sshll.u32 %s12808_s30, 11 }
 0x59b   : > { %v9081_v21 = vmul.f32 %v12563_v43, %v7617_v15  ;;  %v12035_v31 = vpop.f32.mrb[213].mxu0  ;;  %v12041_v34 = vpop.f32.mrb[237].mxu1  ;;  %s10636_s14 = sshll.u32 %s15926_s12, 4  ;;  %s10621_s30 = scalar_lea.sflag [#allocation4], %s12988_s11  ;;  %s16294_s14 = int_to_ptr.vmem [resolvable:$true] %s10636_s14 }
 0x59c   : > { %v15579_v32 = vpop.xlane.xlu1 %5978  ;;  %v7620_v4 = vpop.f32.mrb[214].mxu0  ;;  %s12734_s23 = scalar_lea.vmem %s16294_s14, 2048  ;;  %p12741_p13 = scmp.lt.s32.totalorder %s16294_s14, %s12739_s22 }
 0x59d   : > { %v15581_v39 = vpop.xlane.xlu0 %5987  ;;  %v7666_v19 = vpop.f32.mrb[238].mxu1  ;;  %9193 = vrot.lane.b32.xlu0 %v9081_v21, %s12825_s26  ;;  %12582 = vrcp.f32 %v15579_v32  ;;  %v12344_v32 = vld [vmem:[%s16357_s6] sm:$0xff]   ;;  %p12735_p9 = scmp.ne.s32.totalorder %s16294_s14, %s12734_s23 }
 0x59e   : > { %9195 = vrot.lane.b32.xlu1 %v9082_v12, %s12825_s26  ;;  %v12036_v22 = vpop.f32.mrb[215].mxu0  ;;  %v12042_v44 = vpop.f32.mrb[239].mxu1  ;;  %12584 = vrcp.f32 %v15575_v51  ;;  %12223 = vmatprep.subr.bf16.mxu0 %v12344_v32 }
 0x59f   : > { %v12565_v62 = vpop.eup %12564  ;;  %12224 = vmatpush3.bf16.msra.mxu0 %v12344_v32  ;;  %p12736_p0 = pnand %p12735_p9, %p16618_p11 }
 0x5a0   : > { %v15585_v7 = vpop.xlane.xlu1 %5984  ;;  %v12567_v36 = vpop.eup %12566 }
 0x5a1   : > { %v15587_v52 = vpop.xlane.xlu0 %5993  ;;  %v7755_v40 = vpop.f32.mrb[240].mxu1  ;;  %12586 = vrcp.f32 %v15585_v7  ;;  %p12737_p6 = pneg %p12736_p0 }
 0x5a2   : > { %v7709_v57 = vpop.f32.mrb[216].mxu0  ;;  %v9084_v18 = vmul.f32 %v12565_v62, %v7755_v40  ;;  %v12053_v38 = vpop.f32.mrb[241].mxu1  ;;  %12588 = vrcp.f32 %v15519_v27 }
 0x5a3   : > { %v9083_v56 = vmul.f32 %v12567_v36, %v7709_v57  ;;  %v12047_v13 = vpop.f32.mrb[217].mxu0  ;;  %v7758_v2 = vpop.f32.mrb[242].mxu1 }
 0x5a4   : > { %v15590_v48 = vpop.xlane.xlu1 %5990  ;;  %v7712_v41 = vpop.f32.mrb[218].mxu0  ;;  %9199 = vrot.lane.b32.xlu1 %v9084_v18, %s12825_s26 }
 0x5a5   : > { %v15592_v26 = vpop.xlane.xlu0 %5996  ;;  %v12048_v1 = vpop.f32.mrb[219].mxu0  ;;  %9197 = vrot.lane.b32.xlu0 %v9083_v56, %s12825_s26  ;;  %12590 = vrcp.f32 %v15590_v48 }
 0x5a6   : > { %v12054_v10 = vpop.f32.mrb[243].mxu1  ;;  %v12569_v5 = vpop.eup %12568  ;;  %12592 = vrcp.f32 %v15507_v20 }
 0x5a7   : > { %v12571_v63 = vpop.eup %12570  ;;  %12594 = vrcp.f32 %v15581_v39 }
 0x5a8   : > { %v15596_v14 = vpop.xlane.xlu1 %6002  ;;  %v12573_v45 = vpop.eup %12572  ;;  %12596 = vrcp.f32 %v15521_v0 }
 0x5a9   : > { %v7847_v47 = vpop.f32.mrb[244].mxu1  ;;  %v15599_v55 = vpop.xlane.xlu0 %5999  ;;  %12598 = vrcp.f32 %v15511_v30 }
 0x5aa   : > { %v7801_v17 = vpop.f32.mrb[220].mxu0  ;;  %v9086_v28 = vmul.f32 %v12569_v5, %v7847_v47  ;;  %v12065_v15 = vpop.f32.mrb[245].mxu1  ;;  %12600 = vrcp.f32 %v15592_v26 }
 0x5ab   : > { %v9085_v3 = vmul.f32 %v12571_v63, %v7801_v17  ;;  %v12059_v43 = vpop.f32.mrb[221].mxu0  ;;  %v7850_v21 = vpop.f32.mrb[246].mxu1  ;;  %v12345_v15 = vld [vmem:[%s16357_s6 + $0x8] sm:$0xff]   ;;  %12602 = vrcp.f32 %v15587_v52 }
 0x5ac   : > { %v15601_v33 = vpop.xlane.xlu1 %6008  ;;  %v7804_v12 = vpop.f32.mrb[222].mxu0  ;;  %9203 = vrot.lane.b32.xlu1 %v9086_v28, %s12825_s26  ;;  %12225 = vmatprep.subr.bf16.mxu0 %v12345_v15  ;;  %12604 = vrcp.f32 %v15513_v6 }
 0x5ad   : > { %v12060_v31 = vpop.f32.mrb[223].mxu0  ;;  %9201 = vrot.lane.b32.xlu0 %v9085_v3, %s12825_s26  ;;  %v12066_v9 = vpop.f32.mrb[247].mxu1  ;;  %12226 = vmatpush3.bf16.msra.mxu0 %v12345_v15 }
 0x5ae   : > { %v15606_v34 = vpop.xlane.xlu0 %6005  ;;  %v12575_v62 = vpop.eup %12574  ;;  %12606 = vrcp.f32 %v15596_v14 }
 0x5af   : > { %v12577_v54 = vpop.eup %12576  ;;  %12608 = vrcp.f32 %v15599_v55 }
 0x5b0   : > { %v15608_v19 = vpop.xlane.xlu1 %6014  ;;  %v12579_v5 = vpop.eup %12578  ;;  %12610 = vrcp.f32 %v15515_v35 }
 0x5b1   : > { %v12581_v12 = vpop.eup %12580  ;;  %12612 = vrcp.f32 %v15601_v33 }
 0x5b2   : > { %v7893_v4 = vpop.f32.mrb[224].mxu0  ;;  %v15614_v23 = vpop.xlane.xlu0 %6011 }
 0x5b3   : > { %v9087_v22 = vmul.f32 %v12573_v45, %v7893_v4  ;;  %v12071_v44 = vpop.f32.mrb[225].mxu0  ;;  %v7939_v40 = vpop.f32.mrb[248].mxu1 }
 0x5b4   : > { %v7896_v36 = vpop.f32.mrb[226].mxu0  ;;  %v9088_v57 = vmul.f32 %v12575_v62, %v7939_v40  ;;  %v12077_v18 = vpop.f32.mrb[249].mxu1 }
 0x5b5   : > { %v12072_v56 = vpop.f32.mrb[227].mxu0  ;;  %9205 = vrot.lane.b32.xlu0 %v9087_v22, %s12825_s26  ;;  %v7942_v13 = vpop.f32.mrb[250].mxu1 }
 0x5b6   : > { %v12078_v38 = vpop.f32.mrb[251].mxu1  ;;  %9207 = vrot.lane.b32.xlu1 %v9088_v57, %s12825_s26  ;;  %v15616_v2 = vpop.xlane.xlu1 %6020  ;;  %v12346_v56 = vld [vmem:[%s16357_s6 + $0x10] sm:$0xff]  }
 0x5b7   : > { %v15628_v21 = vpop.xlane.xlu0 %6017  ;;  %v12583_v51 = vpop.eup %12582  ;;  %12227 = vmatprep.subr.bf16.mxu0 %v12346_v56  ;;  %12614 = vrcp.f32 %v15606_v34 }
 0x5b8   : > { %v12585_v13 = vpop.eup %12584  ;;  %12228 = vmatpush3.bf16.msra.mxu0 %v12346_v56  ;;  %12616 = vrcp.f32 %v15517_v60 }
 0x5ba   : > { %v7985_v41 = vpop.f32.mrb[228].mxu0  ;;  %v15630_v9 = vpop.xlane.xlu1 %6026 }
 0x5bb   : > { %v9089_v1 = vmul.f32 %v12577_v54, %v7985_v41  ;;  %v12083_v10 = vpop.f32.mrb[229].mxu0  ;;  %v8031_v47 = vpop.f32.mrb[252].mxu1 }
 0x5bc   : > { %v7988_v63 = vpop.f32.mrb[230].mxu0  ;;  %v9090_v17 = vmul.f32 %v12579_v5, %v8031_v47  ;;  %v12089_v28 = vpop.f32.mrb[253].mxu1 }
 0x5bd   : > { %v12084_v3 = vpop.f32.mrb[231].mxu0  ;;  %9209 = vrot.lane.b32.xlu0 %v9089_v1, %s12825_s26  ;;  %v8034_v43 = vpop.f32.mrb[254].mxu1  ;;  %v12347_v63 = vld [vmem:[%s16357_s6 + $0x18] sm:$0xff]  }
 0x5be   : > { %v12090_v50 = vpop.f32.mrb[255].mxu1  ;;  %9211 = vrot.lane.b32.xlu1 %v9090_v17, %s12825_s26  ;;  %v15635_v18 = vpop.xlane.xlu0 %6023  ;;  %12229 = vmatprep.subr.bf16.mxu0 %v12347_v63 }
 0x5bf   : > { %v15641_v38 = vpop.xlane.xlu1 %6032  ;;  %v12587_v41 = vpop.eup %12586  ;;  %12230 = vmatpush3.bf16.msra.mxu0 %v12347_v63  ;;  %v12348_v50 = vld [vmem:[%s16357_s6 + $0x20] sm:$0xff]   ;;  %12618 = vrcp.f32 %v15608_v19 }
 0x5c0   : > { %v12589_v39 = vpop.eup %12588  ;;  %12231 = vmatprep.subr.bf16.mxu0 %v12348_v50  ;;  %12620 = vrcp.f32 %v15614_v23 }
 0x5c1   : > { %v12591_v32 = vpop.eup %12590  ;;  %v9050_v30 = vmul.f32 %v12589_v39, %v15054_v59  ;;  %12622 = vrcp.f32 %v15616_v2 }
 0x5c2   : > { %v8077_v31 = vpop.f32.mrb[232].mxu0  ;;  %v15649_v3 = vpop.xlane.xlu0 %6029 }
 0x5c3   : > { %v9091_v45 = vmul.f32 %v12581_v12, %v8077_v31  ;;  %v12095_v4 = vpop.f32.mrb[233].mxu0  ;;  %v8123_v22 = vpop.f32.mrb[0].mxu1  ;;  %12232 = vmatpush3.bf16.msra.mxu0 %v12348_v50 }
 0x5c4   : > { %v8080_v7 = vpop.f32.mrb[234].mxu0  ;;  %v9092_v44 = vmul.f32 %v12583_v51, %v8123_v22  ;;  %v12101_v62 = vpop.f32.mrb[1].mxu1  ;;  %v12349_v51 = vld [vmem:[%s16357_s6 + $0x28] sm:$0xff]  }
 0x5c5   : > { %v12096_v40 = vpop.f32.mrb[235].mxu0  ;;  %9213 = vrot.lane.b32.xlu0 %v9091_v45, %s12825_s26  ;;  %v8126_v36 = vpop.f32.mrb[2].mxu1  ;;  %12233 = vmatprep.subr.bf16.mxu0 %v12349_v51 }
 0x5c6   : > { %v12102_v57 = vpop.f32.mrb[3].mxu1  ;;  %9215 = vrot.lane.b32.xlu1 %v9092_v44, %s12825_s26  ;;  %v15661_v12 = vpop.xlane.xlu0 %6035 }
 0x5c7   : > { %v12593_v45 = vpop.eup %12592  ;;  %12234 = vmatpush3.bf16.msra.mxu0 %v12349_v51  ;;  %12624 = vrcp.f32 %v15628_v21 }
 0x5c8   : > { %v12595_v22 = vpop.eup %12594  ;;  %v9051_v36 = vmul.f32 %v12593_v45, %v15069_v61  ;;  %12626 = vrcp.f32 %v15630_v9 }
 0x5c9   : > { %v12597_v57 = vpop.eup %12596  ;;  %12628 = vrcp.f32 %v15635_v18 }
 0x5ca   : > { %v8169_v54 = vpop.f32.mrb[236].mxu0 }
 0x5cb   : > { %v9093_v27 = vmul.f32 %v12585_v13, %v8169_v54  ;;  %v12107_v1 = vpop.f32.mrb[237].mxu0  ;;  %v8215_v10 = vpop.f32.mrb[4].mxu1 }
 0x5cc   : > { %v9094_v5 = vmul.f32 %v12587_v41, %v8215_v10  ;;  %v8172_v47 = vpop.f32.mrb[238].mxu0  ;;  %v12113_v48 = vpop.f32.mrb[5].mxu1 }
 0x5cd   : > { %v12108_v17 = vpop.f32.mrb[239].mxu0  ;;  %v8218_v28 = vpop.f32.mrb[6].mxu1  ;;  %9217 = vrot.lane.b32.xlu0 %v9093_v27, %s12825_s26  ;;  %v12350_v27 = vld [vmem:[%s16357_s6 + $0x30] sm:$0xff]  }
 0x5ce   : > { %v12114_v20 = vpop.f32.mrb[7].mxu1  ;;  %9219 = vrot.lane.b32.xlu1 %v9094_v5, %s12825_s26  ;;  %v12599_v54 = vpop.eup %12598  ;;  %v9052_v5 = vmul.f32 %v12597_v57, %v15086_v58  ;;  %12235 = vmatprep.subr.bf16.mxu0 %v12350_v27  ;;  %v12351_v58 = vld [vmem:[%s16357_s6 + $0x38] sm:$0xff]   ;;  %12630 = vrcp.f32 %v15641_v38 }
 0x5cf   : > { %v12601_v6 = vpop.eup %12600  ;;  %v15681_v1 = vpop.permute.xlu0 %9129  ;;  %12236 = vmatpush3.bf16.msra.mxu0 %v12350_v27  ;;  %v9053_v39 = vmul.f32 %v12599_v54, %v15102_v16  ;;  %12632 = vrcp.f32 %v15649_v3 }
 0x5d0   : > { %v12603_v63 = vpop.eup %12602  ;;  %12237 = vmatprep.subr.bf16.mxu0 %v12351_v58 }
 0x5d1   : > { %v12605_v16 = vpop.eup %12604 }
 0x5d2   : > { %v15655_v43 = vpop.xlane.xlu1 %6038 }
 0x5d3   : > { %v8307_v15 = vpop.f32.mrb[8].mxu1  ;;  %12238 = vmatpush3.bf16.msra.mxu0 %v12351_v58  ;;  %12634 = vrcp.f32 %v15655_v43 }
 0x5d4   : > { %v9096_v31 = vmul.f32 %v12591_v32, %v8307_v15  ;;  %v12125_v0 = vpop.f32.mrb[9].mxu1  ;;  %12636 = vrcp.f32 %v15661_v12 }
 0x5d5   : > { %v8310_v4 = vpop.f32.mrb[10].mxu1 }
 0x5d6   : > { %v9132_v26 = vpop.permute.xlu1 %9131  ;;  %v12126_v52 = vpop.f32.mrb[11].mxu1  ;;  %9223 = vrot.lane.b32.xlu1 %v9096_v31, %s12825_s26 }
 0x5d7   : > { %v15668_v7 = vsel %vm884_vm7, %v9050_v30, %v9132_v26  ;;  %v8261_v44 = vpop.f32.mrb[240].mxu0  ;;  %v12607_v4 = vpop.eup %12606 }
 0x5d8   : > { %v9095_v62 = vmul.f32 %v12595_v22, %v8261_v44  ;;  %v12119_v40 = vpop.f32.mrb[241].mxu0  ;;  %v12609_v52 = vpop.eup %12608 }
 0x5d9   : > { %v8264_v59 = vpop.f32.mrb[242].mxu0 }
 0x5da   : > { %v9134_v56 = vpop.permute.xlu1 %9133  ;;  %v12120_v13 = vpop.f32.mrb[243].mxu0  ;;  %9221 = vrot.lane.b32.xlu0 %v9095_v62, %s12825_s26  ;;  %v16582_v62 = vld [vmem:[#allocation62_spill] sm:$0xff]  ;;  %s16292_s26 = scalar_lea.hbm %s16359_s8, %s11182_s21 }
 0x5db   : > { %v15676_v41 = vsel %vm884_vm7, %v9051_v36, %v9134_v56  ;;  %v8399_v61 = vpop.f32.mrb[12].mxu1  ;;  %v9055_v40 = vmul.f32 %v12605_v16, %v16582_v62  ;;  %v12611_v13 = vpop.eup %12610 }
 0x5dc   : > { %v9098_v14 = vmul.f32 %v12601_v6, %v8399_v61  ;;  %v12137_v10 = vpop.f32.mrb[13].mxu1  ;;  %v12613_v54 = vpop.eup %12612 }
 0x5dd   : > { %v8402_v47 = vpop.f32.mrb[14].mxu1  ;;  %v12615_v10 = vpop.eup %12614 }
 0x5de   : > { %v9136_v48 = vpop.permute.xlu1 %9135  ;;  %v12138_v28 = vpop.f32.mrb[15].mxu1  ;;  %9259 = vrot.lane.b32.xlu1 %v9098_v14, %s12824_s17  ;;  %v16583_v47 = vld [vmem:[#allocation63_spill] sm:$0xff] }
 0x5df   : > { %v15686_v17 = vsel %vm884_vm7, %v9052_v5, %v9136_v48  ;;  %v8353_v20 = vpop.f32.mrb[244].mxu0  ;;  %v9057_v48 = vmul.f32 %v12611_v13, %v16583_v47 }
 0x5e0   : > { %v9097_v50 = vmul.f32 %v12603_v63, %v8353_v20  ;;  %v9138_v55 = vpop.permute.xlu0 %9137  ;;  %v12131_v32 = vpop.f32.mrb[245].mxu0 }
 0x5e1   : > { %v15695_v15 = vsel %vm884_vm7, %v9053_v39, %v9138_v55  ;;  %v8356_v31 = vpop.f32.mrb[246].mxu0 }
 0x5e2   : > { %v9140_v0 = vpop.permute.xlu1 %9139  ;;  %v12132_v30 = vpop.f32.mrb[247].mxu0  ;;  %9257 = vrot.lane.b32.xlu0 %v9097_v50, %s12824_s17 }
 0x5e3   : > { %v15701_v45 = vsel %vm884_vm7, %v15536_v49, %v9140_v0  ;;  %v8491_v26 = vpop.f32.mrb[16].mxu1  ;;  %v12617_v50 = vpop.eup %12616 }
 0x5e4   : > { %v9100_v35 = vmul.f32 %v12607_v4, %v8491_v26  ;;  %v12149_v51 = vpop.f32.mrb[17].mxu1  ;;  %v12619_v55 = vpop.eup %12618  ;;  %v9059_v26 = vmul.f32 %v12617_v50, %v15205_v53 }
 0x5e5   : > { %v8494_v22 = vpop.f32.mrb[18].mxu1  ;;  %v12621_v30 = vpop.eup %12620 }
 0x5e6   : > { %v12150_v33 = vpop.f32.mrb[19].mxu1  ;;  %9263 = vrot.lane.b32.xlu1 %v9100_v35, %s12824_s17 }
 0x5e7   : > { %v8445_v44 = vpop.f32.mrb[248].mxu0  ;;  %v9142_v36 = vpop.permute.xlu0 %9141 }
 0x5e8   : > { %v9099_v59 = vmul.f32 %v12609_v52, %v8445_v44  ;;  %v12143_v57 = vpop.f32.mrb[249].mxu0  ;;  %v15708_v49 = vsel %vm884_vm7, %v9055_v40, %v9142_v36  ;;  %v12623_v44 = vpop.eup %12622 }
 0x5e9   : > { %v8448_v56 = vpop.f32.mrb[250].mxu0  ;;  %v12625_v9 = vpop.eup %12624 }
 0x5ea   : > { %v12144_v34 = vpop.f32.mrb[251].mxu0  ;;  %9261 = vrot.lane.b32.xlu0 %v9099_v59, %s12824_s17 }
 0x5eb   : > { %v8583_v27 = vpop.f32.mrb[20].mxu1 }
 0x5ec   : > { %v9102_v6 = vmul.f32 %v12613_v54, %v8583_v27  ;;  %v12161_v61 = vpop.f32.mrb[21].mxu1 }
 0x5ed   : > { %v8586_v14 = vpop.f32.mrb[22].mxu1 }
 0x5ee   : > { %v12162_v5 = vpop.f32.mrb[23].mxu1  ;;  %9267 = vrot.lane.b32.xlu1 %v9102_v6, %s12824_s17 }
 0x5ef   : > { %v8537_v60 = vpop.f32.mrb[252].mxu0 }
 0x5f0   : > { %v9101_v63 = vmul.f32 %v12615_v10, %v8537_v60  ;;  %v9146_v19 = vpop.permute.xlu0 %9145  ;;  %v12155_v28 = vpop.f32.mrb[253].mxu0 }
 0x5f1   : > { %v15716_v20 = vsel %vm884_vm7, %v9057_v48, %v9146_v19  ;;  %v8540_v39 = vpop.f32.mrb[254].mxu0  ;;  %v12627_v10 = vpop.eup %12626 }
 0x5f2   : > { %v12156_v23 = vpop.f32.mrb[255].mxu0  ;;  %9265 = vrot.lane.b32.xlu0 %v9101_v63, %s12824_s17  ;;  %v12629_v38 = vpop.eup %12628 }
 0x5f3   : > { %v8675_v32 = vpop.f32.mrb[24].mxu1 }
 0x5f4   : > { %v9104_v58 = vmul.f32 %v12619_v55, %v8675_v32  ;;  %v12173_v31 = vpop.f32.mrb[25].mxu1 }
 0x5f5   : > { %v8678_v0 = vpop.f32.mrb[26].mxu1 }
 0x5f6   : > { %v12174_v16 = vpop.f32.mrb[27].mxu1  ;;  %9271 = vrot.lane.b32.xlu1 %v9104_v58, %s12824_s17  ;;  %v12631_v58 = vpop.eup %12630 }
 0x5f7   : > { %v8629_v4 = vpop.f32.mrb[0].mxu0  ;;  %v12633_v16 = vpop.eup %12632 }
 0x5f8   : > { %v9103_v35 = vmul.f32 %v12621_v30, %v8629_v4  ;;  %v9150_v2 = vpop.permute.xlu0 %9149  ;;  %v12167_v51 = vpop.f32.mrb[1].mxu0 }
 0x5f9   : > { %v15724_v22 = vsel %vm884_vm7, %v9059_v26, %v9150_v2  ;;  %v8632_v52 = vpop.f32.mrb[2].mxu0 }
 0x5fa   : > { %v12168_v33 = vpop.f32.mrb[3].mxu0  ;;  %9269 = vrot.lane.b32.xlu0 %v9103_v35, %s12824_s17  ;;  %v12635_v52 = vpop.eup %12634 }
 0x5fb   : > { %v9144_v21 = vpop.permute.xlu1 %9143  ;;  %v8767_v40 = vpop.f32.mrb[28].mxu1 }
 0x5fc   : > { %v15730_v62 = vsel %vm884_vm7, %v15539_v37, %v9144_v21  ;;  %v9106_v53 = vmul.f32 %v12623_v44, %v8767_v40  ;;  %v12185_v59 = vpop.f32.mrb[29].mxu1  ;;  %v12637_v44 = vpop.eup %12636 }
 0x5fd   : > { %v8770_v36 = vpop.f32.mrb[30].mxu1 }
 0x5fe   : > { %v12186_v57 = vpop.f32.mrb[31].mxu1  ;;  %9275 = vrot.lane.b32.xlu1 %v9106_v53, %s12824_s17 }
 0x5ff   : > { %v8721_v13 = vpop.f32.mrb[4].mxu0 }
 0x600   : > { %v9148_v56 = vpop.permute.xlu1 %9147  ;;  %v9105_v27 = vmul.f32 %v12625_v9, %v8721_v13  ;;  %v12179_v6 = vpop.f32.mrb[5].mxu0  ;;  %v15772_v9 = vld [vmem:[%s16356_s5] ss:$0 sm:$0xff]  ;;  %v16584_v13 = vld [vmem:[#allocation25_spill] sm:$0xff] }
 0x601   : > { %v15736_v34 = vsel %vm884_vm7, %v15543_v25, %v9148_v56  ;;  %v9154_v54 = vpop.permute.xlu0 %9153  ;;  %v8724_v18 = vpop.f32.mrb[6].mxu0  ;;  %v16585_v6 = vld [vmem:[#allocation24_spill] sm:$0xff] }
 0x602   : > { %v15740_v37 = vsel %vm884_vm7, %v15527_v42, %v9154_v54  ;;  %v12180_v61 = vpop.f32.mrb[7].mxu0  ;;  %9273 = vrot.lane.b32.xlu0 %v9105_v27, %s12824_s17  ;;  %v1454_v54 = vadd.f32 %v15772_v9, %v16584_v13  ;;  %v1453_v18 = vadd.f32 %v15772_v9, %v16585_v6 }
 0x603   : > { %v8859_v5 = vpop.f32.mrb[32].mxu1 }
 0x604   : > { %v9152_v14 = vpop.permute.xlu1 %9151  ;;  %v9108_v60 = vmul.f32 %v12627_v10, %v8859_v5  ;;  %v12197_v47 = vpop.f32.mrb[33].mxu1  ;;  %v10781_v61 = vmul.f32 -1.442695, %v1454_v54  ;;  %v10780_v5 = vmul.f32 -1.442695, %v1453_v18  ;;  %v16592_v54 = vld [vmem:[#allocation36_spill] sm:$0xff] }
 0x605   : > { %v15746_v25 = vsel %vm884_vm7, %v15548_v8, %v9152_v14  ;;  %v8862_v42 = vpop.f32.mrb[34].mxu1  ;;  %v1462_v6 = vadd.f32 %v15772_v9, %v16592_v54 }
 0x606   : > { %v12198_v48 = vpop.f32.mrb[35].mxu1  ;;  %9279 = vrot.lane.b32.xlu1 %v9108_v60, %s12824_s17  ;;  %12638 = vpow2.f32 %v10781_v61  ;;  %v16586_v60 = vld [vmem:[#allocation27_spill] sm:$0xff] }
 0x607   : > { %v8813_v28 = vpop.f32.mrb[8].mxu0  ;;  %v1456_v47 = vadd.f32 %v15772_v9, %v16586_v60  ;;  %v16587_v48 = vld [vmem:[#allocation26_spill] sm:$0xff]  ;;  %12640 = vpow2.f32 %v10780_v5  ;;  %v16593_v5 = vld [vmem:[#allocation31_spill] sm:$0xff] }
 0x608   : > { %v9156_v63 = vpop.permute.xlu1 %9155  ;;  %v9107_v23 = vmul.f32 %v12629_v38, %v8813_v28  ;;  %v12191_v3 = vpop.f32.mrb[9].mxu0 }
 0x609   : > { %v15752_v19 = vsel %vm884_vm7, %v15552_v24, %v9156_v63  ;;  %v9158_v39 = vpop.permute.xlu0 %9157  ;;  %v8816_v50 = vpop.f32.mrb[10].mxu0  ;;  %v1455_v63 = vadd.f32 %v15772_v9, %v16587_v48  ;;  %v10783_v28 = vmul.f32 -1.442695, %v1456_v47 }
 0x60a   : > { %v15756_v8 = vsel %vm884_vm7, %v15531_v11, %v9158_v39  ;;  %v12192_v55 = vpop.f32.mrb[11].mxu0  ;;  %9277 = vrot.lane.b32.xlu0 %v9107_v23, %s12824_s17  ;;  %v16588_v50 = vld [vmem:[#allocation30_spill] sm:$0xff] }
 0x60b   : > { %v8951_v31 = vpop.f32.mrb[36].mxu1  ;;  %v10782_v23 = vmul.f32 -1.442695, %v1455_v63  ;;  %12642 = vpow2.f32 %v10783_v28  ;;  %v1458_v55 = vadd.f32 %v15772_v9, %v16588_v50  ;;  %v16594_v50 = vld [vmem:[#allocation35_spill] sm:$0xff] }
 0x60c   : > { %v9160_v32 = vpop.permute.xlu1 %9159  ;;  %v9110_v0 = vmul.f32 %v12631_v58, %v8951_v31  ;;  %v12209_v30 = vpop.f32.mrb[37].mxu1  ;;  %v16589_v31 = vld [vmem:[#allocation29_spill] sm:$0xff] }
 0x60d   : > { %v15762_v24 = vsel %vm884_vm7, %v15557_v46, %v9160_v32  ;;  %v8954_v11 = vpop.f32.mrb[38].mxu1  ;;  %12644 = vpow2.f32 %v10782_v23 }
 0x60e   : > { %v12210_v4 = vpop.f32.mrb[39].mxu1  ;;  %9283 = vrot.lane.b32.xlu1 %v9110_v0, %s12824_s17  ;;  %v1457_v0 = vadd.f32 %v15772_v9, %v16589_v31  ;;  %v10785_v11 = vmul.f32 -1.442695, %v1458_v55  ;;  %12646 = vrcp.f32 %v15502_v29  ;;  %v1461_v55 = vadd.f32 %v15772_v9, %v16594_v50 }
 0x60f   : > { %v8905_v43 = vpop.f32.mrb[12].mxu0  ;;  %v15778_v14 = vpop.permute.xlu0 %9193 }
 0x610   : > { %v9109_v26 = vmul.f32 %v12633_v16, %v8905_v43  ;;  %v12203_v35 = vpop.f32.mrb[13].mxu0  ;;  %v9196_v27 = vpop.permute.xlu1 %9195  ;;  %12648 = vpow2.f32 %v10785_v11 }
 0x611   : > { %v8908_v2 = vpop.f32.mrb[14].mxu0  ;;  %v12639_v58 = vpop.eup %12638  ;;  %v9323_v47 = vsel %vm9321_vm11, %v15668_v7, %v9196_v27 }
 0x612   : > { %9281 = vrot.lane.b32.xlu0 %v9109_v26, %s12824_s17  ;;  %v12204_v51 = vpop.f32.mrb[15].mxu0  ;;  %v12641_v16 = vpop.eup %12640  ;;  %v1518_v4 = vadd.f32 1.0, %v12639_v58  ;;  %v10784_v26 = vmul.f32 -1.442695, %v1457_v0  ;;  %v10789_v58 = vmul.f32 -1.442695, %v1462_v6 }
 0x613   : > { %v1517_v2 = vadd.f32 1.0, %v12641_v16  ;;  %v16590_v51 = vld [vmem:[#allocation33_spill] sm:$0xff] }
 0x614   : > { %12650 = vrcp.f32 %v1518_v4 }
 0x615   : > { %v9043_v46 = vpop.f32.mrb[40].mxu1  ;;  %12652 = vpow2.f32 %v10784_v26 }
 0x616   : > { %v9112_v33 = vmul.f32 %v12635_v52, %v9043_v46  ;;  %v12221_v21 = vpop.f32.mrb[41].mxu1  ;;  %v15780_v10 = vpop.permute.xlu1 %9199  ;;  %v1460_v52 = vadd.f32 %v15772_v9, %v16590_v51  ;;  %12654 = vrcp.f32 %v1517_v2  ;;  %v16595_v2 = vld [vmem:[#allocation39_spill] sm:$0xff] }
 0x617   : > { %v9046_v12 = vpop.f32.mrb[42].mxu1  ;;  %v8997_v40 = vpop.f32.mrb[16].mxu0  ;;  %v16591_v21 = vld [vmem:[#allocation32_spill] sm:$0xff]  ;;  %v1464_v51 = vadd.f32 %v15772_v9, %v16595_v2 }
 0x618   : > { %v9111_v53 = vmul.f32 %v12637_v44, %v8997_v40  ;;  %v12222_v59 = vpop.f32.mrb[43].mxu1  ;;  %9287 = vrot.lane.b32.xlu1 %v9112_v33, %s12824_s17  ;;  %v12215_v36 = vpop.f32.mrb[17].mxu0  ;;  %v1459_v44 = vadd.f32 %v15772_v9, %v16591_v21  ;;  %v10787_v40 = vmul.f32 -1.442695, %v1460_v52 }
 0x619   : > { %v9000_v57 = vpop.f32.mrb[18].mxu0  ;;  %v15784_v42 = vpop.permute.xlu0 %9197 }
 0x61a   : > { %9285 = vrot.lane.b32.xlu0 %v9111_v53, %s12824_s17  ;;  %v12216_v56 = vpop.f32.mrb[19].mxu0  ;;  %v12643_v33 = vpop.eup %12642  ;;  %v10786_v36 = vmul.f32 -1.442695, %v1459_v44  ;;  %12656 = vpow2.f32 %v10787_v40  ;;  %v10791_v40 = vmul.f32 -1.442695, %v1464_v51  ;;  %s12740_s17 = scalar_lea.vmem %s12739_s22, 4096 }
 0x61b   : > { %v12645_v29 = vpop.eup %12644  ;;  %v1520_v53 = vadd.f32 1.0, %v12643_v33  ;;  %v10788_v33 = vmul.f32 -1.442695, %v1461_v55  ;;  %p12742_p2 = scmp.lt.s32.totalorder %s12740_s17, %s12734_s23 }
 0x61c   : > { %v12647_v56 = vpop.eup %12646  ;;  %v1519_v13 = vadd.f32 1.0, %v12645_v29 }
 0x61d   : > { %12658 = vrcp.f32 %v1520_v53  ;;  %v12649_v61 = vpop.eup %12648  ;;  %v9049_v60 = vmul.f32 %v12647_v56, %v16593_v5  ;;  %v16596_v56 = vld [vmem:[#allocation38_spill] sm:$0xff]  ;;  %v9324_v5 = vsel %vm9321_vm11, %v15676_v41, %v15784_v42  ;;  %p12743_p5 = por %p12742_p2, %p12741_p13 }
 0x61e   : > { %v15788_v38 = vpop.permute.xlu1 %9203  ;;  %12660 = vpow2.f32 %v10786_v36  ;;  %v12651_v63 = vpop.eup %12650  ;;  %v1522_v11 = vadd.f32 1.0, %v12649_v61  ;;  %v16598_v41 = vld [vmem:[#allocation42_spill] sm:$0xff] }
 0x61f   : > { %v15790_v39 = vpop.permute.xlu0 %9201  ;;  %12662 = vrcp.f32 %v1519_v13  ;;  %v12653_v23 = vpop.eup %12652  ;;  %v9305_v31 = vsel %vm884_vm7, %v9049_v60, %v15681_v1  ;;  %v9325_v1 = vsel %vm9321_vm11, %v15686_v17, %v15780_v10  ;;  %v1463_v13 = vadd.f32 %v15772_v9, %v16596_v56  ;;  %p12744_p4 = pnand %p12743_p5, %p12737_p6 }
 0x620   : > { %v9322_v16 = vsel %vm9321_vm11, %v9305_v31, %v15778_v14  ;;  %v12655_v7 = vpop.eup %12654  ;;  %v1521_v26 = vadd.f32 1.0, %v12653_v23  ;;  %12664 = vpow2.f32 %v10789_v58  ;;  %v9327_v55 = vsel %vm9321_vm11, %v15701_v45, %v15788_v38 }
 0x621   : > { %12666 = vrcp.f32 %v1522_v11  ;;  %v1465_v42 = vadd.f32 %v15772_v9, %v16598_v41 }
 0x622   : > { %12668 = vrcp.f32 %v1521_v26 }
 0x623   : > { %12670 = vpow2.f32 %v10788_v33  ;;  %v10792_v2 = vmul.f32 -1.442695, %v1465_v42 }
 0x624   : > { %v12657_v44 = vpop.eup %12656  ;;  %12672 = vpow2.f32 %v10791_v40 }
 0x625   : > { %v1524_v61 = vadd.f32 1.0, %v12657_v44 }
 0x627   : > { %v15796_v32 = vpop.permute.xlu0 %9205  ;;  %v12659_v14 = vpop.eup %12658  ;;  %12674 = vrcp.f32 %v1524_v61 }
 0x628   : > { %v15792_v3 = vpop.permute.xlu1 %9207  ;;  %v12661_v36 = vpop.eup %12660 }
 0x629   : > { %v12663_v6 = vpop.eup %12662  ;;  %v1523_v60 = vadd.f32 1.0, %v12661_v36 }
 0x62a   : > { %v12665_v50 = vpop.eup %12664 }
 0x62b   : > { %v12667_v31 = vpop.eup %12666  ;;  %12676 = vrcp.f32 %v1523_v60 }
 0x62f   : > { %v15803_v43 = vpop.permute.xlu0 %9209 }
 0x630   : > { %v15800_v30 = vpop.permute.xlu1 %9211 }
 0x637   : > { %v15809_v46 = vpop.permute.xlu0 %9213 }
 0x638   : > { %v15805_v35 = vpop.permute.xlu1 %9215 }
 0x639   : > { %v9333_v42 = vsel %vm9321_vm11, %v15746_v25, %v15805_v35 }
 0x63f   : > { %v15815_v59 = vpop.permute.xlu0 %9217 }
 0x640   : > { %v15813_v12 = vpop.permute.xlu1 %9219 }
 0x641   : > { %v9335_v35 = vsel %vm9321_vm11, %v15752_v19, %v15813_v12 }
 0x648   : > { %v15817_v57 = vpop.permute.xlu1 %9223 }
 0x649   : > { %v9337_v19 = vsel %vm9321_vm11, %v15762_v24, %v15817_v57  ;;  %v15905_v24 = vld [vmem:[%s16358_s7] ss:$0 sm:$0xff] }
 0x64c   : > { %v15821_v18 = vpop.permute.xlu0 %9221 }
 0x650   : > { %v9260_v48 = vpop.permute.xlu1 %9259 }
 0x651   : > { %v9340_v28 = vsel %vm9338_vm12, %v9323_v47, %v9260_v48  ;;  %v10790_v48 = vmul.f32 -1.442695, %v1463_v13 }
 0x652   : > { %v9356_v0 = vmul.f32 %v12651_v63, %v9340_v28  ;;  %v16597_v63 = vld [vmem:[#allocation44_spill] sm:$0xff] }
 0x653   : > { %v1466_v28 = vadd.f32 %v15772_v9, %v16597_v63  ;;  %12678 = vpow2.f32 %v10790_v48 }
 0x654   : > { %v9258_v4 = vpop.permute.xlu0 %9257 }
 0x655   : > { %v9339_v27 = vsel %vm9338_vm12, %v9322_v16, %v9258_v4  ;;  %v10793_v11 = vmul.f32 -1.442695, %v1466_v28  ;;  %v12669_v4 = vpop.eup %12668 }
 0x656   : > { %v9355_v52 = vmul.f32 %v12655_v7, %v9339_v27  ;;  %v1526_v7 = vadd.f32 1.0, %v12665_v50  ;;  %v9326_v27 = vsel %vm9321_vm11, %v15695_v15, %v15790_v39  ;;  %v12671_v45 = vpop.eup %12670  ;;  %v16600_v39 = vld [vmem:[#allocation47_spill] sm:$0xff]  ;;  %v9330_v50 = vsel %vm9321_vm11, %v15716_v20, %v15803_v43 }
 0x657   : > { %12680 = vpow2.f32 %v10793_v11  ;;  %v1525_v33 = vadd.f32 1.0, %v12671_v45  ;;  %v1467_v40 = vadd.f32 %v15772_v9, %v16600_v39 }
 0x658   : > { %v9371_v21 = vpack.c.bf16 %v9356_v0, %v9355_v52  ;;  %v9264_v29 = vpop.permute.xlu1 %9263  ;;  %v12673_v52 = vpop.eup %12672  ;;  %12682 = vrcp.f32 %v1526_v7 }
 0x659   : > { %v9342_v53 = vsel %vm9338_vm12, %v9325_v1, %v9264_v29  ;;  %v9329_v29 = vsel %vm9321_vm11, %v15730_v62, %v15792_v3  ;;  %v12675_v15 = vpop.eup %12674  ;;  %12684 = vpow2.f32 %v10792_v2  ;;  %v1528_v36 = vadd.f32 1.0, %v12673_v52 }
 0x65a   : > { %12239 = vmatprep.mubr.bf16.mxu0 %v9371_v21  ;;  %v9358_v54 = vmul.f32 %v12659_v14, %v9342_v53  ;;  %v16599_v21 = vld [vmem:[#allocation49_spill] sm:$0xff]  ;;  %v12677_v13 = vpop.eup %12676  ;;  %12686 = vrcp.f32 %v1525_v33 }
 0x65b   : > { %v1468_v44 = vadd.f32 %v15772_v9, %v16599_v21  ;;  %12688 = vrcp.f32 %v1528_v36 }
 0x65c   : > { %v9262_v17 = vpop.permute.xlu0 %9261 }
 0x65d   : > { %v9341_v10 = vsel %vm9338_vm12, %v9324_v5, %v9262_v17  ;;  %v12679_v62 = vpop.eup %12678  ;;  %v10794_v5 = vmul.f32 -1.442695, %v1467_v40 }
 0x65e   : > { %v9357_v47 = vmul.f32 %v12663_v6, %v9341_v10  ;;  %v9328_v6 = vsel %vm9321_vm11, %v15708_v49, %v15796_v32  ;;  %v1527_v9 = vadd.f32 1.0, %v12679_v62 }
 0x660   : > { %v9372_v23 = vpack.c.bf16 %v9358_v54, %v9357_v47  ;;  %v9268_v58 = vpop.permute.xlu1 %9267  ;;  %v10795_v54 = vmul.f32 -1.442695, %v1468_v44  ;;  %v9331_v47 = vsel %vm9321_vm11, %v15736_v34, %v15800_v30 }
 0x661   : > { %v9344_v0 = vsel %vm9338_vm12, %v9327_v55, %v9268_v58  ;;  %v12681_v60 = vpop.eup %12680 }
 0x662   : > { %12240 = vmatmul.mubr.bf16.vlgmr.msra.gmra.mrb[20].mxu0 %v9372_v23  ;;  %v9360_v16 = vmul.f32 %v12667_v31, %v9344_v0  ;;  %12690 = vpow2.f32 %v10795_v54  ;;  %v12683_v63 = vpop.eup %12682  ;;  %v1530_v23 = vadd.f32 1.0, %v12681_v60 }
 0x663   : > { %12692 = vpow2.f32 %v10794_v5  ;;  %v12685_v28 = vpop.eup %12684 }
 0x664   : > { %v9266_v26 = vpop.permute.xlu0 %9265  ;;  %12694 = vrcp.f32 %v1527_v9  ;;  %v12687_v58 = vpop.eup %12686  ;;  %v1529_v41 = vadd.f32 1.0, %v12685_v28  ;;  %v16602_v9 = vld [vmem:[#allocation8_spill] sm:$0xff] }
 0x665   : > { %v9343_v38 = vsel %vm9338_vm12, %v9326_v27, %v9266_v26  ;;  %12696 = vrcp.f32 %v1530_v23  ;;  %v12689_v30 = vpop.eup %12688  ;;  %v9332_v27 = vsel %vm9321_vm11, %v15724_v22, %v15809_v46  ;;  %v9334_v22 = vsel %vm9321_vm11, %v15740_v37, %v15815_v59 }
 0x666   : > { %v9359_v51 = vmul.f32 %v12669_v4, %v9343_v38  ;;  %12698 = vrcp.f32 %v1529_v41 }
 0x668   : > { %v9373_v1 = vpack.c.bf16 %v9360_v16, %v9359_v51  ;;  %v9272_v14 = vpop.permute.xlu1 %9271 }
 0x669   : > { %v9346_v53 = vsel %vm9338_vm12, %v9329_v29, %v9272_v14 }
 0x66a   : > { %12243 = vmatprep.mubr.bf16.mxu0 %v9373_v1  ;;  %v9362_v56 = vmul.f32 %v12675_v15, %v9346_v53  ;;  %v9336_v53 = vsel %vm9321_vm11, %v15756_v8, %v15821_v18  ;;  %v16601_v18 = vld [vmem:[#allocation9_spill] sm:$0xff] }
 0x66c   : > { %v9270_v61 = vpop.permute.xlu0 %9269  ;;  %v12691_v16 = vpop.eup %12690 }
 0x66d   : > { %v9345_v3 = vsel %vm9338_vm12, %v9328_v6, %v9270_v61  ;;  %v12693_v20 = vpop.eup %12692  ;;  %v1532_v43 = vadd.f32 1.0, %v12691_v16 }
 0x66e   : > { %v9361_v17 = vmul.f32 %v12677_v13, %v9345_v3  ;;  %v12695_v45 = vpop.eup %12694  ;;  %v1531_v2 = vadd.f32 1.0, %v12693_v20 }
 0x66f   : > { %12700 = vrcp.f32 %v1532_v43  ;;  %v12697_v33 = vpop.eup %12696 }
 0x670   : > { %v9374_v10 = vpack.c.bf16 %v9362_v56, %v9361_v17  ;;  %v9276_v48 = vpop.permute.xlu1 %9275  ;;  %12702 = vrcp.f32 %v1531_v2  ;;  %v12699_v1 = vpop.eup %12698 }
 0x671   : > { %v9348_v49 = vsel %vm9338_vm12, %v9331_v47, %v9276_v48  ;;  %v16603_v48 = vld [vmem:[#allocation50_spill] sm:$0xff] }
 0x672   : > { %12244 = vmatmul.mubr.bf16.gmra.mrb[24].mxu0 %v9374_v10  ;;  %v9364_v32 = vmul.f32 %v12683_v63, %v9348_v49  ;;  %v16604_v49 = vld [vmem:[#allocation11_spill] sm:$0xff] }
 0x674   : > { %v9274_v55 = vpop.permute.xlu0 %9273 }
 0x675   : > { %v9347_v31 = vsel %vm9338_vm12, %v9330_v50, %v9274_v55  ;;  %v16605_v50 = vld [vmem:[#allocation10_spill] sm:$0xff] }
 0x676   : > { %v9363_v34 = vmul.f32 %v12687_v58, %v9347_v31 }
 0x678   : > { %v9280_v0 = vpop.permute.xlu1 %9279  ;;  %v9375_v11 = vpack.c.bf16 %v9364_v32, %v9363_v34 }
 0x679   : > { %v9350_v4 = vsel %vm9338_vm12, %v9333_v42, %v9280_v0  ;;  %v12701_v39 = vpop.eup %12700 }
 0x67a   : > { %v9366_v7 = vmul.f32 %v12689_v30, %v9350_v4  ;;  %12247 = vmatprep.mubr.bf16.mxu0 %v9375_v11  ;;  %v12703_v36 = vpop.eup %12702 }
 0x67c   : > { %v9278_v26 = vpop.permute.xlu0 %9277 }
 0x67d   : > { %v9349_v38 = vsel %vm9338_vm12, %v9332_v27, %v9278_v26 }
 0x67e   : > { %v9365_v25 = vmul.f32 %v12695_v45, %v9349_v38 }
 0x680   : > { %v9376_v51 = vpack.c.bf16 %v9366_v7, %v9365_v25  ;;  %v9284_v52 = vpop.permute.xlu1 %9283 }
 0x681   : > { %v9352_v21 = vsel %vm9338_vm12, %v9335_v35, %v9284_v52 }
 0x682   : > { %v9368_v44 = vmul.f32 %v12697_v33, %v9352_v21  ;;  %12248 = vmatmul.mubr.bf16.gmra.mrb[28].mxu0 %v9376_v51 }
 0x684   : > { %v9282_v46 = vpop.permute.xlu0 %9281 }
 0x685   : > { %v9351_v29 = vsel %vm9338_vm12, %v9334_v22, %v9282_v46 }
 0x686   : > { %v9367_v14 = vmul.f32 %v12699_v1, %v9351_v29 }
 0x688   : > { %v9377_v15 = vpack.c.bf16 %v9368_v44, %v9367_v14 }
 0x68a   : > { %v9288_v12 = vpop.permute.xlu1 %9287  ;;  %12251 = vmatprep.mubr.bf16.mxu0 %v9377_v15 }
 0x68b   : > { %v9354_v40 = vsel %vm9338_vm12, %v9337_v19, %v9288_v12 }
 0x68c   : > { %v9370_v37 = vmul.f32 %v12701_v39, %v9354_v40  ;;  %v9286_v59 = vpop.permute.xlu0 %9285 }
 0x68d   : > { %v9353_v56 = vsel %vm9338_vm12, %v9336_v53, %v9286_v59 }
 0x68e   : > { %v9369_v13 = vmul.f32 %v12703_v36, %v9353_v56 }
 0x690   : > { %v9378_v54 = vpack.c.bf16 %v9370_v37, %v9369_v13 }
 0x692   : > { %12252 = vmatmul.mubr.bf16.gmra.mrb[32].mxu0 %v9378_v54 }
 0x735   : > { %v12241_v57 = vpop.f32.mrb[20].mxu0 }
 0x736   : > { %v9493_v6 = vadd.f32 %v12241_v57, %v15905_v24  ;;  %v9484_v61 = vpop.f32.mrb[21].mxu0 }
 0x737   : > { %v9485_v62 = vadd.f32 %v15905_v24, %v9484_v61  ;;  %v12242_v8 = vpop.f32.mrb[22].mxu0 }
 0x738   : > { %v9549_v3 = vadd.f32 %v9493_v6, %v16601_v18  ;;  %v9496_v5 = vadd.f32 %v12242_v8, %v15905_v24  ;;  %v9487_v17 = vpop.f32.mrb[23].mxu0 }
 0x739   : > { %v9547_v10 = vadd.f32 %v9485_v62, %v16602_v9  ;;  %v9488_v60 = vadd.f32 %v15905_v24, %v9487_v17 }
 0x73a   : > { %v9697_v47 = vcombine.high %v9549_v3, %v9549_v3  ;;  %v9704_v63 = vrot.slane %v9549_v3, %v16603_v48  ;;  %v9550_v32 = vadd.f32 %v9496_v5, %v16604_v49  ;;  %v16606_v3 = vld [vmem:[#allocation14_spill] sm:$0xff] }
 0x73b   : > { %v9564_v28 = vcombine.high %v9547_v10, %v9547_v10  ;;  %v9571_v23 = vrot.slane %v9547_v10, %v16603_v48  ;;  %v9548_v55 = vadd.f32 %v9488_v60, %v16605_v50 }
 0x73c   : > { %v9711_v58 = vrot.slane %v9697_v47, %v16603_v48  ;;  %v9712_v31 = vcombine.high %v9704_v63, %v9704_v63  ;;  %v9720_v41 = vrot.slane %v9704_v63, %v16603_v48  ;;  %v9763_v34 = vcombine.high %v9550_v32, %v9550_v32 }
 0x73d   : > { %v9578_v30 = vrot.slane %v9564_v28, %v16603_v48  ;;  %v9579_v42 = vcombine.high %v9571_v23, %v9571_v23  ;;  %v9587_v0 = vrot.slane %v9571_v23, %v16603_v48  ;;  %v9770_v11 = vrot.slane %v9550_v32, %v16603_v48  ;;  %v16607_v23 = vld [vmem:[#allocation12_spill] sm:$0xff] }
 0x73e   : > { %v9713_v16 = vcombine.high %v9711_v58, %v9711_v58  ;;  %v9727_v4 = vrot.slane %v9711_v58, %v16603_v48  ;;  %v9734_v7 = vrot.slane %v9712_v31, %v16603_v48  ;;  %v9742_v20 = vcombine.high %v9720_v41, %v9720_v41  ;;  %9754 = vst.msk [vmem:[%s15926_s12 + $0x2] sm:$0x1] %vm9621_vm13, %v9720_v41  ;;  %v16609_v41 = vld [vmem:[#allocation13_spill] sm:$0xff] }
 0x73f   : > { %v9580_v43 = vcombine.high %v9578_v30, %v9578_v30  ;;  %v9594_v27 = vrot.slane %v9578_v30, %v16603_v48  ;;  %v9601_v26 = vrot.slane %v9579_v42, %v16603_v48  ;;  %v9609_v45 = vcombine.high %v9587_v0, %v9587_v0  ;;  %9622 = vst.msk [vmem:[%s15926_s12] sm:$0x1] %vm9621_vm13, %v9587_v0 }
 0x740   : > { %v9741_v38 = vrot.slane %v9713_v16, %v16603_v48  ;;  %v9743_v2 = vcombine.high %v9727_v4, %v9727_v4  ;;  %v9744_v25 = vcombine.high %v9734_v7, %v9734_v7  ;;  %9755 = vst.msk [vmem:[%s15926_s12 + $0x12] sm:$0x1] %vm9621_vm13, %v9734_v7  ;;  %9756 = vst.msk [vmem:[%s15926_s12 + $0x22] sm:$0x1] %vm9621_vm13, %v9742_v20 }
 0x741   : > { %9758 = vst.msk [vmem:[%s15926_s12 + $0x42] sm:$0x1] %vm9621_vm13, %v9727_v4  ;;  %v9777_v35 = vrot.slane %v9763_v34, %v16603_v48  ;;  %v9608_v51 = vrot.slane %v9580_v43, %v16603_v48  ;;  %v9610_v52 = vcombine.high %v9594_v27, %v9594_v27  ;;  %v9611_v33 = vcombine.high %v9601_v26, %v9601_v26 }
 0x742   : > { %9623 = vst.msk [vmem:[%s15926_s12 + $0x10] sm:$0x1] %vm9621_vm13, %v9601_v26  ;;  %9624 = vst.msk [vmem:[%s15926_s12 + $0x20] sm:$0x1] %vm9621_vm13, %v9609_v45  ;;  %v9778_v21 = vcombine.high %v9770_v11, %v9770_v11  ;;  %v9745_v44 = vcombine.high %v9741_v38, %v9741_v38  ;;  %v9786_v46 = vrot.slane %v9770_v11, %v16603_v48 }
 0x743   : > { %9626 = vst.msk [vmem:[%s15926_s12 + $0x40] sm:$0x1] %vm9621_vm13, %v9594_v27  ;;  %9757 = vst.msk [vmem:[%s15926_s12 + $0x32] sm:$0x1] %vm9621_vm13, %v9744_v25  ;;  %v9779_v22 = vcombine.high %v9777_v35, %v9777_v35  ;;  %v9793_v1 = vrot.slane %v9777_v35, %v16603_v48  ;;  %v9612_v29 = vcombine.high %v9608_v51, %v9608_v51 }
 0x744   : > { %9759 = vst.msk [vmem:[%s15926_s12 + $0x52] sm:$0x1] %vm9621_vm13, %v9741_v38  ;;  %9760 = vst.msk [vmem:[%s15926_s12 + $0x62] sm:$0x1] %vm9621_vm13, %v9743_v2  ;;  %v9800_v14 = vrot.slane %v9778_v21, %v16603_v48  ;;  %v9631_v15 = vcombine.high %v9548_v55, %v9548_v55  ;;  %v9638_v19 = vrot.slane %v9548_v55, %v16603_v48  ;;  %v16608_v55 = vld [vmem:[#allocation15_spill] sm:$0xff] }
 0x745   : > { %9625 = vst.msk [vmem:[%s15926_s12 + $0x30] sm:$0x1] %vm9621_vm13, %v9611_v33  ;;  %9627 = vst.msk [vmem:[%s15926_s12 + $0x50] sm:$0x1] %vm9621_vm13, %v9608_v51  ;;  %v9807_v12 = vrot.slane %v9779_v22, %v16603_v48  ;;  %v9808_v39 = vcombine.high %v9786_v46, %v9786_v46  ;;  %v9809_v40 = vcombine.high %v9793_v1, %v9793_v1  ;;  %v12245_v56 = vpop.f32.mrb[24].mxu0 }
 0x746   : > { %9628 = vst.msk [vmem:[%s15926_s12 + $0x60] sm:$0x1] %vm9621_vm13, %v9610_v52  ;;  %9761 = vst.msk [vmem:[%s15926_s12 + $0x72] sm:$0x1] %vm9621_vm13, %v9745_v44  ;;  %v9810_v53 = vcombine.high %v9800_v14, %v9800_v14  ;;  %v9645_v37 = vrot.slane %v9631_v15, %v16603_v48  ;;  %v9646_v59 = vcombine.high %v9638_v19, %v9638_v19  ;;  %v9500_v57 = vpop.f32.mrb[25].mxu0 }
 0x747   : > { %9820 = vst.msk [vmem:[%s15926_s12 + $0x3] sm:$0x1] %vm9621_vm13, %v9786_v46  ;;  %9824 = vst.msk [vmem:[%s15926_s12 + $0x43] sm:$0x1] %vm9621_vm13, %v9793_v1  ;;  %v9654_v36 = vrot.slane %v9638_v19, %v16603_v48  ;;  %v9811_v13 = vcombine.high %v9807_v12, %v9807_v12  ;;  %v9509_v54 = vadd.f32 %v12245_v56, %v15905_v24  ;;  %v12246_v18 = vpop.f32.mrb[26].mxu0 }
 0x748   : > { %9629 = vst.msk [vmem:[%s15926_s12 + $0x70] sm:$0x1] %vm9621_vm13, %v9612_v29  ;;  %9821 = vst.msk [vmem:[%s15926_s12 + $0x13] sm:$0x1] %vm9621_vm13, %v9800_v14  ;;  %v9647_v6 = vcombine.high %v9645_v37, %v9645_v37  ;;  %v9661_v61 = vrot.slane %v9645_v37, %v16603_v48  ;;  %v9668_v62 = vrot.slane %v9646_v59, %v16603_v48  ;;  %v9503_v10 = vpop.f32.mrb[27].mxu0 }
 0x749   : > { %9822 = vst.msk [vmem:[%s15926_s12 + $0x23] sm:$0x1] %vm9621_vm13, %v9808_v39  ;;  %9825 = vst.msk [vmem:[%s15926_s12 + $0x53] sm:$0x1] %vm9621_vm13, %v9807_v12  ;;  %v9676_v8 = vcombine.high %v9654_v36, %v9654_v36  ;;  %v9553_v5 = vadd.f32 %v9509_v54, %v16606_v3  ;;  %v9501_v17 = vadd.f32 %v15905_v24, %v9500_v57 }
 0x74a   : > { %9826 = vst.msk [vmem:[%s15926_s12 + $0x63] sm:$0x1] %vm9621_vm13, %v9809_v40  ;;  %9823 = vst.msk [vmem:[%s15926_s12 + $0x33] sm:$0x1] %vm9621_vm13, %v9810_v53  ;;  %v9512_v9 = vadd.f32 %v12246_v18, %v15905_v24  ;;  %v9675_v60 = vrot.slane %v9647_v6, %v16603_v48  ;;  %v9677_v47 = vcombine.high %v9661_v61, %v9661_v61 }
 0x74b   : > { %9688 = vst.msk [vmem:[%s15926_s12 + $0x1] sm:$0x1] %vm9621_vm13, %v9654_v36  ;;  %9827 = vst.msk [vmem:[%s15926_s12 + $0x73] sm:$0x1] %vm9621_vm13, %v9811_v13  ;;  %v9678_v63 = vcombine.high %v9668_v62, %v9668_v62  ;;  %v9504_v49 = vadd.f32 %v15905_v24, %v9503_v10  ;;  %v9961_v32 = vcombine.high %v9553_v5, %v9553_v5 }
 0x74c   : > { %9689 = vst.msk [vmem:[%s15926_s12 + $0x11] sm:$0x1] %vm9621_vm13, %v9668_v62  ;;  %9690 = vst.msk [vmem:[%s15926_s12 + $0x21] sm:$0x1] %vm9621_vm13, %v9676_v8  ;;  %v9968_v28 = vrot.slane %v9553_v5, %v16603_v48  ;;  %v9551_v50 = vadd.f32 %v9501_v17, %v16607_v23  ;;  %v9554_v58 = vadd.f32 %v9512_v9, %v16608_v55 }
 0x74d   : > { %9692 = vst.msk [vmem:[%s15926_s12 + $0x41] sm:$0x1] %vm9621_vm13, %v9661_v61  ;;  %v9679_v31 = vcombine.high %v9675_v60, %v9675_v60  ;;  %9691 = vst.msk [vmem:[%s15926_s12 + $0x31] sm:$0x1] %vm9621_vm13, %v9678_v63  ;;  %v9552_v34 = vadd.f32 %v9504_v49, %v16609_v41  ;;  %v9975_v30 = vrot.slane %v9961_v32, %v16603_v48  ;;  %v16610_v32 = vld [vmem:[#allocation18_spill] sm:$0xff] }
 0x74e   : > { %9693 = vst.msk [vmem:[%s15926_s12 + $0x51] sm:$0x1] %vm9621_vm13, %v9675_v60  ;;  %9694 = vst.msk [vmem:[%s15926_s12 + $0x61] sm:$0x1] %vm9621_vm13, %v9677_v47  ;;  %v9976_v42 = vcombine.high %v9968_v28, %v9968_v28  ;;  %v9984_v0 = vrot.slane %v9968_v28, %v16603_v48  ;;  %v9829_v11 = vcombine.high %v9551_v50, %v9551_v50 }
 0x74f   : > { %9695 = vst.msk [vmem:[%s15926_s12 + $0x71] sm:$0x1] %vm9621_vm13, %v9679_v31  ;;  %v9836_v16 = vrot.slane %v9551_v50, %v16603_v48  ;;  %v10027_v4 = vcombine.high %v9554_v58, %v9554_v58  ;;  %v10034_v7 = vrot.slane %v9554_v58, %v16603_v48  ;;  %v9895_v20 = vcombine.high %v9552_v34, %v9552_v34  ;;  %v16611_v58 = vld [vmem:[#allocation16_spill] sm:$0xff] }
 0x750   : > { %v9977_v43 = vcombine.high %v9975_v30, %v9975_v30  ;;  %v9991_v27 = vrot.slane %v9975_v30, %v16603_v48  ;;  %v9998_v26 = vrot.slane %v9976_v42, %v16603_v48  ;;  %v10006_v45 = vcombine.high %v9984_v0, %v9984_v0  ;;  %10018 = vst.msk [vmem:[%s15926_s12 + $0x6] sm:$0x1] %vm9621_vm13, %v9984_v0  ;;  %v16612_v0 = vld [vmem:[#allocation19_spill] sm:$0xff] }
 0x751   : > { %v9843_v38 = vrot.slane %v9829_v11, %v16603_v48  ;;  %v9844_v2 = vcombine.high %v9836_v16, %v9836_v16  ;;  %v9852_v25 = vrot.slane %v9836_v16, %v16603_v48  ;;  %v10041_v35 = vrot.slane %v10027_v4, %v16603_v48 }
 0x752   : > { %v10005_v51 = vrot.slane %v9977_v43, %v16603_v48  ;;  %v10007_v52 = vcombine.high %v9991_v27, %v9991_v27  ;;  %v10008_v33 = vcombine.high %v9998_v26, %v9998_v26  ;;  %10019 = vst.msk [vmem:[%s15926_s12 + $0x16] sm:$0x1] %vm9621_vm13, %v9998_v26  ;;  %10020 = vst.msk [vmem:[%s15926_s12 + $0x26] sm:$0x1] %vm9621_vm13, %v10006_v45 }
 0x753   : > { %10022 = vst.msk [vmem:[%s15926_s12 + $0x46] sm:$0x1] %vm9621_vm13, %v9991_v27  ;;  %v10042_v21 = vcombine.high %v10034_v7, %v10034_v7  ;;  %v9845_v44 = vcombine.high %v9843_v38, %v9843_v38  ;;  %v9859_v22 = vrot.slane %v9843_v38, %v16603_v48  ;;  %v9866_v46 = vrot.slane %v9844_v2, %v16603_v48 }
 0x754   : > { %v9874_v1 = vcombine.high %v9852_v25, %v9852_v25  ;;  %9886 = vst.msk [vmem:[%s15926_s12 + $0x4] sm:$0x1] %vm9621_vm13, %v9852_v25  ;;  %v10009_v29 = vcombine.high %v10005_v51, %v10005_v51  ;;  %10021 = vst.msk [vmem:[%s15926_s12 + $0x36] sm:$0x1] %vm9621_vm13, %v10008_v33  ;;  %v10043_v14 = vcombine.high %v10041_v35, %v10041_v35 }
 0x755   : > { %10023 = vst.msk [vmem:[%s15926_s12 + $0x56] sm:$0x1] %vm9621_vm13, %v10005_v51  ;;  %10024 = vst.msk [vmem:[%s15926_s12 + $0x66] sm:$0x1] %vm9621_vm13, %v10007_v52  ;;  %v10050_v15 = vrot.slane %v10034_v7, %v16603_v48  ;;  %v10057_v19 = vrot.slane %v10041_v35, %v16603_v48  ;;  %v9873_v12 = vrot.slane %v9845_v44, %v16603_v48  ;;  %v12249_v8 = vpop.f32.mrb[28].mxu0  ;;  %v16613_v7 = vld [vmem:[#allocation17_spill] sm:$0xff] }
 0x756   : > { %v9875_v39 = vcombine.high %v9859_v22, %v9859_v22  ;;  %v9876_v40 = vcombine.high %v9866_v46, %v9866_v46  ;;  %9887 = vst.msk [vmem:[%s15926_s12 + $0x14] sm:$0x1] %vm9621_vm13, %v9866_v46  ;;  %9888 = vst.msk [vmem:[%s15926_s12 + $0x24] sm:$0x1] %vm9621_vm13, %v9874_v1  ;;  %v10064_v53 = vrot.slane %v10042_v21, %v16603_v48  ;;  %v9516_v17 = vpop.f32.mrb[29].mxu0 }
 0x757   : > { %9890 = vst.msk [vmem:[%s15926_s12 + $0x44] sm:$0x1] %vm9621_vm13, %v9859_v22  ;;  %10025 = vst.msk [vmem:[%s15926_s12 + $0x76] sm:$0x1] %vm9621_vm13, %v10009_v29  ;;  %v10071_v37 = vrot.slane %v10043_v14, %v16603_v48  ;;  %v10072_v59 = vcombine.high %v10050_v15, %v10050_v15  ;;  %v10073_v36 = vcombine.high %v10057_v19, %v10057_v19  ;;  %v12250_v47 = vpop.f32.mrb[30].mxu0 }
 0x758   : > { %10084 = vst.msk [vmem:[%s15926_s12 + $0x7] sm:$0x1] %vm9621_vm13, %v10050_v15  ;;  %10088 = vst.msk [vmem:[%s15926_s12 + $0x47] sm:$0x1] %vm9621_vm13, %v10057_v19  ;;  %v9902_v56 = vrot.slane %v9552_v34, %v16603_v48  ;;  %v9877_v13 = vcombine.high %v9873_v12, %v9873_v12  ;;  %v10074_v54 = vcombine.high %v10064_v53, %v10064_v53  ;;  %v9519_v50 = vpop.f32.mrb[31].mxu0 }
 0x759   : > { %9889 = vst.msk [vmem:[%s15926_s12 + $0x34] sm:$0x1] %vm9621_vm13, %v9876_v40  ;;  %9891 = vst.msk [vmem:[%s15926_s12 + $0x54] sm:$0x1] %vm9621_vm13, %v9873_v12  ;;  %v9909_v57 = vrot.slane %v9895_v20, %v16603_v48  ;;  %v10075_v6 = vcombine.high %v10071_v37, %v10071_v37  ;;  %v9525_v5 = vadd.f32 %v12249_v8, %v15905_v24 }
 0x75a   : > { %9892 = vst.msk [vmem:[%s15926_s12 + $0x64] sm:$0x1] %vm9621_vm13, %v9875_v39  ;;  %10085 = vst.msk [vmem:[%s15926_s12 + $0x17] sm:$0x1] %vm9621_vm13, %v10064_v53  ;;  %v9910_v61 = vcombine.high %v9902_v56, %v9902_v56  ;;  %v9918_v62 = vrot.slane %v9902_v56, %v16603_v48  ;;  %v9517_v60 = vadd.f32 %v15905_v24, %v9516_v17 }
 0x75b   : > { %10086 = vst.msk [vmem:[%s15926_s12 + $0x27] sm:$0x1] %vm9621_vm13, %v10072_v59  ;;  %10089 = vst.msk [vmem:[%s15926_s12 + $0x57] sm:$0x1] %vm9621_vm13, %v10071_v37  ;;  %v9911_v18 = vcombine.high %v9909_v57, %v9909_v57  ;;  %v9925_v3 = vrot.slane %v9909_v57, %v16603_v48  ;;  %v9557_v28 = vadd.f32 %v9525_v5, %v16610_v32 }
 0x75c   : > { %10090 = vst.msk [vmem:[%s15926_s12 + $0x67] sm:$0x1] %vm9621_vm13, %v10073_v36  ;;  %9893 = vst.msk [vmem:[%s15926_s12 + $0x74] sm:$0x1] %vm9621_vm13, %v9877_v13  ;;  %v9932_v9 = vrot.slane %v9910_v61, %v16603_v48  ;;  %v9940_v10 = vcombine.high %v9918_v62, %v9918_v62  ;;  %v9528_v23 = vadd.f32 %v12250_v47, %v15905_v24 }
 0x75d   : > { %10087 = vst.msk [vmem:[%s15926_s12 + $0x37] sm:$0x1] %vm9621_vm13, %v10074_v54  ;;  %10091 = vst.msk [vmem:[%s15926_s12 + $0x77] sm:$0x1] %vm9621_vm13, %v10075_v6  ;;  %v9939_v63 = vrot.slane %v9911_v18, %v16603_v48  ;;  %v9941_v49 = vcombine.high %v9925_v3, %v9925_v3  ;;  %v9555_v31 = vadd.f32 %v9517_v60, %v16611_v58  ;;  %v16614_v58 = vld [vmem:[#allocation22_spill] sm:$0xff] }
 0x75e   : > { %9952 = vst.msk [vmem:[%s15926_s12 + $0x5] sm:$0x1] %vm9621_vm13, %v9918_v62  ;;  %9956 = vst.msk [vmem:[%s15926_s12 + $0x45] sm:$0x1] %vm9621_vm13, %v9925_v3  ;;  %v9942_v55 = vcombine.high %v9932_v9, %v9932_v9  ;;  %v9520_v41 = vadd.f32 %v15905_v24, %v9519_v50  ;;  %v10225_v30 = vcombine.high %v9557_v28, %v9557_v28 }
 0x75f   : > { %9953 = vst.msk [vmem:[%s15926_s12 + $0x15] sm:$0x1] %vm9621_vm13, %v9932_v9  ;;  %9954 = vst.msk [vmem:[%s15926_s12 + $0x25] sm:$0x1] %vm9621_vm13, %v9940_v10  ;;  %v9943_v34 = vcombine.high %v9939_v63, %v9939_v63  ;;  %v10232_v42 = vrot.slane %v9557_v28, %v16603_v48  ;;  %v9558_v11 = vadd.f32 %v9528_v23, %v16612_v0 }
 0x760   : > { %9957 = vst.msk [vmem:[%s15926_s12 + $0x55] sm:$0x1] %vm9621_vm13, %v9939_v63  ;;  %9958 = vst.msk [vmem:[%s15926_s12 + $0x65] sm:$0x1] %vm9621_vm13, %v9941_v49  ;;  %v10093_v16 = vcombine.high %v9555_v31, %v9555_v31  ;;  %v10100_v4 = vrot.slane %v9555_v31, %v16603_v48  ;;  %v9556_v20 = vadd.f32 %v9520_v41, %v16613_v7  ;;  %v16615_v41 = vld [vmem:[#allocation20_spill] sm:$0xff] }
 0x761   : > { %9955 = vst.msk [vmem:[%s15926_s12 + $0x35] sm:$0x1] %vm9621_vm13, %v9942_v55  ;;  %9959 = vst.msk [vmem:[%s15926_s12 + $0x75] sm:$0x1] %vm9621_vm13, %v9943_v34  ;;  %v10239_v43 = vrot.slane %v10225_v30, %v16603_v48  ;;  %v10240_v27 = vcombine.high %v10232_v42, %v10232_v42  ;;  %v10248_v26 = vrot.slane %v10232_v42, %v16603_v48 }
 0x762   : > { %v10291_v45 = vcombine.high %v9558_v11, %v9558_v11  ;;  %v10107_v38 = vrot.slane %v10093_v16, %v16603_v48  ;;  %v10108_v2 = vcombine.high %v10100_v4, %v10100_v4  ;;  %v10116_v25 = vrot.slane %v10100_v4, %v16603_v48 }
 0x763   : > { %v10298_v35 = vrot.slane %v9558_v11, %v16603_v48  ;;  %v10241_v51 = vcombine.high %v10239_v43, %v10239_v43  ;;  %v10255_v52 = vrot.slane %v10239_v43, %v16603_v48  ;;  %v10262_v33 = vrot.slane %v10240_v27, %v16603_v48  ;;  %10282 = vst.msk [vmem:[%s15926_s12 + $0xa] sm:$0x1] %vm9621_vm13, %v10248_v26 }
 0x764   : > { %v10270_v21 = vcombine.high %v10248_v26, %v10248_v26  ;;  %v10109_v44 = vcombine.high %v10107_v38, %v10107_v38  ;;  %v10123_v22 = vrot.slane %v10107_v38, %v16603_v48  ;;  %v10130_v46 = vrot.slane %v10108_v2, %v16603_v48  ;;  %10150 = vst.msk [vmem:[%s15926_s12 + $0x8] sm:$0x1] %vm9621_vm13, %v10116_v25 }
 0x765   : > { %v10138_v1 = vcombine.high %v10116_v25, %v10116_v25  ;;  %v10269_v29 = vrot.slane %v10241_v51, %v16603_v48  ;;  %v10271_v14 = vcombine.high %v10255_v52, %v10255_v52  ;;  %v10272_v15 = vcombine.high %v10262_v33, %v10262_v33  ;;  %10283 = vst.msk [vmem:[%s15926_s12 + $0x1a] sm:$0x1] %vm9621_vm13, %v10262_v33  ;;  %v12253_v18 = vpop.f32.mrb[32].mxu0 }
 0x766   : > { %10284 = vst.msk [vmem:[%s15926_s12 + $0x2a] sm:$0x1] %vm9621_vm13, %v10270_v21  ;;  %10286 = vst.msk [vmem:[%s15926_s12 + $0x4a] sm:$0x1] %vm9621_vm13, %v10255_v52  ;;  %v10305_v19 = vrot.slane %v10291_v45, %v16603_v48  ;;  %v10137_v12 = vrot.slane %v10109_v44, %v16603_v48  ;;  %v10139_v39 = vcombine.high %v10123_v22, %v10123_v22  ;;  %v9532_v10 = vpop.f32.mrb[33].mxu0  ;;  %v16617_v45 = vld [vmem:[#allocation21_spill] sm:$0xff] }
 0x767   : > { %v10140_v40 = vcombine.high %v10130_v46, %v10130_v46  ;;  %10151 = vst.msk [vmem:[%s15926_s12 + $0x18] sm:$0x1] %vm9621_vm13, %v10130_v46  ;;  %10152 = vst.msk [vmem:[%s15926_s12 + $0x28] sm:$0x1] %vm9621_vm13, %v10138_v1  ;;  %v10306_v53 = vcombine.high %v10298_v35, %v10298_v35  ;;  %v10273_v37 = vcombine.high %v10269_v29, %v10269_v29  ;;  %v12254_v49 = vpop.f32.mrb[34].mxu0 }
 0x768   : > { %10154 = vst.msk [vmem:[%s15926_s12 + $0x48] sm:$0x1] %vm9621_vm13, %v10123_v22  ;;  %10285 = vst.msk [vmem:[%s15926_s12 + $0x3a] sm:$0x1] %vm9621_vm13, %v10272_v15  ;;  %v10307_v59 = vcombine.high %v10305_v19, %v10305_v19  ;;  %v10314_v36 = vrot.slane %v10298_v35, %v16603_v48  ;;  %v10321_v56 = vrot.slane %v10305_v19, %v16603_v48  ;;  %v9535_v55 = vpop.f32.mrb[35].mxu0 }
 0x769   : > { %10287 = vst.msk [vmem:[%s15926_s12 + $0x5a] sm:$0x1] %vm9621_vm13, %v10269_v29  ;;  %10288 = vst.msk [vmem:[%s15926_s12 + $0x6a] sm:$0x1] %vm9621_vm13, %v10271_v14  ;;  %v10141_v13 = vcombine.high %v10137_v12, %v10137_v12  ;;  %v10328_v54 = vrot.slane %v10306_v53, %v16603_v48  ;;  %v10159_v57 = vcombine.high %v9556_v20, %v9556_v20 }
 0x76a   : > { %10153 = vst.msk [vmem:[%s15926_s12 + $0x38] sm:$0x1] %vm9621_vm13, %v10140_v40  ;;  %10155 = vst.msk [vmem:[%s15926_s12 + $0x58] sm:$0x1] %vm9621_vm13, %v10137_v12  ;;  %v10166_v6 = vrot.slane %v9556_v20, %v16603_v48  ;;  %v10335_v61 = vrot.slane %v10307_v59, %v16603_v48  ;;  %v10336_v62 = vcombine.high %v10314_v36, %v10314_v36 }
 0x76b   : > { %10156 = vst.msk [vmem:[%s15926_s12 + $0x68] sm:$0x1] %vm9621_vm13, %v10139_v39  ;;  %10289 = vst.msk [vmem:[%s15926_s12 + $0x7a] sm:$0x1] %vm9621_vm13, %v10273_v37  ;;  %v10337_v8 = vcombine.high %v10321_v56, %v10321_v56  ;;  %v10338_v3 = vcombine.high %v10328_v54, %v10328_v54  ;;  %v10173_v5 = vrot.slane %v10159_v57, %v16603_v48 }
 0x76c   : > { %10348 = vst.msk [vmem:[%s15926_s12 + $0xb] sm:$0x1] %vm9621_vm13, %v10314_v36  ;;  %10352 = vst.msk [vmem:[%s15926_s12 + $0x4b] sm:$0x1] %vm9621_vm13, %v10321_v56  ;;  %v10174_v17 = vcombine.high %v10166_v6, %v10166_v6  ;;  %v10182_v9 = vrot.slane %v10166_v6, %v16603_v48  ;;  %v10339_v60 = vcombine.high %v10335_v61, %v10335_v61 }
 0x76d   : > { %10157 = vst.msk [vmem:[%s15926_s12 + $0x78] sm:$0x1] %vm9621_vm13, %v10141_v13  ;;  %10349 = vst.msk [vmem:[%s15926_s12 + $0x1b] sm:$0x1] %vm9621_vm13, %v10328_v54  ;;  %v9541_v47 = vadd.f32 %v12253_v18, %v15905_v24  ;;  %v9533_v63 = vadd.f32 %v15905_v24, %v9532_v10  ;;  %v10175_v32 = vcombine.high %v10173_v5, %v10173_v5 }
 0x76e   : > { %10350 = vst.msk [vmem:[%s15926_s12 + $0x2b] sm:$0x1] %vm9621_vm13, %v10336_v62  ;;  %10353 = vst.msk [vmem:[%s15926_s12 + $0x5b] sm:$0x1] %vm9621_vm13, %v10335_v61  ;;  %v10189_v28 = vrot.slane %v10173_v5, %v16603_v48  ;;  %v10196_v23 = vrot.slane %v10174_v17, %v16603_v48  ;;  %v10204_v50 = vcombine.high %v10182_v9, %v10182_v9 }
 0x76f   : > { %10354 = vst.msk [vmem:[%s15926_s12 + $0x6b] sm:$0x1] %vm9621_vm13, %v10337_v8  ;;  %10351 = vst.msk [vmem:[%s15926_s12 + $0x3b] sm:$0x1] %vm9621_vm13, %v10338_v3  ;;  %v9561_v31 = vadd.f32 %v9541_v47, %v16614_v58  ;;  %v9559_v34 = vadd.f32 %v9533_v63, %v16615_v41  ;;  %v9544_v30 = vadd.f32 %v12254_v49, %v15905_v24 }
 0x770   : > { %10216 = vst.msk [vmem:[%s15926_s12 + $0x9] sm:$0x1] %vm9621_vm13, %v10182_v9  ;;  %10355 = vst.msk [vmem:[%s15926_s12 + $0x7b] sm:$0x1] %vm9621_vm13, %v10339_v60  ;;  %v9536_v42 = vadd.f32 %v15905_v24, %v9535_v55  ;;  %v10203_v0 = vrot.slane %v10175_v32, %v16603_v48  ;;  %v10205_v11 = vcombine.high %v10189_v28, %v10189_v28  ;;  %v16616_v24 = vld [vmem:[#allocation23_spill] sm:$0xff] }
 0x771   : > { %v10206_v16 = vcombine.high %v10196_v23, %v10196_v23  ;;  %10217 = vst.msk [vmem:[%s15926_s12 + $0x19] sm:$0x1] %vm9621_vm13, %v10196_v23  ;;  %10218 = vst.msk [vmem:[%s15926_s12 + $0x29] sm:$0x1] %vm9621_vm13, %v10204_v50  ;;  %v10489_v4 = vcombine.high %v9561_v31, %v9561_v31  ;;  %v10496_v7 = vrot.slane %v9561_v31, %v16603_v48 }
 0x772   : > { %10220 = vst.msk [vmem:[%s15926_s12 + $0x49] sm:$0x1] %vm9621_vm13, %v10189_v28  ;;  %v10357_v20 = vcombine.high %v9559_v34, %v9559_v34  ;;  %v10364_v43 = vrot.slane %v9559_v34, %v16603_v48  ;;  %v10207_v27 = vcombine.high %v10203_v0, %v10203_v0  ;;  %10221 = vst.msk [vmem:[%s15926_s12 + $0x59] sm:$0x1] %vm9621_vm13, %v10203_v0 }
 0x773   : > { %10219 = vst.msk [vmem:[%s15926_s12 + $0x39] sm:$0x1] %vm9621_vm13, %v10206_v16  ;;  %10222 = vst.msk [vmem:[%s15926_s12 + $0x69] sm:$0x1] %vm9621_vm13, %v10205_v11  ;;  %v9562_v26 = vadd.f32 %v9544_v30, %v16616_v24  ;;  %v9560_v38 = vadd.f32 %v9536_v42, %v16617_v45  ;;  %v10503_v2 = vrot.slane %v10489_v4, %v16603_v48 }
 0x774   : > { %v10504_v25 = vcombine.high %v10496_v7, %v10496_v7  ;;  %v10512_v35 = vrot.slane %v10496_v7, %v16603_v48  ;;  %v10371_v51 = vrot.slane %v10357_v20, %v16603_v48  ;;  %10223 = vst.msk [vmem:[%s15926_s12 + $0x79] sm:$0x1] %vm9621_vm13, %v10207_v27  ;;  %v10372_v52 = vcombine.high %v10364_v43, %v10364_v43 }
 0x775   : > { %v10380_v33 = vrot.slane %v10364_v43, %v16603_v48  ;;  %v10555_v21 = vcombine.high %v9562_v26, %v9562_v26  ;;  %v10562_v44 = vrot.slane %v9562_v26, %v16603_v48  ;;  %v10505_v22 = vcombine.high %v10503_v2, %v10503_v2 }
 0x776   : > { %v10519_v46 = vrot.slane %v10503_v2, %v16603_v48  ;;  %v10526_v1 = vrot.slane %v10504_v25, %v16603_v48  ;;  %v10534_v29 = vcombine.high %v10512_v35, %v10512_v35  ;;  %10546 = vst.msk [vmem:[%s15926_s12 + $0xe] sm:$0x1] %vm9621_vm13, %v10512_v35  ;;  %v10373_v14 = vcombine.high %v10371_v51, %v10371_v51 }
 0x777   : > { %v10387_v15 = vrot.slane %v10371_v51, %v16603_v48  ;;  %v10394_v19 = vrot.slane %v10372_v52, %v16603_v48  ;;  %v10402_v12 = vcombine.high %v10380_v33, %v10380_v33  ;;  %10414 = vst.msk [vmem:[%s15926_s12 + $0xc] sm:$0x1] %vm9621_vm13, %v10380_v33  ;;  %v10533_v39 = vrot.slane %v10505_v22, %v16603_v48 }
 0x778   : > { %v10535_v40 = vcombine.high %v10519_v46, %v10519_v46  ;;  %v10536_v53 = vcombine.high %v10526_v1, %v10526_v1  ;;  %10547 = vst.msk [vmem:[%s15926_s12 + $0x1e] sm:$0x1] %vm9621_vm13, %v10526_v1  ;;  %10548 = vst.msk [vmem:[%s15926_s12 + $0x2e] sm:$0x1] %vm9621_vm13, %v10534_v29  ;;  %v10569_v37 = vrot.slane %v10555_v21, %v16603_v48 }
 0x779   : > { %10550 = vst.msk [vmem:[%s15926_s12 + $0x4e] sm:$0x1] %vm9621_vm13, %v10519_v46  ;;  %v10401_v59 = vrot.slane %v10373_v14, %v16603_v48  ;;  %v10403_v36 = vcombine.high %v10387_v15, %v10387_v15  ;;  %v10404_v56 = vcombine.high %v10394_v19, %v10394_v19  ;;  %10415 = vst.msk [vmem:[%s15926_s12 + $0x1c] sm:$0x1] %vm9621_vm13, %v10394_v19 }
 0x77a   : > { %10416 = vst.msk [vmem:[%s15926_s12 + $0x2c] sm:$0x1] %vm9621_vm13, %v10402_v12  ;;  %10418 = vst.msk [vmem:[%s15926_s12 + $0x4c] sm:$0x1] %vm9621_vm13, %v10387_v15  ;;  %v10570_v13 = vcombine.high %v10562_v44, %v10562_v44  ;;  %v10537_v54 = vcombine.high %v10533_v39, %v10533_v39  ;;  %v10571_v57 = vcombine.high %v10569_v37, %v10569_v37 }
 0x77b   : > { %10549 = vst.msk [vmem:[%s15926_s12 + $0x3e] sm:$0x1] %vm9621_vm13, %v10536_v53  ;;  %10551 = vst.msk [vmem:[%s15926_s12 + $0x5e] sm:$0x1] %vm9621_vm13, %v10533_v39  ;;  %v10578_v6 = vrot.slane %v10562_v44, %v16603_v48  ;;  %v10585_v61 = vrot.slane %v10569_v37, %v16603_v48  ;;  %v10405_v62 = vcombine.high %v10401_v59, %v10401_v59 }
 0x77c   : > { %10552 = vst.msk [vmem:[%s15926_s12 + $0x6e] sm:$0x1] %vm9621_vm13, %v10535_v40  ;;  %10417 = vst.msk [vmem:[%s15926_s12 + $0x3c] sm:$0x1] %vm9621_vm13, %v10404_v56  ;;  %v10592_v8 = vrot.slane %v10570_v13, %v16603_v48  ;;  %v10423_v18 = vcombine.high %v9560_v38, %v9560_v38  ;;  %v10430_v3 = vrot.slane %v9560_v38, %v16603_v48 }
 0x77d   : > { %10419 = vst.msk [vmem:[%s15926_s12 + $0x5c] sm:$0x1] %vm9621_vm13, %v10401_v59  ;;  %10420 = vst.msk [vmem:[%s15926_s12 + $0x6c] sm:$0x1] %vm9621_vm13, %v10403_v36  ;;  %v10599_v5 = vrot.slane %v10571_v57, %v16603_v48  ;;  %v10600_v17 = vcombine.high %v10578_v6, %v10578_v6  ;;  %v10601_v9 = vcombine.high %v10585_v61, %v10585_v61 }
 0x77e   : > { %10553 = vst.msk [vmem:[%s15926_s12 + $0x7e] sm:$0x1] %vm9621_vm13, %v10537_v54  ;;  %10612 = vst.msk [vmem:[%s15926_s12 + $0xf] sm:$0x1] %vm9621_vm13, %v10578_v6  ;;  %v10602_v10 = vcombine.high %v10592_v8, %v10592_v8  ;;  %v10437_v60 = vrot.slane %v10423_v18, %v16603_v48  ;;  %v10438_v47 = vcombine.high %v10430_v3, %v10430_v3 }
 0x77f   : > { %10616 = vst.msk [vmem:[%s15926_s12 + $0x4f] sm:$0x1] %vm9621_vm13, %v10585_v61  ;;  %10421 = vst.msk [vmem:[%s15926_s12 + $0x7c] sm:$0x1] %vm9621_vm13, %v10405_v62  ;;  %v10446_v63 = vrot.slane %v10430_v3, %v16603_v48  ;;  %v10603_v49 = vcombine.high %v10599_v5, %v10599_v5 }
 0x780   : > { %10613 = vst.msk [vmem:[%s15926_s12 + $0x1f] sm:$0x1] %vm9621_vm13, %v10592_v8  ;;  %10614 = vst.msk [vmem:[%s15926_s12 + $0x2f] sm:$0x1] %vm9621_vm13, %v10600_v17  ;;  %v10439_v32 = vcombine.high %v10437_v60, %v10437_v60  ;;  %v10453_v28 = vrot.slane %v10437_v60, %v16603_v48  ;;  %v10460_v23 = vrot.slane %v10438_v47, %v16603_v48 }
 0x781   : > { %10617 = vst.msk [vmem:[%s15926_s12 + $0x5f] sm:$0x1] %vm9621_vm13, %v10599_v5  ;;  %10618 = vst.msk [vmem:[%s15926_s12 + $0x6f] sm:$0x1] %vm9621_vm13, %v10601_v9  ;;  %v10468_v50 = vcombine.high %v10446_v63, %v10446_v63 }
 0x782   : > { %10615 = vst.msk [vmem:[%s15926_s12 + $0x3f] sm:$0x1] %vm9621_vm13, %v10602_v10  ;;  %10480 = vst.msk [vmem:[%s15926_s12 + $0xd] sm:$0x1] %vm9621_vm13, %v10446_v63  ;;  %v10467_v55 = vrot.slane %v10439_v32, %v16603_v48  ;;  %v10469_v58 = vcombine.high %v10453_v28, %v10453_v28  ;;  %v10470_v31 = vcombine.high %v10460_v23, %v10460_v23 }
 0x783   : > { %10619 = vst.msk [vmem:[%s15926_s12 + $0x7f] sm:$0x1] %vm9621_vm13, %v10603_v49  ;;  %10481 = vst.msk [vmem:[%s15926_s12 + $0x1d] sm:$0x1] %vm9621_vm13, %v10460_v23 }
 0x784   : > { %10482 = vst.msk [vmem:[%s15926_s12 + $0x2d] sm:$0x1] %vm9621_vm13, %v10468_v50  ;;  %10484 = vst.msk [vmem:[%s15926_s12 + $0x4d] sm:$0x1] %vm9621_vm13, %v10453_v28  ;;  %v10471_v48 = vcombine.high %v10467_v55, %v10467_v55 }
 0x785   : > { %10483 = vst.msk [vmem:[%s15926_s12 + $0x3d] sm:$0x1] %vm9621_vm13, %v10470_v31  ;;  %10485 = vst.msk [vmem:[%s15926_s12 + $0x5d] sm:$0x1] %vm9621_vm13, %v10467_v55 }
 0x786   : > { %10486 = vst.msk [vmem:[%s15926_s12 + $0x6d] sm:$0x1] %vm9621_vm13, %v10469_v58  ;;  %10487 = vst.msk [vmem:[%s15926_s12 + $0x7d] sm:$0x1] %vm9621_vm13, %v10471_v48 }
 0x787   : > { %12747 = shalt.err (!%p12744_p4)
}
 0x788   : > { %s12748_s24 = scalar_lea.hbm %s16292_s26, 2048  ;;  %s12752_s16 = scalar_lea.hbm %s16359_s8, 4096 }
 0x789   : > { %p12749_p7 = scmp.ne.s32.totalorder %s16292_s26, %s12748_s24  ;;  %p12753_p1 = scmp.lt.u32.totalorder %s16292_s26, %s16359_s8 }
 0x78a   : > { %p12754_p3 = scmp.lt.u32.totalorder %s12752_s16, %s12748_s24  ;;  %p12756_p9 = scmp.lt.u32.totalorder %s12748_s24, %s16292_s26 }
 0x78b   : > { %p12750_p10 = pnand %p12749_p7, %p16618_p11 }
 0x78c   : > { %p12755_p8 = por %p12754_p3, %p12753_p1 }
 0x78d   : > { %p12751_p12 = pneg %p12750_p10 }
 0x78e   : > { %p12757_p0 = por %p12756_p9, %p12755_p8 }
 0x790   : > { %p12758_p6 = pnand %p12757_p0, %p12751_p12 }
 0x792   : > { %12761 = shalt.err (!%p12758_p6)
}
 0x793   : > { %s12829_s23 = smov 128   ;;  %s12830_s22 = smov 8  }
 0x794   : > { %12261 = dma.vmem_to_hbm [thread:$0]  (%p16618_p11), %s16294_s14, 2048, %s16292_s26, %s10621_s30, %s12829_s23, %s12829_s23, %s12830_s22  }
 0x795 PF: > { %s10651_s17 = sand.u32 1, %s12796_s27   ;;  %p16619_p13 = scmp.ne.s32.totalorder %s16438_s20, 0 }
 0x796   : > { %p16620_p2 = scmp.ge.s32.totalorder %s12816_s10, 2  ;;  %s10652_s24 = scalar_lea.sflag [#allocation4], %s10651_s17 }
 0x798   : > { %p12268_p5 = pnand %p16620_p2, %p16619_p13 }
 0x79a   : > { %12791 = dma.done.wait (!%p12268_p5), %s10652_s24, 2048  }
 0x79b   : > { %12793 = vsyncadd (!%p12268_p5), %s10652_s24, 4294965248  ;;  %s24_s10 = sadd.s32 1, %s12816_s10   ;;  %s16621_s27 = smov %s12800_s28 }
 0x79c   : > { %p21_p4 = scmp.ge.s32.totalorder %s24_s10, 4   ;;  %s16622_s28 = smov %s12804_s29 }
 0x79d   : > { %s16623_s29 = smov %s12932_s19  ;;  %s16624_s30 = smov %s12812_s9 }
 0x79e   : > { %s16625_s9 = smov %s16627_s13  ;;  %23 = sbr.rel (!%p21_p4) target bundleno = 6 (0x6), region = 100 }
 0x7a5   :  { %10657 = vsyncpa [#allocation3], 1 }
 0x7a6   :  { %10659 = vsyncpa [#allocation3 + $0x1], 1 }
 0x7a7   :  { %10660 = vsyncpa [#allocation4], 1 }
 0x7a8   :  { %10662 = vsyncpa [#allocation4 + $0x1], 1 }

</bundles_post_ra>
